<compile_context>
chip_gen: v6e
topology: v6e:2x2x1
jax: 0.10.0
libtpu: 0.0.40
codegen_flags: <defaults>
</compile_context>

<pallas_src>
import math

import jax
import jax.numpy as jnp
from jax.experimental import pallas as pl
from jax.experimental.pallas import tpu as pltpu

BN_EPS = 1e-5
_VMEM_LIMIT = 48 * 1024 * 1024  # < 64 MiB physical on v7x, plenty on v5e/v6e


# --------------------------------------------------------------------------
# tile selection
# --------------------------------------------------------------------------

def _pick_tile_n(n_points, cap=1024):
    """Largest divisor of N that is a multiple of 16 (or 8) and <= cap."""
    step = 16 if n_points % 16 == 0 else 8
    assert n_points % step == 0, "N (points per cloud) must be a multiple of 8"
    best = step
    for cand in range(step, min(n_points, cap) + 1, step):
        if n_points % cand == 0:
            best = cand
    return best


# --------------------------------------------------------------------------
# kernel factories (static python flags pick the variant; no dead traced code)
# --------------------------------------------------------------------------

def _make_stats_kernel(with_transform, d_extra):
    """Pass 1: accumulate per-channel [sum; sum of squares] of y = x @ w + b."""

    def kernel(*refs):
        if with_transform:
            x_ref, t_ref, w_ref, b_ref, stat_ref = refs
        else:
            x_ref, w_ref, b_ref, stat_ref = refs
            t_ref = None

        x = x_ref[...]
        if with_transform:
            coords = jnp.dot(x[:, :3], t_ref[0], preferred_element_type=jnp.float32)
            x = jnp.concatenate([coords, x[:, 3:]], axis=1) if d_extra > 0 else coords

        y = jnp.dot(x.astype(jnp.bfloat16), w_ref[...],
                    preferred_element_type=jnp.float32) + b_ref[...]

        @pl.when((pl.program_id(0) == 0) & (pl.program_id(1) == 0))
        def _():
            stat_ref[...] = jnp.zeros_like(stat_ref)

        s = jnp.sum(y, axis=0, keepdims=True)
        ss = jnp.sum(y * y, axis=0, keepdims=True)
        stat_ref[...] += jnp.concatenate([s, ss], axis=0)

    return kernel


def _make_apply_kernel(count, with_transform, d_extra, with_residual, fuse_max):
    """Pass 2: y = x@w+b (recomputed), BN(train stats)+ReLU, optional residual
    x@wr+br, optional per-batch max over the row tile."""
    inv_count = 1.0 / float(count)

    def kernel(*refs):
        refs = list(refs)
        x_ref = refs.pop(0)
        t_ref = refs.pop(0) if with_transform else None
        w_ref = refs.pop(0)
        b_ref = refs.pop(0)
        g_ref = refs.pop(0)
        be_ref = refs.pop(0)
        if with_residual:
            wr_ref = refs.pop(0)
            br_ref = refs.pop(0)
        stat_ref = refs.pop(0)
        o_ref = refs.pop(0)

        x = x_ref[...]
        if with_transform:
            coords = jnp.dot(x[:, :3], t_ref[0], preferred_element_type=jnp.float32)
            x = jnp.concatenate([coords, x[:, 3:]], axis=1) if d_extra > 0 else coords
        xb = x.astype(jnp.bfloat16)

        y = jnp.dot(xb, w_ref[...], preferred_element_type=jnp.float32) + b_ref[...]

        st = stat_ref[...]
        mu = st[0:1, :] * inv_count
        var = jnp.maximum(st[1:2, :] * inv_count - mu * mu, 0.0)
        y = (y - mu) * jax.lax.rsqrt(var + BN_EPS) * g_ref[...] + be_ref[...]
        y = jnp.maximum(y, 0.0)

        if with_residual:
            y = y + jnp.dot(xb, wr_ref[...], preferred_element_type=jnp.float32) + br_ref[...]

        if fuse_max:
            tile_max = jnp.max(y, axis=0, keepdims=True).astype(o_ref.dtype)  # (1, Cout)
            nn = pl.program_id(1)

            @pl.when(nn == 0)
            def _():
                o_ref[0] = tile_max

            @pl.when(nn > 0)
            def _():
                o_ref[0] = jnp.maximum(o_ref[0], tile_max)
        else:
            o_ref[...] = y.astype(o_ref.dtype)

    return kernel


def _stn_head_kernel(g_ref, w1_ref, b1_ref, g1_ref, be1_ref,
                     w2_ref, b2_ref, g2_ref, be2_ref, w3_ref, b3_ref, o_ref):
    """STN head: fc1+bn+relu -> fc2+bn+relu -> fc3, all in one kernel."""

    def lbr(h, w_r, b_r, gm_r, bt_r):
        y = jnp.dot(h.astype(jnp.bfloat16), w_r[...],
                    preferred_element_type=jnp.float32) + b_r[...]
        mu = jnp.mean(y, axis=0, keepdims=True)
        var = jnp.mean((y - mu) ** 2, axis=0, keepdims=True)
        y = (y - mu) * jax.lax.rsqrt(var + BN_EPS) * gm_r[...] + bt_r[...]
        return jnp.maximum(y, 0.0)

    h = lbr(g_ref[...], w1_ref, b1_ref, g1_ref, be1_ref)
    h = lbr(h, w2_ref, b2_ref, g2_ref, be2_ref)
    o_ref[...] = jnp.dot(h.astype(jnp.bfloat16), w3_ref[...],
                         preferred_element_type=jnp.float32) + b3_ref[...]


# --------------------------------------------------------------------------
# layer wrappers
# --------------------------------------------------------------------------

def _conv_block(x_flat, p, *, B, N, tn, trans=None, with_residual=False,
                fuse_max=False, act_dtype=jnp.bfloat16):
    """Conv1d(k=1)+BN(train stats)+ReLU [+conv residual] [+per-batch max],
    computed in two M-tiled passes over (B*N, Cin)."""
    M, D = x_flat.shape
    Cout = p["w"].shape[1]
    n_tiles = N // tn
    with_transform = trans is not None
    d_extra = D - 3 if with_transform else 0

    w = p["w"].astype(jnp.bfloat16)
    b, gamma, beta = p["b"], p["gamma"], p["beta"]

    x_spec = pl.BlockSpec((tn, D), lambda bb, nn, _nt=n_tiles: (bb * _nt + nn, 0))
    t_spec = pl.BlockSpec((1, 3, 3), lambda bb, nn: (bb, 0, 0))
    w_spec = pl.BlockSpec((D, Cout), lambda bb, nn: (0, 0))
    vec_spec = pl.BlockSpec((1, Cout), lambda bb, nn: (0, 0))
    stat_spec = pl.BlockSpec((2, Cout), lambda bb, nn: (0, 0))

    # ---- pass 1: per-channel sum / sum-of-squares over all B*N rows ----
    stats_in = [x_spec] + ([t_spec] if with_transform else []) + [w_spec, vec_spec]
    stats_args = [x_flat] + ([trans] if with_transform else []) + [w, b]
    stats = pl.pallas_call(
        _make_stats_kernel(with_transform, d_extra),
        out_shape=jax.ShapeDtypeStruct((2, Cout), jnp.float32),
        grid=(B, n_tiles),
        in_specs=stats_in,
        out_specs=stat_spec,
        compiler_params=pltpu.CompilerParams(
            dimension_semantics=("arbitrary", "arbitrary"),
            vmem_limit_bytes=_VMEM_LIMIT),
    )(*stats_args)

    # ---- pass 2: normalize / activate / (residual, fused max) ----
    apply_in = [x_spec] + ([t_spec] if with_transform else []) + \
               [w_spec, vec_spec, vec_spec, vec_spec]
    apply_args = [x_flat] + ([trans] if with_transform else []) + [w, b, gamma, beta]
    if with_residual:
        apply_in += [w_spec, vec_spec]
        apply_args += [p["wr"].astype(jnp.bfloat16), p["br"]]
    apply_in += [stat_spec]
    apply_args += [stats]

    if fuse_max:
        # Keep a leading size-1 "row" dim so the output block's last two dims
        # ((1, Cout)) equal the full array dims -> valid TPU tiling.
        out_shape = jax.ShapeDtypeStruct((B, 1, Cout), jnp.float32)
        out_spec = pl.BlockSpec((1, 1, Cout), lambda bb, nn: (bb, 0, 0))
        dims = ("parallel", "arbitrary")
    else:
        out_shape = jax.ShapeDtypeStruct((M, Cout), act_dtype)
        out_spec = pl.BlockSpec((tn, Cout),
                                lambda bb, nn, _nt=n_tiles: (bb * _nt + nn, 0))
        dims = ("parallel", "parallel")

    out = pl.pallas_call(
        _make_apply_kernel(M, with_transform, d_extra, with_residual, fuse_max),
        out_shape=out_shape,
        grid=(B, n_tiles),
        in_specs=apply_in,
        out_specs=out_spec,
        compiler_params=pltpu.CompilerParams(
            dimension_semantics=dims, vmem_limit_bytes=_VMEM_LIMIT),
    )(*apply_args)

    if fuse_max:
        out = out.reshape(B, Cout)
    return out


def _stn_head(g, sp):
    B = g.shape[0]

    def fs(shape):
        nd = len(shape)
        return pl.BlockSpec(shape, lambda i, _nd=nd: (0,) * _nd)

    args = [g,
            sp["fc1"]["w"].astype(jnp.bfloat16), sp["fc1"]["b"],
            sp["fc1"]["gamma"], sp["fc1"]["beta"],
            sp["fc2"]["w"].astype(jnp.bfloat16), sp["fc2"]["b"],
            sp["fc2"]["gamma"], sp["fc2"]["beta"],
            sp["fc3"]["w"].astype(jnp.bfloat16), sp["fc3"]["b"]]
    in_specs = [fs(a.shape) for a in args]
    return pl.pallas_call(
        _stn_head_kernel,
        out_shape=jax.ShapeDtypeStruct((B, 9), jnp.float32),
        grid=(1,),
        in_specs=in_specs,
        out_specs=fs((B, 9)),
        compiler_params=pltpu.CompilerParams(
            dimension_semantics=("arbitrary",), vmem_limit_bytes=_VMEM_LIMIT),
    )(*args)


# --------------------------------------------------------------------------
# parameters
# --------------------------------------------------------------------------

def init_params(key, channel=3):
    keys = iter(jax.random.split(key, 48))

    def lin(cin, cout):
        w = jax.random.normal(next(keys), (cin, cout), jnp.float32) / math.sqrt(cin)
        b = jax.random.normal(next(keys), (1, cout), jnp.float32) * 0.01
        return {"w": w, "b": b}

    def bn(c):
        g = 1.0 + 0.1 * jax.random.normal(next(keys), (1, c), jnp.float32)
        be = 0.1 * jax.random.normal(next(keys), (1, c), jnp.float32)
        return {"gamma": g, "beta": be}

    def resmlp(cin, cout):
        m = lin(cin, cout)
        n = bn(cout)
        r = lin(cin, cout)
        return {**m, **n, "wr": r["w"], "br": r["b"]}

    return {
        "stn": {
            "conv1": {**lin(channel, 64), **bn(64)},
            "conv2": {**lin(64, 128), **bn(128)},
            "conv3": {**lin(128, 1024), **bn(1024)},
            "fc1": {**lin(1024, 512), **bn(512)},
            "fc2": {**lin(512, 256), **bn(256)},
            "fc3": lin(256, 9),
        },
        "conv1": resmlp(channel, 64),
        "conv2": resmlp(64, 128),
        "conv3": resmlp(128, 1024),
    }


# --------------------------------------------------------------------------
# forward
# --------------------------------------------------------------------------

def pointnet_encoder(x, params):
    """x: (B, D, N) float32 (as in the PyTorch module).
    Returns (global_feat (B, 1024), trans (B, 3, 3), trans_feat=None)."""
    B, D, N = x.shape
    tn = _pick_tile_n(N)
    act_dtype = jnp.bfloat16 if tn % 16 == 0 else jnp.float32
    M = B * N

    # TODO(synk): fold this NCW->NWC transpose into the first kernel's index_map.
    xT = jnp.transpose(x, (0, 2, 1)).reshape(M, D)   # (B*N, D), channels on lanes

    # ---- STN3d conv stack (max over points fused into conv3) ----
    sp = params["stn"]
    h = _conv_block(xT, sp["conv1"], B=B, N=N, tn=tn, act_dtype=act_dtype)
    h = _conv_block(h, sp["conv2"], B=B, N=N, tn=tn, act_dtype=act_dtype)
    g = _conv_block(h, sp["conv3"], B=B, N=N, tn=tn, fuse_max=True)   # (B, 1024)

    # ---- STN3d head: fc1 -> fc2 -> fc3 in one kernel ----
    t9 = _stn_head(g, sp)                                             # (B, 9)
    trans = t9.reshape(B, 3, 3) + jnp.eye(3, dtype=jnp.float32)[None]

    # ---- main ResidualMLP stack (3x3 input transform fused into conv1,
    #      max over points fused into conv3) ----
    y = _conv_block(xT, params["conv1"], B=B, N=N, tn=tn, trans=trans,
                    with_residual=True, act_dtype=act_dtype)          # (M, 64)
    y = _conv_block(y, params["conv2"], B=B, N=N, tn=tn,
                    with_residual=True, act_dtype=act_dtype)          # (M, 128)
    gf = _conv_block(y, params["conv3"], B=B, N=N, tn=tn,
                     with_residual=True, fuse_max=True)               # (B, 1024)

    # feature_transform=False -> trans_feat is None; global_feat=True.
    return gf, trans, None


# --------------------------------------------------------------------------
# main
# --------------------------------------------------------------------------

if __name__ == "__main__":
    B, C, N = 2, 3, 16
    key = jax.random.PRNGKey(0)
    kparam, kdata = jax.random.split(key)
    params = init_params(kparam, channel=C)
    x = jax.random.normal(kdata, (B, C, N), jnp.float32)

    fwd = jax.jit(pointnet_encoder)
    out, trans, trans_feat = fwd(x, params)
    jax.block_until_ready((out, trans))

    assert out.shape == (B, 1024) and out.dtype == jnp.float32
    assert trans.shape == (B, 3, 3)
    assert trans_feat is None
    assert bool(jnp.all(jnp.isfinite(out))) and bool(jnp.all(jnp.isfinite(trans)))
    print("KERNEL_OK")
</pallas_src>

<mosaic_0001>
module attributes {stable_mosaic.version = 11 : i64} {
  func.func @kernel(%arg0: i32, %arg1: i32, %arg2: memref<16x3xf32, #tpu.memory_space<vmem>>, %arg3: memref<3x64xbf16, #tpu.memory_space<vmem>>, %arg4: memref<1x64xf32, #tpu.memory_space<vmem>>, %arg5: memref<1x64xf32, #tpu.memory_space<vmem>>, %arg6: memref<1x64xf32, #tpu.memory_space<vmem>>, %arg7: memref<2x64xf32, #tpu.memory_space<vmem>>, %arg8: memref<16x64xbf16, #tpu.memory_space<vmem>>) attributes {dimension_semantics = [#tpu.dimension_semantics<parallel>, #tpu.dimension_semantics<parallel>], iteration_bounds = array<i64: 2, 1>, scalar_prefetch = 0 : i64, scratch_operands = 0 : i64, tpu.core_type = #tpu.core_type<tc>, window_params = [{transform_indices = @transform_0, window_bounds = array<i64: 16, 3>}, {pipeline_mode = #tpu.pipeline_mode<synchronous>, transform_indices = @transform_1, window_bounds = array<i64: 3, 64>}, {pipeline_mode = #tpu.pipeline_mode<synchronous>, transform_indices = @transform_2, window_bounds = array<i64: 1, 64>}, {pipeline_mode = #tpu.pipeline_mode<synchronous>, transform_indices = @transform_3, window_bounds = array<i64: 1, 64>}, {pipeline_mode = #tpu.pipeline_mode<synchronous>, transform_indices = @transform_4, window_bounds = array<i64: 1, 64>}, {pipeline_mode = #tpu.pipeline_mode<synchronous>, transform_indices = @transform_5, window_bounds = array<i64: 2, 64>}, {transform_indices = @transform_6, window_bounds = array<i64: 16, 64>}]} {
    %c0 = arith.constant 0 : index
    %c0_0 = arith.constant 0 : index
    %0 = vector.load %arg2[%c0, %c0_0] : memref<16x3xf32, #tpu.memory_space<vmem>>, vector<16x3xf32>
    %1 = arith.truncf %0 : vector<16x3xf32> to vector<16x3xbf16>
    %c0_1 = arith.constant 0 : index
    %c0_2 = arith.constant 0 : index
    %2 = vector.load %arg3[%c0_1, %c0_2] : memref<3x64xbf16, #tpu.memory_space<vmem>>, vector<3x64xbf16>
    %cst = arith.constant dense<0.000000e+00> : vector<16x64xf32>
    %3 = tpu.matmul %1, %2, %cst {dimension_numbers = #tpu.dot_dimension_numbers<[1], [0], [0], [1], [0, 0, 1, 1], [], []>} : vector<16x3xbf16>, vector<3x64xbf16>, vector<16x64xf32> -> vector<16x64xf32>
    %c0_3 = arith.constant 0 : index
    %c0_4 = arith.constant 0 : index
    %4 = vector.load %arg4[%c0_3, %c0_4] : memref<1x64xf32, #tpu.memory_space<vmem>>, vector<1x64xf32>
    %5 = vector.broadcast %4 : vector<1x64xf32> to vector<16x64xf32>
    %6 = arith.addf %3, %5 : vector<16x64xf32>
    %c0_5 = arith.constant 0 : index
    %c0_6 = arith.constant 0 : index
    %7 = vector.load %arg7[%c0_5, %c0_6] : memref<2x64xf32, #tpu.memory_space<vmem>>, vector<2x64xf32>
    %8 = vector.extract_strided_slice %7 {offsets = [0, 0], sizes = [1, 64], strides = [1, 1]} : vector<2x64xf32> to vector<1x64xf32>
    %cst_7 = arith.constant 3.125000e-02 : f32
    %9 = vector.broadcast %cst_7 : f32 to vector<1x64xf32>
    %10 = arith.mulf %8, %9 : vector<1x64xf32>
    %11 = vector.extract_strided_slice %7 {offsets = [1, 0], sizes = [1, 64], strides = [1, 1]} : vector<2x64xf32> to vector<1x64xf32>
    %cst_8 = arith.constant 3.125000e-02 : f32
    %12 = vector.broadcast %cst_8 : f32 to vector<1x64xf32>
    %13 = arith.mulf %11, %12 : vector<1x64xf32>
    %14 = arith.mulf %10, %10 : vector<1x64xf32>
    %15 = arith.subf %13, %14 : vector<1x64xf32>
    %cst_9 = arith.constant 0.000000e+00 : f32
    %16 = vector.broadcast %cst_9 : f32 to vector<1x64xf32>
    %17 = arith.maximumf %15, %16 : vector<1x64xf32>
    %18 = vector.broadcast %10 : vector<1x64xf32> to vector<16x64xf32>
    %19 = arith.subf %6, %18 : vector<16x64xf32>
    %cst_10 = arith.constant 9.99999974E-6 : f32
    %20 = vector.broadcast %cst_10 : f32 to vector<1x64xf32>
    %21 = arith.addf %17, %20 : vector<1x64xf32>
    %22 = math.rsqrt %21 : vector<1x64xf32>
    %23 = vector.broadcast %22 : vector<1x64xf32> to vector<16x64xf32>
    %24 = arith.mulf %19, %23 : vector<16x64xf32>
    %c0_11 = arith.constant 0 : index
    %c0_12 = arith.constant 0 : index
    %25 = vector.load %arg5[%c0_11, %c0_12] : memref<1x64xf32, #tpu.memory_space<vmem>>, vector<1x64xf32>
    %26 = vector.broadcast %25 : vector<1x64xf32> to vector<16x64xf32>
    %27 = arith.mulf %24, %26 : vector<16x64xf32>
    %c0_13 = arith.constant 0 : index
    %c0_14 = arith.constant 0 : index
    %28 = vector.load %arg6[%c0_13, %c0_14] : memref<1x64xf32, #tpu.memory_space<vmem>>, vector<1x64xf32>
    %29 = vector.broadcast %28 : vector<1x64xf32> to vector<16x64xf32>
    %30 = arith.addf %27, %29 : vector<16x64xf32>
    %cst_15 = arith.constant 0.000000e+00 : f32
    %31 = vector.broadcast %cst_15 : f32 to vector<16x64xf32>
    %32 = arith.maximumf %30, %31 : vector<16x64xf32>
    %33 = arith.truncf %32 : vector<16x64xf32> to vector<16x64xbf16>
    %c0_16 = arith.constant 0 : index
    %c0_17 = arith.constant 0 : index
    %34 = vector.load %arg8[%c0_16, %c0_17] : memref<16x64xbf16, #tpu.memory_space<vmem>>, vector<16x64xbf16>
    tpu.vector_store %arg8[%c0_16, %c0_17], %33 {strides = array<i32>} : memref<16x64xbf16, #tpu.memory_space<vmem>>, vector<16x64xbf16>,
    return
  }
  func.func @transform_0(%arg0: i32, %arg1: i32) -> (i32, i32) {
    %c1_i32 = arith.constant 1 : i32
    %0 = arith.muli %arg0, %c1_i32 : i32
    %1 = arith.addi %0, %arg1 : i32
    %c0_i32 = arith.constant 0 : i32
    %c0_i32_0 = arith.constant 0 : i32
    return %1, %c0_i32 : i32, i32
  }
  func.func @transform_1(%arg0: i32, %arg1: i32) -> (i32, i32) {
    %c0_i32 = arith.constant 0 : i32
    %c0_i32_0 = arith.constant 0 : i32
    %c0_i32_1 = arith.constant 0 : i32
    return %c0_i32, %c0_i32_0 : i32, i32
  }
  func.func @transform_2(%arg0: i32, %arg1: i32) -> (i32, i32) {
    %c0_i32 = arith.constant 0 : i32
    %c0_i32_0 = arith.constant 0 : i32
    %c0_i32_1 = arith.constant 0 : i32
    return %c0_i32, %c0_i32_0 : i32, i32
  }
  func.func @transform_3(%arg0: i32, %arg1: i32) -> (i32, i32) {
    %c0_i32 = arith.constant 0 : i32
    %c0_i32_0 = arith.constant 0 : i32
    %c0_i32_1 = arith.constant 0 : i32
    return %c0_i32, %c0_i32_0 : i32, i32
  }
  func.func @transform_4(%arg0: i32, %arg1: i32) -> (i32, i32) {
    %c0_i32 = arith.constant 0 : i32
    %c0_i32_0 = arith.constant 0 : i32
    %c0_i32_1 = arith.constant 0 : i32
    return %c0_i32, %c0_i32_0 : i32, i32
  }
  func.func @transform_5(%arg0: i32, %arg1: i32) -> (i32, i32) {
    %c0_i32 = arith.constant 0 : i32
    %c0_i32_0 = arith.constant 0 : i32
    %c0_i32_1 = arith.constant 0 : i32
    return %c0_i32, %c0_i32_0 : i32, i32
  }
  func.func @transform_6(%arg0: i32, %arg1: i32) -> (i32, i32) {
    %c1_i32 = arith.constant 1 : i32
    %0 = arith.muli %arg0, %c1_i32 : i32
    %1 = arith.addi %0, %arg1 : i32
    %c0_i32 = arith.constant 0 : i32
    %c0_i32_0 = arith.constant 0 : i32
    return %1, %c0_i32 : i32, i32
  }
}

module attributes {stable_mosaic.version = 11 : i64} {
  func.func @kernel(%arg0: i32, %arg1: i32, %arg2: memref<16x3xf32, #tpu.memory_space<vmem>>, %arg3: memref<3x64xbf16, #tpu.memory_space<vmem>>, %arg4: memref<1x64xf32, #tpu.memory_space<vmem>>, %arg5: memref<2x64xf32, #tpu.memory_space<vmem>>) attributes {dimension_semantics = [#tpu.dimension_semantics<arbitrary>, #tpu.dimension_semantics<arbitrary>], iteration_bounds = array<i64: 2, 1>, scalar_prefetch = 0 : i64, scratch_operands = 0 : i64, tpu.core_type = #tpu.core_type<tc>, window_params = [{transform_indices = @transform_0, window_bounds = array<i64: 16, 3>}, {pipeline_mode = #tpu.pipeline_mode<synchronous>, transform_indices = @transform_1, window_bounds = array<i64: 3, 64>}, {pipeline_mode = #tpu.pipeline_mode<synchronous>, transform_indices = @transform_2, window_bounds = array<i64: 1, 64>}, {pipeline_mode = #tpu.pipeline_mode<synchronous>, transform_indices = @transform_3, window_bounds = array<i64: 2, 64>}]} {
    %c0 = arith.constant 0 : index
    %c0_0 = arith.constant 0 : index
    %0 = vector.load %arg2[%c0, %c0_0] : memref<16x3xf32, #tpu.memory_space<vmem>>, vector<16x3xf32>
    %1 = arith.truncf %0 : vector<16x3xf32> to vector<16x3xbf16>
    %c0_1 = arith.constant 0 : index
    %c0_2 = arith.constant 0 : index
    %2 = vector.load %arg3[%c0_1, %c0_2] : memref<3x64xbf16, #tpu.memory_space<vmem>>, vector<3x64xbf16>
    %cst = arith.constant dense<0.000000e+00> : vector<16x64xf32>
    %3 = tpu.matmul %1, %2, %cst {dimension_numbers = #tpu.dot_dimension_numbers<[1], [0], [0], [1], [0, 0, 1, 1], [], []>} : vector<16x3xbf16>, vector<3x64xbf16>, vector<16x64xf32> -> vector<16x64xf32>
    %c0_3 = arith.constant 0 : index
    %c0_4 = arith.constant 0 : index
    %4 = vector.load %arg4[%c0_3, %c0_4] : memref<1x64xf32, #tpu.memory_space<vmem>>, vector<1x64xf32>
    %5 = vector.broadcast %4 : vector<1x64xf32> to vector<16x64xf32>
    %6 = arith.addf %3, %5 : vector<16x64xf32>
    %c0_i32 = arith.constant 0 : i32
    %7 = arith.cmpi eq, %arg0, %c0_i32 : i32
    %c0_i32_5 = arith.constant 0 : i32
    %8 = arith.cmpi eq, %arg1, %c0_i32_5 : i32
    %9 = arith.andi %7, %8 : i1
    %10 = arith.extui %9 : i1 to i32
    %c0_i32_6 = arith.constant 0 : i32
    %11 = arith.cmpi ne, %10, %c0_i32_6 : i32
    scf.if %11 {
      %cst_13 = arith.constant 0.000000e+00 : f32
      %21 = vector.broadcast %cst_13 : f32 to vector<2x64xf32>
      %c0_14 = arith.constant 0 : index
      %c0_15 = arith.constant 0 : index
      %22 = vector.load %arg5[%c0_14, %c0_15] : memref<2x64xf32, #tpu.memory_space<vmem>>, vector<2x64xf32>
      tpu.vector_store %arg5[%c0_14, %c0_15], %21 {strides = array<i32>} : memref<2x64xf32, #tpu.memory_space<vmem>>, vector<2x64xf32>,
    } else {
    }
    %cst_7 = arith.constant dense<0.000000e+00> : vector<64xf32>
    %12 = vector.multi_reduction <add>, %6, %cst_7 [0] : vector<16x64xf32> to vector<64xf32>
    %13 = vector.shape_cast %12 : vector<64xf32> to vector<1x64xf32>
    %14 = arith.mulf %6, %6 : vector<16x64xf32>
    %cst_8 = arith.constant dense<0.000000e+00> : vector<64xf32>
    %15 = vector.multi_reduction <add>, %14, %cst_8 [0] : vector<16x64xf32> to vector<64xf32>
    %16 = vector.shape_cast %15 : vector<64xf32> to vector<1x64xf32>
    %c0_9 = arith.constant 0 : index
    %c0_10 = arith.constant 0 : index
    %17 = vector.load %arg5[%c0_9, %c0_10] : memref<2x64xf32, #tpu.memory_space<vmem>>, vector<2x64xf32>
    %18 = tpu.concatenate %13, %16 in 0 : vector<1x64xf32>, vector<1x64xf32> -> vector<2x64xf32>
    %19 = arith.addf %17, %18 : vector<2x64xf32>
    %c0_11 = arith.constant 0 : index
    %c0_12 = arith.constant 0 : index
    %20 = vector.load %arg5[%c0_11, %c0_12] : memref<2x64xf32, #tpu.memory_space<vmem>>, vector<2x64xf32>
    tpu.vector_store %arg5[%c0_11, %c0_12], %19 {strides = array<i32>} : memref<2x64xf32, #tpu.memory_space<vmem>>, vector<2x64xf32>,
    return
  }
  func.func @transform_0(%arg0: i32, %arg1: i32) -> (i32, i32) {
    %c1_i32 = arith.constant 1 : i32
    %0 = arith.muli %arg0, %c1_i32 : i32
    %1 = arith.addi %0, %arg1 : i32
    %c0_i32 = arith.constant 0 : i32
    %c0_i32_0 = arith.constant 0 : i32
    return %1, %c0_i32 : i32, i32
  }
  func.func @transform_1(%arg0: i32, %arg1: i32) -> (i32, i32) {
    %c0_i32 = arith.constant 0 : i32
    %c0_i32_0 = arith.constant 0 : i32
    %c0_i32_1 = arith.constant 0 : i32
    return %c0_i32, %c0_i32_0 : i32, i32
  }
  func.func @transform_2(%arg0: i32, %arg1: i32) -> (i32, i32) {
    %c0_i32 = arith.constant 0 : i32
    %c0_i32_0 = arith.constant 0 : i32
    %c0_i32_1 = arith.constant 0 : i32
    return %c0_i32, %c0_i32_0 : i32, i32
  }
  func.func @transform_3(%arg0: i32, %arg1: i32) -> (i32, i32) {
    %c0_i32 = arith.constant 0 : i32
    %c0_i32_0 = arith.constant 0 : i32
    %c0_i32_1 = arith.constant 0 : i32
    return %c0_i32, %c0_i32_0 : i32, i32
  }
}

module attributes {stable_mosaic.version = 11 : i64} {
  func.func @kernel(%arg0: i32, %arg1: i32, %arg2: memref<16x64xbf16, #tpu.memory_space<vmem>>, %arg3: memref<64x128xbf16, #tpu.memory_space<vmem>>, %arg4: memref<1x128xf32, #tpu.memory_space<vmem>>, %arg5: memref<1x128xf32, #tpu.memory_space<vmem>>, %arg6: memref<1x128xf32, #tpu.memory_space<vmem>>, %arg7: memref<2x128xf32, #tpu.memory_space<vmem>>, %arg8: memref<16x128xbf16, #tpu.memory_space<vmem>>) attributes {dimension_semantics = [#tpu.dimension_semantics<parallel>, #tpu.dimension_semantics<parallel>], iteration_bounds = array<i64: 2, 1>, scalar_prefetch = 0 : i64, scratch_operands = 0 : i64, tpu.core_type = #tpu.core_type<tc>, window_params = [{transform_indices = @transform_0, window_bounds = array<i64: 16, 64>}, {pipeline_mode = #tpu.pipeline_mode<synchronous>, transform_indices = @transform_1, window_bounds = array<i64: 64, 128>}, {pipeline_mode = #tpu.pipeline_mode<synchronous>, transform_indices = @transform_2, window_bounds = array<i64: 1, 128>}, {pipeline_mode = #tpu.pipeline_mode<synchronous>, transform_indices = @transform_3, window_bounds = array<i64: 1, 128>}, {pipeline_mode = #tpu.pipeline_mode<synchronous>, transform_indices = @transform_4, window_bounds = array<i64: 1, 128>}, {pipeline_mode = #tpu.pipeline_mode<synchronous>, transform_indices = @transform_5, window_bounds = array<i64: 2, 128>}, {transform_indices = @transform_6, window_bounds = array<i64: 16, 128>}]} {
    %c0 = arith.constant 0 : index
    %c0_0 = arith.constant 0 : index
    %0 = vector.load %arg2[%c0, %c0_0] : memref<16x64xbf16, #tpu.memory_space<vmem>>, vector<16x64xbf16>
    %c0_1 = arith.constant 0 : index
    %c0_2 = arith.constant 0 : index
    %1 = vector.load %arg3[%c0_1, %c0_2] : memref<64x128xbf16, #tpu.memory_space<vmem>>, vector<64x128xbf16>
    %cst = arith.constant dense<0.000000e+00> : vector<16x128xf32>
    %2 = tpu.matmul %0, %1, %cst {dimension_numbers = #tpu.dot_dimension_numbers<[1], [0], [0], [1], [0, 0, 1, 1], [], []>} : vector<16x64xbf16>, vector<64x128xbf16>, vector<16x128xf32> -> vector<16x128xf32>
    %c0_3 = arith.constant 0 : index
    %c0_4 = arith.constant 0 : index
    %3 = vector.load %arg4[%c0_3, %c0_4] : memref<1x128xf32, #tpu.memory_space<vmem>>, vector<1x128xf32>
    %4 = vector.broadcast %3 : vector<1x128xf32> to vector<16x128xf32>
    %5 = arith.addf %2, %4 : vector<16x128xf32>
    %c0_5 = arith.constant 0 : index
    %c0_6 = arith.constant 0 : index
    %6 = vector.load %arg7[%c0_5, %c0_6] : memref<2x128xf32, #tpu.memory_space<vmem>>, vector<2x128xf32>
    %7 = vector.extract_strided_slice %6 {offsets = [0, 0], sizes = [1, 128], strides = [1, 1]} : vector<2x128xf32> to vector<1x128xf32>
    %cst_7 = arith.constant 3.125000e-02 : f32
    %8 = vector.broadcast %cst_7 : f32 to vector<1x128xf32>
    %9 = arith.mulf %7, %8 : vector<1x128xf32>
    %10 = vector.extract_strided_slice %6 {offsets = [1, 0], sizes = [1, 128], strides = [1, 1]} : vector<2x128xf32> to vector<1x128xf32>
    %cst_8 = arith.constant 3.125000e-02 : f32
    %11 = vector.broadcast %cst_8 : f32 to vector<1x128xf32>
    %12 = arith.mulf %10, %11 : vector<1x128xf32>
    %13 = arith.mulf %9, %9 : vector<1x128xf32>
    %14 = arith.subf %12, %13 : vector<1x128xf32>
    %cst_9 = arith.constant 0.000000e+00 : f32
    %15 = vector.broadcast %cst_9 : f32 to vector<1x128xf32>
    %16 = arith.maximumf %14, %15 : vector<1x128xf32>
    %17 = vector.broadcast %9 : vector<1x128xf32> to vector<16x128xf32>
    %18 = arith.subf %5, %17 : vector<16x128xf32>
    %cst_10 = arith.constant 9.99999974E-6 : f32
    %19 = vector.broadcast %cst_10 : f32 to vector<1x128xf32>
    %20 = arith.addf %16, %19 : vector<1x128xf32>
    %21 = math.rsqrt %20 : vector<1x128xf32>
    %22 = vector.broadcast %21 : vector<1x128xf32> to vector<16x128xf32>
    %23 = arith.mulf %18, %22 : vector<16x128xf32>
    %c0_11 = arith.constant 0 : index
    %c0_12 = arith.constant 0 : index
    %24 = vector.load %arg5[%c0_11, %c0_12] : memref<1x128xf32, #tpu.memory_space<vmem>>, vector<1x128xf32>
    %25 = vector.broadcast %24 : vector<1x128xf32> to vector<16x128xf32>
    %26 = arith.mulf %23, %25 : vector<16x128xf32>
    %c0_13 = arith.constant 0 : index
    %c0_14 = arith.constant 0 : index
    %27 = vector.load %arg6[%c0_13, %c0_14] : memref<1x128xf32, #tpu.memory_space<vmem>>, vector<1x128xf32>
    %28 = vector.broadcast %27 : vector<1x128xf32> to vector<16x128xf32>
    %29 = arith.addf %26, %28 : vector<16x128xf32>
    %cst_15 = arith.constant 0.000000e+00 : f32
    %30 = vector.broadcast %cst_15 : f32 to vector<16x128xf32>
    %31 = arith.maximumf %29, %30 : vector<16x128xf32>
    %32 = arith.truncf %31 : vector<16x128xf32> to vector<16x128xbf16>
    %c0_16 = arith.constant 0 : index
    %c0_17 = arith.constant 0 : index
    %33 = vector.load %arg8[%c0_16, %c0_17] : memref<16x128xbf16, #tpu.memory_space<vmem>>, vector<16x128xbf16>
    tpu.vector_store %arg8[%c0_16, %c0_17], %32 {strides = array<i32>} : memref<16x128xbf16, #tpu.memory_space<vmem>>, vector<16x128xbf16>,
    return
  }
  func.func @transform_0(%arg0: i32, %arg1: i32) -> (i32, i32) {
    %c1_i32 = arith.constant 1 : i32
    %0 = arith.muli %arg0, %c1_i32 : i32
    %1 = arith.addi %0, %arg1 : i32
    %c0_i32 = arith.constant 0 : i32
    %c0_i32_0 = arith.constant 0 : i32
    return %1, %c0_i32 : i32, i32
  }
  func.func @transform_1(%arg0: i32, %arg1: i32) -> (i32, i32) {
    %c0_i32 = arith.constant 0 : i32
    %c0_i32_0 = arith.constant 0 : i32
    %c0_i32_1 = arith.constant 0 : i32
    return %c0_i32, %c0_i32_0 : i32, i32
  }
  func.func @transform_2(%arg0: i32, %arg1: i32) -> (i32, i32) {
    %c0_i32 = arith.constant 0 : i32
    %c0_i32_0 = arith.constant 0 : i32
    %c0_i32_1 = arith.constant 0 : i32
    return %c0_i32, %c0_i32_0 : i32, i32
  }
  func.func @transform_3(%arg0: i32, %arg1: i32) -> (i32, i32) {
    %c0_i32 = arith.constant 0 : i32
    %c0_i32_0 = arith.constant 0 : i32
    %c0_i32_1 = arith.constant 0 : i32
    return %c0_i32, %c0_i32_0 : i32, i32
  }
  func.func @transform_4(%arg0: i32, %arg1: i32) -> (i32, i32) {
    %c0_i32 = arith.constant 0 : i32
    %c0_i32_0 = arith.constant 0 : i32
    %c0_i32_1 = arith.constant 0 : i32
    return %c0_i32, %c0_i32_0 : i32, i32
  }
  func.func @transform_5(%arg0: i32, %arg1: i32) -> (i32, i32) {
    %c0_i32 = arith.constant 0 : i32
    %c0_i32_0 = arith.constant 0 : i32
    %c0_i32_1 = arith.constant 0 : i32
    return %c0_i32, %c0_i32_0 : i32, i32
  }
  func.func @transform_6(%arg0: i32, %arg1: i32) -> (i32, i32) {
    %c1_i32 = arith.constant 1 : i32
    %0 = arith.muli %arg0, %c1_i32 : i32
    %1 = arith.addi %0, %arg1 : i32
    %c0_i32 = arith.constant 0 : i32
    %c0_i32_0 = arith.constant 0 : i32
    return %1, %c0_i32 : i32, i32
  }
}

module attributes {stable_mosaic.version = 11 : i64} {
  func.func @kernel(%arg0: i32, %arg1: i32, %arg2: memref<16x64xbf16, #tpu.memory_space<vmem>>, %arg3: memref<64x128xbf16, #tpu.memory_space<vmem>>, %arg4: memref<1x128xf32, #tpu.memory_space<vmem>>, %arg5: memref<2x128xf32, #tpu.memory_space<vmem>>) attributes {dimension_semantics = [#tpu.dimension_semantics<arbitrary>, #tpu.dimension_semantics<arbitrary>], iteration_bounds = array<i64: 2, 1>, scalar_prefetch = 0 : i64, scratch_operands = 0 : i64, tpu.core_type = #tpu.core_type<tc>, window_params = [{transform_indices = @transform_0, window_bounds = array<i64: 16, 64>}, {pipeline_mode = #tpu.pipeline_mode<synchronous>, transform_indices = @transform_1, window_bounds = array<i64: 64, 128>}, {pipeline_mode = #tpu.pipeline_mode<synchronous>, transform_indices = @transform_2, window_bounds = array<i64: 1, 128>}, {pipeline_mode = #tpu.pipeline_mode<synchronous>, transform_indices = @transform_3, window_bounds = array<i64: 2, 128>}]} {
    %c0 = arith.constant 0 : index
    %c0_0 = arith.constant 0 : index
    %0 = vector.load %arg2[%c0, %c0_0] : memref<16x64xbf16, #tpu.memory_space<vmem>>, vector<16x64xbf16>
    %c0_1 = arith.constant 0 : index
    %c0_2 = arith.constant 0 : index
    %1 = vector.load %arg3[%c0_1, %c0_2] : memref<64x128xbf16, #tpu.memory_space<vmem>>, vector<64x128xbf16>
    %cst = arith.constant dense<0.000000e+00> : vector<16x128xf32>
    %2 = tpu.matmul %0, %1, %cst {dimension_numbers = #tpu.dot_dimension_numbers<[1], [0], [0], [1], [0, 0, 1, 1], [], []>} : vector<16x64xbf16>, vector<64x128xbf16>, vector<16x128xf32> -> vector<16x128xf32>
    %c0_3 = arith.constant 0 : index
    %c0_4 = arith.constant 0 : index
    %3 = vector.load %arg4[%c0_3, %c0_4] : memref<1x128xf32, #tpu.memory_space<vmem>>, vector<1x128xf32>
    %4 = vector.broadcast %3 : vector<1x128xf32> to vector<16x128xf32>
    %5 = arith.addf %2, %4 : vector<16x128xf32>
    %c0_i32 = arith.constant 0 : i32
    %6 = arith.cmpi eq, %arg0, %c0_i32 : i32
    %c0_i32_5 = arith.constant 0 : i32
    %7 = arith.cmpi eq, %arg1, %c0_i32_5 : i32
    %8 = arith.andi %6, %7 : i1
    %9 = arith.extui %8 : i1 to i32
    %c0_i32_6 = arith.constant 0 : i32
    %10 = arith.cmpi ne, %9, %c0_i32_6 : i32
    scf.if %10 {
      %cst_13 = arith.constant 0.000000e+00 : f32
      %20 = vector.broadcast %cst_13 : f32 to vector<2x128xf32>
      %c0_14 = arith.constant 0 : index
      %c0_15 = arith.constant 0 : index
      %21 = vector.load %arg5[%c0_14, %c0_15] : memref<2x128xf32, #tpu.memory_space<vmem>>, vector<2x128xf32>
      tpu.vector_store %arg5[%c0_14, %c0_15], %20 {strides = array<i32>} : memref<2x128xf32, #tpu.memory_space<vmem>>, vector<2x128xf32>,
    } else {
    }
    %cst_7 = arith.constant dense<0.000000e+00> : vector<128xf32>
    %11 = vector.multi_reduction <add>, %5, %cst_7 [0] : vector<16x128xf32> to vector<128xf32>
    %12 = vector.shape_cast %11 : vector<128xf32> to vector<1x128xf32>
    %13 = arith.mulf %5, %5 : vector<16x128xf32>
    %cst_8 = arith.constant dense<0.000000e+00> : vector<128xf32>
    %14 = vector.multi_reduction <add>, %13, %cst_8 [0] : vector<16x128xf32> to vector<128xf32>
    %15 = vector.shape_cast %14 : vector<128xf32> to vector<1x128xf32>
    %c0_9 = arith.constant 0 : index
    %c0_10 = arith.constant 0 : index
    %16 = vector.load %arg5[%c0_9, %c0_10] : memref<2x128xf32, #tpu.memory_space<vmem>>, vector<2x128xf32>
    %17 = tpu.concatenate %12, %15 in 0 : vector<1x128xf32>, vector<1x128xf32> -> vector<2x128xf32>
    %18 = arith.addf %16, %17 : vector<2x128xf32>
    %c0_11 = arith.constant 0 : index
    %c0_12 = arith.constant 0 : index
    %19 = vector.load %arg5[%c0_11, %c0_12] : memref<2x128xf32, #tpu.memory_space<vmem>>, vector<2x128xf32>
    tpu.vector_store %arg5[%c0_11, %c0_12], %18 {strides = array<i32>} : memref<2x128xf32, #tpu.memory_space<vmem>>, vector<2x128xf32>,
    return
  }
  func.func @transform_0(%arg0: i32, %arg1: i32) -> (i32, i32) {
    %c1_i32 = arith.constant 1 : i32
    %0 = arith.muli %arg0, %c1_i32 : i32
    %1 = arith.addi %0, %arg1 : i32
    %c0_i32 = arith.constant 0 : i32
    %c0_i32_0 = arith.constant 0 : i32
    return %1, %c0_i32 : i32, i32
  }
  func.func @transform_1(%arg0: i32, %arg1: i32) -> (i32, i32) {
    %c0_i32 = arith.constant 0 : i32
    %c0_i32_0 = arith.constant 0 : i32
    %c0_i32_1 = arith.constant 0 : i32
    return %c0_i32, %c0_i32_0 : i32, i32
  }
  func.func @transform_2(%arg0: i32, %arg1: i32) -> (i32, i32) {
    %c0_i32 = arith.constant 0 : i32
    %c0_i32_0 = arith.constant 0 : i32
    %c0_i32_1 = arith.constant 0 : i32
    return %c0_i32, %c0_i32_0 : i32, i32
  }
  func.func @transform_3(%arg0: i32, %arg1: i32) -> (i32, i32) {
    %c0_i32 = arith.constant 0 : i32
    %c0_i32_0 = arith.constant 0 : i32
    %c0_i32_1 = arith.constant 0 : i32
    return %c0_i32, %c0_i32_0 : i32, i32
  }
}

module attributes {stable_mosaic.version = 11 : i64} {
  func.func @kernel(%arg0: i32, %arg1: i32, %arg2: memref<16x128xbf16, #tpu.memory_space<vmem>>, %arg3: memref<128x1024xbf16, #tpu.memory_space<vmem>>, %arg4: memref<1x1024xf32, #tpu.memory_space<vmem>>, %arg5: memref<2x1024xf32, #tpu.memory_space<vmem>>) attributes {dimension_semantics = [#tpu.dimension_semantics<arbitrary>, #tpu.dimension_semantics<arbitrary>], iteration_bounds = array<i64: 2, 1>, scalar_prefetch = 0 : i64, scratch_operands = 0 : i64, tpu.core_type = #tpu.core_type<tc>, window_params = [{transform_indices = @transform_0, window_bounds = array<i64: 16, 128>}, {pipeline_mode = #tpu.pipeline_mode<synchronous>, transform_indices = @transform_1, window_bounds = array<i64: 128, 1024>}, {pipeline_mode = #tpu.pipeline_mode<synchronous>, transform_indices = @transform_2, window_bounds = array<i64: 1, 1024>}, {pipeline_mode = #tpu.pipeline_mode<synchronous>, transform_indices = @transform_3, window_bounds = array<i64: 2, 1024>}]} {
    %c0 = arith.constant 0 : index
    %c0_0 = arith.constant 0 : index
    %0 = vector.load %arg2[%c0, %c0_0] : memref<16x128xbf16, #tpu.memory_space<vmem>>, vector<16x128xbf16>
    %c0_1 = arith.constant 0 : index
    %c0_2 = arith.constant 0 : index
    %1 = vector.load %arg3[%c0_1, %c0_2] : memref<128x1024xbf16, #tpu.memory_space<vmem>>, vector<128x1024xbf16>
    %cst = arith.constant dense<0.000000e+00> : vector<16x1024xf32>
    %2 = tpu.matmul %0, %1, %cst {dimension_numbers = #tpu.dot_dimension_numbers<[1], [0], [0], [1], [0, 0, 1, 1], [], []>} : vector<16x128xbf16>, vector<128x1024xbf16>, vector<16x1024xf32> -> vector<16x1024xf32>
    %c0_3 = arith.constant 0 : index
    %c0_4 = arith.constant 0 : index
    %3 = vector.load %arg4[%c0_3, %c0_4] : memref<1x1024xf32, #tpu.memory_space<vmem>>, vector<1x1024xf32>
    %4 = vector.broadcast %3 : vector<1x1024xf32> to vector<16x1024xf32>
    %5 = arith.addf %2, %4 : vector<16x1024xf32>
    %c0_i32 = arith.constant 0 : i32
    %6 = arith.cmpi eq, %arg0, %c0_i32 : i32
    %c0_i32_5 = arith.constant 0 : i32
    %7 = arith.cmpi eq, %arg1, %c0_i32_5 : i32
    %8 = arith.andi %6, %7 : i1
    %9 = arith.extui %8 : i1 to i32
    %c0_i32_6 = arith.constant 0 : i32
    %10 = arith.cmpi ne, %9, %c0_i32_6 : i32
    scf.if %10 {
      %cst_13 = arith.constant 0.000000e+00 : f32
      %20 = vector.broadcast %cst_13 : f32 to vector<2x1024xf32>
      %c0_14 = arith.constant 0 : index
      %c0_15 = arith.constant 0 : index
      %21 = vector.load %arg5[%c0_14, %c0_15] : memref<2x1024xf32, #tpu.memory_space<vmem>>, vector<2x1024xf32>
      tpu.vector_store %arg5[%c0_14, %c0_15], %20 {strides = array<i32>} : memref<2x1024xf32, #tpu.memory_space<vmem>>, vector<2x1024xf32>,
    } else {
    }
    %cst_7 = arith.constant dense<0.000000e+00> : vector<1024xf32>
    %11 = vector.multi_reduction <add>, %5, %cst_7 [0] : vector<16x1024xf32> to vector<1024xf32>
    %12 = vector.shape_cast %11 : vector<1024xf32> to vector<1x1024xf32>
    %13 = arith.mulf %5, %5 : vector<16x1024xf32>
    %cst_8 = arith.constant dense<0.000000e+00> : vector<1024xf32>
    %14 = vector.multi_reduction <add>, %13, %cst_8 [0] : vector<16x1024xf32> to vector<1024xf32>
    %15 = vector.shape_cast %14 : vector<1024xf32> to vector<1x1024xf32>
    %c0_9 = arith.constant 0 : index
    %c0_10 = arith.constant 0 : index
    %16 = vector.load %arg5[%c0_9, %c0_10] : memref<2x1024xf32, #tpu.memory_space<vmem>>, vector<2x1024xf32>
    %17 = tpu.concatenate %12, %15 in 0 : vector<1x1024xf32>, vector<1x1024xf32> -> vector<2x1024xf32>
    %18 = arith.addf %16, %17 : vector<2x1024xf32>
    %c0_11 = arith.constant 0 : index
    %c0_12 = arith.constant 0 : index
    %19 = vector.load %arg5[%c0_11, %c0_12] : memref<2x1024xf32, #tpu.memory_space<vmem>>, vector<2x1024xf32>
    tpu.vector_store %arg5[%c0_11, %c0_12], %18 {strides = array<i32>} : memref<2x1024xf32, #tpu.memory_space<vmem>>, vector<2x1024xf32>,
    return
  }
  func.func @transform_0(%arg0: i32, %arg1: i32) -> (i32, i32) {
    %c1_i32 = arith.constant 1 : i32
    %0 = arith.muli %arg0, %c1_i32 : i32
    %1 = arith.addi %0, %arg1 : i32
    %c0_i32 = arith.constant 0 : i32
    %c0_i32_0 = arith.constant 0 : i32
    return %1, %c0_i32 : i32, i32
  }
  func.func @transform_1(%arg0: i32, %arg1: i32) -> (i32, i32) {
    %c0_i32 = arith.constant 0 : i32
    %c0_i32_0 = arith.constant 0 : i32
    %c0_i32_1 = arith.constant 0 : i32
    return %c0_i32, %c0_i32_0 : i32, i32
  }
  func.func @transform_2(%arg0: i32, %arg1: i32) -> (i32, i32) {
    %c0_i32 = arith.constant 0 : i32
    %c0_i32_0 = arith.constant 0 : i32
    %c0_i32_1 = arith.constant 0 : i32
    return %c0_i32, %c0_i32_0 : i32, i32
  }
  func.func @transform_3(%arg0: i32, %arg1: i32) -> (i32, i32) {
    %c0_i32 = arith.constant 0 : i32
    %c0_i32_0 = arith.constant 0 : i32
    %c0_i32_1 = arith.constant 0 : i32
    return %c0_i32, %c0_i32_0 : i32, i32
  }
}

module attributes {stable_mosaic.version = 11 : i64} {
  func.func @kernel(%arg0: i32, %arg1: i32, %arg2: memref<16x128xbf16, #tpu.memory_space<vmem>>, %arg3: memref<128x1024xbf16, #tpu.memory_space<vmem>>, %arg4: memref<1x1024xf32, #tpu.memory_space<vmem>>, %arg5: memref<1x1024xf32, #tpu.memory_space<vmem>>, %arg6: memref<1x1024xf32, #tpu.memory_space<vmem>>, %arg7: memref<2x1024xf32, #tpu.memory_space<vmem>>, %arg8: memref<1x1x1024xf32, #tpu.memory_space<vmem>>) attributes {dimension_semantics = [#tpu.dimension_semantics<parallel>, #tpu.dimension_semantics<arbitrary>], iteration_bounds = array<i64: 2, 1>, scalar_prefetch = 0 : i64, scratch_operands = 0 : i64, tpu.core_type = #tpu.core_type<tc>, window_params = [{transform_indices = @transform_0, window_bounds = array<i64: 16, 128>}, {pipeline_mode = #tpu.pipeline_mode<synchronous>, transform_indices = @transform_1, window_bounds = array<i64: 128, 1024>}, {pipeline_mode = #tpu.pipeline_mode<synchronous>, transform_indices = @transform_2, window_bounds = array<i64: 1, 1024>}, {pipeline_mode = #tpu.pipeline_mode<synchronous>, transform_indices = @transform_3, window_bounds = array<i64: 1, 1024>}, {pipeline_mode = #tpu.pipeline_mode<synchronous>, transform_indices = @transform_4, window_bounds = array<i64: 1, 1024>}, {pipeline_mode = #tpu.pipeline_mode<synchronous>, transform_indices = @transform_5, window_bounds = array<i64: 2, 1024>}, {transform_indices = @transform_6, window_bounds = array<i64: 1, 1, 1024>}]} {
    %c0 = arith.constant 0 : index
    %c0_0 = arith.constant 0 : index
    %0 = vector.load %arg2[%c0, %c0_0] : memref<16x128xbf16, #tpu.memory_space<vmem>>, vector<16x128xbf16>
    %c0_1 = arith.constant 0 : index
    %c0_2 = arith.constant 0 : index
    %1 = vector.load %arg3[%c0_1, %c0_2] : memref<128x1024xbf16, #tpu.memory_space<vmem>>, vector<128x1024xbf16>
    %cst = arith.constant dense<0.000000e+00> : vector<16x1024xf32>
    %2 = tpu.matmul %0, %1, %cst {dimension_numbers = #tpu.dot_dimension_numbers<[1], [0], [0], [1], [0, 0, 1, 1], [], []>} : vector<16x128xbf16>, vector<128x1024xbf16>, vector<16x1024xf32> -> vector<16x1024xf32>
    %c0_3 = arith.constant 0 : index
    %c0_4 = arith.constant 0 : index
    %3 = vector.load %arg4[%c0_3, %c0_4] : memref<1x1024xf32, #tpu.memory_space<vmem>>, vector<1x1024xf32>
    %4 = vector.broadcast %3 : vector<1x1024xf32> to vector<16x1024xf32>
    %5 = arith.addf %2, %4 : vector<16x1024xf32>
    %c0_5 = arith.constant 0 : index
    %c0_6 = arith.constant 0 : index
    %6 = vector.load %arg7[%c0_5, %c0_6] : memref<2x1024xf32, #tpu.memory_space<vmem>>, vector<2x1024xf32>
    %7 = vector.extract_strided_slice %6 {offsets = [0, 0], sizes = [1, 1024], strides = [1, 1]} : vector<2x1024xf32> to vector<1x1024xf32>
    %cst_7 = arith.constant 3.125000e-02 : f32
    %8 = vector.broadcast %cst_7 : f32 to vector<1x1024xf32>
    %9 = arith.mulf %7, %8 : vector<1x1024xf32>
    %10 = vector.extract_strided_slice %6 {offsets = [1, 0], sizes = [1, 1024], strides = [1, 1]} : vector<2x1024xf32> to vector<1x1024xf32>
    %cst_8 = arith.constant 3.125000e-02 : f32
    %11 = vector.broadcast %cst_8 : f32 to vector<1x1024xf32>
    %12 = arith.mulf %10, %11 : vector<1x1024xf32>
    %13 = arith.mulf %9, %9 : vector<1x1024xf32>
    %14 = arith.subf %12, %13 : vector<1x1024xf32>
    %cst_9 = arith.constant 0.000000e+00 : f32
    %15 = vector.broadcast %cst_9 : f32 to vector<1x1024xf32>
    %16 = arith.maximumf %14, %15 : vector<1x1024xf32>
    %17 = vector.broadcast %9 : vector<1x1024xf32> to vector<16x1024xf32>
    %18 = arith.subf %5, %17 : vector<16x1024xf32>
    %cst_10 = arith.constant 9.99999974E-6 : f32
    %19 = vector.broadcast %cst_10 : f32 to vector<1x1024xf32>
    %20 = arith.addf %16, %19 : vector<1x1024xf32>
    %21 = math.rsqrt %20 : vector<1x1024xf32>
    %22 = vector.broadcast %21 : vector<1x1024xf32> to vector<16x1024xf32>
    %23 = arith.mulf %18, %22 : vector<16x1024xf32>
    %c0_11 = arith.constant 0 : index
    %c0_12 = arith.constant 0 : index
    %24 = vector.load %arg5[%c0_11, %c0_12] : memref<1x1024xf32, #tpu.memory_space<vmem>>, vector<1x1024xf32>
    %25 = vector.broadcast %24 : vector<1x1024xf32> to vector<16x1024xf32>
    %26 = arith.mulf %23, %25 : vector<16x1024xf32>
    %c0_13 = arith.constant 0 : index
    %c0_14 = arith.constant 0 : index
    %27 = vector.load %arg6[%c0_13, %c0_14] : memref<1x1024xf32, #tpu.memory_space<vmem>>, vector<1x1024xf32>
    %28 = vector.broadcast %27 : vector<1x1024xf32> to vector<16x1024xf32>
    %29 = arith.addf %26, %28 : vector<16x1024xf32>
    %cst_15 = arith.constant 0.000000e+00 : f32
    %30 = vector.broadcast %cst_15 : f32 to vector<16x1024xf32>
    %31 = arith.maximumf %29, %30 : vector<16x1024xf32>
    %cst_16 = arith.constant dense<0xFF800000> : vector<1024xf32>
    %32 = vector.multi_reduction <maximumf>, %31, %cst_16 [0] : vector<16x1024xf32> to vector<1024xf32>
    %33 = vector.shape_cast %32 : vector<1024xf32> to vector<1x1024xf32>
    %c0_i32 = arith.constant 0 : i32
    %34 = arith.cmpi eq, %arg1, %c0_i32 : i32
    %35 = arith.extui %34 : i1 to i32
    %c0_i32_17 = arith.constant 0 : i32
    %36 = arith.cmpi ne, %35, %c0_i32_17 : i32
    scf.if %36 {
      %c0_20 = arith.constant 0 : index
      %c0_21 = arith.constant 0 : index
      %c0_22 = arith.constant 0 : index
      %40 = vector.load %arg8[%c0_20, %c0_21, %c0_22] : memref<1x1x1024xf32, #tpu.memory_space<vmem>>, vector<1x1x1024xf32>
      %41 = vector.shape_cast %40 : vector<1x1x1024xf32> to vector<1x1024xf32>
      %42 = vector.shape_cast %33 : vector<1x1024xf32> to vector<1x1x1024xf32>
      tpu.vector_store %arg8[%c0_20, %c0_21, %c0_22], %42 {strides = array<i32>} : memref<1x1x1024xf32, #tpu.memory_space<vmem>>, vector<1x1x1024xf32>,
    } else {
    }
    %c0_i32_18 = arith.constant 0 : i32
    %37 = arith.cmpi sgt, %arg1, %c0_i32_18 : i32
    %38 = arith.extui %37 : i1 to i32
    %c0_i32_19 = arith.constant 0 : i32
    %39 = arith.cmpi ne, %38, %c0_i32_19 : i32
    scf.if %39 {
      %c0_20 = arith.constant 0 : index
      %c0_21 = arith.constant 0 : index
      %c0_22 = arith.constant 0 : index
      %40 = vector.load %arg8[%c0_20, %c0_21, %c0_22] : memref<1x1x1024xf32, #tpu.memory_space<vmem>>, vector<1x1x1024xf32>
      %41 = vector.shape_cast %40 : vector<1x1x1024xf32> to vector<1x1024xf32>
      %42 = arith.maximumf %41, %33 : vector<1x1024xf32>
      %c0_23 = arith.constant 0 : index
      %c0_24 = arith.constant 0 : index
      %c0_25 = arith.constant 0 : index
      %43 = vector.load %arg8[%c0_23, %c0_24, %c0_25] : memref<1x1x1024xf32, #tpu.memory_space<vmem>>, vector<1x1x1024xf32>
      %44 = vector.shape_cast %43 : vector<1x1x1024xf32> to vector<1x1024xf32>
      %45 = vector.shape_cast %42 : vector<1x1024xf32> to vector<1x1x1024xf32>
      tpu.vector_store %arg8[%c0_23, %c0_24, %c0_25], %45 {strides = array<i32>} : memref<1x1x1024xf32, #tpu.memory_space<vmem>>, vector<1x1x1024xf32>,
    } else {
    }
    return
  }
  func.func @transform_0(%arg0: i32, %arg1: i32) -> (i32, i32) {
    %c1_i32 = arith.constant 1 : i32
    %0 = arith.muli %arg0, %c1_i32 : i32
    %1 = arith.addi %0, %arg1 : i32
    %c0_i32 = arith.constant 0 : i32
    %c0_i32_0 = arith.constant 0 : i32
    return %1, %c0_i32 : i32, i32
  }
  func.func @transform_1(%arg0: i32, %arg1: i32) -> (i32, i32) {
    %c0_i32 = arith.constant 0 : i32
    %c0_i32_0 = arith.constant 0 : i32
    %c0_i32_1 = arith.constant 0 : i32
    return %c0_i32, %c0_i32_0 : i32, i32
  }
  func.func @transform_2(%arg0: i32, %arg1: i32) -> (i32, i32) {
    %c0_i32 = arith.constant 0 : i32
    %c0_i32_0 = arith.constant 0 : i32
    %c0_i32_1 = arith.constant 0 : i32
    return %c0_i32, %c0_i32_0 : i32, i32
  }
  func.func @transform_3(%arg0: i32, %arg1: i32) -> (i32, i32) {
    %c0_i32 = arith.constant 0 : i32
    %c0_i32_0 = arith.constant 0 : i32
    %c0_i32_1 = arith.constant 0 : i32
    return %c0_i32, %c0_i32_0 : i32, i32
  }
  func.func @transform_4(%arg0: i32, %arg1: i32) -> (i32, i32) {
    %c0_i32 = arith.constant 0 : i32
    %c0_i32_0 = arith.constant 0 : i32
    %c0_i32_1 = arith.constant 0 : i32
    return %c0_i32, %c0_i32_0 : i32, i32
  }
  func.func @transform_5(%arg0: i32, %arg1: i32) -> (i32, i32) {
    %c0_i32 = arith.constant 0 : i32
    %c0_i32_0 = arith.constant 0 : i32
    %c0_i32_1 = arith.constant 0 : i32
    return %c0_i32, %c0_i32_0 : i32, i32
  }
  func.func @transform_6(%arg0: i32, %arg1: i32) -> (i32, i32, i32) {
    %c0_i32 = arith.constant 0 : i32
    %c0_i32_0 = arith.constant 0 : i32
    %c0_i32_1 = arith.constant 0 : i32
    return %arg0, %c0_i32, %c0_i32_0 : i32, i32, i32
  }
}

module attributes {stable_mosaic.version = 11 : i64} {
  func.func @_stn_head_kernel(%arg0: i32, %arg1: memref<2x1024xf32, #tpu.memory_space<vmem>>, %arg2: memref<1024x512xbf16, #tpu.memory_space<vmem>>, %arg3: memref<1x512xf32, #tpu.memory_space<vmem>>, %arg4: memref<1x512xf32, #tpu.memory_space<vmem>>, %arg5: memref<1x512xf32, #tpu.memory_space<vmem>>, %arg6: memref<512x256xbf16, #tpu.memory_space<vmem>>, %arg7: memref<1x256xf32, #tpu.memory_space<vmem>>, %arg8: memref<1x256xf32, #tpu.memory_space<vmem>>, %arg9: memref<1x256xf32, #tpu.memory_space<vmem>>, %arg10: memref<256x9xbf16, #tpu.memory_space<vmem>>, %arg11: memref<1x9xf32, #tpu.memory_space<vmem>>, %arg12: memref<2x9xf32, #tpu.memory_space<vmem>>) attributes {dimension_semantics = [#tpu.dimension_semantics<arbitrary>], iteration_bounds = array<i64: 1>, scalar_prefetch = 0 : i64, scratch_operands = 0 : i64, tpu.core_type = #tpu.core_type<tc>, window_params = [{pipeline_mode = #tpu.pipeline_mode<synchronous>, transform_indices = @transform_0, window_bounds = array<i64: 2, 1024>}, {pipeline_mode = #tpu.pipeline_mode<synchronous>, transform_indices = @transform_1, window_bounds = array<i64: 1024, 512>}, {pipeline_mode = #tpu.pipeline_mode<synchronous>, transform_indices = @transform_2, window_bounds = array<i64: 1, 512>}, {pipeline_mode = #tpu.pipeline_mode<synchronous>, transform_indices = @transform_3, window_bounds = array<i64: 1, 512>}, {pipeline_mode = #tpu.pipeline_mode<synchronous>, transform_indices = @transform_4, window_bounds = array<i64: 1, 512>}, {pipeline_mode = #tpu.pipeline_mode<synchronous>, transform_indices = @transform_5, window_bounds = array<i64: 512, 256>}, {pipeline_mode = #tpu.pipeline_mode<synchronous>, transform_indices = @transform_6, window_bounds = array<i64: 1, 256>}, {pipeline_mode = #tpu.pipeline_mode<synchronous>, transform_indices = @transform_7, window_bounds = array<i64: 1, 256>}, {pipeline_mode = #tpu.pipeline_mode<synchronous>, transform_indices = @transform_8, window_bounds = array<i64: 1, 256>}, {pipeline_mode = #tpu.pipeline_mode<synchronous>, transform_indices = @transform_9, window_bounds = array<i64: 256, 9>}, {pipeline_mode = #tpu.pipeline_mode<synchronous>, transform_indices = @transform_10, window_bounds = array<i64: 1, 9>}, {pipeline_mode = #tpu.pipeline_mode<synchronous>, transform_indices = @transform_11, window_bounds = array<i64: 2, 9>}]} {
    %c0 = arith.constant 0 : index
    %c0_0 = arith.constant 0 : index
    %0 = vector.load %arg1[%c0, %c0_0] : memref<2x1024xf32, #tpu.memory_space<vmem>>, vector<2x1024xf32>
    %1 = arith.truncf %0 : vector<2x1024xf32> to vector<2x1024xbf16>
    %c0_1 = arith.constant 0 : index
    %c0_2 = arith.constant 0 : index
    %2 = vector.load %arg2[%c0_1, %c0_2] : memref<1024x512xbf16, #tpu.memory_space<vmem>>, vector<1024x512xbf16>
    %cst = arith.constant dense<0.000000e+00> : vector<2x512xf32>
    %3 = tpu.matmul %1, %2, %cst {dimension_numbers = #tpu.dot_dimension_numbers<[1], [0], [0], [1], [0, 0, 1, 1], [], []>} : vector<2x1024xbf16>, vector<1024x512xbf16>, vector<2x512xf32> -> vector<2x512xf32>
    %c0_3 = arith.constant 0 : index
    %c0_4 = arith.constant 0 : index
    %4 = vector.load %arg3[%c0_3, %c0_4] : memref<1x512xf32, #tpu.memory_space<vmem>>, vector<1x512xf32>
    %5 = vector.broadcast %4 : vector<1x512xf32> to vector<2x512xf32>
    %6 = arith.addf %3, %5 : vector<2x512xf32>
    %cst_5 = arith.constant dense<0.000000e+00> : vector<512xf32>
    %7 = vector.multi_reduction <add>, %6, %cst_5 [0] : vector<2x512xf32> to vector<512xf32>
    %8 = vector.shape_cast %7 : vector<512xf32> to vector<1x512xf32>
    %cst_6 = arith.constant 2.000000e+00 : f32
    %9 = vector.broadcast %cst_6 : f32 to vector<1x512xf32>
    %10 = arith.divf %8, %9 : vector<1x512xf32>
    %11 = vector.broadcast %10 : vector<1x512xf32> to vector<2x512xf32>
    %12 = arith.subf %6, %11 : vector<2x512xf32>
    %13 = arith.mulf %12, %12 : vector<2x512xf32>
    %cst_7 = arith.constant dense<0.000000e+00> : vector<512xf32>
    %14 = vector.multi_reduction <add>, %13, %cst_7 [0] : vector<2x512xf32> to vector<512xf32>
    %15 = vector.shape_cast %14 : vector<512xf32> to vector<1x512xf32>
    %cst_8 = arith.constant 2.000000e+00 : f32
    %16 = vector.broadcast %cst_8 : f32 to vector<1x512xf32>
    %17 = arith.divf %15, %16 : vector<1x512xf32>
    %18 = vector.broadcast %10 : vector<1x512xf32> to vector<2x512xf32>
    %19 = arith.subf %6, %18 : vector<2x512xf32>
    %cst_9 = arith.constant 9.99999974E-6 : f32
    %20 = vector.broadcast %cst_9 : f32 to vector<1x512xf32>
    %21 = arith.addf %17, %20 : vector<1x512xf32>
    %22 = math.rsqrt %21 : vector<1x512xf32>
    %23 = vector.broadcast %22 : vector<1x512xf32> to vector<2x512xf32>
    %24 = arith.mulf %19, %23 : vector<2x512xf32>
    %c0_10 = arith.constant 0 : index
    %c0_11 = arith.constant 0 : index
    %25 = vector.load %arg4[%c0_10, %c0_11] : memref<1x512xf32, #tpu.memory_space<vmem>>, vector<1x512xf32>
    %26 = vector.broadcast %25 : vector<1x512xf32> to vector<2x512xf32>
    %27 = arith.mulf %24, %26 : vector<2x512xf32>
    %c0_12 = arith.constant 0 : index
    %c0_13 = arith.constant 0 : index
    %28 = vector.load %arg5[%c0_12, %c0_13] : memref<1x512xf32, #tpu.memory_space<vmem>>, vector<1x512xf32>
    %29 = vector.broadcast %28 : vector<1x512xf32> to vector<2x512xf32>
    %30 = arith.addf %27, %29 : vector<2x512xf32>
    %cst_14 = arith.constant 0.000000e+00 : f32
    %31 = vector.broadcast %cst_14 : f32 to vector<2x512xf32>
    %32 = arith.maximumf %30, %31 : vector<2x512xf32>
    %33 = arith.truncf %32 : vector<2x512xf32> to vector<2x512xbf16>
    %c0_15 = arith.constant 0 : index
    %c0_16 = arith.constant 0 : index
    %34 = vector.load %arg6[%c0_15, %c0_16] : memref<512x256xbf16, #tpu.memory_space<vmem>>, vector<512x256xbf16>
    %cst_17 = arith.constant dense<0.000000e+00> : vector<2x256xf32>
    %35 = tpu.matmul %33, %34, %cst_17 {dimension_numbers = #tpu.dot_dimension_numbers<[1], [0], [0], [1], [0, 0, 1, 1], [], []>} : vector<2x512xbf16>, vector<512x256xbf16>, vector<2x256xf32> -> vector<2x256xf32>
    %c0_18 = arith.constant 0 : index
    %c0_19 = arith.constant 0 : index
    %36 = vector.load %arg7[%c0_18, %c0_19] : memref<1x256xf32, #tpu.memory_space<vmem>>, vector<1x256xf32>
    %37 = vector.broadcast %36 : vector<1x256xf32> to vector<2x256xf32>
    %38 = arith.addf %35, %37 : vector<2x256xf32>
    %cst_20 = arith.constant dense<0.000000e+00> : vector<256xf32>
    %39 = vector.multi_reduction <add>, %38, %cst_20 [0] : vector<2x256xf32> to vector<256xf32>
    %40 = vector.shape_cast %39 : vector<256xf32> to vector<1x256xf32>
    %cst_21 = arith.constant 2.000000e+00 : f32
    %41 = vector.broadcast %cst_21 : f32 to vector<1x256xf32>
    %42 = arith.divf %40, %41 : vector<1x256xf32>
    %43 = vector.broadcast %42 : vector<1x256xf32> to vector<2x256xf32>
    %44 = arith.subf %38, %43 : vector<2x256xf32>
    %45 = arith.mulf %44, %44 : vector<2x256xf32>
    %cst_22 = arith.constant dense<0.000000e+00> : vector<256xf32>
    %46 = vector.multi_reduction <add>, %45, %cst_22 [0] : vector<2x256xf32> to vector<256xf32>
    %47 = vector.shape_cast %46 : vector<256xf32> to vector<1x256xf32>
    %cst_23 = arith.constant 2.000000e+00 : f32
    %48 = vector.broadcast %cst_23 : f32 to vector<1x256xf32>
    %49 = arith.divf %47, %48 : vector<1x256xf32>
    %50 = vector.broadcast %42 : vector<1x256xf32> to vector<2x256xf32>
    %51 = arith.subf %38, %50 : vector<2x256xf32>
    %cst_24 = arith.constant 9.99999974E-6 : f32
    %52 = vector.broadcast %cst_24 : f32 to vector<1x256xf32>
    %53 = arith.addf %49, %52 : vector<1x256xf32>
    %54 = math.rsqrt %53 : vector<1x256xf32>
    %55 = vector.broadcast %54 : vector<1x256xf32> to vector<2x256xf32>
    %56 = arith.mulf %51, %55 : vector<2x256xf32>
    %c0_25 = arith.constant 0 : index
    %c0_26 = arith.constant 0 : index
    %57 = vector.load %arg8[%c0_25, %c0_26] : memref<1x256xf32, #tpu.memory_space<vmem>>, vector<1x256xf32>
    %58 = vector.broadcast %57 : vector<1x256xf32> to vector<2x256xf32>
    %59 = arith.mulf %56, %58 : vector<2x256xf32>
    %c0_27 = arith.constant 0 : index
    %c0_28 = arith.constant 0 : index
    %60 = vector.load %arg9[%c0_27, %c0_28] : memref<1x256xf32, #tpu.memory_space<vmem>>, vector<1x256xf32>
    %61 = vector.broadcast %60 : vector<1x256xf32> to vector<2x256xf32>
    %62 = arith.addf %59, %61 : vector<2x256xf32>
    %cst_29 = arith.constant 0.000000e+00 : f32
    %63 = vector.broadcast %cst_29 : f32 to vector<2x256xf32>
    %64 = arith.maximumf %62, %63 : vector<2x256xf32>
    %65 = arith.truncf %64 : vector<2x256xf32> to vector<2x256xbf16>
    %c0_30 = arith.constant 0 : index
    %c0_31 = arith.constant 0 : index
    %66 = vector.load %arg10[%c0_30, %c0_31] : memref<256x9xbf16, #tpu.memory_space<vmem>>, vector<256x9xbf16>
    %cst_32 = arith.constant dense<0.000000e+00> : vector<2x9xf32>
    %67 = tpu.matmul %65, %66, %cst_32 {dimension_numbers = #tpu.dot_dimension_numbers<[1], [0], [0], [1], [0, 0, 1, 1], [], []>} : vector<2x256xbf16>, vector<256x9xbf16>, vector<2x9xf32> -> vector<2x9xf32>
    %c0_33 = arith.constant 0 : index
    %c0_34 = arith.constant 0 : index
    %68 = vector.load %arg11[%c0_33, %c0_34] : memref<1x9xf32, #tpu.memory_space<vmem>>, vector<1x9xf32>
    %69 = vector.broadcast %68 : vector<1x9xf32> to vector<2x9xf32>
    %70 = arith.addf %67, %69 : vector<2x9xf32>
    %c0_35 = arith.constant 0 : index
    %c0_36 = arith.constant 0 : index
    %71 = vector.load %arg12[%c0_35, %c0_36] : memref<2x9xf32, #tpu.memory_space<vmem>>, vector<2x9xf32>
    tpu.vector_store %arg12[%c0_35, %c0_36], %70 {strides = array<i32>} : memref<2x9xf32, #tpu.memory_space<vmem>>, vector<2x9xf32>,
    return
  }
  func.func @transform_0(%arg0: i32) -> (i32, i32) {
    %c0_i32 = arith.constant 0 : i32
    %c0_i32_0 = arith.constant 0 : i32
    %c0_i32_1 = arith.constant 0 : i32
    return %c0_i32, %c0_i32_0 : i32, i32
  }
  func.func @transform_1(%arg0: i32) -> (i32, i32) {
    %c0_i32 = arith.constant 0 : i32
    %c0_i32_0 = arith.constant 0 : i32
    %c0_i32_1 = arith.constant 0 : i32
    return %c0_i32, %c0_i32_0 : i32, i32
  }
  func.func @transform_2(%arg0: i32) -> (i32, i32) {
    %c0_i32 = arith.constant 0 : i32
    %c0_i32_0 = arith.constant 0 : i32
    %c0_i32_1 = arith.constant 0 : i32
    return %c0_i32, %c0_i32_0 : i32, i32
  }
  func.func @transform_3(%arg0: i32) -> (i32, i32) {
    %c0_i32 = arith.constant 0 : i32
    %c0_i32_0 = arith.constant 0 : i32
    %c0_i32_1 = arith.constant 0 : i32
    return %c0_i32, %c0_i32_0 : i32, i32
  }
  func.func @transform_4(%arg0: i32) -> (i32, i32) {
    %c0_i32 = arith.constant 0 : i32
    %c0_i32_0 = arith.constant 0 : i32
    %c0_i32_1 = arith.constant 0 : i32
    return %c0_i32, %c0_i32_0 : i32, i32
  }
  func.func @transform_5(%arg0: i32) -> (i32, i32) {
    %c0_i32 = arith.constant 0 : i32
    %c0_i32_0 = arith.constant 0 : i32
    %c0_i32_1 = arith.constant 0 : i32
    return %c0_i32, %c0_i32_0 : i32, i32
  }
  func.func @transform_6(%arg0: i32) -> (i32, i32) {
    %c0_i32 = arith.constant 0 : i32
    %c0_i32_0 = arith.constant 0 : i32
    %c0_i32_1 = arith.constant 0 : i32
    return %c0_i32, %c0_i32_0 : i32, i32
  }
  func.func @transform_7(%arg0: i32) -> (i32, i32) {
    %c0_i32 = arith.constant 0 : i32
    %c0_i32_0 = arith.constant 0 : i32
    %c0_i32_1 = arith.constant 0 : i32
    return %c0_i32, %c0_i32_0 : i32, i32
  }
  func.func @transform_8(%arg0: i32) -> (i32, i32) {
    %c0_i32 = arith.constant 0 : i32
    %c0_i32_0 = arith.constant 0 : i32
    %c0_i32_1 = arith.constant 0 : i32
    return %c0_i32, %c0_i32_0 : i32, i32
  }
  func.func @transform_9(%arg0: i32) -> (i32, i32) {
    %c0_i32 = arith.constant 0 : i32
    %c0_i32_0 = arith.constant 0 : i32
    %c0_i32_1 = arith.constant 0 : i32
    return %c0_i32, %c0_i32_0 : i32, i32
  }
  func.func @transform_10(%arg0: i32) -> (i32, i32) {
    %c0_i32 = arith.constant 0 : i32
    %c0_i32_0 = arith.constant 0 : i32
    %c0_i32_1 = arith.constant 0 : i32
    return %c0_i32, %c0_i32_0 : i32, i32
  }
  func.func @transform_11(%arg0: i32) -> (i32, i32) {
    %c0_i32 = arith.constant 0 : i32
    %c0_i32_0 = arith.constant 0 : i32
    %c0_i32_1 = arith.constant 0 : i32
    return %c0_i32, %c0_i32_0 : i32, i32
  }
}

module attributes {stable_mosaic.version = 11 : i64} {
  func.func @kernel(%arg0: i32, %arg1: i32, %arg2: memref<16x3xf32, #tpu.memory_space<vmem>>, %arg3: memref<1x3x3xf32, #tpu.memory_space<vmem>>, %arg4: memref<3x64xbf16, #tpu.memory_space<vmem>>, %arg5: memref<1x64xf32, #tpu.memory_space<vmem>>, %arg6: memref<2x64xf32, #tpu.memory_space<vmem>>) attributes {dimension_semantics = [#tpu.dimension_semantics<arbitrary>, #tpu.dimension_semantics<arbitrary>], iteration_bounds = array<i64: 2, 1>, scalar_prefetch = 0 : i64, scratch_operands = 0 : i64, tpu.core_type = #tpu.core_type<tc>, window_params = [{transform_indices = @transform_0, window_bounds = array<i64: 16, 3>}, {transform_indices = @transform_1, window_bounds = array<i64: 1, 3, 3>}, {pipeline_mode = #tpu.pipeline_mode<synchronous>, transform_indices = @transform_2, window_bounds = array<i64: 3, 64>}, {pipeline_mode = #tpu.pipeline_mode<synchronous>, transform_indices = @transform_3, window_bounds = array<i64: 1, 64>}, {pipeline_mode = #tpu.pipeline_mode<synchronous>, transform_indices = @transform_4, window_bounds = array<i64: 2, 64>}]} {
    %c0 = arith.constant 0 : index
    %c0_0 = arith.constant 0 : index
    %0 = vector.load %arg2[%c0, %c0_0] : memref<16x3xf32, #tpu.memory_space<vmem>>, vector<16x3xf32>
    %c0_1 = arith.constant 0 : index
    %c0_2 = arith.constant 0 : index
    %c0_3 = arith.constant 0 : index
    %1 = vector.load %arg3[%c0_1, %c0_2, %c0_3] : memref<1x3x3xf32, #tpu.memory_space<vmem>>, vector<1x3x3xf32>
    %2 = vector.shape_cast %1 : vector<1x3x3xf32> to vector<3x3xf32>
    %cst = arith.constant dense<0.000000e+00> : vector<16x3xf32>
    %3 = tpu.matmul %0, %2, %cst {dimension_numbers = #tpu.dot_dimension_numbers<[1], [0], [0], [1], [0, 0, 1, 1], [], []>} : vector<16x3xf32>, vector<3x3xf32>, vector<16x3xf32> -> vector<16x3xf32>
    %4 = arith.truncf %3 : vector<16x3xf32> to vector<16x3xbf16>
    %c0_4 = arith.constant 0 : index
    %c0_5 = arith.constant 0 : index
    %5 = vector.load %arg4[%c0_4, %c0_5] : memref<3x64xbf16, #tpu.memory_space<vmem>>, vector<3x64xbf16>
    %cst_6 = arith.constant dense<0.000000e+00> : vector<16x64xf32>
    %6 = tpu.matmul %4, %5, %cst_6 {dimension_numbers = #tpu.dot_dimension_numbers<[1], [0], [0], [1], [0, 0, 1, 1], [], []>} : vector<16x3xbf16>, vector<3x64xbf16>, vector<16x64xf32> -> vector<16x64xf32>
    %c0_7 = arith.constant 0 : index
    %c0_8 = arith.constant 0 : index
    %7 = vector.load %arg5[%c0_7, %c0_8] : memref<1x64xf32, #tpu.memory_space<vmem>>, vector<1x64xf32>
    %8 = vector.broadcast %7 : vector<1x64xf32> to vector<16x64xf32>
    %9 = arith.addf %6, %8 : vector<16x64xf32>
    %c0_i32 = arith.constant 0 : i32
    %10 = arith.cmpi eq, %arg0, %c0_i32 : i32
    %c0_i32_9 = arith.constant 0 : i32
    %11 = arith.cmpi eq, %arg1, %c0_i32_9 : i32
    %12 = arith.andi %10, %11 : i1
    %13 = arith.extui %12 : i1 to i32
    %c0_i32_10 = arith.constant 0 : i32
    %14 = arith.cmpi ne, %13, %c0_i32_10 : i32
    scf.if %14 {
      %cst_17 = arith.constant 0.000000e+00 : f32
      %24 = vector.broadcast %cst_17 : f32 to vector<2x64xf32>
      %c0_18 = arith.constant 0 : index
      %c0_19 = arith.constant 0 : index
      %25 = vector.load %arg6[%c0_18, %c0_19] : memref<2x64xf32, #tpu.memory_space<vmem>>, vector<2x64xf32>
      tpu.vector_store %arg6[%c0_18, %c0_19], %24 {strides = array<i32>} : memref<2x64xf32, #tpu.memory_space<vmem>>, vector<2x64xf32>,
    } else {
    }
    %cst_11 = arith.constant dense<0.000000e+00> : vector<64xf32>
    %15 = vector.multi_reduction <add>, %9, %cst_11 [0] : vector<16x64xf32> to vector<64xf32>
    %16 = vector.shape_cast %15 : vector<64xf32> to vector<1x64xf32>
    %17 = arith.mulf %9, %9 : vector<16x64xf32>
    %cst_12 = arith.constant dense<0.000000e+00> : vector<64xf32>
    %18 = vector.multi_reduction <add>, %17, %cst_12 [0] : vector<16x64xf32> to vector<64xf32>
    %19 = vector.shape_cast %18 : vector<64xf32> to vector<1x64xf32>
    %c0_13 = arith.constant 0 : index
    %c0_14 = arith.constant 0 : index
    %20 = vector.load %arg6[%c0_13, %c0_14] : memref<2x64xf32, #tpu.memory_space<vmem>>, vector<2x64xf32>
    %21 = tpu.concatenate %16, %19 in 0 : vector<1x64xf32>, vector<1x64xf32> -> vector<2x64xf32>
    %22 = arith.addf %20, %21 : vector<2x64xf32>
    %c0_15 = arith.constant 0 : index
    %c0_16 = arith.constant 0 : index
    %23 = vector.load %arg6[%c0_15, %c0_16] : memref<2x64xf32, #tpu.memory_space<vmem>>, vector<2x64xf32>
    tpu.vector_store %arg6[%c0_15, %c0_16], %22 {strides = array<i32>} : memref<2x64xf32, #tpu.memory_space<vmem>>, vector<2x64xf32>,
    return
  }
  func.func @transform_0(%arg0: i32, %arg1: i32) -> (i32, i32) {
    %c1_i32 = arith.constant 1 : i32
    %0 = arith.muli %arg0, %c1_i32 : i32
    %1 = arith.addi %0, %arg1 : i32
    %c0_i32 = arith.constant 0 : i32
    %c0_i32_0 = arith.constant 0 : i32
    return %1, %c0_i32 : i32, i32
  }
  func.func @transform_1(%arg0: i32, %arg1: i32) -> (i32, i32, i32) {
    %c0_i32 = arith.constant 0 : i32
    %c0_i32_0 = arith.constant 0 : i32
    %c0_i32_1 = arith.constant 0 : i32
    return %arg0, %c0_i32, %c0_i32_0 : i32, i32, i32
  }
  func.func @transform_2(%arg0: i32, %arg1: i32) -> (i32, i32) {
    %c0_i32 = arith.constant 0 : i32
    %c0_i32_0 = arith.constant 0 : i32
    %c0_i32_1 = arith.constant 0 : i32
    return %c0_i32, %c0_i32_0 : i32, i32
  }
  func.func @transform_3(%arg0: i32, %arg1: i32) -> (i32, i32) {
    %c0_i32 = arith.constant 0 : i32
    %c0_i32_0 = arith.constant 0 : i32
    %c0_i32_1 = arith.constant 0 : i32
    return %c0_i32, %c0_i32_0 : i32, i32
  }
  func.func @transform_4(%arg0: i32, %arg1: i32) -> (i32, i32) {
    %c0_i32 = arith.constant 0 : i32
    %c0_i32_0 = arith.constant 0 : i32
    %c0_i32_1 = arith.constant 0 : i32
    return %c0_i32, %c0_i32_0 : i32, i32
  }
}

module attributes {stable_mosaic.version = 11 : i64} {
  func.func @kernel(%arg0: i32, %arg1: i32, %arg2: memref<16x3xf32, #tpu.memory_space<vmem>>, %arg3: memref<1x3x3xf32, #tpu.memory_space<vmem>>, %arg4: memref<3x64xbf16, #tpu.memory_space<vmem>>, %arg5: memref<1x64xf32, #tpu.memory_space<vmem>>, %arg6: memref<1x64xf32, #tpu.memory_space<vmem>>, %arg7: memref<1x64xf32, #tpu.memory_space<vmem>>, %arg8: memref<3x64xbf16, #tpu.memory_space<vmem>>, %arg9: memref<1x64xf32, #tpu.memory_space<vmem>>, %arg10: memref<2x64xf32, #tpu.memory_space<vmem>>, %arg11: memref<16x64xbf16, #tpu.memory_space<vmem>>) attributes {dimension_semantics = [#tpu.dimension_semantics<parallel>, #tpu.dimension_semantics<parallel>], iteration_bounds = array<i64: 2, 1>, scalar_prefetch = 0 : i64, scratch_operands = 0 : i64, tpu.core_type = #tpu.core_type<tc>, window_params = [{transform_indices = @transform_0, window_bounds = array<i64: 16, 3>}, {transform_indices = @transform_1, window_bounds = array<i64: 1, 3, 3>}, {pipeline_mode = #tpu.pipeline_mode<synchronous>, transform_indices = @transform_2, window_bounds = array<i64: 3, 64>}, {pipeline_mode = #tpu.pipeline_mode<synchronous>, transform_indices = @transform_3, window_bounds = array<i64: 1, 64>}, {pipeline_mode = #tpu.pipeline_mode<synchronous>, transform_indices = @transform_4, window_bounds = array<i64: 1, 64>}, {pipeline_mode = #tpu.pipeline_mode<synchronous>, transform_indices = @transform_5, window_bounds = array<i64: 1, 64>}, {pipeline_mode = #tpu.pipeline_mode<synchronous>, transform_indices = @transform_6, window_bounds = array<i64: 3, 64>}, {pipeline_mode = #tpu.pipeline_mode<synchronous>, transform_indices = @transform_7, window_bounds = array<i64: 1, 64>}, {pipeline_mode = #tpu.pipeline_mode<synchronous>, transform_indices = @transform_8, window_bounds = array<i64: 2, 64>}, {transform_indices = @transform_9, window_bounds = array<i64: 16, 64>}]} {
    %c0 = arith.constant 0 : index
    %c0_0 = arith.constant 0 : index
    %0 = vector.load %arg2[%c0, %c0_0] : memref<16x3xf32, #tpu.memory_space<vmem>>, vector<16x3xf32>
    %c0_1 = arith.constant 0 : index
    %c0_2 = arith.constant 0 : index
    %c0_3 = arith.constant 0 : index
    %1 = vector.load %arg3[%c0_1, %c0_2, %c0_3] : memref<1x3x3xf32, #tpu.memory_space<vmem>>, vector<1x3x3xf32>
    %2 = vector.shape_cast %1 : vector<1x3x3xf32> to vector<3x3xf32>
    %cst = arith.constant dense<0.000000e+00> : vector<16x3xf32>
    %3 = tpu.matmul %0, %2, %cst {dimension_numbers = #tpu.dot_dimension_numbers<[1], [0], [0], [1], [0, 0, 1, 1], [], []>} : vector<16x3xf32>, vector<3x3xf32>, vector<16x3xf32> -> vector<16x3xf32>
    %4 = arith.truncf %3 : vector<16x3xf32> to vector<16x3xbf16>
    %c0_4 = arith.constant 0 : index
    %c0_5 = arith.constant 0 : index
    %5 = vector.load %arg4[%c0_4, %c0_5] : memref<3x64xbf16, #tpu.memory_space<vmem>>, vector<3x64xbf16>
    %cst_6 = arith.constant dense<0.000000e+00> : vector<16x64xf32>
    %6 = tpu.matmul %4, %5, %cst_6 {dimension_numbers = #tpu.dot_dimension_numbers<[1], [0], [0], [1], [0, 0, 1, 1], [], []>} : vector<16x3xbf16>, vector<3x64xbf16>, vector<16x64xf32> -> vector<16x64xf32>
    %c0_7 = arith.constant 0 : index
    %c0_8 = arith.constant 0 : index
    %7 = vector.load %arg5[%c0_7, %c0_8] : memref<1x64xf32, #tpu.memory_space<vmem>>, vector<1x64xf32>
    %8 = vector.broadcast %7 : vector<1x64xf32> to vector<16x64xf32>
    %9 = arith.addf %6, %8 : vector<16x64xf32>
    %c0_9 = arith.constant 0 : index
    %c0_10 = arith.constant 0 : index
    %10 = vector.load %arg10[%c0_9, %c0_10] : memref<2x64xf32, #tpu.memory_space<vmem>>, vector<2x64xf32>
    %11 = vector.extract_strided_slice %10 {offsets = [0, 0], sizes = [1, 64], strides = [1, 1]} : vector<2x64xf32> to vector<1x64xf32>
    %cst_11 = arith.constant 3.125000e-02 : f32
    %12 = vector.broadcast %cst_11 : f32 to vector<1x64xf32>
    %13 = arith.mulf %11, %12 : vector<1x64xf32>
    %14 = vector.extract_strided_slice %10 {offsets = [1, 0], sizes = [1, 64], strides = [1, 1]} : vector<2x64xf32> to vector<1x64xf32>
    %cst_12 = arith.constant 3.125000e-02 : f32
    %15 = vector.broadcast %cst_12 : f32 to vector<1x64xf32>
    %16 = arith.mulf %14, %15 : vector<1x64xf32>
    %17 = arith.mulf %13, %13 : vector<1x64xf32>
    %18 = arith.subf %16, %17 : vector<1x64xf32>
    %cst_13 = arith.constant 0.000000e+00 : f32
    %19 = vector.broadcast %cst_13 : f32 to vector<1x64xf32>
    %20 = arith.maximumf %18, %19 : vector<1x64xf32>
    %21 = vector.broadcast %13 : vector<1x64xf32> to vector<16x64xf32>
    %22 = arith.subf %9, %21 : vector<16x64xf32>
    %cst_14 = arith.constant 9.99999974E-6 : f32
    %23 = vector.broadcast %cst_14 : f32 to vector<1x64xf32>
    %24 = arith.addf %20, %23 : vector<1x64xf32>
    %25 = math.rsqrt %24 : vector<1x64xf32>
    %26 = vector.broadcast %25 : vector<1x64xf32> to vector<16x64xf32>
    %27 = arith.mulf %22, %26 : vector<16x64xf32>
    %c0_15 = arith.constant 0 : index
    %c0_16 = arith.constant 0 : index
    %28 = vector.load %arg6[%c0_15, %c0_16] : memref<1x64xf32, #tpu.memory_space<vmem>>, vector<1x64xf32>
    %29 = vector.broadcast %28 : vector<1x64xf32> to vector<16x64xf32>
    %30 = arith.mulf %27, %29 : vector<16x64xf32>
    %c0_17 = arith.constant 0 : index
    %c0_18 = arith.constant 0 : index
    %31 = vector.load %arg7[%c0_17, %c0_18] : memref<1x64xf32, #tpu.memory_space<vmem>>, vector<1x64xf32>
    %32 = vector.broadcast %31 : vector<1x64xf32> to vector<16x64xf32>
    %33 = arith.addf %30, %32 : vector<16x64xf32>
    %cst_19 = arith.constant 0.000000e+00 : f32
    %34 = vector.broadcast %cst_19 : f32 to vector<16x64xf32>
    %35 = arith.maximumf %33, %34 : vector<16x64xf32>
    %c0_20 = arith.constant 0 : index
    %c0_21 = arith.constant 0 : index
    %36 = vector.load %arg8[%c0_20, %c0_21] : memref<3x64xbf16, #tpu.memory_space<vmem>>, vector<3x64xbf16>
    %cst_22 = arith.constant dense<0.000000e+00> : vector<16x64xf32>
    %37 = tpu.matmul %4, %36, %cst_22 {dimension_numbers = #tpu.dot_dimension_numbers<[1], [0], [0], [1], [0, 0, 1, 1], [], []>} : vector<16x3xbf16>, vector<3x64xbf16>, vector<16x64xf32> -> vector<16x64xf32>
    %38 = arith.addf %35, %37 : vector<16x64xf32>
    %c0_23 = arith.constant 0 : index
    %c0_24 = arith.constant 0 : index
    %39 = vector.load %arg9[%c0_23, %c0_24] : memref<1x64xf32, #tpu.memory_space<vmem>>, vector<1x64xf32>
    %40 = vector.broadcast %39 : vector<1x64xf32> to vector<16x64xf32>
    %41 = arith.addf %38, %40 : vector<16x64xf32>
    %42 = arith.truncf %41 : vector<16x64xf32> to vector<16x64xbf16>
    %c0_25 = arith.constant 0 : index
    %c0_26 = arith.constant 0 : index
    %43 = vector.load %arg11[%c0_25, %c0_26] : memref<16x64xbf16, #tpu.memory_space<vmem>>, vector<16x64xbf16>
    tpu.vector_store %arg11[%c0_25, %c0_26], %42 {strides = array<i32>} : memref<16x64xbf16, #tpu.memory_space<vmem>>, vector<16x64xbf16>,
    return
  }
  func.func @transform_0(%arg0: i32, %arg1: i32) -> (i32, i32) {
    %c1_i32 = arith.constant 1 : i32
    %0 = arith.muli %arg0, %c1_i32 : i32
    %1 = arith.addi %0, %arg1 : i32
    %c0_i32 = arith.constant 0 : i32
    %c0_i32_0 = arith.constant 0 : i32
    return %1, %c0_i32 : i32, i32
  }
  func.func @transform_1(%arg0: i32, %arg1: i32) -> (i32, i32, i32) {
    %c0_i32 = arith.constant 0 : i32
    %c0_i32_0 = arith.constant 0 : i32
    %c0_i32_1 = arith.constant 0 : i32
    return %arg0, %c0_i32, %c0_i32_0 : i32, i32, i32
  }
  func.func @transform_2(%arg0: i32, %arg1: i32) -> (i32, i32) {
    %c0_i32 = arith.constant 0 : i32
    %c0_i32_0 = arith.constant 0 : i32
    %c0_i32_1 = arith.constant 0 : i32
    return %c0_i32, %c0_i32_0 : i32, i32
  }
  func.func @transform_3(%arg0: i32, %arg1: i32) -> (i32, i32) {
    %c0_i32 = arith.constant 0 : i32
    %c0_i32_0 = arith.constant 0 : i32
    %c0_i32_1 = arith.constant 0 : i32
    return %c0_i32, %c0_i32_0 : i32, i32
  }
  func.func @transform_4(%arg0: i32, %arg1: i32) -> (i32, i32) {
    %c0_i32 = arith.constant 0 : i32
    %c0_i32_0 = arith.constant 0 : i32
    %c0_i32_1 = arith.constant 0 : i32
    return %c0_i32, %c0_i32_0 : i32, i32
  }
  func.func @transform_5(%arg0: i32, %arg1: i32) -> (i32, i32) {
    %c0_i32 = arith.constant 0 : i32
    %c0_i32_0 = arith.constant 0 : i32
    %c0_i32_1 = arith.constant 0 : i32
    return %c0_i32, %c0_i32_0 : i32, i32
  }
  func.func @transform_6(%arg0: i32, %arg1: i32) -> (i32, i32) {
    %c0_i32 = arith.constant 0 : i32
    %c0_i32_0 = arith.constant 0 : i32
    %c0_i32_1 = arith.constant 0 : i32
    return %c0_i32, %c0_i32_0 : i32, i32
  }
  func.func @transform_7(%arg0: i32, %arg1: i32) -> (i32, i32) {
    %c0_i32 = arith.constant 0 : i32
    %c0_i32_0 = arith.constant 0 : i32
    %c0_i32_1 = arith.constant 0 : i32
    return %c0_i32, %c0_i32_0 : i32, i32
  }
  func.func @transform_8(%arg0: i32, %arg1: i32) -> (i32, i32) {
    %c0_i32 = arith.constant 0 : i32
    %c0_i32_0 = arith.constant 0 : i32
    %c0_i32_1 = arith.constant 0 : i32
    return %c0_i32, %c0_i32_0 : i32, i32
  }
  func.func @transform_9(%arg0: i32, %arg1: i32) -> (i32, i32) {
    %c1_i32 = arith.constant 1 : i32
    %0 = arith.muli %arg0, %c1_i32 : i32
    %1 = arith.addi %0, %arg1 : i32
    %c0_i32 = arith.constant 0 : i32
    %c0_i32_0 = arith.constant 0 : i32
    return %1, %c0_i32 : i32, i32
  }
}

module attributes {stable_mosaic.version = 11 : i64} {
  func.func @kernel(%arg0: i32, %arg1: i32, %arg2: memref<16x64xbf16, #tpu.memory_space<vmem>>, %arg3: memref<64x128xbf16, #tpu.memory_space<vmem>>, %arg4: memref<1x128xf32, #tpu.memory_space<vmem>>, %arg5: memref<2x128xf32, #tpu.memory_space<vmem>>) attributes {dimension_semantics = [#tpu.dimension_semantics<arbitrary>, #tpu.dimension_semantics<arbitrary>], iteration_bounds = array<i64: 2, 1>, scalar_prefetch = 0 : i64, scratch_operands = 0 : i64, tpu.core_type = #tpu.core_type<tc>, window_params = [{transform_indices = @transform_0, window_bounds = array<i64: 16, 64>}, {pipeline_mode = #tpu.pipeline_mode<synchronous>, transform_indices = @transform_1, window_bounds = array<i64: 64, 128>}, {pipeline_mode = #tpu.pipeline_mode<synchronous>, transform_indices = @transform_2, window_bounds = array<i64: 1, 128>}, {pipeline_mode = #tpu.pipeline_mode<synchronous>, transform_indices = @transform_3, window_bounds = array<i64: 2, 128>}]} {
    %c0 = arith.constant 0 : index
    %c0_0 = arith.constant 0 : index
    %0 = vector.load %arg2[%c0, %c0_0] : memref<16x64xbf16, #tpu.memory_space<vmem>>, vector<16x64xbf16>
    %c0_1 = arith.constant 0 : index
    %c0_2 = arith.constant 0 : index
    %1 = vector.load %arg3[%c0_1, %c0_2] : memref<64x128xbf16, #tpu.memory_space<vmem>>, vector<64x128xbf16>
    %cst = arith.constant dense<0.000000e+00> : vector<16x128xf32>
    %2 = tpu.matmul %0, %1, %cst {dimension_numbers = #tpu.dot_dimension_numbers<[1], [0], [0], [1], [0, 0, 1, 1], [], []>} : vector<16x64xbf16>, vector<64x128xbf16>, vector<16x128xf32> -> vector<16x128xf32>
    %c0_3 = arith.constant 0 : index
    %c0_4 = arith.constant 0 : index
    %3 = vector.load %arg4[%c0_3, %c0_4] : memref<1x128xf32, #tpu.memory_space<vmem>>, vector<1x128xf32>
    %4 = vector.broadcast %3 : vector<1x128xf32> to vector<16x128xf32>
    %5 = arith.addf %2, %4 : vector<16x128xf32>
    %c0_i32 = arith.constant 0 : i32
    %6 = arith.cmpi eq, %arg0, %c0_i32 : i32
    %c0_i32_5 = arith.constant 0 : i32
    %7 = arith.cmpi eq, %arg1, %c0_i32_5 : i32
    %8 = arith.andi %6, %7 : i1
    %9 = arith.extui %8 : i1 to i32
    %c0_i32_6 = arith.constant 0 : i32
    %10 = arith.cmpi ne, %9, %c0_i32_6 : i32
    scf.if %10 {
      %cst_13 = arith.constant 0.000000e+00 : f32
      %20 = vector.broadcast %cst_13 : f32 to vector<2x128xf32>
      %c0_14 = arith.constant 0 : index
      %c0_15 = arith.constant 0 : index
      %21 = vector.load %arg5[%c0_14, %c0_15] : memref<2x128xf32, #tpu.memory_space<vmem>>, vector<2x128xf32>
      tpu.vector_store %arg5[%c0_14, %c0_15], %20 {strides = array<i32>} : memref<2x128xf32, #tpu.memory_space<vmem>>, vector<2x128xf32>,
    } else {
    }
    %cst_7 = arith.constant dense<0.000000e+00> : vector<128xf32>
    %11 = vector.multi_reduction <add>, %5, %cst_7 [0] : vector<16x128xf32> to vector<128xf32>
    %12 = vector.shape_cast %11 : vector<128xf32> to vector<1x128xf32>
    %13 = arith.mulf %5, %5 : vector<16x128xf32>
    %cst_8 = arith.constant dense<0.000000e+00> : vector<128xf32>
    %14 = vector.multi_reduction <add>, %13, %cst_8 [0] : vector<16x128xf32> to vector<128xf32>
    %15 = vector.shape_cast %14 : vector<128xf32> to vector<1x128xf32>
    %c0_9 = arith.constant 0 : index
    %c0_10 = arith.constant 0 : index
    %16 = vector.load %arg5[%c0_9, %c0_10] : memref<2x128xf32, #tpu.memory_space<vmem>>, vector<2x128xf32>
    %17 = tpu.concatenate %12, %15 in 0 : vector<1x128xf32>, vector<1x128xf32> -> vector<2x128xf32>
    %18 = arith.addf %16, %17 : vector<2x128xf32>
    %c0_11 = arith.constant 0 : index
    %c0_12 = arith.constant 0 : index
    %19 = vector.load %arg5[%c0_11, %c0_12] : memref<2x128xf32, #tpu.memory_space<vmem>>, vector<2x128xf32>
    tpu.vector_store %arg5[%c0_11, %c0_12], %18 {strides = array<i32>} : memref<2x128xf32, #tpu.memory_space<vmem>>, vector<2x128xf32>,
    return
  }
  func.func @transform_0(%arg0: i32, %arg1: i32) -> (i32, i32) {
    %c1_i32 = arith.constant 1 : i32
    %0 = arith.muli %arg0, %c1_i32 : i32
    %1 = arith.addi %0, %arg1 : i32
    %c0_i32 = arith.constant 0 : i32
    %c0_i32_0 = arith.constant 0 : i32
    return %1, %c0_i32 : i32, i32
  }
  func.func @transform_1(%arg0: i32, %arg1: i32) -> (i32, i32) {
    %c0_i32 = arith.constant 0 : i32
    %c0_i32_0 = arith.constant 0 : i32
    %c0_i32_1 = arith.constant 0 : i32
    return %c0_i32, %c0_i32_0 : i32, i32
  }
  func.func @transform_2(%arg0: i32, %arg1: i32) -> (i32, i32) {
    %c0_i32 = arith.constant 0 : i32
    %c0_i32_0 = arith.constant 0 : i32
    %c0_i32_1 = arith.constant 0 : i32
    return %c0_i32, %c0_i32_0 : i32, i32
  }
  func.func @transform_3(%arg0: i32, %arg1: i32) -> (i32, i32) {
    %c0_i32 = arith.constant 0 : i32
    %c0_i32_0 = arith.constant 0 : i32
    %c0_i32_1 = arith.constant 0 : i32
    return %c0_i32, %c0_i32_0 : i32, i32
  }
}

module attributes {stable_mosaic.version = 11 : i64} {
  func.func @kernel(%arg0: i32, %arg1: i32, %arg2: memref<16x64xbf16, #tpu.memory_space<vmem>>, %arg3: memref<64x128xbf16, #tpu.memory_space<vmem>>, %arg4: memref<1x128xf32, #tpu.memory_space<vmem>>, %arg5: memref<1x128xf32, #tpu.memory_space<vmem>>, %arg6: memref<1x128xf32, #tpu.memory_space<vmem>>, %arg7: memref<64x128xbf16, #tpu.memory_space<vmem>>, %arg8: memref<1x128xf32, #tpu.memory_space<vmem>>, %arg9: memref<2x128xf32, #tpu.memory_space<vmem>>, %arg10: memref<16x128xbf16, #tpu.memory_space<vmem>>) attributes {dimension_semantics = [#tpu.dimension_semantics<parallel>, #tpu.dimension_semantics<parallel>], iteration_bounds = array<i64: 2, 1>, scalar_prefetch = 0 : i64, scratch_operands = 0 : i64, tpu.core_type = #tpu.core_type<tc>, window_params = [{transform_indices = @transform_0, window_bounds = array<i64: 16, 64>}, {pipeline_mode = #tpu.pipeline_mode<synchronous>, transform_indices = @transform_1, window_bounds = array<i64: 64, 128>}, {pipeline_mode = #tpu.pipeline_mode<synchronous>, transform_indices = @transform_2, window_bounds = array<i64: 1, 128>}, {pipeline_mode = #tpu.pipeline_mode<synchronous>, transform_indices = @transform_3, window_bounds = array<i64: 1, 128>}, {pipeline_mode = #tpu.pipeline_mode<synchronous>, transform_indices = @transform_4, window_bounds = array<i64: 1, 128>}, {pipeline_mode = #tpu.pipeline_mode<synchronous>, transform_indices = @transform_5, window_bounds = array<i64: 64, 128>}, {pipeline_mode = #tpu.pipeline_mode<synchronous>, transform_indices = @transform_6, window_bounds = array<i64: 1, 128>}, {pipeline_mode = #tpu.pipeline_mode<synchronous>, transform_indices = @transform_7, window_bounds = array<i64: 2, 128>}, {transform_indices = @transform_8, window_bounds = array<i64: 16, 128>}]} {
    %c0 = arith.constant 0 : index
    %c0_0 = arith.constant 0 : index
    %0 = vector.load %arg2[%c0, %c0_0] : memref<16x64xbf16, #tpu.memory_space<vmem>>, vector<16x64xbf16>
    %c0_1 = arith.constant 0 : index
    %c0_2 = arith.constant 0 : index
    %1 = vector.load %arg3[%c0_1, %c0_2] : memref<64x128xbf16, #tpu.memory_space<vmem>>, vector<64x128xbf16>
    %cst = arith.constant dense<0.000000e+00> : vector<16x128xf32>
    %2 = tpu.matmul %0, %1, %cst {dimension_numbers = #tpu.dot_dimension_numbers<[1], [0], [0], [1], [0, 0, 1, 1], [], []>} : vector<16x64xbf16>, vector<64x128xbf16>, vector<16x128xf32> -> vector<16x128xf32>
    %c0_3 = arith.constant 0 : index
    %c0_4 = arith.constant 0 : index
    %3 = vector.load %arg4[%c0_3, %c0_4] : memref<1x128xf32, #tpu.memory_space<vmem>>, vector<1x128xf32>
    %4 = vector.broadcast %3 : vector<1x128xf32> to vector<16x128xf32>
    %5 = arith.addf %2, %4 : vector<16x128xf32>
    %c0_5 = arith.constant 0 : index
    %c0_6 = arith.constant 0 : index
    %6 = vector.load %arg9[%c0_5, %c0_6] : memref<2x128xf32, #tpu.memory_space<vmem>>, vector<2x128xf32>
    %7 = vector.extract_strided_slice %6 {offsets = [0, 0], sizes = [1, 128], strides = [1, 1]} : vector<2x128xf32> to vector<1x128xf32>
    %cst_7 = arith.constant 3.125000e-02 : f32
    %8 = vector.broadcast %cst_7 : f32 to vector<1x128xf32>
    %9 = arith.mulf %7, %8 : vector<1x128xf32>
    %10 = vector.extract_strided_slice %6 {offsets = [1, 0], sizes = [1, 128], strides = [1, 1]} : vector<2x128xf32> to vector<1x128xf32>
    %cst_8 = arith.constant 3.125000e-02 : f32
    %11 = vector.broadcast %cst_8 : f32 to vector<1x128xf32>
    %12 = arith.mulf %10, %11 : vector<1x128xf32>
    %13 = arith.mulf %9, %9 : vector<1x128xf32>
    %14 = arith.subf %12, %13 : vector<1x128xf32>
    %cst_9 = arith.constant 0.000000e+00 : f32
    %15 = vector.broadcast %cst_9 : f32 to vector<1x128xf32>
    %16 = arith.maximumf %14, %15 : vector<1x128xf32>
    %17 = vector.broadcast %9 : vector<1x128xf32> to vector<16x128xf32>
    %18 = arith.subf %5, %17 : vector<16x128xf32>
    %cst_10 = arith.constant 9.99999974E-6 : f32
    %19 = vector.broadcast %cst_10 : f32 to vector<1x128xf32>
    %20 = arith.addf %16, %19 : vector<1x128xf32>
    %21 = math.rsqrt %20 : vector<1x128xf32>
    %22 = vector.broadcast %21 : vector<1x128xf32> to vector<16x128xf32>
    %23 = arith.mulf %18, %22 : vector<16x128xf32>
    %c0_11 = arith.constant 0 : index
    %c0_12 = arith.constant 0 : index
    %24 = vector.load %arg5[%c0_11, %c0_12] : memref<1x128xf32, #tpu.memory_space<vmem>>, vector<1x128xf32>
    %25 = vector.broadcast %24 : vector<1x128xf32> to vector<16x128xf32>
    %26 = arith.mulf %23, %25 : vector<16x128xf32>
    %c0_13 = arith.constant 0 : index
    %c0_14 = arith.constant 0 : index
    %27 = vector.load %arg6[%c0_13, %c0_14] : memref<1x128xf32, #tpu.memory_space<vmem>>, vector<1x128xf32>
    %28 = vector.broadcast %27 : vector<1x128xf32> to vector<16x128xf32>
    %29 = arith.addf %26, %28 : vector<16x128xf32>
    %cst_15 = arith.constant 0.000000e+00 : f32
    %30 = vector.broadcast %cst_15 : f32 to vector<16x128xf32>
    %31 = arith.maximumf %29, %30 : vector<16x128xf32>
    %c0_16 = arith.constant 0 : index
    %c0_17 = arith.constant 0 : index
    %32 = vector.load %arg7[%c0_16, %c0_17] : memref<64x128xbf16, #tpu.memory_space<vmem>>, vector<64x128xbf16>
    %cst_18 = arith.constant dense<0.000000e+00> : vector<16x128xf32>
    %33 = tpu.matmul %0, %32, %cst_18 {dimension_numbers = #tpu.dot_dimension_numbers<[1], [0], [0], [1], [0, 0, 1, 1], [], []>} : vector<16x64xbf16>, vector<64x128xbf16>, vector<16x128xf32> -> vector<16x128xf32>
    %34 = arith.addf %31, %33 : vector<16x128xf32>
    %c0_19 = arith.constant 0 : index
    %c0_20 = arith.constant 0 : index
    %35 = vector.load %arg8[%c0_19, %c0_20] : memref<1x128xf32, #tpu.memory_space<vmem>>, vector<1x128xf32>
    %36 = vector.broadcast %35 : vector<1x128xf32> to vector<16x128xf32>
    %37 = arith.addf %34, %36 : vector<16x128xf32>
    %38 = arith.truncf %37 : vector<16x128xf32> to vector<16x128xbf16>
    %c0_21 = arith.constant 0 : index
    %c0_22 = arith.constant 0 : index
    %39 = vector.load %arg10[%c0_21, %c0_22] : memref<16x128xbf16, #tpu.memory_space<vmem>>, vector<16x128xbf16>
    tpu.vector_store %arg10[%c0_21, %c0_22], %38 {strides = array<i32>} : memref<16x128xbf16, #tpu.memory_space<vmem>>, vector<16x128xbf16>,
    return
  }
  func.func @transform_0(%arg0: i32, %arg1: i32) -> (i32, i32) {
    %c1_i32 = arith.constant 1 : i32
    %0 = arith.muli %arg0, %c1_i32 : i32
    %1 = arith.addi %0, %arg1 : i32
    %c0_i32 = arith.constant 0 : i32
    %c0_i32_0 = arith.constant 0 : i32
    return %1, %c0_i32 : i32, i32
  }
  func.func @transform_1(%arg0: i32, %arg1: i32) -> (i32, i32) {
    %c0_i32 = arith.constant 0 : i32
    %c0_i32_0 = arith.constant 0 : i32
    %c0_i32_1 = arith.constant 0 : i32
    return %c0_i32, %c0_i32_0 : i32, i32
  }
  func.func @transform_2(%arg0: i32, %arg1: i32) -> (i32, i32) {
    %c0_i32 = arith.constant 0 : i32
    %c0_i32_0 = arith.constant 0 : i32
    %c0_i32_1 = arith.constant 0 : i32
    return %c0_i32, %c0_i32_0 : i32, i32
  }
  func.func @transform_3(%arg0: i32, %arg1: i32) -> (i32, i32) {
    %c0_i32 = arith.constant 0 : i32
    %c0_i32_0 = arith.constant 0 : i32
    %c0_i32_1 = arith.constant 0 : i32
    return %c0_i32, %c0_i32_0 : i32, i32
  }
  func.func @transform_4(%arg0: i32, %arg1: i32) -> (i32, i32) {
    %c0_i32 = arith.constant 0 : i32
    %c0_i32_0 = arith.constant 0 : i32
    %c0_i32_1 = arith.constant 0 : i32
    return %c0_i32, %c0_i32_0 : i32, i32
  }
  func.func @transform_5(%arg0: i32, %arg1: i32) -> (i32, i32) {
    %c0_i32 = arith.constant 0 : i32
    %c0_i32_0 = arith.constant 0 : i32
    %c0_i32_1 = arith.constant 0 : i32
    return %c0_i32, %c0_i32_0 : i32, i32
  }
  func.func @transform_6(%arg0: i32, %arg1: i32) -> (i32, i32) {
    %c0_i32 = arith.constant 0 : i32
    %c0_i32_0 = arith.constant 0 : i32
    %c0_i32_1 = arith.constant 0 : i32
    return %c0_i32, %c0_i32_0 : i32, i32
  }
  func.func @transform_7(%arg0: i32, %arg1: i32) -> (i32, i32) {
    %c0_i32 = arith.constant 0 : i32
    %c0_i32_0 = arith.constant 0 : i32
    %c0_i32_1 = arith.constant 0 : i32
    return %c0_i32, %c0_i32_0 : i32, i32
  }
  func.func @transform_8(%arg0: i32, %arg1: i32) -> (i32, i32) {
    %c1_i32 = arith.constant 1 : i32
    %0 = arith.muli %arg0, %c1_i32 : i32
    %1 = arith.addi %0, %arg1 : i32
    %c0_i32 = arith.constant 0 : i32
    %c0_i32_0 = arith.constant 0 : i32
    return %1, %c0_i32 : i32, i32
  }
}

module attributes {stable_mosaic.version = 11 : i64} {
  func.func @kernel(%arg0: i32, %arg1: i32, %arg2: memref<16x128xbf16, #tpu.memory_space<vmem>>, %arg3: memref<128x1024xbf16, #tpu.memory_space<vmem>>, %arg4: memref<1x1024xf32, #tpu.memory_space<vmem>>, %arg5: memref<2x1024xf32, #tpu.memory_space<vmem>>) attributes {dimension_semantics = [#tpu.dimension_semantics<arbitrary>, #tpu.dimension_semantics<arbitrary>], iteration_bounds = array<i64: 2, 1>, scalar_prefetch = 0 : i64, scratch_operands = 0 : i64, tpu.core_type = #tpu.core_type<tc>, window_params = [{transform_indices = @transform_0, window_bounds = array<i64: 16, 128>}, {pipeline_mode = #tpu.pipeline_mode<synchronous>, transform_indices = @transform_1, window_bounds = array<i64: 128, 1024>}, {pipeline_mode = #tpu.pipeline_mode<synchronous>, transform_indices = @transform_2, window_bounds = array<i64: 1, 1024>}, {pipeline_mode = #tpu.pipeline_mode<synchronous>, transform_indices = @transform_3, window_bounds = array<i64: 2, 1024>}]} {
    %c0 = arith.constant 0 : index
    %c0_0 = arith.constant 0 : index
    %0 = vector.load %arg2[%c0, %c0_0] : memref<16x128xbf16, #tpu.memory_space<vmem>>, vector<16x128xbf16>
    %c0_1 = arith.constant 0 : index
    %c0_2 = arith.constant 0 : index
    %1 = vector.load %arg3[%c0_1, %c0_2] : memref<128x1024xbf16, #tpu.memory_space<vmem>>, vector<128x1024xbf16>
    %cst = arith.constant dense<0.000000e+00> : vector<16x1024xf32>
    %2 = tpu.matmul %0, %1, %cst {dimension_numbers = #tpu.dot_dimension_numbers<[1], [0], [0], [1], [0, 0, 1, 1], [], []>} : vector<16x128xbf16>, vector<128x1024xbf16>, vector<16x1024xf32> -> vector<16x1024xf32>
    %c0_3 = arith.constant 0 : index
    %c0_4 = arith.constant 0 : index
    %3 = vector.load %arg4[%c0_3, %c0_4] : memref<1x1024xf32, #tpu.memory_space<vmem>>, vector<1x1024xf32>
    %4 = vector.broadcast %3 : vector<1x1024xf32> to vector<16x1024xf32>
    %5 = arith.addf %2, %4 : vector<16x1024xf32>
    %c0_i32 = arith.constant 0 : i32
    %6 = arith.cmpi eq, %arg0, %c0_i32 : i32
    %c0_i32_5 = arith.constant 0 : i32
    %7 = arith.cmpi eq, %arg1, %c0_i32_5 : i32
    %8 = arith.andi %6, %7 : i1
    %9 = arith.extui %8 : i1 to i32
    %c0_i32_6 = arith.constant 0 : i32
    %10 = arith.cmpi ne, %9, %c0_i32_6 : i32
    scf.if %10 {
      %cst_13 = arith.constant 0.000000e+00 : f32
      %20 = vector.broadcast %cst_13 : f32 to vector<2x1024xf32>
      %c0_14 = arith.constant 0 : index
      %c0_15 = arith.constant 0 : index
      %21 = vector.load %arg5[%c0_14, %c0_15] : memref<2x1024xf32, #tpu.memory_space<vmem>>, vector<2x1024xf32>
      tpu.vector_store %arg5[%c0_14, %c0_15], %20 {strides = array<i32>} : memref<2x1024xf32, #tpu.memory_space<vmem>>, vector<2x1024xf32>,
    } else {
    }
    %cst_7 = arith.constant dense<0.000000e+00> : vector<1024xf32>
    %11 = vector.multi_reduction <add>, %5, %cst_7 [0] : vector<16x1024xf32> to vector<1024xf32>
    %12 = vector.shape_cast %11 : vector<1024xf32> to vector<1x1024xf32>
    %13 = arith.mulf %5, %5 : vector<16x1024xf32>
    %cst_8 = arith.constant dense<0.000000e+00> : vector<1024xf32>
    %14 = vector.multi_reduction <add>, %13, %cst_8 [0] : vector<16x1024xf32> to vector<1024xf32>
    %15 = vector.shape_cast %14 : vector<1024xf32> to vector<1x1024xf32>
    %c0_9 = arith.constant 0 : index
    %c0_10 = arith.constant 0 : index
    %16 = vector.load %arg5[%c0_9, %c0_10] : memref<2x1024xf32, #tpu.memory_space<vmem>>, vector<2x1024xf32>
    %17 = tpu.concatenate %12, %15 in 0 : vector<1x1024xf32>, vector<1x1024xf32> -> vector<2x1024xf32>
    %18 = arith.addf %16, %17 : vector<2x1024xf32>
    %c0_11 = arith.constant 0 : index
    %c0_12 = arith.constant 0 : index
    %19 = vector.load %arg5[%c0_11, %c0_12] : memref<2x1024xf32, #tpu.memory_space<vmem>>, vector<2x1024xf32>
    tpu.vector_store %arg5[%c0_11, %c0_12], %18 {strides = array<i32>} : memref<2x1024xf32, #tpu.memory_space<vmem>>, vector<2x1024xf32>,
    return
  }
  func.func @transform_0(%arg0: i32, %arg1: i32) -> (i32, i32) {
    %c1_i32 = arith.constant 1 : i32
    %0 = arith.muli %arg0, %c1_i32 : i32
    %1 = arith.addi %0, %arg1 : i32
    %c0_i32 = arith.constant 0 : i32
    %c0_i32_0 = arith.constant 0 : i32
    return %1, %c0_i32 : i32, i32
  }
  func.func @transform_1(%arg0: i32, %arg1: i32) -> (i32, i32) {
    %c0_i32 = arith.constant 0 : i32
    %c0_i32_0 = arith.constant 0 : i32
    %c0_i32_1 = arith.constant 0 : i32
    return %c0_i32, %c0_i32_0 : i32, i32
  }
  func.func @transform_2(%arg0: i32, %arg1: i32) -> (i32, i32) {
    %c0_i32 = arith.constant 0 : i32
    %c0_i32_0 = arith.constant 0 : i32
    %c0_i32_1 = arith.constant 0 : i32
    return %c0_i32, %c0_i32_0 : i32, i32
  }
  func.func @transform_3(%arg0: i32, %arg1: i32) -> (i32, i32) {
    %c0_i32 = arith.constant 0 : i32
    %c0_i32_0 = arith.constant 0 : i32
    %c0_i32_1 = arith.constant 0 : i32
    return %c0_i32, %c0_i32_0 : i32, i32
  }
}

module attributes {stable_mosaic.version = 11 : i64} {
  func.func @kernel(%arg0: i32, %arg1: i32, %arg2: memref<16x128xbf16, #tpu.memory_space<vmem>>, %arg3: memref<128x1024xbf16, #tpu.memory_space<vmem>>, %arg4: memref<1x1024xf32, #tpu.memory_space<vmem>>, %arg5: memref<1x1024xf32, #tpu.memory_space<vmem>>, %arg6: memref<1x1024xf32, #tpu.memory_space<vmem>>, %arg7: memref<128x1024xbf16, #tpu.memory_space<vmem>>, %arg8: memref<1x1024xf32, #tpu.memory_space<vmem>>, %arg9: memref<2x1024xf32, #tpu.memory_space<vmem>>, %arg10: memref<1x1x1024xf32, #tpu.memory_space<vmem>>) attributes {dimension_semantics = [#tpu.dimension_semantics<parallel>, #tpu.dimension_semantics<arbitrary>], iteration_bounds = array<i64: 2, 1>, scalar_prefetch = 0 : i64, scratch_operands = 0 : i64, tpu.core_type = #tpu.core_type<tc>, window_params = [{transform_indices = @transform_0, window_bounds = array<i64: 16, 128>}, {pipeline_mode = #tpu.pipeline_mode<synchronous>, transform_indices = @transform_1, window_bounds = array<i64: 128, 1024>}, {pipeline_mode = #tpu.pipeline_mode<synchronous>, transform_indices = @transform_2, window_bounds = array<i64: 1, 1024>}, {pipeline_mode = #tpu.pipeline_mode<synchronous>, transform_indices = @transform_3, window_bounds = array<i64: 1, 1024>}, {pipeline_mode = #tpu.pipeline_mode<synchronous>, transform_indices = @transform_4, window_bounds = array<i64: 1, 1024>}, {pipeline_mode = #tpu.pipeline_mode<synchronous>, transform_indices = @transform_5, window_bounds = array<i64: 128, 1024>}, {pipeline_mode = #tpu.pipeline_mode<synchronous>, transform_indices = @transform_6, window_bounds = array<i64: 1, 1024>}, {pipeline_mode = #tpu.pipeline_mode<synchronous>, transform_indices = @transform_7, window_bounds = array<i64: 2, 1024>}, {transform_indices = @transform_8, window_bounds = array<i64: 1, 1, 1024>}]} {
    %c0 = arith.constant 0 : index
    %c0_0 = arith.constant 0 : index
    %0 = vector.load %arg2[%c0, %c0_0] : memref<16x128xbf16, #tpu.memory_space<vmem>>, vector<16x128xbf16>
    %c0_1 = arith.constant 0 : index
    %c0_2 = arith.constant 0 : index
    %1 = vector.load %arg3[%c0_1, %c0_2] : memref<128x1024xbf16, #tpu.memory_space<vmem>>, vector<128x1024xbf16>
    %cst = arith.constant dense<0.000000e+00> : vector<16x1024xf32>
    %2 = tpu.matmul %0, %1, %cst {dimension_numbers = #tpu.dot_dimension_numbers<[1], [0], [0], [1], [0, 0, 1, 1], [], []>} : vector<16x128xbf16>, vector<128x1024xbf16>, vector<16x1024xf32> -> vector<16x1024xf32>
    %c0_3 = arith.constant 0 : index
    %c0_4 = arith.constant 0 : index
    %3 = vector.load %arg4[%c0_3, %c0_4] : memref<1x1024xf32, #tpu.memory_space<vmem>>, vector<1x1024xf32>
    %4 = vector.broadcast %3 : vector<1x1024xf32> to vector<16x1024xf32>
    %5 = arith.addf %2, %4 : vector<16x1024xf32>
    %c0_5 = arith.constant 0 : index
    %c0_6 = arith.constant 0 : index
    %6 = vector.load %arg9[%c0_5, %c0_6] : memref<2x1024xf32, #tpu.memory_space<vmem>>, vector<2x1024xf32>
    %7 = vector.extract_strided_slice %6 {offsets = [0, 0], sizes = [1, 1024], strides = [1, 1]} : vector<2x1024xf32> to vector<1x1024xf32>
    %cst_7 = arith.constant 3.125000e-02 : f32
    %8 = vector.broadcast %cst_7 : f32 to vector<1x1024xf32>
    %9 = arith.mulf %7, %8 : vector<1x1024xf32>
    %10 = vector.extract_strided_slice %6 {offsets = [1, 0], sizes = [1, 1024], strides = [1, 1]} : vector<2x1024xf32> to vector<1x1024xf32>
    %cst_8 = arith.constant 3.125000e-02 : f32
    %11 = vector.broadcast %cst_8 : f32 to vector<1x1024xf32>
    %12 = arith.mulf %10, %11 : vector<1x1024xf32>
    %13 = arith.mulf %9, %9 : vector<1x1024xf32>
    %14 = arith.subf %12, %13 : vector<1x1024xf32>
    %cst_9 = arith.constant 0.000000e+00 : f32
    %15 = vector.broadcast %cst_9 : f32 to vector<1x1024xf32>
    %16 = arith.maximumf %14, %15 : vector<1x1024xf32>
    %17 = vector.broadcast %9 : vector<1x1024xf32> to vector<16x1024xf32>
    %18 = arith.subf %5, %17 : vector<16x1024xf32>
    %cst_10 = arith.constant 9.99999974E-6 : f32
    %19 = vector.broadcast %cst_10 : f32 to vector<1x1024xf32>
    %20 = arith.addf %16, %19 : vector<1x1024xf32>
    %21 = math.rsqrt %20 : vector<1x1024xf32>
    %22 = vector.broadcast %21 : vector<1x1024xf32> to vector<16x1024xf32>
    %23 = arith.mulf %18, %22 : vector<16x1024xf32>
    %c0_11 = arith.constant 0 : index
    %c0_12 = arith.constant 0 : index
    %24 = vector.load %arg5[%c0_11, %c0_12] : memref<1x1024xf32, #tpu.memory_space<vmem>>, vector<1x1024xf32>
    %25 = vector.broadcast %24 : vector<1x1024xf32> to vector<16x1024xf32>
    %26 = arith.mulf %23, %25 : vector<16x1024xf32>
    %c0_13 = arith.constant 0 : index
    %c0_14 = arith.constant 0 : index
    %27 = vector.load %arg6[%c0_13, %c0_14] : memref<1x1024xf32, #tpu.memory_space<vmem>>, vector<1x1024xf32>
    %28 = vector.broadcast %27 : vector<1x1024xf32> to vector<16x1024xf32>
    %29 = arith.addf %26, %28 : vector<16x1024xf32>
    %cst_15 = arith.constant 0.000000e+00 : f32
    %30 = vector.broadcast %cst_15 : f32 to vector<16x1024xf32>
    %31 = arith.maximumf %29, %30 : vector<16x1024xf32>
    %c0_16 = arith.constant 0 : index
    %c0_17 = arith.constant 0 : index
    %32 = vector.load %arg7[%c0_16, %c0_17] : memref<128x1024xbf16, #tpu.memory_space<vmem>>, vector<128x1024xbf16>
    %cst_18 = arith.constant dense<0.000000e+00> : vector<16x1024xf32>
    %33 = tpu.matmul %0, %32, %cst_18 {dimension_numbers = #tpu.dot_dimension_numbers<[1], [0], [0], [1], [0, 0, 1, 1], [], []>} : vector<16x128xbf16>, vector<128x1024xbf16>, vector<16x1024xf32> -> vector<16x1024xf32>
    %34 = arith.addf %31, %33 : vector<16x1024xf32>
    %c0_19 = arith.constant 0 : index
    %c0_20 = arith.constant 0 : index
    %35 = vector.load %arg8[%c0_19, %c0_20] : memref<1x1024xf32, #tpu.memory_space<vmem>>, vector<1x1024xf32>
    %36 = vector.broadcast %35 : vector<1x1024xf32> to vector<16x1024xf32>
    %37 = arith.addf %34, %36 : vector<16x1024xf32>
    %cst_21 = arith.constant dense<0xFF800000> : vector<1024xf32>
    %38 = vector.multi_reduction <maximumf>, %37, %cst_21 [0] : vector<16x1024xf32> to vector<1024xf32>
    %39 = vector.shape_cast %38 : vector<1024xf32> to vector<1x1024xf32>
    %c0_i32 = arith.constant 0 : i32
    %40 = arith.cmpi eq, %arg1, %c0_i32 : i32
    %41 = arith.extui %40 : i1 to i32
    %c0_i32_22 = arith.constant 0 : i32
    %42 = arith.cmpi ne, %41, %c0_i32_22 : i32
    scf.if %42 {
      %c0_25 = arith.constant 0 : index
      %c0_26 = arith.constant 0 : index
      %c0_27 = arith.constant 0 : index
      %46 = vector.load %arg10[%c0_25, %c0_26, %c0_27] : memref<1x1x1024xf32, #tpu.memory_space<vmem>>, vector<1x1x1024xf32>
      %47 = vector.shape_cast %46 : vector<1x1x1024xf32> to vector<1x1024xf32>
      %48 = vector.shape_cast %39 : vector<1x1024xf32> to vector<1x1x1024xf32>
      tpu.vector_store %arg10[%c0_25, %c0_26, %c0_27], %48 {strides = array<i32>} : memref<1x1x1024xf32, #tpu.memory_space<vmem>>, vector<1x1x1024xf32>,
    } else {
    }
    %c0_i32_23 = arith.constant 0 : i32
    %43 = arith.cmpi sgt, %arg1, %c0_i32_23 : i32
    %44 = arith.extui %43 : i1 to i32
    %c0_i32_24 = arith.constant 0 : i32
    %45 = arith.cmpi ne, %44, %c0_i32_24 : i32
    scf.if %45 {
      %c0_25 = arith.constant 0 : index
      %c0_26 = arith.constant 0 : index
      %c0_27 = arith.constant 0 : index
      %46 = vector.load %arg10[%c0_25, %c0_26, %c0_27] : memref<1x1x1024xf32, #tpu.memory_space<vmem>>, vector<1x1x1024xf32>
      %47 = vector.shape_cast %46 : vector<1x1x1024xf32> to vector<1x1024xf32>
      %48 = arith.maximumf %47, %39 : vector<1x1024xf32>
      %c0_28 = arith.constant 0 : index
      %c0_29 = arith.constant 0 : index
      %c0_30 = arith.constant 0 : index
      %49 = vector.load %arg10[%c0_28, %c0_29, %c0_30] : memref<1x1x1024xf32, #tpu.memory_space<vmem>>, vector<1x1x1024xf32>
      %50 = vector.shape_cast %49 : vector<1x1x1024xf32> to vector<1x1024xf32>
      %51 = vector.shape_cast %48 : vector<1x1024xf32> to vector<1x1x1024xf32>
      tpu.vector_store %arg10[%c0_28, %c0_29, %c0_30], %51 {strides = array<i32>} : memref<1x1x1024xf32, #tpu.memory_space<vmem>>, vector<1x1x1024xf32>,
    } else {
    }
    return
  }
  func.func @transform_0(%arg0: i32, %arg1: i32) -> (i32, i32) {
    %c1_i32 = arith.constant 1 : i32
    %0 = arith.muli %arg0, %c1_i32 : i32
    %1 = arith.addi %0, %arg1 : i32
    %c0_i32 = arith.constant 0 : i32
    %c0_i32_0 = arith.constant 0 : i32
    return %1, %c0_i32 : i32, i32
  }
  func.func @transform_1(%arg0: i32, %arg1: i32) -> (i32, i32) {
    %c0_i32 = arith.constant 0 : i32
    %c0_i32_0 = arith.constant 0 : i32
    %c0_i32_1 = arith.constant 0 : i32
    return %c0_i32, %c0_i32_0 : i32, i32
  }
  func.func @transform_2(%arg0: i32, %arg1: i32) -> (i32, i32) {
    %c0_i32 = arith.constant 0 : i32
    %c0_i32_0 = arith.constant 0 : i32
    %c0_i32_1 = arith.constant 0 : i32
    return %c0_i32, %c0_i32_0 : i32, i32
  }
  func.func @transform_3(%arg0: i32, %arg1: i32) -> (i32, i32) {
    %c0_i32 = arith.constant 0 : i32
    %c0_i32_0 = arith.constant 0 : i32
    %c0_i32_1 = arith.constant 0 : i32
    return %c0_i32, %c0_i32_0 : i32, i32
  }
  func.func @transform_4(%arg0: i32, %arg1: i32) -> (i32, i32) {
    %c0_i32 = arith.constant 0 : i32
    %c0_i32_0 = arith.constant 0 : i32
    %c0_i32_1 = arith.constant 0 : i32
    return %c0_i32, %c0_i32_0 : i32, i32
  }
  func.func @transform_5(%arg0: i32, %arg1: i32) -> (i32, i32) {
    %c0_i32 = arith.constant 0 : i32
    %c0_i32_0 = arith.constant 0 : i32
    %c0_i32_1 = arith.constant 0 : i32
    return %c0_i32, %c0_i32_0 : i32, i32
  }
  func.func @transform_6(%arg0: i32, %arg1: i32) -> (i32, i32) {
    %c0_i32 = arith.constant 0 : i32
    %c0_i32_0 = arith.constant 0 : i32
    %c0_i32_1 = arith.constant 0 : i32
    return %c0_i32, %c0_i32_0 : i32, i32
  }
  func.func @transform_7(%arg0: i32, %arg1: i32) -> (i32, i32) {
    %c0_i32 = arith.constant 0 : i32
    %c0_i32_0 = arith.constant 0 : i32
    %c0_i32_1 = arith.constant 0 : i32
    return %c0_i32, %c0_i32_0 : i32, i32
  }
  func.func @transform_8(%arg0: i32, %arg1: i32) -> (i32, i32, i32) {
    %c0_i32 = arith.constant 0 : i32
    %c0_i32_0 = arith.constant 0 : i32
    %c0_i32_1 = arith.constant 0 : i32
    return %arg0, %c0_i32, %c0_i32_0 : i32, i32, i32
  }
}

</mosaic_0001>

<bundles_post_ra>
// kernel: pointnet_encoder.13
= control target key start
LH: loop header
LB: loop body
LE: loop exit
PB: predicated region body
PF: predicated region fallthrough
CT: control target
= control target key end

     0   :  { %8 = vsyncpa [#allocation3], 0  ;;  %s477_s12 = smov 0   ;;  %s479_s13 = smov 0   ;;  %s547_s0 = inlined_call_operand.vmem [shape: f32[32,3], index: 0, kind: input, shape index: {}]   ;;  %s548_s1 = inlined_call_operand.vmem [shape: bf16[3,64], index: 1, kind: input, shape index: {}]   ;;  %s549_s2 = inlined_call_operand.hbm [shape: f32[1,64], index: 2, kind: input, shape index: {}]   ;;  %s550_s3 = inlined_call_operand.vmem [shape: f32[2,64], index: 3, kind: output, shape index: {}]  }
   0x1   :  { %s481_s14 = smov 0  }
   0x2 LB: > { %s337_s15 = sadd.s32 4294967295, %s450_s14   ;;  %s26_s16 = sadd.s32 1, %s446_s13  ;;  %s450_s14 = sphi %s481_s14, %s14_s14   ;;  %s446_s13 = sphi %s479_s13, %s554_s13   ;;  %s442_s12 = sphi %s477_s12, %s553_s12  }
   0x3   : > { %p28_p0 = scmp.ge.s32.totalorder %s26_s16, 2  ;;  %p338_p1 = scmp.ge.s32.totalorder %s450_s14, 1 }
   0x4   : > { %p122_p2 = scmp.lt.s32.totalorder %s450_s14, 3  ;;  %p502_p4 = scmp.eq.s32.totalorder %s337_s15, 0 }
   0x5   : > { %s556_s16 = smov (%p28_p0, %s26_s16), 0  ;;  %s452_s19 = smov [#allocation2]  }
   0x6   : > { %p498_p3 = pnand %p338_p1, %p122_p2  ;;  %s138_s20 = sshll.u32 %s452_s19, 4  ;;  %s139_s20 = int_to_ptr.vmem [resolvable:$true] %s138_s20 }
   0x7   : > { %s409_s21 = scalar_lea.vmem %s139_s20, 16  ;;  %s416_s22 = scalar_lea.vmem %s139_s20, 32 }
   0x8   : > { %p363_p5 = pneg %p498_p3  ;;  %p410_p8 = scmp.ne.s32.totalorder %s139_s20, %s409_s21 }
   0x9   : > { %p417_p11 = scmp.lt.s32.totalorder %s139_s20, %s139_s20  ;;  %p418_p12 = scmp.lt.s32.totalorder %s416_s22, %s409_s21 }
   0xa   : > { %p364_p6 = pnand %p502_p4, %p363_p5 }
   0xb   : > { %p419_p13 = por %p418_p12, %p417_p11 }
   0xc   : > { %p400_p7 = pneg %p364_p6 }
   0xe   : > { %p412_p9 = pnand %p410_p8, %p400_p7 }
  0x10   : > { %p413_p10 = pneg %p412_p9 }
  0x12   : > { %p420_p0 = pnand %p419_p13, %p413_p10 }
  0x14   : > { %423 = shalt.err (!%p420_p0)
}
  0x15   : > { %366 = dma.hbm_to_vmem [thread:$0]  (!%p364_p6), %s549_s2, 16, %s139_s20, [#allocation3]  }
  0x16   : > { %162 = sbr.rel (%p498_p3) target bundleno = 257 (0x101), region = 32 }
  0x1b   : > { %437 = dma.done.wait (%p502_p4), [#allocation3], 16  }
  0x1c   : > { %439 = vsyncadd (%p502_p4), [#allocation3], 4294967280  ;;  %vm206_vm0 = vcmask 1040384   ;;  %v453_v0 = vmov 0.0   ;;  %s343_s25 = sshll.u32 %s442_s12, 1  ;;  %vm207_vm1 = vcmask 1041408  }
  0x1d   : > { %353 = vmatprep.subr.bf16.mxu0 %v453_v0  ;;  %v454_v1 = vmov 65535   ;;  %vm455_vm2 = vmmov 0   ;;  %p184_p1 = scmp.lt.s32.totalorder %s343_s25, 3  ;;  %v194_v4 = vld [vmem:[%s548_s1] sm:$0x3]  ;;  %vm202_vm3 = vcmask 23552  }
  0x1e   : > { %v208_v2 = vsel %vm206_vm0, 4294967295, %v454_v1  ;;  %355 = vmatprep.mubr.msk.bf16.mxu0 %vm455_vm2, %v453_v0  ;;  %p254_p2 = scmp.eq.s32.totalorder %s442_s12, 0  ;;  %v345_v9 = vld [vmem:[#allocation2] ss:$0 sm:$0xff] }
  0x1f   : > { %s558_s25 = smov (!%p184_p1, %s343_s25), 3  ;;  %v209_v3 = vsel %vm207_vm1, %v208_v2, 0  ;;  %vm260_vm4 = vcmask (%p254_p2), 517120   ;;  %v456_v16 = vmov (%p254_p2), 0.0  }
  0x20   : > { %s344_s26 = sshll.u32 %s558_s25, 3  ;;  %v211_v5 = vand.u32 %v209_v3, %v194_v4  ;;  %261 = vst.msk [vmem:[%s550_s3] sm:$0x3] (%p254_p2), %vm260_vm4, %v456_v16 }
  0x21   : > { %s187_s4 = scalar_lea.vmem %s547_s0, %s344_s26 }
  0x22   : > { %v191_v6 = vld [vmem:[%s187_s4] sm:$0xff]  ;;  %v192_v7 = vld [vmem:[%s187_s4 + $0x8] sm:$0xff]  ;;  %354 = vmatpush3.bf16.msra.mxu0 %v211_v5 }
  0x23   : > { %v193_v8 = vpack.c.bf16 %v192_v7, %v191_v6 }
  0x25   : > { %356 = vmatmul.mubr.msk.bf16.vlgmr.msra.gmra.mxu0 %vm202_vm3, %v193_v8 }
  0xe5   : > { %v247_v10 = vpop.f32.mrf.mxu0 }
  0xe6   : > { %v248_v11 = vadd.f32 %v345_v9, %v247_v10 }
  0xe7   : > { %v357_v12 = vpop.f32.mrf.mxu0  ;;  %259 = sbr.rel (!%p254_p2) target bundleno = 236 (0xec), region = 40 }
  0xe9   : > { %v250_v13 = vpop.f32.mrf.mxu0 }
  0xea   : > { %v251_v14 = vadd.f32 %v345_v9, %v250_v13 }
  0xeb   : > { %v358_v15 = vpop.f32.mrf.mxu0 }
  0xec PF: > { %vm262_vm5 = vcmask 523264   ;;  %v272_v17 = vmul.f32 %v248_v11, %v248_v11  ;;  %v273_v18 = vmul.f32 %v251_v14, %v251_v14  ;;  %v283_v37 = vld [vmem:[%s550_s3] sm:$0x3]  ;;  %vm286_vm6 = vcmask 517120  }
  0xed   : > { %v263_v19 = vsel %vm262_vm5, %v248_v11, 0.0  ;;  %v264_v20 = vsel %vm262_vm5, %v251_v14, 0.0 }
  0xee   : > { %v265_v21 = vadd.f32 %v264_v20, %v263_v19  ;;  %v274_v22 = vsel %vm262_vm5, %v272_v17, 0.0  ;;  %v275_v23 = vsel %vm262_vm5, %v273_v18, 0.0 }
  0xef   : > { %v276_v24 = vadd.f32 %v275_v23, %v274_v22 }
  0xf0   : > { %v266_v25 = vrot.slane %v265_v21, 4 }
  0xf1   : > { %v277_v26 = vrot.slane %v276_v24, 4 }
  0xf2   : > { %v267_v27 = vadd.f32 %v266_v25, %v265_v21 }
  0xf3   : > { %v278_v28 = vadd.f32 %v277_v26, %v276_v24 }
  0xf4   : > { %v268_v29 = vrot.slane %v267_v27, 2 }
  0xf5   : > { %v279_v30 = vrot.slane %v278_v28, 2 }
  0xf6   : > { %v269_v31 = vadd.f32 %v268_v29, %v267_v27 }
  0xf7   : > { %v280_v32 = vadd.f32 %v279_v30, %v278_v28 }
  0xf8   : > { %v270_v33 = vrot.slane %v269_v31, 1 }
  0xf9   : > { %v281_v34 = vrot.slane %v280_v32, 1 }
  0xfa   : > { %v271_v35 = vadd.f32 %v270_v33, %v269_v31 }
  0xfb   : > { %v282_v36 = vadd.f32 %v281_v34, %v280_v32 }
  0xfd   : > { %v284_v38 = vsel %vm206_vm0, %v271_v35, %v282_v36 }
  0xfe   : > { %v285_v39 = vadd.f32 %v284_v38, %v283_v37 }
 0x100   : > { %287 = vst.msk [vmem:[%s550_s3] sm:$0x3] %vm286_vm6, %v285_v39 }
 0x101 PF: > { %s14_s14 = sadd.s32 1, %s450_s14   ;;  %s553_s12 = smov %s446_s13 }
 0x102   : > { %p11_p3 = scmp.ge.s32.totalorder %s14_s14, 4   ;;  %s554_s13 = smov %s556_s16 }
 0x104   :  { %13 = sbr.rel (!%p11_p3) target bundleno = 2 (0x2), region = 67 }
 0x109   :  { %299 = vsyncpa [#allocation3], 1 }
 0x10a   :  { %301 = vsyncpa [#allocation3 + $0x1], 1 }

// kernel: pointnet_encoder.14
= control target key start
LH: loop header
LB: loop body
LE: loop exit
PB: predicated region body
PF: predicated region fallthrough
CT: control target
= control target key end

     0   :  { %11 = vsyncpa [#allocation3], 0  ;;  %s882_s0 = inlined_call_operand.vmem [shape: f32[32,3], index: 0, kind: input, shape index: {}]   ;;  %s883_s1 = inlined_call_operand.vmem [shape: bf16[3,64], index: 1, kind: input, shape index: {}]   ;;  %s884_s2 = inlined_call_operand.hbm [shape: f32[1,64], index: 2, kind: input, shape index: {}]   ;;  %s885_s3 = inlined_call_operand.hbm [shape: f32[1,64], index: 3, kind: input, shape index: {}]   ;;  %s886_s4 = inlined_call_operand.hbm [shape: f32[1,64], index: 4, kind: input, shape index: {}]   ;;  %s887_s5 = inlined_call_operand.vmem [shape: f32[2,64], index: 5, kind: input, shape index: {}]   ;;  %s888_s6 = inlined_call_operand.vmem [shape: bf16[32,64], index: 6, kind: output, shape index: {}]  }
   0x1   :  { %12 = vsyncpa [#allocation5], 0  ;;  %s777_s21 = smov 0   ;;  %s779_s22 = smov 0  }
   0x2   :  { %s781_s23 = smov 0  }
   0x3 LB: > { %s736_s24 = smov [#allocation4]   ;;  %s533_s26 = sadd.s32 4294967295, %s734_s23   ;;  %s734_s23 = sphi %s781_s23, %s18_s23   ;;  %s730_s22 = sphi %s779_s22, %s894_s22   ;;  %s726_s21 = sphi %s777_s21, %s893_s21  }
   0x4   : > { %s223_s25 = sshll.u32 %s736_s24, 4  ;;  %p535_p0 = scmp.ge.s32.totalorder %s734_s23, 1  ;;  %s224_s25 = int_to_ptr.vmem [resolvable:$true] %s223_s25 }
   0x5   : > { %p196_p1 = scmp.lt.s32.totalorder %s734_s23, 3  ;;  %p795_p2 = scmp.eq.s32.totalorder %s533_s26, 0 }
   0x6   : > { %s30_s29 = sadd.s32 1, %s730_s22  ;;  %s737_s8 = smov [#allocation2]  }
   0x7   : > { %p799_p3 = pnand %p535_p0, %p196_p1  ;;  %p812_p6 = scmp.ge.s32.totalorder %s30_s29, 2 }
   0x8   : > { %s212_s9 = sshll.u32 %s737_s8, 4  ;;  %s637_s10 = scalar_lea.vmem %s224_s25, 16  ;;  %s213_s9 = int_to_ptr.vmem [resolvable:$true] %s212_s9 }
   0x9   : > { %p578_p4 = pneg %p799_p3  ;;  %p638_p8 = scmp.ne.s32.totalorder %s224_s25, %s637_s10 }
   0xa   : > { %s644_s11 = scalar_lea.vmem %s224_s25, 32  ;;  %p645_p11 = scmp.lt.s32.totalorder %s224_s25, %s224_s25 }
   0xb   : > { %p808_p5 = pnand %p795_p2, %p578_p4  ;;  %p646_p12 = scmp.lt.s32.totalorder %s644_s11, %s637_s10 }
   0xd   : > { %p628_p7 = pneg %p808_p5  ;;  %p647_p13 = por %p646_p12, %p645_p11 }
   0xf   : > { %p640_p9 = pnand %p638_p8, %p628_p7 }
  0x11   : > { %p641_p10 = pneg %p640_p9 }
  0x13   : > { %p648_p0 = pnand %p647_p13, %p641_p10 }
  0x15   : > { %651 = shalt.err (!%p648_p0)
}
  0x16   : > { %584 = dma.hbm_to_vmem [thread:$0]  (!%p808_p5), %s885_s3, 16, %s224_s25, [#allocation5]  }
  0x17   : > { %s896_s29 = smov (%p812_p6, %s30_s29), 0  ;;  %s663_s14 = scalar_lea.vmem %s213_s9, 16 }
  0x18   : > { %p664_p1 = scmp.ne.s32.totalorder %s213_s9, %s663_s14  ;;  %s670_s15 = scalar_lea.vmem %s213_s9, 32 }
  0x19   : > { %p671_p9 = scmp.lt.s32.totalorder %s213_s9, %s213_s9  ;;  %p672_p10 = scmp.lt.s32.totalorder %s670_s15, %s663_s14 }
  0x1a   : > { %p666_p4 = pnand %p664_p1, %p628_p7 }
  0x1b   : > { %p673_p11 = por %p672_p10, %p671_p9 }
  0x1c   : > { %p667_p8 = pneg %p666_p4 }
  0x1e   : > { %p674_p12 = pnand %p673_p11, %p667_p8 }
  0x20   : > { %677 = shalt.err (!%p674_p12)
}
  0x21   : > { %581 = dma.hbm_to_vmem [thread:$0]  (!%p808_p5), %s884_s2, 16, %s213_s9, [#allocation3]  }
  0x22   : > { %s738_s18 = smov [#allocation6]  }
  0x23   : > { %s234_s19 = sshll.u32 %s738_s18, 4  ;;  %s235_s19 = int_to_ptr.vmem [resolvable:$true] %s234_s19 }
  0x24   : > { %s689_s20 = scalar_lea.vmem %s235_s19, 16  ;;  %s696_s24 = scalar_lea.vmem %s235_s19, 32 }
  0x25   : > { %p690_p6 = scmp.ne.s32.totalorder %s235_s19, %s689_s20  ;;  %p697_p1 = scmp.lt.s32.totalorder %s235_s19, %s235_s19 }
  0x26   : > { %p698_p4 = scmp.lt.s32.totalorder %s696_s24, %s689_s20 }
  0x27   : > { %p692_p13 = pnand %p690_p6, %p628_p7 }
  0x28   : > { %p699_p8 = por %p698_p4, %p697_p1 }
  0x29   : > { %p693_p0 = pneg %p692_p13 }
  0x2b   : > { %p700_p9 = pnand %p699_p8, %p693_p0 }
  0x2d   : > { %703 = shalt.err (!%p700_p9)
}
  0x2e   : > { %587 = dma.hbm_to_vmem [thread:$0]  (!%p808_p5), %s886_s4, 16, %s235_s19, [#allocation5]  }
  0x2f   : > { %261 = sbr.rel (%p799_p3) target bundleno = 276 (0x114), region = 44 }
  0x34   : > { %717 = dma.done.wait (%p795_p2), [#allocation3], 16  }
  0x35   : > { %719 = vsyncadd (%p795_p2), [#allocation3], 4294967280 }
  0x36   : > { %721 = dma.done.wait (%p795_p2), [#allocation5], 32  }
  0x37   : > { %723 = vsyncadd (%p795_p2), [#allocation5], 4294967264  ;;  %vm333_vm0 = vcmask 1040384   ;;  %v739_v0 = vmov 0.0   ;;  %s544_s30 = sshll.u32 %s726_s21, 1  ;;  %vm334_vm1 = vcmask 1041408   ;;  %v389_v16 = vlaneseq }
  0x38   : > { %560 = vmatprep.subr.bf16.mxu0 %v739_v0  ;;  %v740_v1 = vmov 65535   ;;  %vm741_vm2 = vmmov 0   ;;  %p303_p3 = scmp.lt.s32.totalorder %s544_s30, 3  ;;  %v321_v4 = vld [vmem:[%s883_s1] sm:$0x3]  ;;  %vm329_vm3 = vcmask 23552  }
  0x39   : > { %v335_v2 = vsel %vm333_vm0, 4294967295, %v740_v1  ;;  %562 = vmatprep.mubr.msk.bf16.mxu0 %vm741_vm2, %v739_v0  ;;  %v381_v9 = vld [vmem:[%s887_s5] sm:$0x3]  ;;  %v390_v17 = vshrl.u32 %v389_v16, 7  ;;  %v550_v28 = vld [vmem:[#allocation4] ss:$0 sm:$0xff] }
  0x3a   : > { %s898_s30 = smov (!%p303_p3, %s544_s30), 3  ;;  %v336_v3 = vsel %vm334_vm1, %v335_v2, 0  ;;  %v382_v10 = vmul.f32 0.03125, %v381_v9  ;;  %v548_v21 = vld [vmem:[#allocation2] ss:$0 sm:$0xff]  ;;  %vm431_vm4 = vcmask 519168  }
  0x3b   : > { %s545_s28 = sshll.u32 %s898_s30, 3  ;;  %v338_v5 = vand.u32 %v336_v3, %v321_v4  ;;  %v391_v18 = vsub.s32 0, %v390_v17  ;;  %v399_v19 = vsub.s32 1, %v390_v17  ;;  %v551_v32 = vld [vmem:[#allocation6] ss:$0 sm:$0xff]  ;;  %s547_s12 = sshll.u32 %s898_s30, 2 }
  0x3c   : > { %s306_s10 = scalar_lea.vmem %s882_s0, %s545_s28  ;;  %v383_v11 = vmul.f32 %v382_v10, %v382_v10  ;;  %s314_s15 = scalar_lea.vmem %s888_s6, %s547_s12 }
  0x3d   : > { %v318_v6 = vld [vmem:[%s306_s10] sm:$0xff]  ;;  %v319_v7 = vld [vmem:[%s306_s10 + $0x8] sm:$0xff]  ;;  %561 = vmatpush3.bf16.msra.mxu0 %v338_v5  ;;  %v392_v22 = vrot.slane %v382_v10, %v391_v18 }
  0x3e   : > { %v320_v8 = vpack.c.bf16 %v319_v7, %v318_v6  ;;  %v385_v12 = vrot.slane %v383_v11, 7 }
  0x40   : > { %563 = vmatmul.mubr.msk.bf16.vlgmr.msra.gmra.mxu0 %vm329_vm3, %v320_v8  ;;  %v387_v13 = vsub.f32 %v382_v10, %v385_v12 }
  0x42   : > { %v388_v14 = vmax.f32 %v387_v13, 0.0 }
  0x44   : > { %v395_v15 = vadd.f32 1e-05, %v388_v14 }
  0x46   : > { %624 = vrsqrt.f32 %v395_v15 }
  0x53   : > { %v625_v20 = vpop.eup %624 }
  0x54   : > { %v400_v25 = vrot.slane %v625_v20, %v399_v19 }
 0x100   : > { %v374_v23 = vpop.f32.mrf.mxu0 }
 0x101   : > { %v375_v24 = vadd.f32 %v548_v21, %v374_v23 }
 0x102   : > { %v564_v26 = vpop.f32.mrf.mxu0 }
 0x103   : > { %v393_v27 = vsub.f32 %v375_v24, %v392_v22 }
 0x104   : > { %v377_v29 = vpop.f32.mrf.mxu0 }
 0x105   : > { %v401_v30 = vmul.f32 %v400_v25, %v393_v27  ;;  %v378_v31 = vadd.f32 %v548_v21, %v377_v29 }
 0x106   : > { %v565_v33 = vpop.f32.mrf.mxu0 }
 0x107   : > { %v410_v34 = vmul.f32 %v550_v28, %v401_v30  ;;  %v394_v35 = vsub.f32 %v378_v31, %v392_v22 }
 0x109   : > { %v419_v36 = vadd.f32 %v551_v32, %v410_v34  ;;  %v402_v37 = vmul.f32 %v400_v25, %v394_v35 }
 0x10b   : > { %v421_v38 = vmax.f32 %v419_v36, 0.0  ;;  %v411_v39 = vmul.f32 %v550_v28, %v402_v37 }
 0x10d   : > { %v556_v40 = vpack.c.bf16 %v421_v38, %v421_v38  ;;  %v420_v41 = vadd.f32 %v551_v32, %v411_v39 }
 0x10f   : > { %432 = vst.msk [vmem:[%s314_s15] sm:$0xf] %vm431_vm4, %v556_v40  ;;  %v422_v42 = vmax.f32 %v420_v41, 0.0 }
 0x111   : > { %v557_v43 = vpack.c.bf16 %v422_v42, %v422_v42 }
 0x113   : > { %433 = vst.msk [vmem:[%s314_s15 + $0x4] sm:$0xf] %vm431_vm4, %v557_v43 }
 0x114 PF: > { %s18_s23 = sadd.s32 1, %s734_s23   ;;  %s893_s21 = smov %s730_s22 }
 0x115   : > { %p15_p2 = scmp.ge.s32.totalorder %s18_s23, 4   ;;  %s894_s22 = smov %s896_s29 }
 0x117   :  { %17 = sbr.rel (!%p15_p2) target bundleno = 3 (0x3), region = 87 }
 0x11c   :  { %459 = vsyncpa [#allocation3], 1 }
 0x11d   :  { %461 = vsyncpa [#allocation3 + $0x1], 1 }
 0x11e   :  { %462 = vsyncpa [#allocation5], 1 }

// kernel: pointnet_encoder.16
= control target key start
LH: loop header
LB: loop body
LE: loop exit
PB: predicated region body
PF: predicated region fallthrough
CT: control target
= control target key end

     0   :  { %11 = vsyncpa [#allocation3], 0  ;;  %s943_s0 = inlined_call_operand.vmem [shape: bf16[32,64], index: 0, kind: input, shape index: {}]   ;;  %s944_s1 = inlined_call_operand.vmem [shape: bf16[64,128], index: 1, kind: input, shape index: {}]   ;;  %s945_s2 = inlined_call_operand.hbm [shape: f32[1,128], index: 2, kind: input, shape index: {}]   ;;  %s946_s3 = inlined_call_operand.hbm [shape: f32[1,128], index: 3, kind: input, shape index: {}]   ;;  %s947_s4 = inlined_call_operand.hbm [shape: f32[1,128], index: 4, kind: input, shape index: {}]   ;;  %s948_s5 = inlined_call_operand.vmem [shape: f32[2,128], index: 5, kind: input, shape index: {}]   ;;  %s949_s6 = inlined_call_operand.vmem [shape: bf16[32,128], index: 6, kind: output, shape index: {}]  }
   0x1   :  { %12 = vsyncpa [#allocation5], 0  ;;  %s826_s21 = smov 0   ;;  %s828_s22 = smov 0  }
   0x2   :  { %s830_s23 = smov 0  }
   0x3 LB: > { %s786_s24 = smov [#allocation4]   ;;  %s560_s26 = sadd.s32 4294967295, %s784_s23   ;;  %s784_s23 = sphi %s830_s23, %s18_s23   ;;  %s780_s22 = sphi %s828_s22, %s955_s22   ;;  %s776_s21 = sphi %s826_s21, %s954_s21  }
   0x4   : > { %s223_s25 = sshll.u32 %s786_s24, 4  ;;  %p562_p0 = scmp.ge.s32.totalorder %s784_s23, 1  ;;  %s224_s25 = int_to_ptr.vmem [resolvable:$true] %s223_s25 }
   0x5   : > { %p196_p1 = scmp.lt.s32.totalorder %s784_s23, 3  ;;  %p844_p2 = scmp.eq.s32.totalorder %s560_s26, 0 }
   0x6   : > { %s30_s29 = sadd.s32 1, %s780_s22  ;;  %s787_s8 = smov [#allocation2]  }
   0x7   : > { %p848_p3 = pnand %p562_p0, %p196_p1  ;;  %p861_p6 = scmp.ge.s32.totalorder %s30_s29, 2 }
   0x8   : > { %s212_s9 = sshll.u32 %s787_s8, 4  ;;  %s687_s10 = scalar_lea.vmem %s224_s25, 16  ;;  %s213_s9 = int_to_ptr.vmem [resolvable:$true] %s212_s9 }
   0x9   : > { %p624_p4 = pneg %p848_p3  ;;  %p688_p8 = scmp.ne.s32.totalorder %s224_s25, %s687_s10 }
   0xa   : > { %s694_s11 = scalar_lea.vmem %s224_s25, 32  ;;  %p695_p11 = scmp.lt.s32.totalorder %s224_s25, %s224_s25 }
   0xb   : > { %p857_p5 = pnand %p844_p2, %p624_p4  ;;  %p696_p12 = scmp.lt.s32.totalorder %s694_s11, %s687_s10 }
   0xd   : > { %p678_p7 = pneg %p857_p5  ;;  %p697_p13 = por %p696_p12, %p695_p11 }
   0xf   : > { %p690_p9 = pnand %p688_p8, %p678_p7 }
  0x11   : > { %p691_p10 = pneg %p690_p9 }
  0x13   : > { %p698_p0 = pnand %p697_p13, %p691_p10 }
  0x15   : > { %701 = shalt.err (!%p698_p0)
}
  0x16   : > { %630 = dma.hbm_to_vmem [thread:$0]  (!%p857_p5), %s946_s3, 16, %s224_s25, [#allocation5]  }
  0x17   : > { %s957_s29 = smov (%p861_p6, %s30_s29), 0  ;;  %s713_s14 = scalar_lea.vmem %s213_s9, 16 }
  0x18   : > { %p714_p1 = scmp.ne.s32.totalorder %s213_s9, %s713_s14  ;;  %s720_s15 = scalar_lea.vmem %s213_s9, 32 }
  0x19   : > { %p721_p9 = scmp.lt.s32.totalorder %s213_s9, %s213_s9  ;;  %p722_p10 = scmp.lt.s32.totalorder %s720_s15, %s713_s14 }
  0x1a   : > { %p716_p4 = pnand %p714_p1, %p678_p7 }
  0x1b   : > { %p723_p11 = por %p722_p10, %p721_p9 }
  0x1c   : > { %p717_p8 = pneg %p716_p4 }
  0x1e   : > { %p724_p12 = pnand %p723_p11, %p717_p8 }
  0x20   : > { %727 = shalt.err (!%p724_p12)
}
  0x21   : > { %627 = dma.hbm_to_vmem [thread:$0]  (!%p857_p5), %s945_s2, 16, %s213_s9, [#allocation3]  }
  0x22   : > { %s788_s18 = smov [#allocation6]  }
  0x23   : > { %s234_s19 = sshll.u32 %s788_s18, 4  ;;  %s235_s19 = int_to_ptr.vmem [resolvable:$true] %s234_s19 }
  0x24   : > { %s739_s20 = scalar_lea.vmem %s235_s19, 16  ;;  %s746_s24 = scalar_lea.vmem %s235_s19, 32 }
  0x25   : > { %p740_p6 = scmp.ne.s32.totalorder %s235_s19, %s739_s20  ;;  %p747_p1 = scmp.lt.s32.totalorder %s235_s19, %s235_s19 }
  0x26   : > { %p748_p4 = scmp.lt.s32.totalorder %s746_s24, %s739_s20 }
  0x27   : > { %p742_p13 = pnand %p740_p6, %p678_p7 }
  0x28   : > { %p749_p8 = por %p748_p4, %p747_p1 }
  0x29   : > { %p743_p0 = pneg %p742_p13 }
  0x2b   : > { %p750_p9 = pnand %p749_p8, %p743_p0 }
  0x2d   : > { %753 = shalt.err (!%p750_p9)
}
  0x2e   : > { %633 = dma.hbm_to_vmem [thread:$0]  (!%p857_p5), %s947_s4, 16, %s235_s19, [#allocation5]  }
  0x2f   : > { %261 = sbr.rel (%p848_p3) target bundleno = 284 (0x11c), region = 44 }
  0x34   : > { %767 = dma.done.wait (%p844_p2), [#allocation3], 16  }
  0x35   : > { %769 = vsyncadd (%p844_p2), [#allocation3], 4294967280 }
  0x36   : > { %771 = dma.done.wait (%p844_p2), [#allocation5], 32  }
  0x37   : > { %773 = vsyncadd (%p844_p2), [#allocation5], 4294967264  ;;  %s571_s30 = sshll.u32 %s776_s21, 1  ;;  %v789_v0 = vmov 0.0   ;;  %vm790_vm0 = vmmov 0   ;;  %v669_v1 = vld [vmem:[%s944_s1 + $0x18] sm:$0xff]   ;;  %v417_v13 = vlaneseq }
  0x38   : > { %600 = vmatprep.subr.bf16.mxu0 %v789_v0  ;;  %608 = vmatprep.mubr.msk.bf16.mxu0 %vm790_vm0, %v789_v0  ;;  %p303_p5 = scmp.lt.s32.totalorder %s571_s30, 3  ;;  %v670_v2 = vld [vmem:[%s944_s1 + $0x10] sm:$0xff]   ;;  %v671_v3 = vld [vmem:[%s944_s1 + $0x8] sm:$0xff]   ;;  %v672_v4 = vld [vmem:[%s944_s1] sm:$0xff]   ;;  %vm364_vm1 = vcmask 523264  }
  0x39   : > { %601 = vmatpush3.bf16.msra.mxu0 %v669_v1  ;;  %v409_v6 = vld [vmem:[%s948_s5] sm:$0x3]  ;;  %v418_v14 = vshrl.u32 %v417_v13, 7  ;;  %v582_v25 = vld [vmem:[#allocation4] ss:$0 sm:$0xff] }
  0x3a   : > { %s959_s30 = smov (!%p303_p5, %s571_s30), 3  ;;  %602 = vmatprep.subr.bf16.mxu0 %v789_v0  ;;  %v410_v7 = vmul.f32 0.03125, %v409_v6  ;;  %v575_v18 = vld [vmem:[#allocation2] ss:$0 sm:$0xff]  ;;  %v583_v32 = vld [vmem:[#allocation6] ss:$0 sm:$0xff] }
  0x3b   : > { %s572_s8 = sshll.u32 %s959_s30, 2  ;;  %v419_v15 = vsub.s32 0, %v418_v14  ;;  %v427_v16 = vsub.s32 1, %v418_v14 }
  0x3c   : > { %s306_s11 = scalar_lea.vmem %s943_s0, %s572_s8  ;;  %v411_v8 = vmul.f32 %v410_v7, %v410_v7  ;;  %s314_s20 = scalar_lea.vmem %s949_s6, %s572_s8 }
  0x3d   : > { %603 = vmatpush3.bf16.msra.mxu0 %v670_v2  ;;  %v673_v5 = vld [vmem:[%s306_s11] sm:$0xff]   ;;  %v420_v19 = vrot.slane %v410_v7, %v419_v15 }
  0x3e   : > { %604 = vmatprep.subr.bf16.mxu0 %v789_v0  ;;  %v413_v9 = vrot.slane %v411_v8, 7 }
  0x40   : > { %v415_v10 = vsub.f32 %v410_v7, %v413_v9 }
  0x41   : > { %605 = vmatpush3.bf16.msra.mxu0 %v671_v3 }
  0x42   : > { %606 = vmatprep.subr.bf16.mxu0 %v789_v0  ;;  %v416_v11 = vmax.f32 %v415_v10, 0.0 }
  0x44   : > { %v423_v12 = vadd.f32 1e-05, %v416_v11 }
  0x45   : > { %607 = vmatpush3.bf16.msra.mxu0 %v672_v4 }
  0x46   : > { %674 = vrsqrt.f32 %v423_v12 }
  0x48   : > { %609 = vmatmul.mubr.msk.bf16.vlgmr.msra.gmra.mxu0 %vm364_vm1, %v673_v5 }
  0x53   : > { %v675_v17 = vpop.eup %674 }
  0x54   : > { %v428_v22 = vrot.slane %v675_v17, %v427_v16 }
 0x108   : > { %v402_v20 = vpop.f32.mrf.mxu0 }
 0x109   : > { %v403_v21 = vadd.f32 %v575_v18, %v402_v20 }
 0x10a   : > { %v610_v23 = vpop.f32.mrf.mxu0 }
 0x10b   : > { %v421_v24 = vsub.f32 %v403_v21, %v420_v19 }
 0x10c   : > { %v405_v26 = vpop.f32.mrf.mxu0 }
 0x10d   : > { %v429_v27 = vmul.f32 %v428_v22, %v421_v24  ;;  %v406_v28 = vadd.f32 %v575_v18, %v405_v26 }
 0x10e   : > { %v611_v29 = vpop.f32.mrf.mxu0 }
 0x10f   : > { %v438_v30 = vmul.f32 %v582_v25, %v429_v27  ;;  %v422_v31 = vsub.f32 %v406_v28, %v420_v19 }
 0x111   : > { %v430_v33 = vmul.f32 %v428_v22, %v422_v31  ;;  %v447_v34 = vadd.f32 %v583_v32, %v438_v30 }
 0x113   : > { %v439_v35 = vmul.f32 %v582_v25, %v430_v33  ;;  %v449_v37 = vmax.f32 %v447_v34, 0.0 }
 0x115   : > { %v448_v36 = vadd.f32 %v583_v32, %v439_v35 }
 0x117   : > { %v450_v38 = vmax.f32 %v448_v36, 0.0 }
 0x119   : > { %v593_v39 = vpack.c.bf16 %v450_v38, %v449_v37 }
 0x11b   : > { %594 = vst [vmem:[%s314_s20] sm:$0xff] %v593_v39  }
 0x11c PF: > { %s18_s23 = sadd.s32 1, %s784_s23   ;;  %s954_s21 = smov %s780_s22 }
 0x11d   : > { %p15_p2 = scmp.ge.s32.totalorder %s18_s23, 4   ;;  %s955_s22 = smov %s957_s29 }
 0x11f   :  { %17 = sbr.rel (!%p15_p2) target bundleno = 3 (0x3), region = 87 }
 0x124   :  { %486 = vsyncpa [#allocation3], 1 }
 0x125   :  { %488 = vsyncpa [#allocation3 + $0x1], 1 }
 0x126   :  { %489 = vsyncpa [#allocation5], 1 }

// kernel: pointnet_encoder.15
= control target key start
LH: loop header
LB: loop body
LE: loop exit
PB: predicated region body
PF: predicated region fallthrough
CT: control target
= control target key end

     0   :  { %8 = vsyncpa [#allocation3], 0  ;;  %s516_s12 = smov 0   ;;  %s518_s13 = smov 0   ;;  %s593_s0 = inlined_call_operand.vmem [shape: bf16[32,64], index: 0, kind: input, shape index: {}]   ;;  %s594_s1 = inlined_call_operand.vmem [shape: bf16[64,128], index: 1, kind: input, shape index: {}]   ;;  %s595_s2 = inlined_call_operand.hbm [shape: f32[1,128], index: 2, kind: input, shape index: {}]   ;;  %s596_s3 = inlined_call_operand.vmem [shape: f32[2,128], index: 3, kind: output, shape index: {}]  }
   0x1   :  { %s520_s14 = smov 0  }
   0x2 LB: > { %s359_s15 = sadd.s32 4294967295, %s490_s14   ;;  %s26_s16 = sadd.s32 1, %s486_s13  ;;  %s490_s14 = sphi %s520_s14, %s14_s14   ;;  %s486_s13 = sphi %s518_s13, %s600_s13   ;;  %s482_s12 = sphi %s516_s12, %s599_s12  }
   0x3   : > { %p28_p0 = scmp.ge.s32.totalorder %s26_s16, 2  ;;  %p360_p1 = scmp.ge.s32.totalorder %s490_s14, 1 }
   0x4   : > { %p122_p2 = scmp.lt.s32.totalorder %s490_s14, 3  ;;  %p541_p4 = scmp.eq.s32.totalorder %s359_s15, 0 }
   0x5   : > { %s602_s16 = smov (%p28_p0, %s26_s16), 0  ;;  %s492_s19 = smov [#allocation2]  }
   0x6   : > { %p537_p3 = pnand %p360_p1, %p122_p2  ;;  %s138_s20 = sshll.u32 %s492_s19, 4  ;;  %s139_s20 = int_to_ptr.vmem [resolvable:$true] %s138_s20 }
   0x7   : > { %s449_s21 = scalar_lea.vmem %s139_s20, 16  ;;  %s456_s22 = scalar_lea.vmem %s139_s20, 32 }
   0x8   : > { %p399_p5 = pneg %p537_p3  ;;  %p450_p8 = scmp.ne.s32.totalorder %s139_s20, %s449_s21 }
   0x9   : > { %p457_p11 = scmp.lt.s32.totalorder %s139_s20, %s139_s20  ;;  %p458_p12 = scmp.lt.s32.totalorder %s456_s22, %s449_s21 }
   0xa   : > { %p400_p6 = pnand %p541_p4, %p399_p5 }
   0xb   : > { %p459_p13 = por %p458_p12, %p457_p11 }
   0xc   : > { %p440_p7 = pneg %p400_p6 }
   0xe   : > { %p452_p9 = pnand %p450_p8, %p440_p7 }
  0x10   : > { %p453_p10 = pneg %p452_p9 }
  0x12   : > { %p460_p0 = pnand %p459_p13, %p453_p10 }
  0x14   : > { %463 = shalt.err (!%p460_p0)
}
  0x15   : > { %402 = dma.hbm_to_vmem [thread:$0]  (!%p400_p6), %s595_s2, 16, %s139_s20, [#allocation3]  }
  0x16   : > { %162 = sbr.rel (%p537_p3) target bundleno = 264 (0x108), region = 32 }
  0x1b   : > { %477 = dma.done.wait (%p541_p4), [#allocation3], 16  }
  0x1c   : > { %479 = vsyncadd (%p541_p4), [#allocation3], 4294967280  ;;  %s365_s25 = sshll.u32 %s482_s12, 1  ;;  %v493_v0 = vmov 0.0   ;;  %vm494_vm0 = vmmov 0   ;;  %v433_v1 = vld [vmem:[%s594_s1 + $0x18] sm:$0xff]  }
  0x1d   : > { %383 = vmatprep.subr.bf16.mxu0 %v493_v0  ;;  %391 = vmatprep.mubr.msk.bf16.mxu0 %vm494_vm0, %v493_v0  ;;  %p184_p1 = scmp.lt.s32.totalorder %s365_s25, 3  ;;  %v434_v2 = vld [vmem:[%s594_s1 + $0x10] sm:$0xff]   ;;  %v435_v3 = vld [vmem:[%s594_s1 + $0x8] sm:$0xff]   ;;  %v436_v4 = vld [vmem:[%s594_s1] sm:$0xff]   ;;  %vm237_vm1 = vcmask 523264   ;;  %p282_p2 = scmp.eq.s32.totalorder %s482_s12, 0 }
  0x1e   : > { %384 = vmatpush3.bf16.msra.mxu0 %v433_v1  ;;  %v367_v6 = vld [vmem:[#allocation2] ss:$0 sm:$0xff]  ;;  %v495_v13 = vmov (%p282_p2), 0.0  }
  0x1f   : > { %s604_s25 = smov (!%p184_p1, %s365_s25), 3  ;;  %385 = vmatprep.subr.bf16.mxu0 %v493_v0  ;;  %288 = vst [vmem:[%s596_s3] sm:$0x3] (%p282_p2), %v495_v13 }
  0x20   : > { %s366_s28 = sshll.u32 %s604_s25, 2 }
  0x21   : > { %s187_s6 = scalar_lea.vmem %s593_s0, %s366_s28 }
  0x22   : > { %386 = vmatpush3.bf16.msra.mxu0 %v434_v2  ;;  %v437_v5 = vld [vmem:[%s187_s6] sm:$0xff]  }
  0x23   : > { %387 = vmatprep.subr.bf16.mxu0 %v493_v0 }
  0x26   : > { %388 = vmatpush3.bf16.msra.mxu0 %v435_v3 }
  0x27   : > { %389 = vmatprep.subr.bf16.mxu0 %v493_v0 }
  0x2a   : > { %390 = vmatpush3.bf16.msra.mxu0 %v436_v4 }
  0x2d   : > { %392 = vmatmul.mubr.msk.bf16.vlgmr.msra.gmra.mxu0 %vm237_vm1, %v437_v5 }
  0xed   : > { %v275_v7 = vpop.f32.mrf.mxu0 }
  0xee   : > { %v276_v8 = vadd.f32 %v367_v6, %v275_v7 }
  0xef   : > { %v393_v9 = vpop.f32.mrf.mxu0  ;;  %287 = sbr.rel (!%p282_p2) target bundleno = 244 (0xf4), region = 40 }
  0xf1   : > { %v278_v10 = vpop.f32.mrf.mxu0 }
  0xf2   : > { %v279_v11 = vadd.f32 %v367_v6, %v278_v10 }
  0xf3   : > { %v394_v12 = vpop.f32.mrf.mxu0 }
  0xf4 PF: > { %v289_v14 = vadd.f32 %v279_v11, %v276_v8  ;;  %v296_v15 = vmul.f32 %v276_v8, %v276_v8  ;;  %v297_v16 = vmul.f32 %v279_v11, %v279_v11  ;;  %vm306_vm2 = vcmask 1040384   ;;  %v305_v30 = vld [vmem:[%s596_s3] sm:$0x3] }
  0xf6   : > { %v290_v17 = vrot.slane %v289_v14, 4  ;;  %v298_v18 = vadd.f32 %v297_v16, %v296_v15 }
  0xf8   : > { %v291_v19 = vadd.f32 %v290_v17, %v289_v14  ;;  %v299_v20 = vrot.slane %v298_v18, 4 }
  0xfa   : > { %v292_v21 = vrot.slane %v291_v19, 2  ;;  %v300_v22 = vadd.f32 %v299_v20, %v298_v18 }
  0xfc   : > { %v293_v23 = vadd.f32 %v292_v21, %v291_v19  ;;  %v301_v24 = vrot.slane %v300_v22, 2 }
  0xfe   : > { %v294_v25 = vrot.slane %v293_v23, 1  ;;  %v302_v26 = vadd.f32 %v301_v24, %v300_v22 }
 0x100   : > { %v295_v27 = vadd.f32 %v294_v25, %v293_v23  ;;  %v303_v28 = vrot.slane %v302_v26, 1 }
 0x102   : > { %v304_v29 = vadd.f32 %v303_v28, %v302_v26 }
 0x104   : > { %v307_v31 = vsel %vm306_vm2, %v295_v27, %v304_v29 }
 0x105   : > { %v308_v32 = vadd.f32 %v307_v31, %v305_v30 }
 0x107   : > { %309 = vst [vmem:[%s596_s3] sm:$0x3] %v308_v32 }
 0x108 PF: > { %s14_s14 = sadd.s32 1, %s490_s14   ;;  %s599_s12 = smov %s486_s13 }
 0x109   : > { %p11_p3 = scmp.ge.s32.totalorder %s14_s14, 4   ;;  %s600_s13 = smov %s602_s16 }
 0x10b   :  { %13 = sbr.rel (!%p11_p3) target bundleno = 2 (0x2), region = 67 }
 0x110   :  { %321 = vsyncpa [#allocation3], 1 }
 0x111   :  { %323 = vsyncpa [#allocation3 + $0x1], 1 }

// kernel: pointnet_encoder.17
= control target key start
LH: loop header
LB: loop body
LE: loop exit
PB: predicated region body
PF: predicated region fallthrough
CT: control target
= control target key end

     0   :  { %8 = vsyncpa [#allocation3], 0  ;;  %s1235_s12 = smov 0   ;;  %s1237_s13 = smov 0   ;;  %s1637_s0 = inlined_call_operand.vmem [shape: bf16[32,128], index: 0, kind: input, shape index: {}]   ;;  %s1638_s1 = inlined_call_operand.vmem [shape: bf16[128,1024], index: 1, kind: input, shape index: {}]   ;;  %s1639_s2 = inlined_call_operand.hbm [shape: f32[1,1024], index: 2, kind: input, shape index: {}]   ;;  %s1640_s3 = inlined_call_operand.vmem [shape: f32[2,1024], index: 3, kind: output, shape index: {}]  }
   0x1   :  { %s1239_s14 = smov 0  }
   0x2 LB: > { %s1041_s15 = sadd.s32 4294967295, %s1209_s14   ;;  %s26_s16 = sadd.s32 1, %s1205_s13  ;;  %s1209_s14 = sphi %s1239_s14, %s14_s14   ;;  %s1205_s13 = sphi %s1237_s13, %s1645_s13   ;;  %s1201_s12 = sphi %s1235_s12, %s1644_s12  }
   0x3   : > { %p28_p0 = scmp.ge.s32.totalorder %s26_s16, 2  ;;  %p1042_p1 = scmp.ge.s32.totalorder %s1209_s14, 1 }
   0x4   : > { %p122_p2 = scmp.lt.s32.totalorder %s1209_s14, 3  ;;  %p1260_p4 = scmp.eq.s32.totalorder %s1041_s15, 0 }
   0x5   : > { %s1647_s16 = smov (%p28_p0, %s26_s16), 0  ;;  %s1211_s19 = smov [#allocation2]  }
   0x6   : > { %p1256_p3 = pnand %p1042_p1, %p122_p2  ;;  %s138_s20 = sshll.u32 %s1211_s19, 4  ;;  %s139_s20 = int_to_ptr.vmem [resolvable:$true] %s138_s20 }
   0x7   : > { %s1168_s21 = scalar_lea.vmem %s139_s20, 128  ;;  %p1176_p11 = scmp.lt.s32.totalorder %s139_s20, %s139_s20 }
   0x8   : > { %p1122_p5 = pneg %p1256_p3  ;;  %p1169_p8 = scmp.ne.s32.totalorder %s139_s20, %s1168_s21 }
   0x9   : > { %p1177_p12 = scmp.lt.s32.totalorder %s1168_s21, %s1168_s21 }
   0xa   : > { %p1123_p6 = pnand %p1260_p4, %p1122_p5 }
   0xb   : > { %p1178_p13 = por %p1177_p12, %p1176_p11 }
   0xc   : > { %p1159_p7 = pneg %p1123_p6 }
   0xe   : > { %p1171_p9 = pnand %p1169_p8, %p1159_p7 }
  0x10   : > { %p1172_p10 = pneg %p1171_p9 }
  0x12   : > { %p1179_p0 = pnand %p1178_p13, %p1172_p10 }
  0x14   : > { %1182 = shalt.err (!%p1179_p0)
}
  0x15   : > { %1125 = dma.hbm_to_vmem [thread:$0]  (!%p1123_p6), %s1639_s2, 128, %s139_s20, [#allocation3]  }
  0x16   : > { %162 = sbr.rel (%p1256_p3) target bundleno = 344 (0x158), region = 32 }
  0x1b   : > { %1196 = dma.done.wait (%p1260_p4), [#allocation3], 128  }
  0x1c   : > { %1198 = vsyncadd (%p1260_p4), [#allocation3], 4294967168  ;;  %v1212_v0 = vmov 0   ;;  %s1047_s24 = sshll.u32 %s1201_s12, 1  ;;  %v249_v1 = vld [vmem:[%s1638_s1 + $0x1c0] sm:$0xff]  ;;  %v250_v3 = vld [vmem:[%s1638_s1 + $0x1c8] sm:$0xff] }
  0x1d   : > { %657 = vmatprep.mubr.bf16.mxu0 %v1212_v0  ;;  %700 = vmatprep.mubr.bf16.mxu1 %v1212_v0  ;;  %p1280_p1 = scmp.lt.s32.totalorder %s1047_s24, 3  ;;  %v253_v2 = vld [vmem:[%s1638_s1 + $0x1e0] sm:$0xff]  ;;  %v254_v5 = vld [vmem:[%s1638_s1 + $0x1e8] sm:$0xff]  ;;  %v251_v63 = vld [vmem:[%s1638_s1 + $0x1d0] sm:$0xff]  ;;  %p797_p2 = scmp.eq.s32.totalorder %s1201_s12, 0 }
  0x1e   : > { %v1107_v4 = vcombine.high %v249_v1, %v253_v2  ;;  %v1106_v6 = vcombine.low %v249_v1, %v253_v2  ;;  %v241_v7 = vld [vmem:[%s1638_s1 + $0x180] sm:$0xff]  ;;  %v1109_v9 = vcombine.high %v250_v3, %v254_v5  ;;  %v1108_v10 = vcombine.low %v250_v3, %v254_v5  ;;  %v242_v12 = vld [vmem:[%s1638_s1 + $0x188] sm:$0xff]  ;;  %v255_v1 = vld [vmem:[%s1638_s1 + $0x1f0] sm:$0xff] }
  0x1f   : > { %v245_v8 = vld [vmem:[%s1638_s1 + $0x1a0] sm:$0xff]  ;;  %v246_v13 = vld [vmem:[%s1638_s1 + $0x1a8] sm:$0xff]  ;;  %s1649_s24 = smov (!%p1280_p1, %s1047_s24), 3  ;;  %v252_v2 = vld [vmem:[%s1638_s1 + $0x1d8] sm:$0xff] }
  0x20   : > { %v1099_v11 = vcombine.high %v241_v7, %v245_v8  ;;  %v233_v14 = vld [vmem:[%s1638_s1 + $0x140] sm:$0xff]  ;;  %625 = vmatprep.subr.bf16.mxu0 %v1107_v4  ;;  %v1101_v15 = vcombine.high %v242_v12, %v246_v13  ;;  %v234_v17 = vld [vmem:[%s1638_s1 + $0x148] sm:$0xff]  ;;  %668 = vmatprep.subr.bf16.mxu1 %v1109_v9  ;;  %v1098_v19 = vcombine.low %v241_v7, %v245_v8  ;;  %s1048_s5 = sshll.u32 %s1649_s24, 2  ;;  %v256_v3 = vld [vmem:[%s1638_s1 + $0x1f8] sm:$0xff] }
  0x21   : > { %v237_v16 = vld [vmem:[%s1638_s1 + $0x160] sm:$0xff]  ;;  %v238_v18 = vld [vmem:[%s1638_s1 + $0x168] sm:$0xff]  ;;  %626 = vmatpush1.bf16.msra.mxu0 %v1106_v6  ;;  %669 = vmatpush1.bf16.msra.mxu1 %v1108_v10  ;;  %v1100_v20 = vcombine.low %v242_v12, %v246_v13  ;;  %s1337_s15 = scalar_lea.vmem %s1637_s0, %s1048_s5  ;;  %v1111_v6 = vcombine.high %v251_v63, %v255_v1  ;;  %v1113_v7 = vcombine.high %v252_v2, %v256_v3  ;;  %v243_v8 = vld [vmem:[%s1638_s1 + $0x190] sm:$0xff] }
  0x22   : > { %627 = vmatprep.subr.bf16.mxu0 %v1099_v11  ;;  %v1091_v21 = vcombine.high %v233_v14, %v237_v16  ;;  %670 = vmatprep.subr.bf16.mxu1 %v1101_v15  ;;  %v1093_v22 = vcombine.high %v234_v17, %v238_v18  ;;  %v225_v23 = vld [vmem:[%s1638_s1 + $0x100] sm:$0xff]  ;;  %v226_v25 = vld [vmem:[%s1638_s1 + $0x108] sm:$0xff]  ;;  %v1090_v27 = vcombine.low %v233_v14, %v237_v16  ;;  %v247_v9 = vld [vmem:[%s1638_s1 + $0x1b0] sm:$0xff] }
  0x23   : > { %v229_v24 = vld [vmem:[%s1638_s1 + $0x120] sm:$0xff]  ;;  %v230_v26 = vld [vmem:[%s1638_s1 + $0x128] sm:$0xff]  ;;  %v1092_v28 = vcombine.low %v234_v17, %v238_v18  ;;  %v244_v11 = vld [vmem:[%s1638_s1 + $0x198] sm:$0xff]  ;;  %v1110_v13 = vcombine.low %v251_v63, %v255_v1  ;;  %v1112_v14 = vcombine.low %v252_v2, %v256_v3  ;;  %v1103_v15 = vcombine.high %v243_v8, %v247_v9 }
  0x24   : > { %v1083_v29 = vcombine.high %v225_v23, %v229_v24  ;;  %v1085_v30 = vcombine.high %v226_v25, %v230_v26  ;;  %v217_v31 = vld [vmem:[%s1638_s1 + $0xc0] sm:$0xff]  ;;  %v218_v33 = vld [vmem:[%s1638_s1 + $0xc8] sm:$0xff]  ;;  %v1082_v35 = vcombine.low %v225_v23, %v229_v24  ;;  %v1084_v36 = vcombine.low %v226_v25, %v230_v26  ;;  %v248_v12 = vld [vmem:[%s1638_s1 + $0x1b8] sm:$0xff] }
  0x25   : > { %628 = vmatpush1.bf16.msra.mxu0 %v1098_v19  ;;  %671 = vmatpush1.bf16.msra.mxu1 %v1100_v20  ;;  %v221_v32 = vld [vmem:[%s1638_s1 + $0xe0] sm:$0xff]  ;;  %v222_v34 = vld [vmem:[%s1638_s1 + $0xe8] sm:$0xff]  ;;  %v1105_v16 = vcombine.high %v244_v11, %v248_v12  ;;  %v235_v17 = vld [vmem:[%s1638_s1 + $0x150] sm:$0xff]  ;;  %v259_v3 = vlaneseq }
  0x26   : > { %629 = vmatprep.subr.bf16.mxu0 %v1091_v21  ;;  %672 = vmatprep.subr.bf16.mxu1 %v1093_v22  ;;  %v1075_v37 = vcombine.high %v217_v31, %v221_v32  ;;  %v1077_v38 = vcombine.high %v218_v33, %v222_v34  ;;  %v209_v39 = vld [vmem:[%s1638_s1 + $0x80] sm:$0xff]  ;;  %v210_v41 = vld [vmem:[%s1638_s1 + $0x88] sm:$0xff]  ;;  %v1074_v43 = vcombine.low %v217_v31, %v221_v32  ;;  %v239_v18 = vld [vmem:[%s1638_s1 + $0x170] sm:$0xff] }
  0x27   : > { %v213_v40 = vld [vmem:[%s1638_s1 + $0xa0] sm:$0xff]  ;;  %v214_v42 = vld [vmem:[%s1638_s1 + $0xa8] sm:$0xff]  ;;  %v1076_v44 = vcombine.low %v218_v33, %v222_v34  ;;  %v236_v19 = vld [vmem:[%s1638_s1 + $0x158] sm:$0xff]  ;;  %v1102_v21 = vcombine.low %v243_v8, %v247_v9  ;;  %v1104_v22 = vcombine.low %v244_v11, %v248_v12  ;;  %v1095_v23 = vcombine.high %v235_v17, %v239_v18 }
  0x28   : > { %v1067_v45 = vcombine.high %v209_v39, %v213_v40  ;;  %v1069_v46 = vcombine.high %v210_v41, %v214_v42  ;;  %v201_v47 = vld [vmem:[%s1638_s1 + $0x40] sm:$0xff]  ;;  %v202_v49 = vld [vmem:[%s1638_s1 + $0x48] sm:$0xff]  ;;  %v1066_v51 = vcombine.low %v209_v39, %v213_v40  ;;  %v1068_v52 = vcombine.low %v210_v41, %v214_v42  ;;  %v240_v20 = vld [vmem:[%s1638_s1 + $0x178] sm:$0xff] }
  0x29   : > { %630 = vmatpush1.bf16.msra.mxu0 %v1090_v27  ;;  %673 = vmatpush1.bf16.msra.mxu1 %v1092_v28  ;;  %v205_v48 = vld [vmem:[%s1638_s1 + $0x60] sm:$0xff]  ;;  %v206_v50 = vld [vmem:[%s1638_s1 + $0x68] sm:$0xff]  ;;  %v1097_v24 = vcombine.high %v236_v19, %v240_v20  ;;  %v227_v25 = vld [vmem:[%s1638_s1 + $0x110] sm:$0xff] }
  0x2a   : > { %631 = vmatprep.subr.bf16.mxu0 %v1083_v29  ;;  %674 = vmatprep.subr.bf16.mxu1 %v1085_v30  ;;  %v1059_v53 = vcombine.high %v201_v47, %v205_v48  ;;  %v1061_v54 = vcombine.high %v202_v49, %v206_v50  ;;  %v193_v55 = vld [vmem:[%s1638_s1] sm:$0xff]  ;;  %v194_v57 = vld [vmem:[%s1638_s1 + $0x8] sm:$0xff]  ;;  %v1058_v59 = vcombine.low %v201_v47, %v205_v48  ;;  %v231_v26 = vld [vmem:[%s1638_s1 + $0x130] sm:$0xff] }
  0x2b   : > { %v197_v56 = vld [vmem:[%s1638_s1 + $0x20] sm:$0xff]  ;;  %v198_v58 = vld [vmem:[%s1638_s1 + $0x28] sm:$0xff]  ;;  %v1060_v60 = vcombine.low %v202_v49, %v206_v50  ;;  %v228_v27 = vld [vmem:[%s1638_s1 + $0x118] sm:$0xff]  ;;  %v1094_v29 = vcombine.low %v235_v17, %v239_v18  ;;  %v1096_v30 = vcombine.low %v236_v19, %v240_v20  ;;  %v1087_v31 = vcombine.high %v227_v25, %v231_v26 }
  0x2c   : > { %v1051_v61 = vcombine.high %v193_v55, %v197_v56  ;;  %v1053_v62 = vcombine.high %v194_v57, %v198_v58  ;;  %v1050_v4 = vcombine.low %v193_v55, %v197_v56  ;;  %v1052_v5 = vcombine.low %v194_v57, %v198_v58  ;;  %v1406_v10 = vld [vmem:[%s1337_s15] sm:$0xff]   ;;  %v232_v28 = vld [vmem:[%s1638_s1 + $0x138] sm:$0xff]  ;;  %v219_v33 = vld [vmem:[%s1638_s1 + $0xd0] sm:$0xff] }
  0x2d   : > { %632 = vmatpush1.bf16.msra.mxu0 %v1082_v35  ;;  %675 = vmatpush1.bf16.msra.mxu1 %v1084_v36  ;;  %v1089_v32 = vcombine.high %v228_v27, %v232_v28  ;;  %v223_v34 = vld [vmem:[%s1638_s1 + $0xf0] sm:$0xff]  ;;  %v224_v35 = vld [vmem:[%s1638_s1 + $0xf8] sm:$0xff]  ;;  %v1086_v36 = vcombine.low %v227_v25, %v231_v26 }
  0x2e   : > { %633 = vmatprep.subr.bf16.mxu0 %v1075_v37  ;;  %676 = vmatprep.subr.bf16.mxu1 %v1077_v38  ;;  %v1088_v37 = vcombine.low %v228_v27, %v232_v28  ;;  %v1079_v38 = vcombine.high %v219_v33, %v223_v34  ;;  %v211_v40 = vld [vmem:[%s1638_s1 + $0x90] sm:$0xff]  ;;  %v212_v42 = vld [vmem:[%s1638_s1 + $0x98] sm:$0xff] }
  0x2f   : > { %v215_v41 = vld [vmem:[%s1638_s1 + $0xb0] sm:$0xff]  ;;  %v204_v50 = vld [vmem:[%s1638_s1 + $0x58] sm:$0xff] }
  0x30   : > { %v203_v48 = vld [vmem:[%s1638_s1 + $0x50] sm:$0xff]  ;;  %v196_v58 = vld [vmem:[%s1638_s1 + $0x18] sm:$0xff] }
  0x31   : > { %634 = vmatpush1.bf16.msra.mxu0 %v1074_v43  ;;  %677 = vmatpush1.bf16.msra.mxu1 %v1076_v44  ;;  %v216_v43 = vld [vmem:[%s1638_s1 + $0xb8] sm:$0xff]  ;;  %v1078_v44 = vcombine.low %v219_v33, %v223_v34  ;;  %v207_v49 = vld [vmem:[%s1638_s1 + $0x70] sm:$0xff] }
  0x32   : > { %635 = vmatprep.subr.bf16.mxu0 %v1067_v45  ;;  %678 = vmatprep.subr.bf16.mxu1 %v1069_v46  ;;  %v1071_v46 = vcombine.high %v211_v40, %v215_v41  ;;  %v1073_v47 = vcombine.high %v212_v42, %v216_v43  ;;  %v195_v56 = vld [vmem:[%s1638_s1 + $0x10] sm:$0xff] }
  0x33   : > { %v199_v57 = vld [vmem:[%s1638_s1 + $0x30] sm:$0xff] }
  0x34   : > { %v1054_v1 = vcombine.low %v195_v56, %v199_v57 }
  0x35   : > { %636 = vmatpush1.bf16.msra.mxu0 %v1066_v51  ;;  %679 = vmatpush1.bf16.msra.mxu1 %v1068_v52  ;;  %v208_v51 = vld [vmem:[%s1638_s1 + $0x78] sm:$0xff]  ;;  %v1070_v52 = vcombine.low %v211_v40, %v215_v41 }
  0x36   : > { %637 = vmatprep.subr.bf16.mxu0 %v1059_v53  ;;  %680 = vmatprep.subr.bf16.mxu1 %v1061_v54  ;;  %v1072_v53 = vcombine.low %v212_v42, %v216_v43  ;;  %v1063_v54 = vcombine.high %v203_v48, %v207_v49  ;;  %v1065_v55 = vcombine.high %v204_v50, %v208_v51 }
  0x39   : > { %638 = vmatpush1.bf16.msra.mxu0 %v1058_v59  ;;  %681 = vmatpush1.bf16.msra.mxu1 %v1060_v60  ;;  %v200_v59 = vld [vmem:[%s1638_s1 + $0x38] sm:$0xff]  ;;  %v1062_v60 = vcombine.low %v203_v48, %v207_v49 }
  0x3a   : > { %639 = vmatprep.subr.bf16.mxu0 %v1051_v61  ;;  %682 = vmatprep.subr.bf16.mxu1 %v1053_v62  ;;  %v1064_v61 = vcombine.low %v204_v50, %v208_v51  ;;  %v1055_v62 = vcombine.high %v195_v56, %v199_v57  ;;  %v1057_v63 = vcombine.high %v196_v58, %v200_v59 }
  0x3b   : > { %v1056_v2 = vcombine.low %v196_v58, %v200_v59 }
  0x3d   : > { %640 = vmatpush1.bf16.msra.mxu0 %v1050_v4  ;;  %683 = vmatpush1.bf16.msra.mxu1 %v1052_v5  ;;  %v1493_v4 = vshrl.u32 %v259_v3, 7 }
  0x3e   : > { %711 = vmatprep.subr.bf16.mxu0 %v1111_v6  ;;  %754 = vmatprep.subr.bf16.mxu1 %v1113_v7  ;;  %v257_v6 = vld [vmem:[#allocation2] sm:$0xff] }
  0x3f   : > { %v261_v5 = vsub.s32 0, %v1493_v4  ;;  %v269_v7 = vsub.s32 2, %v1493_v4  ;;  %v265_v8 = vsub.s32 1, %v1493_v4  ;;  %v273_v9 = vsub.s32 3, %v1493_v4 }
  0x40   : > { %658 = vmatmul.mubr.bf16.vlgmr.msra.gmra.mxu0 %v1406_v10  ;;  %701 = vmatmul.mubr.bf16.vlgmr.msra.gmra.mxu1 %v1406_v10  ;;  %v289_v33 = vsub.s32 7, %v1493_v4 }
  0x41   : > { %712 = vmatpush1.bf16.msra.mxu0 %v1110_v13  ;;  %755 = vmatpush1.bf16.msra.mxu1 %v1112_v14  ;;  %v262_v11 = vrot.slane %v257_v6, %v261_v5  ;;  %v270_v12 = vrot.slane %v257_v6, %v269_v7  ;;  %v266_v13 = vrot.slane %v257_v6, %v265_v8 }
  0x42   : > { %713 = vmatprep.subr.bf16.mxu0 %v1103_v15  ;;  %756 = vmatprep.subr.bf16.mxu1 %v1105_v16  ;;  %v274_v15 = vrot.slane %v257_v6, %v273_v9 }
  0x43   : > { %743 = vmatprep.mubr.bf16.mxu0 %v1212_v0  ;;  %786 = vmatprep.mubr.bf16.mxu1 %v1212_v0  ;;  %v220_v0 = vld [vmem:[%s1638_s1 + $0xd8] sm:$0xff] }
  0x44   : > { %v1081_v39 = vcombine.high %v220_v0, %v224_v35  ;;  %v1080_v45 = vcombine.low %v220_v0, %v224_v35 }
  0x45   : > { %714 = vmatpush1.bf16.msra.mxu0 %v1102_v21  ;;  %757 = vmatpush1.bf16.msra.mxu1 %v1104_v22 }
  0x46   : > { %715 = vmatprep.subr.bf16.mxu0 %v1095_v23  ;;  %758 = vmatprep.subr.bf16.mxu1 %v1097_v24 }
  0x49   : > { %716 = vmatpush1.bf16.msra.mxu0 %v1094_v29  ;;  %759 = vmatpush1.bf16.msra.mxu1 %v1096_v30  ;;  %v277_v30 = vsub.s32 4, %v1493_v4 }
  0x4a   : > { %717 = vmatprep.subr.bf16.mxu0 %v1087_v31  ;;  %760 = vmatprep.subr.bf16.mxu1 %v1089_v32  ;;  %v285_v31 = vsub.s32 6, %v1493_v4  ;;  %v281_v32 = vsub.s32 5, %v1493_v4 }
  0x4b   : > { %v278_v34 = vrot.slane %v257_v6, %v277_v30 }
  0x4c   : > { %v286_v0 = vrot.slane %v257_v6, %v285_v31  ;;  %v282_v35 = vrot.slane %v257_v6, %v281_v32 }
  0x4d   : > { %718 = vmatpush1.bf16.msra.mxu0 %v1086_v36  ;;  %761 = vmatpush1.bf16.msra.mxu1 %v1088_v37  ;;  %v290_v37 = vrot.slane %v257_v6, %v289_v33 }
  0x4e   : > { %719 = vmatprep.subr.bf16.mxu0 %v1079_v38  ;;  %762 = vmatprep.subr.bf16.mxu1 %v1081_v39 }
  0x51   : > { %720 = vmatpush1.bf16.msra.mxu0 %v1078_v44  ;;  %763 = vmatpush1.bf16.msra.mxu1 %v1080_v45 }
  0x52   : > { %721 = vmatprep.subr.bf16.mxu0 %v1071_v46  ;;  %764 = vmatprep.subr.bf16.mxu1 %v1073_v47 }
  0x55   : > { %722 = vmatpush1.bf16.msra.mxu0 %v1070_v52  ;;  %765 = vmatpush1.bf16.msra.mxu1 %v1072_v53  ;;  %v1213_v53 = vmov (%p797_p2), 0.0  }
  0x56   : > { %723 = vmatprep.subr.bf16.mxu0 %v1063_v54  ;;  %766 = vmatprep.subr.bf16.mxu1 %v1065_v55  ;;  %803 = vst [vmem:[%s1640_s3] sm:$0xff] (%p797_p2), %v1213_v53  ;;  %804 = vst [vmem:[%s1640_s3 + $0x8] sm:$0xff] (%p797_p2), %v1213_v53 }
  0x59   : > { %724 = vmatpush1.bf16.msra.mxu0 %v1062_v60  ;;  %767 = vmatpush1.bf16.msra.mxu1 %v1064_v61 }
  0x5a   : > { %725 = vmatprep.subr.bf16.mxu0 %v1055_v62  ;;  %768 = vmatprep.subr.bf16.mxu1 %v1057_v63 }
  0x5d   : > { %726 = vmatpush1.bf16.msra.mxu0 %v1054_v1  ;;  %769 = vmatpush1.bf16.msra.mxu1 %v1056_v2 }
  0x60   : > { %744 = vmatmul.mubr.bf16.vlgmr.msra.gmra.mxu0 %v1406_v10  ;;  %787 = vmatmul.mubr.bf16.vlgmr.msra.gmra.mxu1 %v1406_v10 }
 0x100   : > { %v659_v14 = vpop.f32.mrf.mxu0  ;;  %v702_v10 = vpop.f32.mrf.mxu1 }
 0x101   : > { %v1499_v16 = vadd.f32 %v659_v14, %v262_v11  ;;  %v1501_v17 = vadd.f32 %v702_v10, %v270_v12 }
 0x102   : > { %v661_v18 = vpop.f32.mrf.mxu0  ;;  %v704_v20 = vpop.f32.mrf.mxu1 }
 0x103   : > { %v1503_v19 = vadd.f32 %v661_v18, %v266_v13  ;;  %v1505_v21 = vadd.f32 %v704_v20, %v274_v15 }
 0x104   : > { %v663_v22 = vpop.f32.mrf.mxu0  ;;  %v706_v24 = vpop.f32.mrf.mxu1 }
 0x105   : > { %v1507_v23 = vadd.f32 %v663_v22, %v262_v11  ;;  %v1509_v25 = vadd.f32 %v706_v24, %v270_v12 }
 0x106   : > { %v665_v26 = vpop.f32.mrf.mxu0  ;;  %v708_v28 = vpop.f32.mrf.mxu1 }
 0x107   : > { %v1511_v27 = vadd.f32 %v665_v26, %v266_v13  ;;  %v1513_v29 = vadd.f32 %v708_v28, %v274_v15 }
 0x120   : > { %v745_v36 = vpop.f32.mrf.mxu0  ;;  %v788_v39 = vpop.f32.mrf.mxu1 }
 0x121   : > { %v1519_v38 = vadd.f32 %v745_v36, %v278_v34  ;;  %v1521_v40 = vadd.f32 %v788_v39, %v286_v0 }
 0x122   : > { %v747_v41 = vpop.f32.mrf.mxu0  ;;  %v790_v43 = vpop.f32.mrf.mxu1 }
 0x123   : > { %v1523_v42 = vadd.f32 %v747_v41, %v282_v35  ;;  %v1525_v44 = vadd.f32 %v790_v43, %v290_v37  ;;  %802 = sbr.rel (!%p797_p2) target bundleno = 296 (0x128), region = 40 }
 0x124   : > { %v749_v45 = vpop.f32.mrf.mxu0  ;;  %v792_v47 = vpop.f32.mrf.mxu1 }
 0x125   : > { %v1527_v46 = vadd.f32 %v749_v45, %v278_v34  ;;  %v1529_v48 = vadd.f32 %v792_v47, %v286_v0 }
 0x126   : > { %v751_v49 = vpop.f32.mrf.mxu0  ;;  %v794_v51 = vpop.f32.mrf.mxu1 }
 0x127   : > { %v1531_v50 = vadd.f32 %v751_v49, %v282_v35  ;;  %v1533_v52 = vadd.f32 %v794_v51, %v290_v37 }
 0x128 PF: > { %v805_v54 = vadd.f32 %v1507_v23, %v1499_v16  ;;  %v812_v55 = vadd.f32 %v1511_v27, %v1503_v19  ;;  %v819_v56 = vadd.f32 %v1509_v25, %v1501_v17  ;;  %v826_v57 = vadd.f32 %v1513_v29, %v1505_v21 }
 0x129   : > { %v833_v58 = vadd.f32 %v1527_v46, %v1519_v38  ;;  %v840_v59 = vadd.f32 %v1531_v50, %v1523_v42  ;;  %v847_v60 = vadd.f32 %v1529_v48, %v1521_v40  ;;  %v854_v61 = vadd.f32 %v1533_v52, %v1525_v44 }
 0x12a   : > { %v806_v62 = vrot.slane %v805_v54, 4  ;;  %v813_v63 = vrot.slane %v812_v55, 4  ;;  %v820_v1 = vrot.slane %v819_v56, 4  ;;  %v827_v2 = vrot.slane %v826_v57, 4 }
 0x12b   : > { %v834_v3 = vrot.slane %v833_v58, 4  ;;  %v841_v5 = vrot.slane %v840_v59, 4  ;;  %v848_v6 = vrot.slane %v847_v60, 4  ;;  %v855_v7 = vrot.slane %v854_v61, 4 }
 0x12c   : > { %v807_v8 = vadd.f32 %v806_v62, %v805_v54  ;;  %v814_v9 = vadd.f32 %v813_v63, %v812_v55  ;;  %v821_v11 = vadd.f32 %v820_v1, %v819_v56  ;;  %v828_v12 = vadd.f32 %v827_v2, %v826_v57 }
 0x12d   : > { %v835_v13 = vadd.f32 %v834_v3, %v833_v58  ;;  %v842_v14 = vadd.f32 %v841_v5, %v840_v59  ;;  %v849_v15 = vadd.f32 %v848_v6, %v847_v60  ;;  %v856_v10 = vadd.f32 %v855_v7, %v854_v61 }
 0x12e   : > { %v808_v18 = vrot.slane %v807_v8, 2  ;;  %v815_v20 = vrot.slane %v814_v9, 2  ;;  %v822_v22 = vrot.slane %v821_v11, 2  ;;  %v829_v24 = vrot.slane %v828_v12, 2 }
 0x12f   : > { %v836_v26 = vrot.slane %v835_v13, 2  ;;  %v843_v28 = vrot.slane %v842_v14, 2  ;;  %v850_v30 = vrot.slane %v849_v15, 2  ;;  %v857_v31 = vrot.slane %v856_v10, 2 }
 0x130   : > { %v809_v32 = vadd.f32 %v808_v18, %v807_v8  ;;  %v816_v33 = vadd.f32 %v815_v20, %v814_v9  ;;  %v823_v34 = vadd.f32 %v822_v22, %v821_v11  ;;  %v830_v0 = vadd.f32 %v829_v24, %v828_v12 }
 0x131   : > { %v837_v35 = vadd.f32 %v836_v26, %v835_v13  ;;  %v844_v36 = vadd.f32 %v843_v28, %v842_v14  ;;  %v851_v37 = vadd.f32 %v850_v30, %v849_v15  ;;  %v858_v39 = vadd.f32 %v857_v31, %v856_v10 }
 0x132   : > { %v810_v41 = vrot.slane %v809_v32, 1  ;;  %v817_v43 = vrot.slane %v816_v33, 1  ;;  %v824_v45 = vrot.slane %v823_v34, 1  ;;  %v831_v47 = vrot.slane %v830_v0, 1 }
 0x133   : > { %v838_v49 = vrot.slane %v837_v35, 1  ;;  %v845_v51 = vrot.slane %v844_v36, 1  ;;  %v852_v53 = vrot.slane %v851_v37, 1  ;;  %v859_v54 = vrot.slane %v858_v39, 1 }
 0x134   : > { %v1559_v55 = vadd.f32 %v810_v41, %v809_v32  ;;  %v1561_v56 = vadd.f32 %v817_v43, %v816_v33  ;;  %v1563_v57 = vadd.f32 %v824_v45, %v823_v34  ;;  %v1565_v58 = vadd.f32 %v831_v47, %v830_v0 }
 0x135   : > { %v1567_v59 = vadd.f32 %v838_v49, %v837_v35  ;;  %v1569_v60 = vadd.f32 %v845_v51, %v844_v36  ;;  %v1571_v61 = vadd.f32 %v852_v53, %v851_v37  ;;  %v1573_v62 = vadd.f32 %v859_v54, %v858_v39 }
 0x136   : > { %v861_v63 = vmul.f32 %v1499_v16, %v1499_v16  ;;  %v862_v1 = vmul.f32 %v1503_v19, %v1503_v19  ;;  %v863_v2 = vmul.f32 %v1501_v17, %v1501_v17  ;;  %v864_v3 = vmul.f32 %v1505_v21, %v1505_v21 }
 0x137   : > { %v865_v5 = vmul.f32 %v1519_v38, %v1519_v38  ;;  %v866_v6 = vmul.f32 %v1523_v42, %v1523_v42  ;;  %v867_v7 = vmul.f32 %v1521_v40, %v1521_v40  ;;  %v868_v16 = vmul.f32 %v1525_v44, %v1525_v44 }
 0x138   : > { %v869_v19 = vmul.f32 %v1507_v23, %v1507_v23  ;;  %v870_v17 = vmul.f32 %v1511_v27, %v1511_v27  ;;  %v871_v21 = vmul.f32 %v1509_v25, %v1509_v25  ;;  %v872_v38 = vmul.f32 %v1513_v29, %v1513_v29 }
 0x139   : > { %v873_v42 = vmul.f32 %v1527_v46, %v1527_v46  ;;  %v874_v40 = vmul.f32 %v1531_v50, %v1531_v50  ;;  %v875_v44 = vmul.f32 %v1529_v48, %v1529_v48  ;;  %v876_v23 = vmul.f32 %v1533_v52, %v1533_v52 }
 0x13a   : > { %v877_v8 = vadd.f32 %v869_v19, %v861_v63  ;;  %v884_v27 = vadd.f32 %v870_v17, %v862_v1  ;;  %v891_v9 = vadd.f32 %v871_v21, %v863_v2  ;;  %v898_v11 = vadd.f32 %v872_v38, %v864_v3 }
 0x13b   : > { %v905_v25 = vadd.f32 %v873_v42, %v865_v5  ;;  %v912_v12 = vadd.f32 %v874_v40, %v866_v6  ;;  %v919_v13 = vadd.f32 %v875_v44, %v867_v7  ;;  %v926_v29 = vadd.f32 %v876_v23, %v868_v16 }
 0x13c   : > { %v878_v14 = vrot.slane %v877_v8, 4  ;;  %v885_v15 = vrot.slane %v884_v27, 4  ;;  %v892_v46 = vrot.slane %v891_v9, 4  ;;  %v899_v10 = vrot.slane %v898_v11, 4 }
 0x13d   : > { %v906_v18 = vrot.slane %v905_v25, 4  ;;  %v913_v50 = vrot.slane %v912_v12, 4  ;;  %v920_v20 = vrot.slane %v919_v13, 4  ;;  %v927_v22 = vrot.slane %v926_v29, 4 }
 0x13e   : > { %v879_v48 = vadd.f32 %v878_v14, %v877_v8  ;;  %v886_v24 = vadd.f32 %v885_v15, %v884_v27  ;;  %v893_v26 = vadd.f32 %v892_v46, %v891_v9  ;;  %v900_v52 = vadd.f32 %v899_v10, %v898_v11 }
 0x13f   : > { %v907_v28 = vadd.f32 %v906_v18, %v905_v25  ;;  %v914_v30 = vadd.f32 %v913_v50, %v912_v12  ;;  %v921_v31 = vadd.f32 %v920_v20, %v919_v13  ;;  %v928_v32 = vadd.f32 %v927_v22, %v926_v29 }
 0x140   : > { %v880_v33 = vrot.slane %v879_v48, 2  ;;  %v887_v34 = vrot.slane %v886_v24, 2  ;;  %v894_v0 = vrot.slane %v893_v26, 2  ;;  %v901_v35 = vrot.slane %v900_v52, 2 }
 0x141   : > { %v908_v36 = vrot.slane %v907_v28, 2  ;;  %v915_v37 = vrot.slane %v914_v30, 2  ;;  %v922_v39 = vrot.slane %v921_v31, 2  ;;  %v929_v41 = vrot.slane %v928_v32, 2 }
 0x142   : > { %v881_v43 = vadd.f32 %v880_v33, %v879_v48  ;;  %v888_v45 = vadd.f32 %v887_v34, %v886_v24  ;;  %v895_v47 = vadd.f32 %v894_v0, %v893_v26  ;;  %v902_v49 = vadd.f32 %v901_v35, %v900_v52 }
 0x143   : > { %v909_v51 = vadd.f32 %v908_v36, %v907_v28  ;;  %v916_v53 = vadd.f32 %v915_v37, %v914_v30  ;;  %v923_v54 = vadd.f32 %v922_v39, %v921_v31  ;;  %v930_v63 = vadd.f32 %v929_v41, %v928_v32 }
 0x144   : > { %v882_v1 = vrot.slane %v881_v43, 1  ;;  %v889_v2 = vrot.slane %v888_v45, 1  ;;  %v896_v3 = vrot.slane %v895_v47, 1  ;;  %v903_v5 = vrot.slane %v902_v49, 1 }
 0x145   : > { %v910_v6 = vrot.slane %v909_v51, 1  ;;  %v917_v7 = vrot.slane %v916_v53, 1  ;;  %v924_v16 = vrot.slane %v923_v54, 1  ;;  %v931_v19 = vrot.slane %v930_v63, 1 }
 0x146   : > { %v883_v17 = vadd.f32 %v882_v1, %v881_v43  ;;  %v890_v21 = vadd.f32 %v889_v2, %v888_v45  ;;  %v897_v38 = vadd.f32 %v896_v3, %v895_v47  ;;  %v904_v42 = vadd.f32 %v903_v5, %v902_v49 }
 0x147   : > { %v911_v40 = vadd.f32 %v910_v6, %v909_v51  ;;  %v918_v44 = vadd.f32 %v917_v7, %v916_v53  ;;  %v925_v23 = vadd.f32 %v924_v16, %v923_v54  ;;  %v932_v8 = vadd.f32 %v931_v19, %v930_v63 }
 0x148   : > { %vm935_vm0 = vcmask 1040384   ;;  %v1214_v15 = vmov 1983009808  }
 0x149   : > { %v936_v27 = vsel %vm935_vm0, %v1559_v55, %v883_v17  ;;  %v937_v9 = vsel %vm935_vm0, %v1561_v56, %v890_v21  ;;  %v938_v11 = vsel %vm935_vm0, %v1563_v57, %v897_v38  ;;  %v939_v25 = vsel %vm935_vm0, %v1565_v58, %v904_v42 }
 0x14a   : > { %v940_v12 = vsel %vm935_vm0, %v1567_v59, %v911_v40  ;;  %v941_v13 = vsel %vm935_vm0, %v1569_v60, %v918_v44  ;;  %v942_v29 = vsel %vm935_vm0, %v1571_v61, %v925_v23  ;;  %v943_v14 = vsel %vm935_vm0, %v1573_v62, %v932_v8  ;;  %v933_v59 = vld [vmem:[%s1640_s3] sm:$0xff]  ;;  %v934_v60 = vld [vmem:[%s1640_s3 + $0x8] sm:$0xff] }
 0x14b   : > { %v955_v46 = vunpack.c.l.s4 %v1214_v15  ;;  %v952_v10 = vcombine.low %v936_v27, %v937_v9  ;;  %v953_v18 = vcombine.low %v938_v11, %v939_v25  ;;  %v969_v55 = vcombine.low %v940_v12, %v941_v13 }
 0x14c   : > { %v970_v20 = vcombine.low %v942_v29, %v943_v14 }
 0x14d   : > { %v956_v50 = vunpack.c.0.s8 %v955_v46 }
 0x14f   : > { %v959_v56 = vsub.s32 %v956_v50, %v1493_v4 }
 0x151   : > { %v960_v57 = vrot.slane %v952_v10, %v959_v56  ;;  %v967_v22 = vrot.slane %v953_v18, %v959_v56  ;;  %v977_v58 = vrot.slane %v969_v55, %v959_v56  ;;  %v984_v48 = vrot.slane %v970_v20, %v959_v56 }
 0x153   : > { %v968_v61 = vcombine.low %v960_v57, %v967_v22  ;;  %v985_v62 = vcombine.low %v977_v58, %v984_v48 }
 0x155   : > { %v988_v24 = vadd.f32 %v968_v61, %v933_v59  ;;  %v989_v26 = vadd.f32 %v985_v62, %v934_v60 }
 0x157   : > { %990 = vst [vmem:[%s1640_s3] sm:$0xff] %v988_v24  ;;  %991 = vst [vmem:[%s1640_s3 + $0x8] sm:$0xff] %v989_v26 }
 0x158 PF: > { %s14_s14 = sadd.s32 1, %s1209_s14   ;;  %s1644_s12 = smov %s1205_s13 }
 0x159   : > { %p11_p3 = scmp.ge.s32.totalorder %s14_s14, 4   ;;  %s1645_s13 = smov %s1647_s16 }
 0x15b   :  { %13 = sbr.rel (!%p11_p3) target bundleno = 2 (0x2), region = 67 }
 0x160   :  { %1003 = vsyncpa [#allocation3], 1 }
 0x161   :  { %1005 = vsyncpa [#allocation3 + $0x1], 1 }

// kernel: pointnet_encoder.18
= control target key start
LH: loop header
LB: loop body
LE: loop exit
PB: predicated region body
PF: predicated region fallthrough
CT: control target
= control target key end

     0   :  { %11 = vsyncpa [#allocation3], 0  ;;  %s2274_s0 = inlined_call_operand.vmem [shape: bf16[32,128], index: 0, kind: input, shape index: {}]   ;;  %s2275_s1 = inlined_call_operand.vmem [shape: bf16[128,1024], index: 1, kind: input, shape index: {}]   ;;  %s2276_s2 = inlined_call_operand.hbm [shape: f32[1,1024], index: 2, kind: input, shape index: {}]   ;;  %s2277_s3 = inlined_call_operand.hbm [shape: f32[1,1024], index: 3, kind: input, shape index: {}]   ;;  %s2278_s4 = inlined_call_operand.hbm [shape: f32[1,1024], index: 4, kind: input, shape index: {}]   ;;  %s2279_s5 = inlined_call_operand.vmem [shape: f32[2,1024], index: 5, kind: input, shape index: {}]   ;;  %s2280_s6 = inlined_call_operand.vmem [shape: f32[2,1,1024], index: 6, kind: output, shape index: {}]  }
   0x1   :  { %12 = vsyncpa [#allocation5], 0  ;;  %s1818_s21 = smov 0   ;;  %s1820_s22 = smov 0  }
   0x2   :  { %s1822_s23 = smov 0  }
   0x3 LB: > { %s1778_s24 = smov [#allocation4]   ;;  %s1525_s26 = sadd.s32 4294967295, %s1776_s23   ;;  %s1776_s23 = sphi %s1822_s23, %s18_s23   ;;  %s1772_s22 = sphi %s1820_s22, %s2287_s22   ;;  %s1768_s21 = sphi %s1818_s21, %s2286_s21  }
   0x4   : > { %s221_s25 = sshll.u32 %s1778_s24, 4  ;;  %p1527_p0 = scmp.ge.s32.totalorder %s1776_s23, 1  ;;  %s222_s25 = int_to_ptr.vmem [resolvable:$true] %s221_s25 }
   0x5   : > { %p194_p1 = scmp.lt.s32.totalorder %s1776_s23, 3  ;;  %p1836_p2 = scmp.eq.s32.totalorder %s1525_s26, 0 }
   0x6   : > { %s30_s29 = sadd.s32 1, %s1772_s22  ;;  %s1779_s8 = smov [#allocation2]  }
   0x7   : > { %p1840_p3 = pnand %p1527_p0, %p194_p1  ;;  %p1853_p6 = scmp.ge.s32.totalorder %s30_s29, 2 }
   0x8   : > { %s210_s9 = sshll.u32 %s1779_s8, 4  ;;  %s1679_s10 = scalar_lea.vmem %s222_s25, 128  ;;  %s211_s9 = int_to_ptr.vmem [resolvable:$true] %s210_s9 }
   0x9   : > { %p1618_p4 = pneg %p1840_p3  ;;  %p1680_p8 = scmp.ne.s32.totalorder %s222_s25, %s1679_s10 }
   0xa   : > { %p1687_p11 = scmp.lt.s32.totalorder %s222_s25, %s222_s25  ;;  %p1688_p12 = scmp.lt.s32.totalorder %s1679_s10, %s1679_s10 }
   0xb   : > { %p1849_p5 = pnand %p1836_p2, %p1618_p4 }
   0xc   : > { %p1689_p13 = por %p1688_p12, %p1687_p11 }
   0xd   : > { %p1670_p7 = pneg %p1849_p5 }
   0xf   : > { %p1682_p9 = pnand %p1680_p8, %p1670_p7 }
  0x11   : > { %p1683_p10 = pneg %p1682_p9 }
  0x13   : > { %p1690_p0 = pnand %p1689_p13, %p1683_p10 }
  0x15   : > { %1693 = shalt.err (!%p1690_p0)
}
  0x16   : > { %1624 = dma.hbm_to_vmem [thread:$0]  (!%p1849_p5), %s2277_s3, 128, %s222_s25, [#allocation5]  }
  0x17   : > { %s2289_s29 = smov (%p1853_p6, %s30_s29), 0  ;;  %s1705_s13 = scalar_lea.vmem %s211_s9, 128 }
  0x18   : > { %p1706_p1 = scmp.ne.s32.totalorder %s211_s9, %s1705_s13  ;;  %p1713_p9 = scmp.lt.s32.totalorder %s211_s9, %s211_s9 }
  0x19   : > { %p1714_p10 = scmp.lt.s32.totalorder %s1705_s13, %s1705_s13 }
  0x1a   : > { %p1708_p4 = pnand %p1706_p1, %p1670_p7 }
  0x1b   : > { %p1715_p11 = por %p1714_p10, %p1713_p9 }
  0x1c   : > { %p1709_p8 = pneg %p1708_p4 }
  0x1e   : > { %p1716_p12 = pnand %p1715_p11, %p1709_p8 }
  0x20   : > { %1719 = shalt.err (!%p1716_p12)
}
  0x21   : > { %1621 = dma.hbm_to_vmem [thread:$0]  (!%p1849_p5), %s2276_s2, 128, %s211_s9, [#allocation3]  }
  0x22   : > { %s1780_s16 = smov [#allocation6]  }
  0x23   : > { %s232_s17 = sshll.u32 %s1780_s16, 4  ;;  %s233_s17 = int_to_ptr.vmem [resolvable:$true] %s232_s17 }
  0x24   : > { %s1731_s18 = scalar_lea.vmem %s233_s17, 128  ;;  %p1739_p1 = scmp.lt.s32.totalorder %s233_s17, %s233_s17 }
  0x25   : > { %p1732_p6 = scmp.ne.s32.totalorder %s233_s17, %s1731_s18  ;;  %p1740_p4 = scmp.lt.s32.totalorder %s1731_s18, %s1731_s18 }
  0x27   : > { %p1734_p13 = pnand %p1732_p6, %p1670_p7  ;;  %p1741_p8 = por %p1740_p4, %p1739_p1 }
  0x29   : > { %p1735_p0 = pneg %p1734_p13 }
  0x2b   : > { %p1742_p9 = pnand %p1741_p8, %p1735_p0 }
  0x2d   : > { %1745 = shalt.err (!%p1742_p9)
}
  0x2e   : > { %1627 = dma.hbm_to_vmem [thread:$0]  (!%p1849_p5), %s2278_s4, 128, %s233_s17, [#allocation5]  }
  0x2f   : > { %259 = sbr.rel (%p1840_p3) target bundleno = 360 (0x168), region = 44 }
  0x34   : > { %1759 = dma.done.wait (%p1836_p2), [#allocation3], 128  }
  0x35   : > { %1761 = vsyncadd (%p1836_p2), [#allocation3], 4294967168 }
  0x36   : > { %1763 = dma.done.wait (%p1836_p2), [#allocation5], 256  }
  0x37   : > { %1765 = vsyncadd (%p1836_p2), [#allocation5], 4294967040  ;;  %v1781_v0 = vmov 0   ;;  %s1536_s24 = sshll.u32 %s1768_s21, 1  ;;  %v368_v1 = vld [vmem:[%s2275_s1 + $0x1c0] sm:$0xff]  ;;  %v369_v3 = vld [vmem:[%s2275_s1 + $0x1c8] sm:$0xff] }
  0x38   : > { %776 = vmatprep.mubr.bf16.mxu0 %v1781_v0  ;;  %819 = vmatprep.mubr.bf16.mxu1 %v1781_v0  ;;  %p1900_p3 = scmp.lt.s32.totalorder %s1536_s24, 3  ;;  %v372_v2 = vld [vmem:[%s2275_s1 + $0x1e0] sm:$0xff]  ;;  %v373_v5 = vld [vmem:[%s2275_s1 + $0x1e8] sm:$0xff]  ;;  %v370_v63 = vld [vmem:[%s2275_s1 + $0x1d0] sm:$0xff]  ;;  %p305_p2 = scmp.lt.s32.totalorder %s1768_s21, 1 }
  0x39   : > { %v1597_v4 = vcombine.high %v368_v1, %v372_v2  ;;  %v1596_v6 = vcombine.low %v368_v1, %v372_v2  ;;  %v360_v7 = vld [vmem:[%s2275_s1 + $0x180] sm:$0xff]  ;;  %v1599_v9 = vcombine.high %v369_v3, %v373_v5  ;;  %v1598_v10 = vcombine.low %v369_v3, %v373_v5  ;;  %v361_v12 = vld [vmem:[%s2275_s1 + $0x188] sm:$0xff]  ;;  %v374_v1 = vld [vmem:[%s2275_s1 + $0x1f0] sm:$0xff] }
  0x3a   : > { %v364_v8 = vld [vmem:[%s2275_s1 + $0x1a0] sm:$0xff]  ;;  %v365_v13 = vld [vmem:[%s2275_s1 + $0x1a8] sm:$0xff]  ;;  %s2291_s24 = smov (!%p1900_p3, %s1536_s24), 3  ;;  %v371_v2 = vld [vmem:[%s2275_s1 + $0x1d8] sm:$0xff]  ;;  %s2293_s21 = smov (!%p305_p2, %s1768_s21), 1 }
  0x3b   : > { %v1589_v11 = vcombine.high %v360_v7, %v364_v8  ;;  %v352_v14 = vld [vmem:[%s2275_s1 + $0x140] sm:$0xff]  ;;  %744 = vmatprep.subr.bf16.mxu0 %v1597_v4  ;;  %v1591_v15 = vcombine.high %v361_v12, %v365_v13  ;;  %v353_v17 = vld [vmem:[%s2275_s1 + $0x148] sm:$0xff]  ;;  %787 = vmatprep.subr.bf16.mxu1 %v1599_v9  ;;  %v1588_v19 = vcombine.low %v360_v7, %v364_v8  ;;  %s1537_s12 = sshll.u32 %s2291_s24, 2  ;;  %v375_v3 = vld [vmem:[%s2275_s1 + $0x1f8] sm:$0xff]  ;;  %s1538_s26 = sshll.u32 %s2293_s21, 3 }
  0x3c   : > { %v356_v16 = vld [vmem:[%s2275_s1 + $0x160] sm:$0xff]  ;;  %v357_v18 = vld [vmem:[%s2275_s1 + $0x168] sm:$0xff]  ;;  %745 = vmatpush1.bf16.msra.mxu0 %v1596_v6  ;;  %788 = vmatpush1.bf16.msra.mxu1 %v1598_v10  ;;  %v1590_v20 = vcombine.low %v361_v12, %v365_v13  ;;  %s1957_s19 = scalar_lea.vmem %s2274_s0, %s1537_s12  ;;  %v1601_v6 = vcombine.high %v370_v63, %v374_v1  ;;  %v1603_v7 = vcombine.high %v371_v2, %v375_v3  ;;  %v362_v8 = vld [vmem:[%s2275_s1 + $0x190] sm:$0xff]  ;;  %s308_s7 = scalar_lea.vmem %s2280_s6, %s1538_s26 }
  0x3d   : > { %746 = vmatprep.subr.bf16.mxu0 %v1589_v11  ;;  %v1581_v21 = vcombine.high %v352_v14, %v356_v16  ;;  %789 = vmatprep.subr.bf16.mxu1 %v1591_v15  ;;  %v1583_v22 = vcombine.high %v353_v17, %v357_v18  ;;  %v344_v23 = vld [vmem:[%s2275_s1 + $0x100] sm:$0xff]  ;;  %v345_v25 = vld [vmem:[%s2275_s1 + $0x108] sm:$0xff]  ;;  %v1580_v27 = vcombine.low %v352_v14, %v356_v16  ;;  %v366_v9 = vld [vmem:[%s2275_s1 + $0x1b0] sm:$0xff] }
  0x3e   : > { %v348_v24 = vld [vmem:[%s2275_s1 + $0x120] sm:$0xff]  ;;  %v349_v26 = vld [vmem:[%s2275_s1 + $0x128] sm:$0xff]  ;;  %v1582_v28 = vcombine.low %v353_v17, %v357_v18  ;;  %v363_v11 = vld [vmem:[%s2275_s1 + $0x198] sm:$0xff]  ;;  %v1600_v13 = vcombine.low %v370_v63, %v374_v1  ;;  %v1602_v14 = vcombine.low %v371_v2, %v375_v3  ;;  %v1593_v15 = vcombine.high %v362_v8, %v366_v9 }
  0x3f   : > { %v1573_v29 = vcombine.high %v344_v23, %v348_v24  ;;  %v1575_v30 = vcombine.high %v345_v25, %v349_v26  ;;  %v336_v31 = vld [vmem:[%s2275_s1 + $0xc0] sm:$0xff]  ;;  %v337_v33 = vld [vmem:[%s2275_s1 + $0xc8] sm:$0xff]  ;;  %v1572_v35 = vcombine.low %v344_v23, %v348_v24  ;;  %v1574_v36 = vcombine.low %v345_v25, %v349_v26  ;;  %v367_v12 = vld [vmem:[%s2275_s1 + $0x1b8] sm:$0xff] }
  0x40   : > { %747 = vmatpush1.bf16.msra.mxu0 %v1588_v19  ;;  %790 = vmatpush1.bf16.msra.mxu1 %v1590_v20  ;;  %v340_v32 = vld [vmem:[%s2275_s1 + $0xe0] sm:$0xff]  ;;  %v341_v34 = vld [vmem:[%s2275_s1 + $0xe8] sm:$0xff]  ;;  %v1595_v16 = vcombine.high %v363_v11, %v367_v12  ;;  %v354_v17 = vld [vmem:[%s2275_s1 + $0x150] sm:$0xff] }
  0x41   : > { %748 = vmatprep.subr.bf16.mxu0 %v1581_v21  ;;  %791 = vmatprep.subr.bf16.mxu1 %v1583_v22  ;;  %v1565_v37 = vcombine.high %v336_v31, %v340_v32  ;;  %v1567_v38 = vcombine.high %v337_v33, %v341_v34  ;;  %v328_v39 = vld [vmem:[%s2275_s1 + $0x80] sm:$0xff]  ;;  %v329_v41 = vld [vmem:[%s2275_s1 + $0x88] sm:$0xff]  ;;  %v1564_v43 = vcombine.low %v336_v31, %v340_v32  ;;  %v358_v18 = vld [vmem:[%s2275_s1 + $0x170] sm:$0xff] }
  0x42   : > { %v332_v40 = vld [vmem:[%s2275_s1 + $0xa0] sm:$0xff]  ;;  %v333_v42 = vld [vmem:[%s2275_s1 + $0xa8] sm:$0xff]  ;;  %v1566_v44 = vcombine.low %v337_v33, %v341_v34  ;;  %v355_v19 = vld [vmem:[%s2275_s1 + $0x158] sm:$0xff]  ;;  %v1592_v21 = vcombine.low %v362_v8, %v366_v9  ;;  %v1594_v22 = vcombine.low %v363_v11, %v367_v12  ;;  %v1585_v23 = vcombine.high %v354_v17, %v358_v18 }
  0x43   : > { %v1557_v45 = vcombine.high %v328_v39, %v332_v40  ;;  %v1559_v46 = vcombine.high %v329_v41, %v333_v42  ;;  %v320_v47 = vld [vmem:[%s2275_s1 + $0x40] sm:$0xff]  ;;  %v321_v49 = vld [vmem:[%s2275_s1 + $0x48] sm:$0xff]  ;;  %v1556_v51 = vcombine.low %v328_v39, %v332_v40  ;;  %v1558_v52 = vcombine.low %v329_v41, %v333_v42  ;;  %v359_v20 = vld [vmem:[%s2275_s1 + $0x178] sm:$0xff] }
  0x44   : > { %749 = vmatpush1.bf16.msra.mxu0 %v1580_v27  ;;  %792 = vmatpush1.bf16.msra.mxu1 %v1582_v28  ;;  %v324_v48 = vld [vmem:[%s2275_s1 + $0x60] sm:$0xff]  ;;  %v325_v50 = vld [vmem:[%s2275_s1 + $0x68] sm:$0xff]  ;;  %v1587_v24 = vcombine.high %v355_v19, %v359_v20  ;;  %v346_v25 = vld [vmem:[%s2275_s1 + $0x110] sm:$0xff] }
  0x45   : > { %750 = vmatprep.subr.bf16.mxu0 %v1573_v29  ;;  %793 = vmatprep.subr.bf16.mxu1 %v1575_v30  ;;  %v1549_v53 = vcombine.high %v320_v47, %v324_v48  ;;  %v1551_v54 = vcombine.high %v321_v49, %v325_v50  ;;  %v312_v55 = vld [vmem:[%s2275_s1] sm:$0xff]  ;;  %v313_v57 = vld [vmem:[%s2275_s1 + $0x8] sm:$0xff]  ;;  %v1548_v59 = vcombine.low %v320_v47, %v324_v48  ;;  %v350_v26 = vld [vmem:[%s2275_s1 + $0x130] sm:$0xff] }
  0x46   : > { %v316_v56 = vld [vmem:[%s2275_s1 + $0x20] sm:$0xff]  ;;  %v317_v58 = vld [vmem:[%s2275_s1 + $0x28] sm:$0xff]  ;;  %v1550_v60 = vcombine.low %v321_v49, %v325_v50  ;;  %v347_v27 = vld [vmem:[%s2275_s1 + $0x118] sm:$0xff]  ;;  %v1584_v29 = vcombine.low %v354_v17, %v358_v18  ;;  %v1586_v30 = vcombine.low %v355_v19, %v359_v20  ;;  %v1577_v31 = vcombine.high %v346_v25, %v350_v26 }
  0x47   : > { %v1541_v61 = vcombine.high %v312_v55, %v316_v56  ;;  %v1543_v62 = vcombine.high %v313_v57, %v317_v58  ;;  %v1540_v4 = vcombine.low %v312_v55, %v316_v56  ;;  %v1542_v5 = vcombine.low %v313_v57, %v317_v58  ;;  %v2026_v10 = vld [vmem:[%s1957_s19] sm:$0xff]   ;;  %v351_v28 = vld [vmem:[%s2275_s1 + $0x138] sm:$0xff]  ;;  %v338_v33 = vld [vmem:[%s2275_s1 + $0xd0] sm:$0xff] }
  0x48   : > { %751 = vmatpush1.bf16.msra.mxu0 %v1572_v35  ;;  %794 = vmatpush1.bf16.msra.mxu1 %v1574_v36  ;;  %v1579_v32 = vcombine.high %v347_v27, %v351_v28  ;;  %v342_v34 = vld [vmem:[%s2275_s1 + $0xf0] sm:$0xff]  ;;  %v343_v35 = vld [vmem:[%s2275_s1 + $0xf8] sm:$0xff]  ;;  %v1576_v36 = vcombine.low %v346_v25, %v350_v26  ;;  %v916_v3 = vld [vmem:[%s2279_s5] sm:$0xff] }
  0x49   : > { %752 = vmatprep.subr.bf16.mxu0 %v1565_v37  ;;  %795 = vmatprep.subr.bf16.mxu1 %v1567_v38  ;;  %v1578_v37 = vcombine.low %v347_v27, %v351_v28  ;;  %v1569_v38 = vcombine.high %v338_v33, %v342_v34  ;;  %v330_v40 = vld [vmem:[%s2275_s1 + $0x90] sm:$0xff]  ;;  %v331_v42 = vld [vmem:[%s2275_s1 + $0x98] sm:$0xff]  ;;  %v917_v8 = vld [vmem:[%s2279_s5 + $0x8] sm:$0xff] }
  0x4a   : > { %v334_v41 = vld [vmem:[%s2275_s1 + $0xb0] sm:$0xff]  ;;  %v323_v50 = vld [vmem:[%s2275_s1 + $0x58] sm:$0xff]  ;;  %v2118_v11 = vmul.f32 0.03125, %v917_v8 }
  0x4b   : > { %v322_v48 = vld [vmem:[%s2275_s1 + $0x50] sm:$0xff]  ;;  %v315_v58 = vld [vmem:[%s2275_s1 + $0x18] sm:$0xff] }
  0x4c   : > { %753 = vmatpush1.bf16.msra.mxu0 %v1564_v43  ;;  %796 = vmatpush1.bf16.msra.mxu1 %v1566_v44  ;;  %v335_v43 = vld [vmem:[%s2275_s1 + $0xb8] sm:$0xff]  ;;  %v1568_v44 = vcombine.low %v338_v33, %v342_v34  ;;  %v326_v49 = vld [vmem:[%s2275_s1 + $0x70] sm:$0xff] }
  0x4d   : > { %754 = vmatprep.subr.bf16.mxu0 %v1557_v45  ;;  %797 = vmatprep.subr.bf16.mxu1 %v1559_v46  ;;  %v1561_v46 = vcombine.high %v330_v40, %v334_v41  ;;  %v1563_v47 = vcombine.high %v331_v42, %v335_v43  ;;  %v314_v56 = vld [vmem:[%s2275_s1 + $0x10] sm:$0xff] }
  0x4e   : > { %v318_v57 = vld [vmem:[%s2275_s1 + $0x30] sm:$0xff] }
  0x4f   : > { %v1544_v1 = vcombine.low %v314_v56, %v318_v57 }
  0x50   : > { %755 = vmatpush1.bf16.msra.mxu0 %v1556_v51  ;;  %798 = vmatpush1.bf16.msra.mxu1 %v1558_v52  ;;  %v327_v51 = vld [vmem:[%s2275_s1 + $0x78] sm:$0xff]  ;;  %v1560_v52 = vcombine.low %v330_v40, %v334_v41 }
  0x51   : > { %756 = vmatprep.subr.bf16.mxu0 %v1549_v53  ;;  %799 = vmatprep.subr.bf16.mxu1 %v1551_v54  ;;  %v1562_v53 = vcombine.low %v331_v42, %v335_v43  ;;  %v1553_v54 = vcombine.high %v322_v48, %v326_v49  ;;  %v1555_v55 = vcombine.high %v323_v50, %v327_v51 }
  0x54   : > { %757 = vmatpush1.bf16.msra.mxu0 %v1548_v59  ;;  %800 = vmatpush1.bf16.msra.mxu1 %v1550_v60  ;;  %v319_v59 = vld [vmem:[%s2275_s1 + $0x38] sm:$0xff]  ;;  %v1552_v60 = vcombine.low %v322_v48, %v326_v49 }
  0x55   : > { %758 = vmatprep.subr.bf16.mxu0 %v1541_v61  ;;  %801 = vmatprep.subr.bf16.mxu1 %v1543_v62  ;;  %v1554_v61 = vcombine.low %v323_v50, %v327_v51  ;;  %v1545_v62 = vcombine.high %v314_v56, %v318_v57  ;;  %v1547_v63 = vcombine.high %v315_v58, %v319_v59 }
  0x56   : > { %v1546_v2 = vcombine.low %v315_v58, %v319_v59 }
  0x58   : > { %759 = vmatpush1.bf16.msra.mxu0 %v1540_v4  ;;  %802 = vmatpush1.bf16.msra.mxu1 %v1542_v5  ;;  %v918_v4 = vmul.f32 0.03125, %v916_v3 }
  0x59   : > { %830 = vmatprep.subr.bf16.mxu0 %v1601_v6  ;;  %873 = vmatprep.subr.bf16.mxu1 %v1603_v7 }
  0x5a   : > { %v920_v5 = vmul.f32 %v918_v4, %v918_v4 }
  0x5b   : > { %777 = vmatmul.mubr.bf16.vlgmr.msra.gmra.mxu0 %v2026_v10  ;;  %820 = vmatmul.mubr.bf16.vlgmr.msra.gmra.mxu1 %v2026_v10 }
  0x5c   : > { %831 = vmatpush1.bf16.msra.mxu0 %v1600_v13  ;;  %874 = vmatpush1.bf16.msra.mxu1 %v1602_v14  ;;  %v924_v6 = vrot.slane %v920_v5, 7  ;;  %v921_v13 = vmul.f32 %v2118_v11, %v2118_v11 }
  0x5d   : > { %832 = vmatprep.subr.bf16.mxu0 %v1593_v15  ;;  %875 = vmatprep.subr.bf16.mxu1 %v1595_v16 }
  0x5e   : > { %862 = vmatprep.mubr.bf16.mxu0 %v1781_v0  ;;  %905 = vmatprep.mubr.bf16.mxu1 %v1781_v0  ;;  %v339_v0 = vld [vmem:[%s2275_s1 + $0xd8] sm:$0xff]  ;;  %v928_v7 = vsub.f32 %v918_v4, %v924_v6  ;;  %v925_v14 = vrot.slane %v921_v13, 7 }
  0x5f   : > { %v1571_v39 = vcombine.high %v339_v0, %v343_v35  ;;  %v1570_v45 = vcombine.low %v339_v0, %v343_v35 }
  0x60   : > { %833 = vmatpush1.bf16.msra.mxu0 %v1592_v21  ;;  %876 = vmatpush1.bf16.msra.mxu1 %v1594_v22  ;;  %v930_v9 = vmax.f32 %v928_v7, 0.0  ;;  %v929_v16 = vsub.f32 %v2118_v11, %v925_v14 }
  0x61   : > { %834 = vmatprep.subr.bf16.mxu0 %v1585_v23  ;;  %877 = vmatprep.subr.bf16.mxu1 %v1587_v24  ;;  %v2134_v24 = vld [vmem:[#allocation2] sm:$0xff] }
  0x62   : > { %v1022_v12 = vadd.f32 1e-05, %v930_v9  ;;  %v931_v21 = vmax.f32 %v929_v16, 0.0 }
  0x64   : > { %835 = vmatpush1.bf16.msra.mxu0 %v1584_v29  ;;  %878 = vmatpush1.bf16.msra.mxu1 %v1586_v30  ;;  %1664 = vrsqrt.f32 %v1022_v12  ;;  %v1023_v33 = vadd.f32 1e-05, %v931_v21 }
  0x65   : > { %836 = vmatprep.subr.bf16.mxu0 %v1577_v31  ;;  %879 = vmatprep.subr.bf16.mxu1 %v1579_v32 }
  0x66   : > { %1666 = vrsqrt.f32 %v1023_v33 }
  0x68   : > { %837 = vmatpush1.bf16.msra.mxu0 %v1576_v36  ;;  %880 = vmatpush1.bf16.msra.mxu1 %v1578_v37 }
  0x69   : > { %838 = vmatprep.subr.bf16.mxu0 %v1569_v38  ;;  %881 = vmatprep.subr.bf16.mxu1 %v1571_v39 }
  0x6c   : > { %839 = vmatpush1.bf16.msra.mxu0 %v1568_v44  ;;  %882 = vmatpush1.bf16.msra.mxu1 %v1570_v45 }
  0x6d   : > { %840 = vmatprep.subr.bf16.mxu0 %v1561_v46  ;;  %883 = vmatprep.subr.bf16.mxu1 %v1563_v47 }
  0x70   : > { %841 = vmatpush1.bf16.msra.mxu0 %v1560_v52  ;;  %884 = vmatpush1.bf16.msra.mxu1 %v1562_v53 }
  0x71   : > { %842 = vmatprep.subr.bf16.mxu0 %v1553_v54  ;;  %885 = vmatprep.subr.bf16.mxu1 %v1555_v55  ;;  %v1665_v34 = vpop.eup %1664 }
  0x74   : > { %843 = vmatpush1.bf16.msra.mxu0 %v1552_v60  ;;  %886 = vmatpush1.bf16.msra.mxu1 %v1554_v61 }
  0x75   : > { %844 = vmatprep.subr.bf16.mxu0 %v1545_v62  ;;  %887 = vmatprep.subr.bf16.mxu1 %v1547_v63 }
  0x78   : > { %845 = vmatpush1.bf16.msra.mxu0 %v1544_v1  ;;  %888 = vmatpush1.bf16.msra.mxu1 %v1546_v2  ;;  %v2172_v2 = vld [vmem:[#allocation4] sm:$0xff] }
  0x7b   : > { %863 = vmatmul.mubr.bf16.vlgmr.msra.gmra.mxu0 %v2026_v10  ;;  %906 = vmatmul.mubr.bf16.vlgmr.msra.gmra.mxu1 %v2026_v10  ;;  %v378_v10 = vlaneseq }
  0x7d   : > { %v2122_v15 = vshrl.u32 %v378_v10, 7 }
  0x7f   : > { %v2126_v17 = vsub.s32 0, %v2122_v15  ;;  %v2129_v19 = vsub.s32 4, %v2122_v15  ;;  %v2132_v22 = vsub.s32 2, %v2122_v15  ;;  %v2137_v25 = vsub.s32 1, %v2122_v15 }
  0x80   : > { %v2140_v26 = vsub.s32 3, %v2122_v15  ;;  %v2144_v29 = vsub.s32 6, %v2122_v15  ;;  %v2152_v36 = vsub.s32 5, %v2122_v15  ;;  %v2160_v41 = vsub.s32 7, %v2122_v15 }
  0x81   : > { %v937_v28 = vrot.slane %v918_v4, %v2126_v17  ;;  %v945_v31 = vrot.slane %v918_v4, %v2129_v19  ;;  %v381_v0 = vrot.slane %v2134_v24, %v2126_v17  ;;  %v389_v35 = vrot.slane %v2134_v24, %v2132_v22 }
  0x82   : > { %v385_v38 = vrot.slane %v2134_v24, %v2137_v25  ;;  %v941_v39 = vrot.slane %v918_v4, %v2132_v22  ;;  %v393_v40 = vrot.slane %v2134_v24, %v2140_v26  ;;  %v949_v44 = vrot.slane %v918_v4, %v2144_v29 }
  0x83   : > { %v977_v43 = vrot.slane %v937_v28, %v2126_v17  ;;  %v1031_v47 = vrot.slane %v1665_v34, %v2137_v25  ;;  %v985_v48 = vrot.slane %v945_v31, %v2126_v17  ;;  %v1039_v52 = vrot.slane %v1665_v34, %v2152_v36 }
  0x84   : > { %v981_v55 = vrot.slane %v941_v39, %v2126_v17  ;;  %v1035_v56 = vrot.slane %v1665_v34, %v2140_v26  ;;  %v1043_v57 = vrot.slane %v1665_v34, %v2160_v41  ;;  %v989_v59 = vrot.slane %v949_v44, %v2126_v17  ;;  %v1667_v39 = vpop.eup %1666 }
  0x85   : > { %v1071_v62 = vrot.slane %v1031_v47, %v2137_v25  ;;  %v1079_v4 = vrot.slane %v1039_v52, %v2137_v25  ;;  %v1121_v10 = vrot.slane %v2172_v2, %v2126_v17  ;;  %v1129_v21 = vrot.slane %v2172_v2, %v2132_v22 }
  0x86   : > { %v1075_v7 = vrot.slane %v1035_v56, %v2137_v25  ;;  %v1083_v9 = vrot.slane %v1043_v57, %v2137_v25  ;;  %v1125_v28 = vrot.slane %v2172_v2, %v2137_v25  ;;  %v953_v34 = vrot.slane %v2118_v11, %v2126_v17 }
  0x87   : > { %v397_v47 = vrot.slane %v2134_v24, %v2129_v19  ;;  %v1055_v56 = vrot.slane %v1667_v39, %v2152_v36 }
  0x88   : > { %v2206_v52 = vrot.slane %v953_v34, %v2126_v17 }
 0x11b   : > { %v778_v18 = vpop.f32.mrf.mxu0  ;;  %v821_v20 = vpop.f32.mrf.mxu1 }
 0x11c   : > { %v779_v50 = vadd.f32 %v778_v18, %v381_v0  ;;  %v822_v51 = vadd.f32 %v821_v20, %v389_v35  ;;  %v2179_v18 = vld [vmem:[#allocation6] sm:$0xff] }
 0x11d   : > { %v780_v23 = vpop.f32.mrf.mxu0  ;;  %v823_v27 = vpop.f32.mrf.mxu1 }
 0x11e   : > { %v781_v54 = vadd.f32 %v780_v23, %v385_v38  ;;  %v824_v58 = vadd.f32 %v823_v27, %v393_v40  ;;  %v1006_v1 = vsub.f32 %v779_v50, %v977_v43  ;;  %v1008_v3 = vsub.f32 %v822_v51, %v985_v48 }
 0x11f   : > { %v782_v30 = vpop.f32.mrf.mxu0  ;;  %v825_v32 = vpop.f32.mrf.mxu1 }
 0x120   : > { %v783_v45 = vadd.f32 %v782_v30, %v381_v0  ;;  %v826_v46 = vadd.f32 %v825_v32, %v389_v35  ;;  %v1007_v6 = vsub.f32 %v781_v54, %v981_v55  ;;  %v1009_v8 = vsub.f32 %v824_v58, %v989_v59 }
 0x121   : > { %v784_v37 = vpop.f32.mrf.mxu0  ;;  %v827_v42 = vpop.f32.mrf.mxu1  ;;  %v1100_v16 = vmul.f32 %v1071_v62, %v1006_v1  ;;  %v1102_v20 = vmul.f32 %v1079_v4, %v1008_v3  ;;  %v1133_v30 = vrot.slane %v2172_v2, %v2140_v26  ;;  %v1179_v0 = vrot.slane %v2179_v18, %v2126_v17 }
 0x122   : > { %v785_v49 = vadd.f32 %v784_v37, %v385_v38  ;;  %v828_v53 = vadd.f32 %v827_v42, %v393_v40  ;;  %v1014_v60 = vsub.f32 %v783_v45, %v977_v43  ;;  %v1016_v61 = vsub.f32 %v826_v46, %v985_v48 }
 0x123   : > { %v1101_v27 = vmul.f32 %v1075_v7, %v1007_v6  ;;  %v1103_v31 = vmul.f32 %v1083_v9, %v1009_v8  ;;  %v1187_v35 = vrot.slane %v2179_v18, %v2132_v22  ;;  %v961_v38 = vrot.slane %v2118_v11, %v2129_v19 }
 0x124   : > { %v1015_v63 = vsub.f32 %v785_v49, %v981_v55  ;;  %v1017_v5 = vsub.f32 %v828_v53, %v989_v59  ;;  %v1108_v12 = vmul.f32 %v1071_v62, %v1014_v60  ;;  %v1110_v13 = vmul.f32 %v1079_v4, %v1016_v61 }
 0x125   : > { %v1158_v40 = vmul.f32 %v1121_v10, %v1100_v16  ;;  %v1160_v42 = vmul.f32 %v1129_v21, %v1102_v20  ;;  %v1183_v43 = vrot.slane %v2179_v18, %v2137_v25  ;;  %v1159_v45 = vmul.f32 %v1125_v28, %v1101_v27 }
 0x126   : > { %v1109_v14 = vmul.f32 %v1075_v7, %v1015_v63  ;;  %v1111_v23 = vmul.f32 %v1083_v9, %v1017_v5  ;;  %v1166_v32 = vmul.f32 %v1121_v10, %v1108_v12  ;;  %v1168_v33 = vmul.f32 %v1129_v21, %v1110_v13 }
 0x127   : > { %v1191_v46 = vrot.slane %v2179_v18, %v2140_v26  ;;  %v2203_v48 = vrot.slane %v2134_v24, %v2144_v29  ;;  %v1161_v49 = vmul.f32 %v1133_v30, %v1103_v31  ;;  %v1047_v54 = vrot.slane %v1667_v39, %v2137_v25 }
 0x128   : > { %v1167_v37 = vmul.f32 %v1125_v28, %v1109_v14  ;;  %v1169_v44 = vmul.f32 %v1133_v30, %v1111_v23  ;;  %v1224_v50 = vadd.f32 %v1179_v0, %v1166_v32  ;;  %v1226_v51 = vadd.f32 %v1187_v35, %v1168_v33 }
 0x129   : > { %v2210_v55 = vrot.slane %v961_v38, %v2126_v17  ;;  %v1216_v57 = vadd.f32 %v1179_v0, %v1158_v40  ;;  %v1218_v58 = vadd.f32 %v1187_v35, %v1160_v42  ;;  %v957_v60 = vrot.slane %v2118_v11, %v2132_v22 }
 0x12a   : > { %v1225_v53 = vadd.f32 %v1183_v43, %v1167_v37  ;;  %v1227_v59 = vadd.f32 %v1191_v46, %v1169_v44  ;;  %v1217_v61 = vadd.f32 %v1183_v43, %v1159_v45  ;;  %v401_v62 = vrot.slane %v2134_v24, %v2152_v36 }
 0x12b   : > { %v1051_v63 = vrot.slane %v1667_v39, %v2140_v26  ;;  %v2220_v1 = vrot.slane %v2134_v24, %v2160_v41  ;;  %v1219_v3 = vadd.f32 %v1191_v46, %v1161_v49  ;;  %v1240_v4 = vmax.f32 %v1224_v50, 0.0 }
 0x12c   : > { %v1242_v5 = vmax.f32 %v1226_v51, 0.0  ;;  %v965_v6 = vrot.slane %v2118_v11, %v2144_v29  ;;  %v1241_v7 = vmax.f32 %v1225_v53, 0.0  ;;  %v1087_v8 = vrot.slane %v1047_v54, %v2137_v25 }
 0x12d   : > { %v1095_v22 = vrot.slane %v1055_v56, %v2137_v25  ;;  %v1059_v9 = vrot.slane %v1667_v39, %v2160_v41  ;;  %v1232_v12 = vmax.f32 %v1216_v57, 0.0  ;;  %v1234_v13 = vmax.f32 %v1218_v58, 0.0 }
 0x12e   : > { %v1243_v26 = vmax.f32 %v1227_v59, 0.0  ;;  %v997_v10 = vrot.slane %v957_v60, %v2126_v17  ;;  %v1233_v24 = vmax.f32 %v1217_v61, 0.0  ;;  %v1137_v14 = vrot.slane %v2172_v2, %v2129_v19 }
 0x12f   : > { %v1145_v16 = vrot.slane %v2172_v2, %v2144_v29  ;;  %v1091_v11 = vrot.slane %v1051_v63, %v2137_v25  ;;  %v1235_v20 = vmax.f32 %v1219_v3, 0.0  ;;  %v1248_v21 = vmax.f32 %v1232_v12, %v1240_v4 }
 0x130   : > { %v1262_v23 = vmax.f32 %v1234_v13, %v1242_v5  ;;  %v2234_v28 = vrot.slane %v965_v6, %v2126_v17  ;;  %v1255_v30 = vmax.f32 %v1233_v24, %v1241_v7  ;;  %v1195_v32 = vrot.slane %v2179_v18, %v2129_v19 }
 0x131   : > { %v1099_v34 = vrot.slane %v1059_v9, %v2137_v25  ;;  %v1269_v0 = vmax.f32 %v1235_v20, %v1243_v26  ;;  %v1203_v37 = vrot.slane %v2179_v18, %v2144_v29  ;;  %v1141_v39 = vrot.slane %v2172_v2, %v2152_v36 }
 0x132   : > { %v1199_v42 = vrot.slane %v2179_v18, %v2152_v36  ;;  %v1149_v25 = vrot.slane %v2172_v2, %v2160_v41  ;;  %v1249_v43 = vrot.slane %v1248_v21, 4  ;;  %v1263_v44 = vrot.slane %v1262_v23, 4 }
 0x133   : > { %v1256_v49 = vrot.slane %v1255_v30, 4  ;;  %v1270_v56 = vrot.slane %v1269_v0, 4  ;;  %v1207_v6 = vrot.slane %v2179_v18, %v2160_v41 }
 0x134   : > { %v1250_v7 = vmax.f32 %v1248_v21, %v1249_v43 }
 0x135   : > { %v1257_v26 = vmax.f32 %v1255_v30, %v1256_v49 }
 0x136   : > { %v1251_v18 = vrot.slane %v1250_v7, 2 }
 0x13b   : > { %v864_v27 = vpop.f32.mrf.mxu0  ;;  %v907_v33 = vpop.f32.mrf.mxu1 }
 0x13c   : > { %v865_v31 = vadd.f32 %v864_v27, %v397_v47  ;;  %v908_v35 = vadd.f32 %v907_v33, %v2203_v48  ;;  %v1264_v27 = vmax.f32 %v1262_v23, %v1263_v44 }
 0x13d   : > { %v866_v38 = vpop.f32.mrf.mxu0  ;;  %v909_v19 = vpop.f32.mrf.mxu1 }
 0x13e   : > { %v1010_v17 = vsub.f32 %v865_v31, %v2206_v52  ;;  %v867_v40 = vadd.f32 %v866_v38, %v401_v62  ;;  %v1012_v45 = vsub.f32 %v908_v35, %v2210_v55  ;;  %v910_v29 = vadd.f32 %v909_v19, %v2220_v1 }
 0x13f   : > { %v868_v46 = vpop.f32.mrf.mxu0  ;;  %v911_v54 = vpop.f32.mrf.mxu1 }
 0x140   : > { %v1104_v50 = vmul.f32 %v1087_v8, %v1010_v17  ;;  %v1011_v51 = vsub.f32 %v867_v40, %v997_v10  ;;  %v869_v53 = vadd.f32 %v868_v46, %v397_v47  ;;  %v1106_v57 = vmul.f32 %v1095_v22, %v1012_v45 }
 0x141   : > { %v1013_v36 = vsub.f32 %v910_v29, %v2234_v28  ;;  %v912_v58 = vadd.f32 %v911_v54, %v2203_v48  ;;  %v870_v59 = vpop.f32.mrf.mxu0  ;;  %v913_v3 = vpop.f32.mrf.mxu1  ;;  %v1271_v48 = vmax.f32 %v1269_v0, %v1270_v56  ;;  %v1782_v54 = vmov 1966171168  }
 0x142   : > { %v1162_v2 = vmul.f32 %v1137_v14, %v1104_v50  ;;  %v1105_v60 = vmul.f32 %v1091_v11, %v1011_v51  ;;  %v1018_v61 = vsub.f32 %v869_v53, %v2206_v52  ;;  %v871_v63 = vadd.f32 %v870_v59, %v401_v62 }
 0x143   : > { %v1164_v4 = vmul.f32 %v1145_v16, %v1106_v57  ;;  %v1107_v5 = vmul.f32 %v1099_v34, %v1013_v36  ;;  %v1020_v47 = vsub.f32 %v912_v58, %v2210_v55  ;;  %v914_v20 = vadd.f32 %v913_v3, %v2220_v1 }
 0x144   : > { %v1163_v9 = vmul.f32 %v1141_v39, %v1105_v60  ;;  %v1112_v12 = vmul.f32 %v1087_v8, %v1018_v61  ;;  %v1019_v13 = vsub.f32 %v871_v63, %v997_v10  ;;  %v1220_v52 = vadd.f32 %v1195_v32, %v1162_v2 }
 0x145   : > { %v1114_v24 = vmul.f32 %v1095_v22, %v1020_v47  ;;  %v1222_v33 = vadd.f32 %v1203_v37, %v1164_v4  ;;  %v1165_v35 = vmul.f32 %v1149_v25, %v1107_v5  ;;  %v1021_v41 = vsub.f32 %v914_v20, %v2234_v28 }
 0x146   : > { %v1170_v62 = vmul.f32 %v1137_v14, %v1112_v12  ;;  %v1113_v31 = vmul.f32 %v1091_v11, %v1019_v13  ;;  %v1221_v55 = vadd.f32 %v1199_v42, %v1163_v9  ;;  %v1258_v8 = vrot.slane %v1257_v26, 2 }
 0x147   : > { %v1172_v38 = vmul.f32 %v1145_v16, %v1114_v24  ;;  %v1272_v10 = vrot.slane %v1271_v48, 2  ;;  %v1115_v0 = vmul.f32 %v1099_v34, %v1021_v41  ;;  %v1265_v22 = vrot.slane %v1264_v27, 2 }
 0x148   : > { %v1228_v21 = vadd.f32 %v1195_v32, %v1170_v62  ;;  %v1171_v17 = vmul.f32 %v1141_v39, %v1113_v31  ;;  %v1236_v40 = vmax.f32 %v1220_v52, 0.0  ;;  %v1238_v19 = vmax.f32 %v1222_v33, 0.0 }
 0x149   : > { %v1230_v30 = vadd.f32 %v1203_v37, %v1172_v38  ;;  %v1223_v14 = vadd.f32 %v1207_v6, %v1165_v35  ;;  %v1173_v43 = vmul.f32 %v1149_v25, %v1115_v0  ;;  %v1237_v44 = vmax.f32 %v1221_v55, 0.0 }
 0x14a   : > { %v1244_v1 = vmax.f32 %v1228_v21, 0.0  ;;  %v1229_v23 = vadd.f32 %v1199_v42, %v1171_v17  ;;  %v1259_v28 = vmax.f32 %v1257_v26, %v1258_v8  ;;  %v1273_v29 = vmax.f32 %v1271_v48, %v1272_v10 }
 0x14b   : > { %v1246_v11 = vmax.f32 %v1230_v30, 0.0  ;;  %v1231_v32 = vadd.f32 %v1207_v6, %v1173_v43  ;;  %v1252_v39 = vmax.f32 %v1250_v7, %v1251_v18  ;;  %v1266_v37 = vmax.f32 %v1264_v27, %v1265_v22 }
 0x14c   : > { %v1276_v16 = vmax.f32 %v1236_v40, %v1244_v1  ;;  %v1245_v45 = vmax.f32 %v1229_v23, 0.0  ;;  %v1239_v34 = vmax.f32 %v1223_v14, 0.0  ;;  %v1321_v42 = vunpack.c.l.s4 %v1782_v54 }
 0x14d   : > { %v1290_v46 = vmax.f32 %v1238_v19, %v1246_v11  ;;  %v1247_v53 = vmax.f32 %v1231_v32, 0.0  ;;  %v1260_v36 = vrot.slane %v1259_v28, 1  ;;  %v1274_v25 = vrot.slane %v1273_v29, 1 }
 0x14e   : > { %v1277_v49 = vrot.slane %v1276_v16, 4  ;;  %v1283_v50 = vmax.f32 %v1237_v44, %v1245_v45  ;;  %v1253_v61 = vrot.slane %v1252_v39, 1  ;;  %v1267_v63 = vrot.slane %v1266_v37, 1 }
 0x14f   : > { %v1291_v51 = vrot.slane %v1290_v46, 4  ;;  %v1297_v59 = vmax.f32 %v1239_v34, %v1247_v53  ;;  %v1322_v5 = vunpack.c.0.s8 %v1321_v42  ;;  %v1261_v7 = vmax.f32 %v1259_v28, %v1260_v36 }
 0x150   : > { %v1278_v56 = vmax.f32 %v1276_v16, %v1277_v49  ;;  %v1284_v57 = vrot.slane %v1283_v50, 4  ;;  %v1275_v9 = vmax.f32 %v1273_v29, %v1274_v25  ;;  %v1254_v24 = vmax.f32 %v1252_v39, %v1253_v61 }
 0x151   : > { %v1292_v58 = vmax.f32 %v1290_v46, %v1291_v51  ;;  %v1298_v4 = vrot.slane %v1297_v59, 4  ;;  %v1268_v20 = vmax.f32 %v1266_v37, %v1267_v63  ;;  %v1325_v52 = vsub.s32 %v1322_v5, %v2122_v15 }
 0x152   : > { %v1279_v2 = vrot.slane %v1278_v56, 2  ;;  %v1285_v60 = vmax.f32 %v1283_v50, %v1284_v57  ;;  %v1316_v31 = vcombine.low %v1254_v24, %v1261_v7 }
 0x153   : > { %v1293_v3 = vrot.slane %v1292_v58, 2  ;;  %v1299_v13 = vmax.f32 %v1297_v59, %v1298_v4  ;;  %v1317_v33 = vcombine.low %v1268_v20, %v1275_v9 }
 0x154   : > { %v1280_v6 = vmax.f32 %v1278_v56, %v1279_v2  ;;  %v1286_v47 = vrot.slane %v1285_v60, 2  ;;  %v1326_v17 = vrot.slane %v1316_v31, %v1325_v52 }
 0x155   : > { %v1294_v12 = vmax.f32 %v1292_v58, %v1293_v3  ;;  %v1300_v27 = vrot.slane %v1299_v13, 2  ;;  %v1333_v8 = vrot.slane %v1317_v33, %v1325_v52 }
 0x156   : > { %v1281_v26 = vrot.slane %v1280_v6, 1  ;;  %v1287_v48 = vmax.f32 %v1285_v60, %v1286_v47 }
 0x157   : > { %v1295_v35 = vrot.slane %v1294_v12, 1  ;;  %v1301_v38 = vmax.f32 %v1299_v13, %v1300_v27  ;;  %v1348_v40 = vcombine.low %v1326_v17, %v1333_v8 }
 0x158   : > { %v1288_v62 = vrot.slane %v1287_v48, 1  ;;  %v1282_v41 = vmax.f32 %v1280_v6, %v1281_v26 }
 0x159   : > { %v1302_v55 = vrot.slane %v1301_v38, 1  ;;  %v1296_v10 = vmax.f32 %v1294_v12, %v1295_v35  ;;  %v1356_v23 = vrot.slane %v1348_v40, %v1325_v52 }
 0x15a   : > { %v1289_v18 = vmax.f32 %v1287_v48, %v1288_v62 }
 0x15b   : > { %v1303_v30 = vmax.f32 %v1301_v38, %v1302_v55 }
 0x15c   : > { %v1318_v21 = vcombine.low %v1282_v41, %v1289_v18 }
 0x15d   : > { %v1319_v22 = vcombine.low %v1296_v10, %v1303_v30 }
 0x15e   : > { %v1340_v0 = vrot.slane %v1318_v21, %v1325_v52 }
 0x15f   : > { %v1347_v15 = vrot.slane %v1319_v22, %v1325_v52 }
 0x161   : > { %v1349_v1 = vcombine.low %v1340_v0, %v1347_v15 }
 0x163   : > { %v1363_v19 = vrot.slane %v1349_v1, %v1325_v52 }
 0x165   : > { %v1364_v14 = vcombine.low %v1356_v23, %v1363_v19 }
 0x167   : > { %1366 = vst [vmem:[%s308_s7] sm:$0xff] %v1364_v14 }
 0x168 PF: > { %s18_s23 = sadd.s32 1, %s1776_s23   ;;  %s2286_s21 = smov %s1772_s22 }
 0x169   : > { %p15_p5 = scmp.ge.s32.totalorder %s18_s23, 4   ;;  %s2287_s22 = smov %s2289_s29 }
 0x16b   :  { %17 = sbr.rel (!%p15_p5) target bundleno = 3 (0x3), region = 95 }
 0x170   :  { %1451 = vsyncpa [#allocation3], 1 }
 0x171   :  { %1453 = vsyncpa [#allocation3 + $0x1], 1 }
 0x172   :  { %1454 = vsyncpa [#allocation5], 1 }

// kernel: pointnet_encoder.20
= control target key start
LH: loop header
LB: loop body
LE: loop exit
PB: predicated region body
PF: predicated region fallthrough
CT: control target
= control target key end

     0   :  { %s566_s15 = smov 0   ;;  %s568_s16 = smov 0   ;;  %s625_s0 = inlined_call_operand.vmem [shape: f32[32,3], index: 0, kind: input, shape index: {}]   ;;  %s626_s1 = inlined_call_operand.vmem [shape: f32[2,3,3], index: 1, kind: input, shape index: {}]   ;;  %s627_s2 = inlined_call_operand.vmem [shape: bf16[3,64], index: 2, kind: input, shape index: {}]   ;;  %s628_s3 = inlined_call_operand.vmem [shape: f32[1,64], index: 3, kind: input, shape index: {}]   ;;  %s629_s4 = inlined_call_operand.vmem [shape: f32[2,64], index: 4, kind: output, shape index: {}]  }
   0x1   :  { %s570_s17 = smov 0  }
   0x2 LB: > { %s26_s18 = sadd.s32 1, %s531_s16  ;;  %p456_p0 = scmp.ge.s32.totalorder %s535_s17, 1  ;;  %s535_s17 = sphi %s570_s17, %s14_s17   ;;  %s531_s16 = sphi %s568_s16, %s631_s16   ;;  %s527_s15 = sphi %s566_s15, %s630_s15  }
   0x3   : > { %p28_p1 = scmp.ge.s32.totalorder %s26_s18, 2  ;;  %p183_p2 = scmp.lt.s32.totalorder %s535_s17, 3 }
   0x5   : > { %s633_s18 = smov (%p28_p1, %s26_s18), 0  ;;  %p184_p3 = pnand %p456_p0, %p183_p2 }
   0x6   : > { %p217_p4 = scmp.lt.s32.totalorder (!%p184_p3), %s527_s15, 1  ;;  %s457_s19 = sshll.u32 (!%p184_p3), %s527_s15, 1 }
   0x7   : > { %187 = sbr.rel (%p184_p3) target bundleno = 436 (0x1b4), region = 36  ;;  %p211_p5 = scmp.lt.s32.totalorder (!%p184_p3), %s457_s19, 3 }
   0x8   : > { %p371_p6 = scmp.eq.s32.totalorder (!%p184_p3), %s527_s15, 0 }
   0xc   : > { %s218_s20 = scalar_select %p217_p4, %s527_s15, 1  ;;  %vm232_vm0 = vcmask 1042432   ;;  %vm225_vm1 = vcmask 23552   ;;  %vm323_vm2 = vcmask 1040384   ;;  %vm324_vm3 = vcmask 1041408  }
   0xd   : > { %s635_s19 = smov (!%p211_p5, %s457_s19), 3  ;;  %v537_v3 = vmov 65535   ;;  %v312_v5 = vld [vmem:[%s627_s2] sm:$0x3]  ;;  %v538_v8 = vmov 0.0   ;;  %vm539_vm4 = vmmov 0  }
   0xe   : > { %s459_s21 = sshll.u32 %s218_s20, 2  ;;  %s458_s25 = sshll.u32 %s635_s19, 3  ;;  %v325_v4 = vsel %vm323_vm2, 4294967295, %v537_v3  ;;  %479 = vmatprep.subr.bf16.mxu1 %v538_v8  ;;  %481 = vmatprep.mubr.msk.bf16.mxu1 %vm539_vm4, %v538_v8  ;;  %v463_v12 = vld [vmem:[%s628_s3] ss:$0 sm:$0xff]  ;;  %vm377_vm5 = vcmask (%p371_p6), 517120  }
   0xf   : > { %s220_s24 = scalar_lea.vmem %s626_s1, %s459_s21  ;;  %s214_s28 = scalar_lea.vmem %s625_s0, %s458_s25  ;;  %v326_v6 = vsel %vm324_vm3, %v325_v4, 0  ;;  %v540_v19 = vmov (%p371_p6), 0.0  }
  0x10   : > { %v224_v0 = vld [vmem:[%s220_s24] sm:$0x7]  ;;  %v223_v2 = vld [vmem:[%s214_s28 + $0x8] sm:$0xff]  ;;  %v328_v7 = vand.u32 %v326_v6, %v312_v5  ;;  %378 = vst.msk [vmem:[%s629_s4] sm:$0x3] (%p371_p6), %vm377_vm5, %v540_v19 }
  0x11   : > { %474 = vmatprep.subr.msk.mxu0 %vm232_vm0, %v224_v0  ;;  %v222_v1 = vld [vmem:[%s214_s28] sm:$0xff] }
  0x12   : > { %475 = vmatpush3.msk.msra.mxu0 %vm232_vm0, %v224_v0  ;;  %476 = vmatprep.mubr.msk.f32.mxu0 %vm225_vm1, %v222_v1 }
  0x13   : > { %477 = vmatmul.mubr.msk.f32.vlgmr.msra.gmra.mxu0 %vm225_vm1, %v223_v2  ;;  %480 = vmatpush3.bf16.msra.mxu1 %v328_v7 }
  0xd3   : > { %v478_v9 = vpop.f32.mrf.mxu0 }
  0xd5   : > { %v302_v10 = vpop.f32.mrf.mxu0 }
  0xd6   : > { %v311_v11 = vpack.c.bf16 %v478_v9, %v302_v10 }
  0xd8   : > { %482 = vmatmul.mubr.msk.bf16.vlgmr.msra.gmra.mxu1 %vm225_vm1, %v311_v11 }
 0x198   : > { %v364_v13 = vpop.f32.mrf.mxu1 }
 0x199   : > { %v365_v14 = vadd.f32 %v463_v12, %v364_v13 }
 0x19a   : > { %v483_v15 = vpop.f32.mrf.mxu1  ;;  %376 = sbr.rel (!%p371_p6) target bundleno = 415 (0x19f), region = 40 }
 0x19c   : > { %v367_v16 = vpop.f32.mrf.mxu1 }
 0x19d   : > { %v368_v17 = vadd.f32 %v463_v12, %v367_v16 }
 0x19e   : > { %v484_v18 = vpop.f32.mrf.mxu1 }
 0x19f PF: > { %vm379_vm6 = vcmask 523264   ;;  %v389_v20 = vmul.f32 %v365_v14, %v365_v14  ;;  %v390_v21 = vmul.f32 %v368_v17, %v368_v17  ;;  %v400_v40 = vld [vmem:[%s629_s4] sm:$0x3]  ;;  %vm403_vm7 = vcmask 517120  }
 0x1a0   : > { %v380_v22 = vsel %vm379_vm6, %v365_v14, 0.0  ;;  %v381_v23 = vsel %vm379_vm6, %v368_v17, 0.0 }
 0x1a1   : > { %v382_v24 = vadd.f32 %v381_v23, %v380_v22  ;;  %v391_v25 = vsel %vm379_vm6, %v389_v20, 0.0  ;;  %v392_v26 = vsel %vm379_vm6, %v390_v21, 0.0 }
 0x1a2   : > { %v393_v27 = vadd.f32 %v392_v26, %v391_v25 }
 0x1a3   : > { %v383_v28 = vrot.slane %v382_v24, 4 }
 0x1a4   : > { %v394_v29 = vrot.slane %v393_v27, 4 }
 0x1a5   : > { %v384_v30 = vadd.f32 %v383_v28, %v382_v24 }
 0x1a6   : > { %v395_v31 = vadd.f32 %v394_v29, %v393_v27 }
 0x1a7   : > { %v385_v32 = vrot.slane %v384_v30, 2 }
 0x1a8   : > { %v396_v33 = vrot.slane %v395_v31, 2 }
 0x1a9   : > { %v386_v34 = vadd.f32 %v385_v32, %v384_v30 }
 0x1aa   : > { %v397_v35 = vadd.f32 %v396_v33, %v395_v31 }
 0x1ab   : > { %v387_v36 = vrot.slane %v386_v34, 1 }
 0x1ac   : > { %v398_v37 = vrot.slane %v397_v35, 1 }
 0x1ad   : > { %v388_v38 = vadd.f32 %v387_v36, %v386_v34 }
 0x1ae   : > { %v399_v39 = vadd.f32 %v398_v37, %v397_v35 }
 0x1b0   : > { %v401_v41 = vsel %vm323_vm2, %v388_v38, %v399_v39 }
 0x1b1   : > { %v402_v42 = vadd.f32 %v401_v41, %v400_v40 }
 0x1b3   : > { %404 = vst.msk [vmem:[%s629_s4] sm:$0x3] %vm403_vm7, %v402_v42 }
 0x1b4 PF: > { %s14_s17 = sadd.s32 1, %s535_s17   ;;  %s630_s15 = smov %s531_s16 }
 0x1b5   : > { %p11_p7 = scmp.ge.s32.totalorder %s14_s17, 4   ;;  %s631_s16 = smov %s633_s18 }
 0x1b7   :  { %13 = sbr.rel (!%p11_p7) target bundleno = 2 (0x2), region = 69 }

// kernel: pointnet_encoder.21
= control target key start
LH: loop header
LB: loop body
LE: loop exit
PB: predicated region body
PF: predicated region fallthrough
CT: control target
= control target key end

     0   :  { %s871_s30 = smov 0   ;;  %s873_s10 = smov 0   ;;  %s936_s0 = inlined_call_operand.vmem [shape: f32[32,3], index: 0, kind: input, shape index: {}]   ;;  %s937_s1 = inlined_call_operand.vmem [shape: f32[2,3,3], index: 1, kind: input, shape index: {}]   ;;  %s938_s2 = inlined_call_operand.vmem [shape: bf16[3,64], index: 2, kind: input, shape index: {}]   ;;  %s939_s3 = inlined_call_operand.vmem [shape: f32[1,64], index: 3, kind: input, shape index: {}]   ;;  %s940_s4 = inlined_call_operand.vmem [shape: f32[1,64], index: 4, kind: input, shape index: {}]   ;;  %s941_s5 = inlined_call_operand.vmem [shape: f32[1,64], index: 5, kind: input, shape index: {}]   ;;  %s942_s6 = inlined_call_operand.vmem [shape: bf16[3,64], index: 6, kind: input, shape index: {}]   ;;  %s943_s7 = inlined_call_operand.vmem [shape: f32[1,64], index: 7, kind: input, shape index: {}]   ;;  %s944_s8 = inlined_call_operand.vmem [shape: f32[2,64], index: 8, kind: input, shape index: {}]   ;;  %s945_s9 = inlined_call_operand.vmem [shape: bf16[32,64], index: 9, kind: output, shape index: {}]  }
   0x1   :  { %s875_s11 = smov 0  }
   0x2 LB: > { %s31_s12 = sadd.s32 1, %s812_s10  ;;  %p720_p0 = scmp.ge.s32.totalorder %s816_s11, 1  ;;  %s816_s11 = sphi %s875_s11, %s19_s11   ;;  %s812_s10 = sphi %s873_s10, %s947_s10   ;;  %s808_s30 = sphi %s871_s30, %s946_s30  }
   0x3   : > { %p33_p1 = scmp.ge.s32.totalorder %s31_s12, 2  ;;  %p315_p2 = scmp.lt.s32.totalorder %s816_s11, 3 }
   0x5   : > { %s949_s12 = smov (%p33_p1, %s31_s12), 0  ;;  %p316_p3 = pnand %p720_p0, %p315_p2 }
   0x6   : > { %p365_p4 = scmp.lt.s32.totalorder (!%p316_p3), %s808_s30, 1  ;;  %s721_s13 = sshll.u32 (!%p316_p3), %s808_s30, 1 }
   0x7   : > { %319 = sbr.rel (%p316_p3) target bundleno = 431 (0x1af), region = 56  ;;  %p359_p5 = scmp.lt.s32.totalorder (!%p316_p3), %s721_s13, 3 }
   0xc   : > { %s951_s30 = smov (!%p365_p4, %s808_s30), 1  ;;  %s953_s13 = smov (!%p359_p5, %s721_s13), 3  ;;  %vm388_vm0 = vcmask 1042432   ;;  %vm381_vm1 = vcmask 23552   ;;  %vm479_vm2 = vcmask 1040384   ;;  %vm480_vm3 = vcmask 1041408  }
   0xd   : > { %s723_s14 = sshll.u32 %s951_s30, 2  ;;  %s722_s18 = sshll.u32 %s953_s13, 3  ;;  %v818_v3 = vmov 65535   ;;  %v468_v5 = vld [vmem:[%s938_s2] sm:$0x3]  ;;  %v819_v10 = vmov 0.0   ;;  %v535_v21 = vlaneseq }
   0xe   : > { %s368_s17 = scalar_lea.vmem %s937_s1, %s723_s14  ;;  %s362_s21 = scalar_lea.vmem %s936_s0, %s722_s18  ;;  %v481_v4 = vsel %vm479_vm2, 4294967295, %v818_v3  ;;  %v569_v7 = vld [vmem:[%s942_s6] sm:$0x3]  ;;  %753 = vmatprep.subr.bf16.mxu1 %v819_v10  ;;  %vm820_vm4 = vmmov 0   ;;  %vm633_vm5 = vcmask 519168  }
   0xf   : > { %v380_v0 = vld [vmem:[%s368_s17] sm:$0x7]  ;;  %v379_v2 = vld [vmem:[%s362_s21 + $0x8] sm:$0xff]  ;;  %v482_v6 = vsel %vm480_vm3, %v481_v4, 0  ;;  %755 = vmatprep.mubr.msk.bf16.mxu1 %vm820_vm4, %v819_v10  ;;  %v536_v22 = vshrl.u32 %v535_v21, 7  ;;  %s725_s19 = sshll.u32 %s953_s13, 2 }
  0x10   : > { %748 = vmatprep.subr.msk.mxu0 %vm388_vm0, %v380_v0  ;;  %v378_v1 = vld [vmem:[%s362_s21] sm:$0xff]  ;;  %v484_v8 = vand.u32 %v482_v6, %v468_v5  ;;  %v571_v9 = vand.u32 %v569_v7, %v482_v6  ;;  %s374_s22 = scalar_lea.vmem %s945_s9, %s725_s19 }
  0x11   : > { %749 = vmatpush3.msk.msra.mxu0 %vm388_vm0, %v380_v0  ;;  %750 = vmatprep.mubr.msk.f32.mxu0 %vm381_vm1, %v378_v1  ;;  %v527_v14 = vld [vmem:[%s944_s8] sm:$0x3]  ;;  %v537_v23 = vsub.s32 0, %v536_v22  ;;  %v545_v24 = vsub.s32 1, %v536_v22 }
  0x12   : > { %751 = vmatmul.mubr.msk.f32.vlgmr.msra.gmra.mxu0 %vm381_vm1, %v379_v2  ;;  %759 = vmatprep.subr.bf16.mxu0 %v819_v10  ;;  %v528_v15 = vmul.f32 0.03125, %v527_v14  ;;  %v729_v26 = vld [vmem:[%s939_s3] ss:$0 sm:$0xff] }
  0x13   : > { %754 = vmatpush3.bf16.msra.mxu1 %v484_v8  ;;  %760 = vmatpush3.bf16.msra.mxu0 %v571_v9  ;;  %v731_v35 = vld [vmem:[%s940_s4] ss:$0 sm:$0xff] }
  0x14   : > { %761 = vmatprep.mubr.msk.bf16.mxu0 %vm820_vm4, %v819_v10  ;;  %v529_v16 = vmul.f32 %v528_v15, %v528_v15  ;;  %v538_v27 = vrot.slane %v528_v15, %v537_v23  ;;  %v732_v40 = vld [vmem:[%s941_s5] ss:$0 sm:$0xff] }
  0x15   : > { %v734_v49 = vld [vmem:[%s943_s7] ss:$0 sm:$0xff] }
  0x16   : > { %v531_v17 = vrot.slane %v529_v16, 7 }
  0x18   : > { %v533_v18 = vsub.f32 %v528_v15, %v531_v17 }
  0x1a   : > { %v534_v19 = vmax.f32 %v533_v18, 0.0 }
  0x1c   : > { %v541_v20 = vadd.f32 1e-05, %v534_v19 }
  0x1e   : > { %792 = vrsqrt.f32 %v541_v20 }
  0x2b   : > { %v793_v25 = vpop.eup %792 }
  0x2c   : > { %v546_v31 = vrot.slane %v793_v25, %v545_v24 }
  0xd2   : > { %v752_v11 = vpop.f32.mrf.mxu0 }
  0xd4   : > { %v458_v12 = vpop.f32.mrf.mxu0 }
  0xd5   : > { %v467_v13 = vpack.c.bf16 %v752_v11, %v458_v12 }
  0xd7   : > { %756 = vmatmul.mubr.msk.bf16.vlgmr.msra.gmra.mxu1 %vm381_vm1, %v467_v13  ;;  %762 = vmatmul.mubr.msk.bf16.vlgmr.msra.gmra.mxu0 %vm381_vm1, %v467_v13 }
 0x197   : > { %v520_v28 = vpop.f32.mrf.mxu1  ;;  %v607_v29 = vpop.f32.mrf.mxu0 }
 0x198   : > { %v521_v30 = vadd.f32 %v729_v26, %v520_v28 }
 0x199   : > { %v757_v32 = vpop.f32.mrf.mxu1  ;;  %v763_v33 = vpop.f32.mrf.mxu0 }
 0x19a   : > { %v539_v34 = vsub.f32 %v521_v30, %v538_v27 }
 0x19b   : > { %v523_v36 = vpop.f32.mrf.mxu1  ;;  %v610_v37 = vpop.f32.mrf.mxu0 }
 0x19c   : > { %v547_v38 = vmul.f32 %v546_v31, %v539_v34  ;;  %v524_v39 = vadd.f32 %v729_v26, %v523_v36 }
 0x19d   : > { %v758_v41 = vpop.f32.mrf.mxu1  ;;  %v764_v42 = vpop.f32.mrf.mxu0 }
 0x19e   : > { %v556_v43 = vmul.f32 %v731_v35, %v547_v38  ;;  %v540_v44 = vsub.f32 %v524_v39, %v538_v27 }
 0x1a0   : > { %v565_v45 = vadd.f32 %v732_v40, %v556_v43  ;;  %v548_v46 = vmul.f32 %v546_v31, %v540_v44 }
 0x1a2   : > { %v567_v47 = vmax.f32 %v565_v45, 0.0  ;;  %v557_v48 = vmul.f32 %v731_v35, %v548_v46 }
 0x1a4   : > { %v614_v50 = vadd.f32 %v607_v29, %v567_v47  ;;  %v566_v51 = vadd.f32 %v732_v40, %v557_v48 }
 0x1a6   : > { %v623_v52 = vadd.f32 %v734_v49, %v614_v50  ;;  %v568_v53 = vmax.f32 %v566_v51, 0.0 }
 0x1a8   : > { %v739_v54 = vpack.c.bf16 %v623_v52, %v623_v52  ;;  %v615_v55 = vadd.f32 %v610_v37, %v568_v53 }
 0x1aa   : > { %634 = vst.msk [vmem:[%s374_s22] sm:$0xf] %vm633_vm5, %v739_v54  ;;  %v624_v56 = vadd.f32 %v734_v49, %v615_v55 }
 0x1ac   : > { %v740_v57 = vpack.c.bf16 %v624_v56, %v624_v56 }
 0x1ae   : > { %635 = vst.msk [vmem:[%s374_s22 + $0x4] sm:$0xf] %vm633_vm5, %v740_v57 }
 0x1af PF: > { %s19_s11 = sadd.s32 1, %s816_s11   ;;  %s946_s30 = smov %s812_s10 }
 0x1b0   : > { %p16_p6 = scmp.ge.s32.totalorder %s19_s11, 4   ;;  %s947_s10 = smov %s949_s12 }
 0x1b2   :  { %18 = sbr.rel (!%p16_p6) target bundleno = 2 (0x2), region = 89 }

// kernel: pointnet_encoder.22
= control target key start
LH: loop header
LB: loop body
LE: loop exit
PB: predicated region body
PF: predicated region fallthrough
CT: control target
= control target key end

     0   :  { %s446_s12 = smov 0   ;;  %s448_s13 = smov 0   ;;  %s504_s0 = inlined_call_operand.vmem [shape: bf16[32,64], index: 0, kind: input, shape index: {}]   ;;  %s505_s1 = inlined_call_operand.vmem [shape: bf16[64,128], index: 1, kind: input, shape index: {}]   ;;  %s506_s2 = inlined_call_operand.vmem [shape: f32[1,128], index: 2, kind: input, shape index: {}]   ;;  %s507_s3 = inlined_call_operand.vmem [shape: f32[2,128], index: 3, kind: output, shape index: {}]  }
   0x1   :  { %s450_s14 = smov 0  }
   0x2 LB: > { %s25_s15 = sadd.s32 1, %s417_s13  ;;  %p336_p0 = scmp.ge.s32.totalorder %s421_s14, 1  ;;  %s421_s14 = sphi %s450_s14, %s13_s14   ;;  %s417_s13 = sphi %s448_s13, %s509_s13   ;;  %s413_s12 = sphi %s446_s12, %s508_s12  }
   0x3   : > { %p27_p1 = scmp.ge.s32.totalorder %s25_s15, 2  ;;  %p149_p2 = scmp.lt.s32.totalorder %s421_s14, 3 }
   0x5   : > { %s511_s15 = smov (%p27_p1, %s25_s15), 0  ;;  %p150_p3 = pnand %p336_p0, %p149_p2 }
   0x6   : > { %s337_s20 = sshll.u32 (!%p150_p3), %s413_s12, 1  ;;  %p269_p5 = scmp.eq.s32.totalorder (!%p150_p3), %s413_s12, 0 }
   0x7   : > { %153 = sbr.rel (%p150_p3) target bundleno = 248 (0xf8), region = 32  ;;  %p171_p4 = scmp.lt.s32.totalorder (!%p150_p3), %s337_s20, 3 }
   0xc   : > { %v394_v0 = vld [vmem:[%s505_s1 + $0x18] sm:$0xff]   ;;  %v423_v1 = vmov 0.0   ;;  %v395_v2 = vld [vmem:[%s505_s1 + $0x10] sm:$0xff]   ;;  %vm424_vm0 = vmmov 0   ;;  %s513_s20 = smov (!%p171_p4, %s337_s20), 3  ;;  %v396_v3 = vld [vmem:[%s505_s1 + $0x8] sm:$0xff]  }
   0xd   : > { %355 = vmatprep.subr.bf16.mxu0 %v423_v1  ;;  %363 = vmatprep.mubr.msk.bf16.mxu0 %vm424_vm0, %v423_v1  ;;  %s338_s23 = sshll.u32 %s513_s20, 2  ;;  %v397_v4 = vld [vmem:[%s505_s1] sm:$0xff]   ;;  %vm224_vm1 = vcmask 523264   ;;  %v425_v13 = vmov (%p269_p5), 0.0  }
   0xe   : > { %356 = vmatpush3.bf16.msra.mxu0 %v394_v0  ;;  %s174_s26 = scalar_lea.vmem %s504_s0, %s338_s23  ;;  %v339_v6 = vld [vmem:[%s506_s2] ss:$0 sm:$0xff]  ;;  %275 = vst [vmem:[%s507_s3] sm:$0x3] (%p269_p5), %v425_v13 }
   0xf   : > { %357 = vmatprep.subr.bf16.mxu0 %v423_v1  ;;  %v398_v5 = vld [vmem:[%s174_s26] sm:$0xff]  }
  0x12   : > { %358 = vmatpush3.bf16.msra.mxu0 %v395_v2 }
  0x13   : > { %359 = vmatprep.subr.bf16.mxu0 %v423_v1 }
  0x16   : > { %360 = vmatpush3.bf16.msra.mxu0 %v396_v3 }
  0x17   : > { %361 = vmatprep.subr.bf16.mxu0 %v423_v1 }
  0x1a   : > { %362 = vmatpush3.bf16.msra.mxu0 %v397_v4 }
  0x1d   : > { %364 = vmatmul.mubr.msk.bf16.vlgmr.msra.gmra.mxu0 %vm224_vm1, %v398_v5 }
  0xdd   : > { %v262_v7 = vpop.f32.mrf.mxu0 }
  0xde   : > { %v263_v8 = vadd.f32 %v339_v6, %v262_v7 }
  0xdf   : > { %v365_v9 = vpop.f32.mrf.mxu0  ;;  %274 = sbr.rel (!%p269_p5) target bundleno = 228 (0xe4), region = 36 }
  0xe1   : > { %v265_v10 = vpop.f32.mrf.mxu0 }
  0xe2   : > { %v266_v11 = vadd.f32 %v339_v6, %v265_v10 }
  0xe3   : > { %v366_v12 = vpop.f32.mrf.mxu0 }
  0xe4 PF: > { %v276_v14 = vadd.f32 %v266_v11, %v263_v8  ;;  %v283_v15 = vmul.f32 %v263_v8, %v263_v8  ;;  %v284_v16 = vmul.f32 %v266_v11, %v266_v11  ;;  %vm293_vm2 = vcmask 1040384   ;;  %v292_v30 = vld [vmem:[%s507_s3] sm:$0x3] }
  0xe6   : > { %v277_v17 = vrot.slane %v276_v14, 4  ;;  %v285_v18 = vadd.f32 %v284_v16, %v283_v15 }
  0xe8   : > { %v278_v19 = vadd.f32 %v277_v17, %v276_v14  ;;  %v286_v20 = vrot.slane %v285_v18, 4 }
  0xea   : > { %v279_v21 = vrot.slane %v278_v19, 2  ;;  %v287_v22 = vadd.f32 %v286_v20, %v285_v18 }
  0xec   : > { %v280_v23 = vadd.f32 %v279_v21, %v278_v19  ;;  %v288_v24 = vrot.slane %v287_v22, 2 }
  0xee   : > { %v281_v25 = vrot.slane %v280_v23, 1  ;;  %v289_v26 = vadd.f32 %v288_v24, %v287_v22 }
  0xf0   : > { %v282_v27 = vadd.f32 %v281_v25, %v280_v23  ;;  %v290_v28 = vrot.slane %v289_v26, 1 }
  0xf2   : > { %v291_v29 = vadd.f32 %v290_v28, %v289_v26 }
  0xf4   : > { %v294_v31 = vsel %vm293_vm2, %v282_v27, %v291_v29 }
  0xf5   : > { %v295_v32 = vadd.f32 %v294_v31, %v292_v30 }
  0xf7   : > { %296 = vst [vmem:[%s507_s3] sm:$0x3] %v295_v32 }
  0xf8 PF: > { %s13_s14 = sadd.s32 1, %s421_s14   ;;  %s508_s12 = smov %s417_s13 }
  0xf9   : > { %p10_p6 = scmp.ge.s32.totalorder %s13_s14, 4   ;;  %s509_s13 = smov %s511_s15 }
  0xfb   :  { %12 = sbr.rel (!%p10_p6) target bundleno = 2 (0x2), region = 62 }

// kernel: pointnet_encoder.19
= control target key start
LH: loop header
LB: loop body
LE: loop exit
PB: predicated region body
PF: predicated region fallthrough
CT: control target
= control target key end

     0   :  { %v3728_v36 = vmov 1983009808   ;;  %v47_v38 = vlaneseq  ;;  %vm1979_vm0 = vcmask 1041408   ;;  %vm2852_vm1 = vcmask 66560   ;;  %s4956_s1 = inlined_call_operand.vmem [shape: bf16[1024,512], index: 1, kind: input, shape index: {}]   ;;  %s4957_s0 = inlined_call_operand.vmem [shape: f32[2,1024], index: 0, kind: input, shape index: {}]   ;;  %s4958_s5 = inlined_call_operand.vmem [shape: bf16[512,256], index: 5, kind: input, shape index: {}]   ;;  %s4959_s2 = inlined_call_operand.vmem [shape: f32[1,512], index: 2, kind: input, shape index: {}]   ;;  %s4960_s3 = inlined_call_operand.vmem [shape: f32[1,512], index: 3, kind: input, shape index: {}]   ;;  %s4961_s4 = inlined_call_operand.vmem [shape: f32[1,512], index: 4, kind: input, shape index: {}]   ;;  %s4962_s9 = inlined_call_operand.vmem [shape: bf16[256,9], index: 9, kind: input, shape index: {}]   ;;  %s4963_s6 = inlined_call_operand.vmem [shape: f32[1,256], index: 6, kind: input, shape index: {}]   ;;  %s4964_s7 = inlined_call_operand.vmem [shape: f32[1,256], index: 7, kind: input, shape index: {}]   ;;  %s4965_s8 = inlined_call_operand.vmem [shape: f32[1,256], index: 8, kind: input, shape index: {}]   ;;  %s4966_s10 = inlined_call_operand.vmem [shape: f32[1,9], index: 10, kind: input, shape index: {}]   ;;  %s4967_s11 = inlined_call_operand.vmem [shape: f32[2,9], index: 11, kind: output, shape index: {}]  }
   0x1   :  { %v3218_v0 = vld [vmem:[%s4956_s1 + $0xe4] ss:$16 sps:$4 sm:$0xff]   ;;  %v3222_v2 = vld [vmem:[%s4956_s1 + $0xe0] ss:$16 sps:$4 sm:$0xff]   ;;  %v45_v37 = vunpack.c.l.s4 %v3728_v36 }
   0x2   :  { %v3220_v1 = vld [vmem:[%s4956_s1 + $0x2e4] ss:$16 sps:$4 sm:$0xff]   ;;  %1651 = vmatprep.subr.bf16.mxu0 %v3218_v0  ;;  %v3223_v3 = vld [vmem:[%s4956_s1 + $0x2e0] ss:$16 sps:$4 sm:$0xff]   ;;  %v3906_v43 = vshrl.u32 %v47_v38, 7 }
   0x3   :  { %1692 = vmatprep.subr.bf16.mxu1 %v3220_v1  ;;  %v3224_v4 = vld [vmem:[%s4956_s1 + $0xc4] ss:$16 sps:$4 sm:$0xff]   ;;  %1652 = vmatpush1.bf16.msra.mxu0 %v3222_v2  ;;  %v3228_v6 = vld [vmem:[%s4956_s1 + $0xc0] ss:$16 sps:$4 sm:$0xff]   ;;  %v46_v42 = vunpack.c.0.s8 %v45_v37 }
   0x4   :  { %1693 = vmatpush1.bf16.msra.mxu1 %v3223_v3  ;;  %v3226_v5 = vld [vmem:[%s4956_s1 + $0x2c4] ss:$16 sps:$4 sm:$0xff]   ;;  %1653 = vmatprep.subr.bf16.mxu0 %v3224_v4  ;;  %v3229_v7 = vld [vmem:[%s4956_s1 + $0x2c0] ss:$16 sps:$4 sm:$0xff]   ;;  %v40_v4 = vld [vmem:[%s4957_s0 + $0x8] sm:$0xff] }
   0x5   :  { %1694 = vmatprep.subr.bf16.mxu1 %v3226_v5  ;;  %v3230_v8 = vld [vmem:[%s4956_s1 + $0xa4] ss:$16 sps:$4 sm:$0xff]   ;;  %v3234_v10 = vld [vmem:[%s4956_s1 + $0xa0] ss:$16 sps:$4 sm:$0xff]   ;;  %v49_v49 = vsub.s32 %v46_v42, %v3906_v43 }
   0x6   :  { %v3232_v9 = vld [vmem:[%s4956_s1 + $0x2a4] ss:$16 sps:$4 sm:$0xff]   ;;  %v3235_v11 = vld [vmem:[%s4956_s1 + $0x2a0] ss:$16 sps:$4 sm:$0xff]  }
   0x7   :  { %1654 = vmatpush1.bf16.msra.mxu0 %v3228_v6  ;;  %v3236_v12 = vld [vmem:[%s4956_s1 + $0x84] ss:$16 sps:$4 sm:$0xff]   ;;  %v3240_v14 = vld [vmem:[%s4956_s1 + $0x80] ss:$16 sps:$4 sm:$0xff]  }
   0x8   :  { %1695 = vmatpush1.bf16.msra.mxu1 %v3229_v7  ;;  %1655 = vmatprep.subr.bf16.mxu0 %v3230_v8  ;;  %v3238_v13 = vld [vmem:[%s4956_s1 + $0x284] ss:$16 sps:$4 sm:$0xff]   ;;  %v3241_v15 = vld [vmem:[%s4956_s1 + $0x280] ss:$16 sps:$4 sm:$0xff]  }
   0x9   :  { %1696 = vmatprep.subr.bf16.mxu1 %v3232_v9  ;;  %v3242_v16 = vld [vmem:[%s4956_s1 + $0x64] ss:$16 sps:$4 sm:$0xff]   ;;  %v3246_v18 = vld [vmem:[%s4956_s1 + $0x60] ss:$16 sps:$4 sm:$0xff]   ;;  %v60_v9 = vcombine.high %v40_v4, %v40_v4 }
   0xa   :  { %v3244_v17 = vld [vmem:[%s4956_s1 + $0x264] ss:$16 sps:$4 sm:$0xff]   ;;  %v3247_v19 = vld [vmem:[%s4956_s1 + $0x260] ss:$16 sps:$4 sm:$0xff]  }
   0xb   :  { %1656 = vmatpush1.bf16.msra.mxu0 %v3234_v10  ;;  %v3248_v20 = vld [vmem:[%s4956_s1 + $0x44] ss:$16 sps:$4 sm:$0xff]   ;;  %v3252_v22 = vld [vmem:[%s4956_s1 + $0x40] ss:$16 sps:$4 sm:$0xff]  }
   0xc   :  { %1697 = vmatpush1.bf16.msra.mxu1 %v3235_v11  ;;  %1657 = vmatprep.subr.bf16.mxu0 %v3236_v12  ;;  %v3250_v21 = vld [vmem:[%s4956_s1 + $0x244] ss:$16 sps:$4 sm:$0xff]   ;;  %v3253_v23 = vld [vmem:[%s4956_s1 + $0x240] ss:$16 sps:$4 sm:$0xff]  }
   0xd   :  { %1698 = vmatprep.subr.bf16.mxu1 %v3238_v13  ;;  %v3254_v24 = vld [vmem:[%s4956_s1 + $0x24] ss:$16 sps:$4 sm:$0xff]   ;;  %v3258_v26 = vld [vmem:[%s4956_s1 + $0x20] ss:$16 sps:$4 sm:$0xff]  }
   0xe   :  { %v3256_v25 = vld [vmem:[%s4956_s1 + $0x224] ss:$16 sps:$4 sm:$0xff]   ;;  %v3259_v27 = vld [vmem:[%s4956_s1 + $0x220] ss:$16 sps:$4 sm:$0xff]  }
   0xf   :  { %1658 = vmatpush1.bf16.msra.mxu0 %v3240_v14  ;;  %v3260_v28 = vld [vmem:[%s4956_s1 + $0x4] ss:$16 sps:$4 sm:$0xff]   ;;  %v3264_v30 = vld [vmem:[%s4956_s1] ss:$16 sps:$4 sm:$0xff]   ;;  %v3990_v14 = vrot.slane %v40_v4, %v49_v49 }
  0x10   :  { %1699 = vmatpush1.bf16.msra.mxu1 %v3241_v15  ;;  %1659 = vmatprep.subr.bf16.mxu0 %v3242_v16  ;;  %v3262_v29 = vld [vmem:[%s4956_s1 + $0x204] ss:$16 sps:$4 sm:$0xff]   ;;  %v3265_v31 = vld [vmem:[%s4956_s1 + $0x200] ss:$16 sps:$4 sm:$0xff]   ;;  %v3992_v15 = vrot.slane %v60_v9, %v49_v49 }
  0x11   :  { %1700 = vmatprep.subr.bf16.mxu1 %v3244_v17  ;;  %v3266_v32 = vld [vmem:[%s4956_s1 + $0x1e4] ss:$16 sps:$4 sm:$0xff]   ;;  %v3270_v34 = vld [vmem:[%s4956_s1 + $0x1e0] ss:$16 sps:$4 sm:$0xff]  }
  0x12   :  { %v3268_v33 = vld [vmem:[%s4956_s1 + $0x3e4] ss:$16 sps:$4 sm:$0xff]   ;;  %v3271_v35 = vld [vmem:[%s4956_s1 + $0x3e0] ss:$16 sps:$4 sm:$0xff]  }
  0x13   :  { %1660 = vmatpush1.bf16.msra.mxu0 %v3246_v18  ;;  %v3272_v39 = vld [vmem:[%s4956_s1 + $0x1c4] ss:$16 sps:$4 sm:$0xff]   ;;  %v3276_v41 = vld [vmem:[%s4956_s1 + $0x1c0] ss:$16 sps:$4 sm:$0xff]  }
  0x14   :  { %1701 = vmatpush1.bf16.msra.mxu1 %v3247_v19  ;;  %1661 = vmatprep.subr.bf16.mxu0 %v3248_v20  ;;  %v3274_v40 = vld [vmem:[%s4956_s1 + $0x3c4] ss:$16 sps:$4 sm:$0xff]   ;;  %v3277_v44 = vld [vmem:[%s4956_s1 + $0x3c0] ss:$16 sps:$4 sm:$0xff]   ;;  %v75_v20 = vcombine.high %v3990_v14, %v3990_v14 }
  0x15   :  { %1702 = vmatprep.subr.bf16.mxu1 %v3250_v21  ;;  %v3278_v45 = vld [vmem:[%s4956_s1 + $0x1a4] ss:$16 sps:$4 sm:$0xff]   ;;  %v3282_v47 = vld [vmem:[%s4956_s1 + $0x1a0] ss:$16 sps:$4 sm:$0xff]   ;;  %v76_v21 = vcombine.high %v3992_v15, %v3992_v15 }
  0x16   :  { %v3280_v46 = vld [vmem:[%s4956_s1 + $0x3a4] ss:$16 sps:$4 sm:$0xff]   ;;  %v3283_v48 = vld [vmem:[%s4956_s1 + $0x3a0] ss:$16 sps:$4 sm:$0xff]  }
  0x17   :  { %1662 = vmatpush1.bf16.msra.mxu0 %v3252_v22  ;;  %v3284_v50 = vld [vmem:[%s4956_s1 + $0x184] ss:$16 sps:$4 sm:$0xff]   ;;  %v3288_v55 = vld [vmem:[%s4956_s1 + $0x180] ss:$16 sps:$4 sm:$0xff]  }
  0x18   :  { %1703 = vmatpush1.bf16.msra.mxu1 %v3253_v23  ;;  %1663 = vmatprep.subr.bf16.mxu0 %v3254_v24  ;;  %v3286_v51 = vld [vmem:[%s4956_s1 + $0x384] ss:$16 sps:$4 sm:$0xff]   ;;  %v3289_v56 = vld [vmem:[%s4956_s1 + $0x380] ss:$16 sps:$4 sm:$0xff]  }
  0x19   :  { %1704 = vmatprep.subr.bf16.mxu1 %v3256_v25  ;;  %v39_v52 = vld [vmem:[%s4957_s0] sm:$0xff] }
  0x1a   :  { %v50_v53 = vrot.slane %v39_v52, %v49_v49  ;;  %v43_v54 = vcombine.high %v39_v52, %v39_v52  ;;  %v3290_v57 = vld [vmem:[%s4956_s1 + $0x164] ss:$16 sps:$4 sm:$0xff]   ;;  %v3294_v63 = vld [vmem:[%s4956_s1 + $0x160] ss:$16 sps:$4 sm:$0xff]  }
  0x1b   :  { %1664 = vmatpush1.bf16.msra.mxu0 %v3258_v26  ;;  %v3292_v58 = vld [vmem:[%s4956_s1 + $0x364] ss:$16 sps:$4 sm:$0xff]   ;;  %v3295_v0 = vld [vmem:[%s4956_s1 + $0x360] ss:$16 sps:$4 sm:$0xff]  }
  0x1c   :  { %1705 = vmatpush1.bf16.msra.mxu1 %v3259_v27  ;;  %1665 = vmatprep.subr.bf16.mxu0 %v3260_v28  ;;  %v58_v59 = vcombine.high %v50_v53, %v50_v53  ;;  %v57_v60 = vrot.slane %v43_v54, %v49_v49  ;;  %v3296_v1 = vld [vmem:[%s4956_s1 + $0x144] ss:$16 sps:$4 sm:$0xff]   ;;  %v3300_v5 = vld [vmem:[%s4956_s1 + $0x140] ss:$16 sps:$4 sm:$0xff]   ;;  %v4010_v22 = vpack.c.bf16 %v50_v53, %v50_v53 }
  0x1d   :  { %1706 = vmatprep.subr.bf16.mxu1 %v3262_v29  ;;  %v3298_v2 = vld [vmem:[%s4956_s1 + $0x344] ss:$16 sps:$4 sm:$0xff]   ;;  %v3301_v6 = vld [vmem:[%s4956_s1 + $0x340] ss:$16 sps:$4 sm:$0xff]   ;;  %v4026_v28 = vpack.c.bf16 %v75_v20, %v75_v20  ;;  %v4028_v29 = vpack.c.bf16 %v76_v21, %v76_v21 }
  0x1e   :  { %v3945_v61 = vpack.c.bf16 %v58_v59, %v58_v59  ;;  %v59_v62 = vcombine.high %v57_v60, %v57_v60  ;;  %v3302_v7 = vld [vmem:[%s4956_s1 + $0x124] ss:$16 sps:$4 sm:$0xff]   ;;  %v3306_v10 = vld [vmem:[%s4956_s1 + $0x120] ss:$16 sps:$4 sm:$0xff]   ;;  %v4012_v23 = vpack.c.bf16 %v57_v60, %v57_v60 }
  0x1f   :  { %1666 = vmatpush1.bf16.msra.mxu0 %v3264_v30  ;;  %v3304_v8 = vld [vmem:[%s4956_s1 + $0x324] ss:$16 sps:$4 sm:$0xff]   ;;  %v3307_v11 = vld [vmem:[%s4956_s1 + $0x320] ss:$16 sps:$4 sm:$0xff]  }
  0x20   :  { %1707 = vmatpush1.bf16.msra.mxu1 %v3265_v31  ;;  %1667 = vmatprep.subr.bf16.mxu0 %v3266_v32  ;;  %v3959_v3 = vpack.c.bf16 %v59_v62, %v59_v62  ;;  %v3308_v12 = vld [vmem:[%s4956_s1 + $0x104] ss:$16 sps:$4 sm:$0xff]   ;;  %v3312_v16 = vld [vmem:[%s4956_s1 + $0x100] ss:$16 sps:$4 sm:$0xff]  }
  0x21   :  { %1708 = vmatprep.subr.bf16.mxu1 %v3268_v33  ;;  %1683 = vmatprep.mubr.bf16.mxu0 %v3945_v61  ;;  %v3310_v13 = vld [vmem:[%s4956_s1 + $0x304] ss:$16 sps:$4 sm:$0xff]   ;;  %v3313_v17 = vld [vmem:[%s4956_s1 + $0x300] ss:$16 sps:$4 sm:$0xff]  }
  0x22   :  { %1724 = vmatprep.mubr.bf16.mxu1 %v3959_v3  ;;  %v3318_v18 = vld [vmem:[%s4956_s1 + $0x4e4] ss:$16 sps:$4 sm:$0xff]   ;;  %v3316_v24 = vld [vmem:[%s4956_s1 + $0x4e0] ss:$16 sps:$4 sm:$0xff]  }
  0x23   :  { %1668 = vmatpush2.bf16.msra.mxu0 %v3270_v34  ;;  %v3321_v19 = vld [vmem:[%s4956_s1 + $0x6e4] ss:$16 sps:$4 sm:$0xff]   ;;  %v3319_v25 = vld [vmem:[%s4956_s1 + $0x6e0] ss:$16 sps:$4 sm:$0xff]  }
  0x24   :  { %1709 = vmatpush2.bf16.msra.mxu1 %v3271_v35  ;;  %1669 = vmatprep.subr.bf16.mxu0 %v3272_v39  ;;  %v3324_v26 = vld [vmem:[%s4956_s1 + $0x4c4] ss:$16 sps:$4 sm:$0xff]   ;;  %v3322_v30 = vld [vmem:[%s4956_s1 + $0x4c0] ss:$16 sps:$4 sm:$0xff]  }
  0x25   :  { %1710 = vmatprep.subr.bf16.mxu1 %v3274_v40  ;;  %v3327_v27 = vld [vmem:[%s4956_s1 + $0x6c4] ss:$16 sps:$4 sm:$0xff]   ;;  %v3325_v31 = vld [vmem:[%s4956_s1 + $0x6c0] ss:$16 sps:$4 sm:$0xff]  }
  0x26   :  { %v3330_v32 = vld [vmem:[%s4956_s1 + $0x4a4] ss:$16 sps:$4 sm:$0xff]   ;;  %v3328_v34 = vld [vmem:[%s4956_s1 + $0x4a0] ss:$16 sps:$4 sm:$0xff]  }
  0x27   :  { %1670 = vmatpush2.bf16.msra.mxu0 %v3276_v41  ;;  %v3333_v33 = vld [vmem:[%s4956_s1 + $0x6a4] ss:$16 sps:$4 sm:$0xff]   ;;  %v3331_v35 = vld [vmem:[%s4956_s1 + $0x6a0] ss:$16 sps:$4 sm:$0xff]  }
  0x28   :  { %1711 = vmatpush2.bf16.msra.mxu1 %v3277_v44  ;;  %1671 = vmatprep.subr.bf16.mxu0 %v3278_v45  ;;  %v3336_v36 = vld [vmem:[%s4956_s1 + $0x484] ss:$16 sps:$4 sm:$0xff]   ;;  %v3334_v38 = vld [vmem:[%s4956_s1 + $0x480] ss:$16 sps:$4 sm:$0xff]  }
  0x29   :  { %1712 = vmatprep.subr.bf16.mxu1 %v3280_v46  ;;  %v3339_v37 = vld [vmem:[%s4956_s1 + $0x684] ss:$16 sps:$4 sm:$0xff]   ;;  %v3337_v39 = vld [vmem:[%s4956_s1 + $0x680] ss:$16 sps:$4 sm:$0xff]  }
  0x2a   :  { %v3342_v40 = vld [vmem:[%s4956_s1 + $0x464] ss:$16 sps:$4 sm:$0xff]   ;;  %v3340_v42 = vld [vmem:[%s4956_s1 + $0x460] ss:$16 sps:$4 sm:$0xff]  }
  0x2b   :  { %1672 = vmatpush2.bf16.msra.mxu0 %v3282_v47  ;;  %v3345_v41 = vld [vmem:[%s4956_s1 + $0x664] ss:$16 sps:$4 sm:$0xff]   ;;  %v3343_v44 = vld [vmem:[%s4956_s1 + $0x660] ss:$16 sps:$4 sm:$0xff]  }
  0x2c   :  { %1713 = vmatpush2.bf16.msra.mxu1 %v3283_v48  ;;  %1673 = vmatprep.subr.bf16.mxu0 %v3284_v50  ;;  %v3348_v45 = vld [vmem:[%s4956_s1 + $0x444] ss:$16 sps:$4 sm:$0xff]   ;;  %v3346_v47 = vld [vmem:[%s4956_s1 + $0x440] ss:$16 sps:$4 sm:$0xff]  }
  0x2d   :  { %1714 = vmatprep.subr.bf16.mxu1 %v3286_v51  ;;  %v3351_v46 = vld [vmem:[%s4956_s1 + $0x644] ss:$16 sps:$4 sm:$0xff]   ;;  %v3349_v48 = vld [vmem:[%s4956_s1 + $0x640] ss:$16 sps:$4 sm:$0xff]  }
  0x2e   :  { %v3354_v49 = vld [vmem:[%s4956_s1 + $0x424] ss:$16 sps:$4 sm:$0xff]   ;;  %v3352_v51 = vld [vmem:[%s4956_s1 + $0x420] ss:$16 sps:$4 sm:$0xff]  }
  0x2f   :  { %1674 = vmatpush2.bf16.msra.mxu0 %v3288_v55  ;;  %v3357_v50 = vld [vmem:[%s4956_s1 + $0x624] ss:$16 sps:$4 sm:$0xff]   ;;  %v3355_v52 = vld [vmem:[%s4956_s1 + $0x620] ss:$16 sps:$4 sm:$0xff]  }
  0x30   :  { %1715 = vmatpush2.bf16.msra.mxu1 %v3289_v56  ;;  %1675 = vmatprep.subr.bf16.mxu0 %v3290_v57  ;;  %v3360_v53 = vld [vmem:[%s4956_s1 + $0x404] ss:$16 sps:$4 sm:$0xff]   ;;  %v3358_v55 = vld [vmem:[%s4956_s1 + $0x400] ss:$16 sps:$4 sm:$0xff]  }
  0x31   :  { %1716 = vmatprep.subr.bf16.mxu1 %v3292_v58  ;;  %v3363_v54 = vld [vmem:[%s4956_s1 + $0x604] ss:$16 sps:$4 sm:$0xff]   ;;  %v3361_v56 = vld [vmem:[%s4956_s1 + $0x600] ss:$16 sps:$4 sm:$0xff]  }
  0x32   :  { %v3366_v57 = vld [vmem:[%s4956_s1 + $0x5e4] ss:$16 sps:$4 sm:$0xff]   ;;  %v3364_v59 = vld [vmem:[%s4956_s1 + $0x5e0] ss:$16 sps:$4 sm:$0xff]  }
  0x33   :  { %1676 = vmatpush2.bf16.msra.mxu0 %v3294_v63  ;;  %v3369_v58 = vld [vmem:[%s4956_s1 + $0x7e4] ss:$16 sps:$4 sm:$0xff]   ;;  %v3367_v60 = vld [vmem:[%s4956_s1 + $0x7e0] ss:$16 sps:$4 sm:$0xff]  }
  0x34   :  { %1717 = vmatpush2.bf16.msra.mxu1 %v3295_v0  ;;  %1677 = vmatprep.subr.bf16.mxu0 %v3296_v1  ;;  %v3372_v62 = vld [vmem:[%s4956_s1 + $0x5c4] ss:$16 sps:$4 sm:$0xff]   ;;  %v3370_v0 = vld [vmem:[%s4956_s1 + $0x5c0] ss:$16 sps:$4 sm:$0xff]  }
  0x35   :  { %1718 = vmatprep.subr.bf16.mxu1 %v3298_v2  ;;  %v3375_v63 = vld [vmem:[%s4956_s1 + $0x7c4] ss:$16 sps:$4 sm:$0xff]   ;;  %v3373_v1 = vld [vmem:[%s4956_s1 + $0x7c0] ss:$16 sps:$4 sm:$0xff]  }
  0x36   :  { %v3378_v2 = vld [vmem:[%s4956_s1 + $0x5a4] ss:$16 sps:$4 sm:$0xff]   ;;  %v3382_v9 = vld [vmem:[%s4956_s1 + $0x580] ss:$16 sps:$4 sm:$0xff]  }
  0x37   :  { %1678 = vmatpush2.bf16.msra.mxu0 %v3300_v5  ;;  %v3381_v4 = vld [vmem:[%s4956_s1 + $0x7a4] ss:$16 sps:$4 sm:$0xff]   ;;  %v3376_v5 = vld [vmem:[%s4956_s1 + $0x5a0] ss:$16 sps:$4 sm:$0xff]  }
  0x38   :  { %1719 = vmatpush2.bf16.msra.mxu1 %v3301_v6  ;;  %1679 = vmatprep.subr.bf16.mxu0 %v3302_v7  ;;  %v3379_v6 = vld [vmem:[%s4956_s1 + $0x7a0] ss:$16 sps:$4 sm:$0xff]   ;;  %v3384_v7 = vld [vmem:[%s4956_s1 + $0x584] ss:$16 sps:$4 sm:$0xff]  }
  0x39   :  { %1720 = vmatprep.subr.bf16.mxu1 %v3304_v8  ;;  %v3387_v8 = vld [vmem:[%s4956_s1 + $0x784] ss:$16 sps:$4 sm:$0xff]   ;;  %v3397_v20 = vld [vmem:[%s4956_s1 + $0x740] ss:$16 sps:$4 sm:$0xff]  }
  0x3a   :  { %v3402_v21 = vld [vmem:[%s4956_s1 + $0x524] ss:$16 sps:$4 sm:$0xff]  }
  0x3b   :  { %1680 = vmatpush2.bf16.msra.mxu0 %v3306_v10  ;;  %v3385_v10 = vld [vmem:[%s4956_s1 + $0x780] ss:$16 sps:$4 sm:$0xff]  }
  0x3c   :  { %1721 = vmatpush2.bf16.msra.mxu1 %v3307_v11  ;;  %1681 = vmatprep.subr.bf16.mxu0 %v3308_v12  ;;  %v3390_v11 = vld [vmem:[%s4956_s1 + $0x564] ss:$16 sps:$4 sm:$0xff]  }
  0x3d   :  { %1722 = vmatprep.subr.bf16.mxu1 %v3310_v13  ;;  %v3393_v12 = vld [vmem:[%s4956_s1 + $0x764] ss:$16 sps:$4 sm:$0xff]   ;;  %v3388_v13 = vld [vmem:[%s4956_s1 + $0x560] ss:$16 sps:$4 sm:$0xff]  }
  0x3f   :  { %1682 = vmatpush2.bf16.msra.mxu0 %v3312_v16  ;;  %v3391_v16 = vld [vmem:[%s4956_s1 + $0x760] ss:$16 sps:$4 sm:$0xff]  }
  0x40   :  { %1723 = vmatpush2.bf16.msra.mxu1 %v3313_v17  ;;  %1733 = vmatprep.subr.bf16.mxu0 %v3318_v18  ;;  %v3396_v17 = vld [vmem:[%s4956_s1 + $0x544] ss:$16 sps:$4 sm:$0xff]  }
  0x41   :  { %1774 = vmatprep.subr.bf16.mxu1 %v3321_v19  ;;  %v3399_v18 = vld [vmem:[%s4956_s1 + $0x744] ss:$16 sps:$4 sm:$0xff]   ;;  %v3394_v19 = vld [vmem:[%s4956_s1 + $0x540] ss:$16 sps:$4 sm:$0xff]  }
  0x42   :  { %1684 = vmatmul.mubr.bf16.vlgmr.msra.gmra.mxu0 %v4010_v22 }
  0x43   :  { %1725 = vmatmul.mubr.bf16.vlgmr.msra.gmra.mxu1 %v4012_v23  ;;  %1734 = vmatpush1.bf16.msra.mxu0 %v3316_v24  ;;  %v3405_v24 = vld [vmem:[%s4956_s1 + $0x724] ss:$16 sps:$4 sm:$0xff]  }
  0x44   :  { %1775 = vmatpush1.bf16.msra.mxu1 %v3319_v25  ;;  %1735 = vmatprep.subr.bf16.mxu0 %v3324_v26  ;;  %v3400_v25 = vld [vmem:[%s4956_s1 + $0x520] ss:$16 sps:$4 sm:$0xff]  }
  0x45   :  { %1776 = vmatprep.subr.bf16.mxu1 %v3327_v27  ;;  %1765 = vmatprep.mubr.bf16.mxu0 %v4026_v28  ;;  %v3403_v26 = vld [vmem:[%s4956_s1 + $0x720] ss:$16 sps:$4 sm:$0xff]   ;;  %v3408_v27 = vld [vmem:[%s4956_s1 + $0x504] ss:$16 sps:$4 sm:$0xff]  }
  0x46   :  { %1806 = vmatprep.mubr.bf16.mxu1 %v4028_v29 }
  0x47   :  { %1736 = vmatpush1.bf16.msra.mxu0 %v3322_v30  ;;  %v3411_v30 = vld [vmem:[%s4956_s1 + $0x704] ss:$16 sps:$4 sm:$0xff]  }
  0x48   :  { %1777 = vmatpush1.bf16.msra.mxu1 %v3325_v31  ;;  %1737 = vmatprep.subr.bf16.mxu0 %v3330_v32  ;;  %v3406_v31 = vld [vmem:[%s4956_s1 + $0x500] ss:$16 sps:$4 sm:$0xff]  }
  0x49   :  { %1778 = vmatprep.subr.bf16.mxu1 %v3333_v33  ;;  %v3409_v32 = vld [vmem:[%s4956_s1 + $0x700] ss:$16 sps:$4 sm:$0xff]   ;;  %v3414_v33 = vld [vmem:[%s4956_s1 + $0xec] ss:$16 sps:$4 sm:$0xff]  }
  0x4b   :  { %1738 = vmatpush1.bf16.msra.mxu0 %v3328_v34  ;;  %v3417_v34 = vld [vmem:[%s4956_s1 + $0x2ec] ss:$16 sps:$4 sm:$0xff]  }
  0x4c   :  { %1779 = vmatpush1.bf16.msra.mxu1 %v3331_v35  ;;  %1739 = vmatprep.subr.bf16.mxu0 %v3336_v36  ;;  %v4216_v35 = vpack.c.bf16 %v3990_v14, %v3990_v14  ;;  %v4220_v36 = vpack.c.bf16 %v3992_v15, %v3992_v15  ;;  %v3420_v14 = vld [vmem:[%s4956_s1 + $0xcc] ss:$16 sps:$4 sm:$0xff]  }
  0x4d   :  { %1780 = vmatprep.subr.bf16.mxu1 %v3339_v37  ;;  %v3412_v37 = vld [vmem:[%s4956_s1 + $0xe8] ss:$16 sps:$4 sm:$0xff]   ;;  %v3423_v15 = vld [vmem:[%s4956_s1 + $0x2cc] ss:$16 sps:$4 sm:$0xff]  }
  0x4f   :  { %1740 = vmatpush1.bf16.msra.mxu0 %v3334_v38  ;;  %v3415_v38 = vld [vmem:[%s4956_s1 + $0x2e8] ss:$16 sps:$4 sm:$0xff]  }
  0x50   :  { %1781 = vmatpush1.bf16.msra.mxu1 %v3337_v39  ;;  %1741 = vmatprep.subr.bf16.mxu0 %v3342_v40  ;;  %v3418_v39 = vld [vmem:[%s4956_s1 + $0xc8] ss:$16 sps:$4 sm:$0xff]  }
  0x51   :  { %1782 = vmatprep.subr.bf16.mxu1 %v3345_v41  ;;  %v3421_v40 = vld [vmem:[%s4956_s1 + $0x2c8] ss:$16 sps:$4 sm:$0xff]   ;;  %v3426_v41 = vld [vmem:[%s4956_s1 + $0xac] ss:$16 sps:$4 sm:$0xff]  }
  0x53   :  { %1742 = vmatpush1.bf16.msra.mxu0 %v3340_v42  ;;  %v3429_v42 = vld [vmem:[%s4956_s1 + $0x2ac] ss:$16 sps:$4 sm:$0xff]  }
  0x54   :  { %1783 = vmatpush1.bf16.msra.mxu1 %v3343_v44  ;;  %1743 = vmatprep.subr.bf16.mxu0 %v3348_v45  ;;  %v3424_v44 = vld [vmem:[%s4956_s1 + $0xa8] ss:$16 sps:$4 sm:$0xff]  }
  0x55   :  { %1784 = vmatprep.subr.bf16.mxu1 %v3351_v46  ;;  %v3427_v45 = vld [vmem:[%s4956_s1 + $0x2a8] ss:$16 sps:$4 sm:$0xff]   ;;  %v3432_v46 = vld [vmem:[%s4956_s1 + $0x8c] ss:$16 sps:$4 sm:$0xff]  }
  0x57   :  { %1744 = vmatpush1.bf16.msra.mxu0 %v3346_v47  ;;  %v3433_v47 = vld [vmem:[%s4956_s1 + $0x288] ss:$16 sps:$4 sm:$0xff]  }
  0x58   :  { %1785 = vmatpush1.bf16.msra.mxu1 %v3349_v48  ;;  %1745 = vmatprep.subr.bf16.mxu0 %v3354_v49  ;;  %v3438_v48 = vld [vmem:[%s4956_s1 + $0x6c] ss:$16 sps:$4 sm:$0xff]  }
  0x59   :  { %1786 = vmatprep.subr.bf16.mxu1 %v3357_v50  ;;  %v3441_v49 = vld [vmem:[%s4956_s1 + $0x26c] ss:$16 sps:$4 sm:$0xff]   ;;  %v3436_v50 = vld [vmem:[%s4956_s1 + $0x68] ss:$16 sps:$4 sm:$0xff]  }
  0x5b   :  { %1746 = vmatpush1.bf16.msra.mxu0 %v3352_v51  ;;  %v3439_v51 = vld [vmem:[%s4956_s1 + $0x268] ss:$16 sps:$4 sm:$0xff]  }
  0x5c   :  { %1787 = vmatpush1.bf16.msra.mxu1 %v3355_v52  ;;  %1747 = vmatprep.subr.bf16.mxu0 %v3360_v53  ;;  %v3444_v52 = vld [vmem:[%s4956_s1 + $0x4c] ss:$16 sps:$4 sm:$0xff]  }
  0x5d   :  { %1788 = vmatprep.subr.bf16.mxu1 %v3363_v54  ;;  %v3447_v53 = vld [vmem:[%s4956_s1 + $0x24c] ss:$16 sps:$4 sm:$0xff]   ;;  %v3442_v54 = vld [vmem:[%s4956_s1 + $0x48] ss:$16 sps:$4 sm:$0xff]  }
  0x5f   :  { %1748 = vmatpush1.bf16.msra.mxu0 %v3358_v55  ;;  %v3445_v55 = vld [vmem:[%s4956_s1 + $0x248] ss:$16 sps:$4 sm:$0xff]  }
  0x60   :  { %1789 = vmatpush1.bf16.msra.mxu1 %v3361_v56  ;;  %1749 = vmatprep.subr.bf16.mxu0 %v3366_v57  ;;  %v3450_v56 = vld [vmem:[%s4956_s1 + $0x2c] ss:$16 sps:$4 sm:$0xff]  }
  0x61   :  { %1790 = vmatprep.subr.bf16.mxu1 %v3369_v58  ;;  %v3453_v57 = vld [vmem:[%s4956_s1 + $0x22c] ss:$16 sps:$4 sm:$0xff]   ;;  %v3448_v58 = vld [vmem:[%s4956_s1 + $0x28] ss:$16 sps:$4 sm:$0xff]  }
  0x63   :  { %1750 = vmatpush2.bf16.msra.mxu0 %v3364_v59  ;;  %v3451_v59 = vld [vmem:[%s4956_s1 + $0x228] ss:$16 sps:$4 sm:$0xff]  }
  0x64   :  { %1791 = vmatpush2.bf16.msra.mxu1 %v3367_v60  ;;  %1751 = vmatprep.subr.bf16.mxu0 %v3372_v62  ;;  %v3456_v60 = vld [vmem:[%s4956_s1 + $0xc] ss:$16 sps:$4 sm:$0xff]  }
  0x65   :  { %1792 = vmatprep.subr.bf16.mxu1 %v3375_v63  ;;  %v3459_v62 = vld [vmem:[%s4956_s1 + $0x20c] ss:$16 sps:$4 sm:$0xff]   ;;  %v3454_v63 = vld [vmem:[%s4956_s1 + $0x8] ss:$16 sps:$4 sm:$0xff]  }
  0x67   :  { %1752 = vmatpush2.bf16.msra.mxu0 %v3370_v0  ;;  %v3457_v0 = vld [vmem:[%s4956_s1 + $0x208] ss:$16 sps:$4 sm:$0xff]  }
  0x68   :  { %1793 = vmatpush2.bf16.msra.mxu1 %v3373_v1  ;;  %1753 = vmatprep.subr.bf16.mxu0 %v3378_v2  ;;  %v3462_v1 = vld [vmem:[%s4956_s1 + $0x1ec] ss:$16 sps:$4 sm:$0xff]  }
  0x69   :  { %1794 = vmatprep.subr.bf16.mxu1 %v3381_v4  ;;  %v3465_v2 = vld [vmem:[%s4956_s1 + $0x3ec] ss:$16 sps:$4 sm:$0xff]   ;;  %v3460_v4 = vld [vmem:[%s4956_s1 + $0x1e8] ss:$16 sps:$4 sm:$0xff]  }
  0x6b   :  { %1754 = vmatpush2.bf16.msra.mxu0 %v3376_v5  ;;  %v3463_v5 = vld [vmem:[%s4956_s1 + $0x3e8] ss:$16 sps:$4 sm:$0xff]  }
  0x6c   :  { %1795 = vmatpush2.bf16.msra.mxu1 %v3379_v6  ;;  %1755 = vmatprep.subr.bf16.mxu0 %v3384_v7  ;;  %v3468_v6 = vld [vmem:[%s4956_s1 + $0x1cc] ss:$16 sps:$4 sm:$0xff]  }
  0x6d   :  { %1796 = vmatprep.subr.bf16.mxu1 %v3387_v8  ;;  %v3471_v7 = vld [vmem:[%s4956_s1 + $0x3cc] ss:$16 sps:$4 sm:$0xff]   ;;  %v3466_v8 = vld [vmem:[%s4956_s1 + $0x1c8] ss:$16 sps:$4 sm:$0xff]  }
  0x6f   :  { %1756 = vmatpush2.bf16.msra.mxu0 %v3382_v9  ;;  %v3469_v9 = vld [vmem:[%s4956_s1 + $0x3c8] ss:$16 sps:$4 sm:$0xff]  }
  0x70   :  { %1797 = vmatpush2.bf16.msra.mxu1 %v3385_v10  ;;  %1757 = vmatprep.subr.bf16.mxu0 %v3390_v11  ;;  %v3474_v10 = vld [vmem:[%s4956_s1 + $0x1ac] ss:$16 sps:$4 sm:$0xff]  }
  0x71   :  { %1798 = vmatprep.subr.bf16.mxu1 %v3393_v12  ;;  %v3477_v11 = vld [vmem:[%s4956_s1 + $0x3ac] ss:$16 sps:$4 sm:$0xff]   ;;  %v3472_v12 = vld [vmem:[%s4956_s1 + $0x1a8] ss:$16 sps:$4 sm:$0xff]  }
  0x73   :  { %1758 = vmatpush2.bf16.msra.mxu0 %v3388_v13  ;;  %v3475_v13 = vld [vmem:[%s4956_s1 + $0x3a8] ss:$16 sps:$4 sm:$0xff]  }
  0x74   :  { %1799 = vmatpush2.bf16.msra.mxu1 %v3391_v16  ;;  %1759 = vmatprep.subr.bf16.mxu0 %v3396_v17  ;;  %v3480_v16 = vld [vmem:[%s4956_s1 + $0x18c] ss:$16 sps:$4 sm:$0xff]  }
  0x75   :  { %1800 = vmatprep.subr.bf16.mxu1 %v3399_v18  ;;  %v3483_v17 = vld [vmem:[%s4956_s1 + $0x38c] ss:$16 sps:$4 sm:$0xff]   ;;  %v3478_v18 = vld [vmem:[%s4956_s1 + $0x188] ss:$16 sps:$4 sm:$0xff]  }
  0x77   :  { %1760 = vmatpush2.bf16.msra.mxu0 %v3394_v19  ;;  %v3481_v19 = vld [vmem:[%s4956_s1 + $0x388] ss:$16 sps:$4 sm:$0xff]  }
  0x78   :  { %1801 = vmatpush2.bf16.msra.mxu1 %v3397_v20  ;;  %1761 = vmatprep.subr.bf16.mxu0 %v3402_v21  ;;  %v3486_v20 = vld [vmem:[%s4956_s1 + $0x16c] ss:$16 sps:$4 sm:$0xff]  }
  0x79   :  { %1802 = vmatprep.subr.bf16.mxu1 %v3405_v24  ;;  %v3489_v21 = vld [vmem:[%s4956_s1 + $0x36c] ss:$16 sps:$4 sm:$0xff]   ;;  %v3484_v24 = vld [vmem:[%s4956_s1 + $0x168] ss:$16 sps:$4 sm:$0xff]  }
  0x7b   :  { %1762 = vmatpush2.bf16.msra.mxu0 %v3400_v25  ;;  %v3487_v25 = vld [vmem:[%s4956_s1 + $0x368] ss:$16 sps:$4 sm:$0xff]  }
  0x7c   :  { %1803 = vmatpush2.bf16.msra.mxu1 %v3403_v26  ;;  %1763 = vmatprep.subr.bf16.mxu0 %v3408_v27  ;;  %v3492_v26 = vld [vmem:[%s4956_s1 + $0x14c] ss:$16 sps:$4 sm:$0xff]  }
  0x7d   :  { %1804 = vmatprep.subr.bf16.mxu1 %v3411_v30  ;;  %v3495_v27 = vld [vmem:[%s4956_s1 + $0x34c] ss:$16 sps:$4 sm:$0xff]   ;;  %v3490_v30 = vld [vmem:[%s4956_s1 + $0x148] ss:$16 sps:$4 sm:$0xff]  }
  0x7f   :  { %1764 = vmatpush2.bf16.msra.mxu0 %v3406_v31  ;;  %v3493_v31 = vld [vmem:[%s4956_s1 + $0x348] ss:$16 sps:$4 sm:$0xff]  }
  0x80   :  { %1805 = vmatpush2.bf16.msra.mxu1 %v3409_v32  ;;  %1815 = vmatprep.subr.bf16.mxu0 %v3414_v33  ;;  %v3498_v32 = vld [vmem:[%s4956_s1 + $0x12c] ss:$16 sps:$4 sm:$0xff]  }
  0x81   :  { %1856 = vmatprep.subr.bf16.mxu1 %v3417_v34  ;;  %v3501_v33 = vld [vmem:[%s4956_s1 + $0x32c] ss:$16 sps:$4 sm:$0xff]   ;;  %v3496_v34 = vld [vmem:[%s4956_s1 + $0x128] ss:$16 sps:$4 sm:$0xff]  }
  0x82   :  { %1766 = vmatmul.mubr.bf16.vlgmr.msra.gmra.mxu0 %v4216_v35 }
  0x83   :  { %1807 = vmatmul.mubr.bf16.vlgmr.msra.gmra.mxu1 %v4220_v36  ;;  %1816 = vmatpush1.bf16.msra.mxu0 %v3412_v37  ;;  %v3499_v37 = vld [vmem:[%s4956_s1 + $0x328] ss:$16 sps:$4 sm:$0xff]  }
  0x84   :  { %1857 = vmatpush1.bf16.msra.mxu1 %v3415_v38  ;;  %1817 = vmatprep.subr.bf16.mxu0 %v3420_v14  ;;  %v3504_v38 = vld [vmem:[%s4956_s1 + $0x10c] ss:$16 sps:$4 sm:$0xff]  }
  0x85   :  { %1858 = vmatprep.subr.bf16.mxu1 %v3423_v15  ;;  %1847 = vmatprep.mubr.bf16.mxu0 %v3945_v61  ;;  %v3435_v61 = vld [vmem:[%s4956_s1 + $0x28c] ss:$16 sps:$4 sm:$0xff]   ;;  %v3502_v15 = vld [vmem:[%s4956_s1 + $0x108] ss:$16 sps:$4 sm:$0xff]  }
  0x86   :  { %1888 = vmatprep.mubr.bf16.mxu1 %v3959_v3  ;;  %v3430_v3 = vld [vmem:[%s4956_s1 + $0x88] ss:$16 sps:$4 sm:$0xff]   ;;  %v3507_v14 = vld [vmem:[%s4956_s1 + $0x30c] ss:$16 sps:$4 sm:$0xff]  }
  0x87   :  { %1818 = vmatpush1.bf16.msra.mxu0 %v3418_v39  ;;  %v3505_v39 = vld [vmem:[%s4956_s1 + $0x308] ss:$16 sps:$4 sm:$0xff]  }
  0x88   :  { %1859 = vmatpush1.bf16.msra.mxu1 %v3421_v40  ;;  %1819 = vmatprep.subr.bf16.mxu0 %v3426_v41  ;;  %v3510_v40 = vld [vmem:[%s4956_s1 + $0x4ec] ss:$16 sps:$4 sm:$0xff]  }
  0x89   :  { %1860 = vmatprep.subr.bf16.mxu1 %v3429_v42  ;;  %v3513_v41 = vld [vmem:[%s4956_s1 + $0x6ec] ss:$16 sps:$4 sm:$0xff]   ;;  %v3508_v42 = vld [vmem:[%s4956_s1 + $0x4e8] ss:$16 sps:$4 sm:$0xff]  }
  0x8b   :  { %1820 = vmatpush1.bf16.msra.mxu0 %v3424_v44  ;;  %v3511_v44 = vld [vmem:[%s4956_s1 + $0x6e8] ss:$16 sps:$4 sm:$0xff]  }
  0x8c   :  { %1861 = vmatpush1.bf16.msra.mxu1 %v3427_v45  ;;  %1821 = vmatprep.subr.bf16.mxu0 %v3432_v46  ;;  %v3516_v45 = vld [vmem:[%s4956_s1 + $0x4cc] ss:$16 sps:$4 sm:$0xff]  }
  0x8d   :  { %1862 = vmatprep.subr.bf16.mxu1 %v3435_v61  ;;  %v3519_v46 = vld [vmem:[%s4956_s1 + $0x6cc] ss:$16 sps:$4 sm:$0xff]   ;;  %v3514_v61 = vld [vmem:[%s4956_s1 + $0x4c8] ss:$16 sps:$4 sm:$0xff]  }
  0x8f   :  { %1822 = vmatpush1.bf16.msra.mxu0 %v3430_v3  ;;  %v3517_v3 = vld [vmem:[%s4956_s1 + $0x6c8] ss:$16 sps:$4 sm:$0xff]  }
  0x90   :  { %1863 = vmatpush1.bf16.msra.mxu1 %v3433_v47  ;;  %1823 = vmatprep.subr.bf16.mxu0 %v3438_v48  ;;  %v3522_v47 = vld [vmem:[%s4956_s1 + $0x4ac] ss:$16 sps:$4 sm:$0xff]   ;;  %v3523_v48 = vld [vmem:[%s4956_s1 + $0x6a8] ss:$16 sps:$4 sm:$0xff]  }
  0x91   :  { %1864 = vmatprep.subr.bf16.mxu1 %v3441_v49  ;;  %v3528_v49 = vld [vmem:[%s4956_s1 + $0x48c] ss:$16 sps:$4 sm:$0xff]  }
  0x93   :  { %1824 = vmatpush1.bf16.msra.mxu0 %v3436_v50  ;;  %v3531_v50 = vld [vmem:[%s4956_s1 + $0x68c] ss:$16 sps:$4 sm:$0xff]  }
  0x94   :  { %1865 = vmatpush1.bf16.msra.mxu1 %v3439_v51  ;;  %1825 = vmatprep.subr.bf16.mxu0 %v3444_v52  ;;  %v3526_v51 = vld [vmem:[%s4956_s1 + $0x488] ss:$16 sps:$4 sm:$0xff]   ;;  %v3537_v52 = vld [vmem:[%s4956_s1 + $0x66c] ss:$16 sps:$4 sm:$0xff]  }
  0x95   :  { %1866 = vmatprep.subr.bf16.mxu1 %v3447_v53  ;;  %v3532_v53 = vld [vmem:[%s4956_s1 + $0x468] ss:$16 sps:$4 sm:$0xff]  }
  0x97   :  { %1826 = vmatpush1.bf16.msra.mxu0 %v3442_v54  ;;  %v3535_v54 = vld [vmem:[%s4956_s1 + $0x668] ss:$16 sps:$4 sm:$0xff]  }
  0x98   :  { %1867 = vmatpush1.bf16.msra.mxu1 %v3445_v55  ;;  %1827 = vmatprep.subr.bf16.mxu0 %v3450_v56  ;;  %v3540_v55 = vld [vmem:[%s4956_s1 + $0x44c] ss:$16 sps:$4 sm:$0xff]  }
  0x99   :  { %1868 = vmatprep.subr.bf16.mxu1 %v3453_v57  ;;  %v3543_v56 = vld [vmem:[%s4956_s1 + $0x64c] ss:$16 sps:$4 sm:$0xff]   ;;  %v3538_v57 = vld [vmem:[%s4956_s1 + $0x448] ss:$16 sps:$4 sm:$0xff]  }
  0x9b   :  { %1828 = vmatpush1.bf16.msra.mxu0 %v3448_v58  ;;  %v3541_v58 = vld [vmem:[%s4956_s1 + $0x648] ss:$16 sps:$4 sm:$0xff]  }
  0x9c   :  { %1869 = vmatpush1.bf16.msra.mxu1 %v3451_v59  ;;  %1829 = vmatprep.subr.bf16.mxu0 %v3456_v60  ;;  %v3546_v59 = vld [vmem:[%s4956_s1 + $0x42c] ss:$16 sps:$4 sm:$0xff]  }
  0x9d   :  { %1870 = vmatprep.subr.bf16.mxu1 %v3459_v62  ;;  %v3549_v60 = vld [vmem:[%s4956_s1 + $0x62c] ss:$16 sps:$4 sm:$0xff]   ;;  %v3544_v62 = vld [vmem:[%s4956_s1 + $0x428] ss:$16 sps:$4 sm:$0xff]  }
  0x9f   :  { %1830 = vmatpush1.bf16.msra.mxu0 %v3454_v63  ;;  %v3547_v63 = vld [vmem:[%s4956_s1 + $0x628] ss:$16 sps:$4 sm:$0xff]  }
  0xa0   :  { %1871 = vmatpush1.bf16.msra.mxu1 %v3457_v0  ;;  %1831 = vmatprep.subr.bf16.mxu0 %v3462_v1  ;;  %v3552_v0 = vld [vmem:[%s4956_s1 + $0x40c] ss:$16 sps:$4 sm:$0xff]  }
  0xa1   :  { %1872 = vmatprep.subr.bf16.mxu1 %v3465_v2  ;;  %v3555_v1 = vld [vmem:[%s4956_s1 + $0x60c] ss:$16 sps:$4 sm:$0xff]   ;;  %v3550_v2 = vld [vmem:[%s4956_s1 + $0x408] ss:$16 sps:$4 sm:$0xff]  }
  0xa3   :  { %1832 = vmatpush2.bf16.msra.mxu0 %v3460_v4  ;;  %v3553_v4 = vld [vmem:[%s4956_s1 + $0x608] ss:$16 sps:$4 sm:$0xff]  }
  0xa4   :  { %1873 = vmatpush2.bf16.msra.mxu1 %v3463_v5  ;;  %1833 = vmatprep.subr.bf16.mxu0 %v3468_v6  ;;  %v3558_v5 = vld [vmem:[%s4956_s1 + $0x5ec] ss:$16 sps:$4 sm:$0xff]  }
  0xa5   :  { %1874 = vmatprep.subr.bf16.mxu1 %v3471_v7  ;;  %v3561_v6 = vld [vmem:[%s4956_s1 + $0x7ec] ss:$16 sps:$4 sm:$0xff]   ;;  %v3556_v7 = vld [vmem:[%s4956_s1 + $0x5e8] ss:$16 sps:$4 sm:$0xff]  }
  0xa7   :  { %1834 = vmatpush2.bf16.msra.mxu0 %v3466_v8  ;;  %v3559_v8 = vld [vmem:[%s4956_s1 + $0x7e8] ss:$16 sps:$4 sm:$0xff]  }
  0xa8   :  { %1875 = vmatpush2.bf16.msra.mxu1 %v3469_v9  ;;  %1835 = vmatprep.subr.bf16.mxu0 %v3474_v10  ;;  %v3564_v9 = vld [vmem:[%s4956_s1 + $0x5cc] ss:$16 sps:$4 sm:$0xff]  }
  0xa9   :  { %1876 = vmatprep.subr.bf16.mxu1 %v3477_v11  ;;  %v3567_v10 = vld [vmem:[%s4956_s1 + $0x7cc] ss:$16 sps:$4 sm:$0xff]   ;;  %v3562_v11 = vld [vmem:[%s4956_s1 + $0x5c8] ss:$16 sps:$4 sm:$0xff]  }
  0xab   :  { %1836 = vmatpush2.bf16.msra.mxu0 %v3472_v12  ;;  %v3565_v12 = vld [vmem:[%s4956_s1 + $0x7c8] ss:$16 sps:$4 sm:$0xff]  }
  0xac   :  { %1877 = vmatpush2.bf16.msra.mxu1 %v3475_v13  ;;  %1837 = vmatprep.subr.bf16.mxu0 %v3480_v16  ;;  %v3570_v13 = vld [vmem:[%s4956_s1 + $0x5ac] ss:$16 sps:$4 sm:$0xff]  }
  0xad   :  { %1878 = vmatprep.subr.bf16.mxu1 %v3483_v17  ;;  %v3573_v16 = vld [vmem:[%s4956_s1 + $0x7ac] ss:$16 sps:$4 sm:$0xff]   ;;  %v3568_v17 = vld [vmem:[%s4956_s1 + $0x5a8] ss:$16 sps:$4 sm:$0xff]  }
  0xaf   :  { %1838 = vmatpush2.bf16.msra.mxu0 %v3478_v18  ;;  %v3571_v18 = vld [vmem:[%s4956_s1 + $0x7a8] ss:$16 sps:$4 sm:$0xff]  }
  0xb0   :  { %1879 = vmatpush2.bf16.msra.mxu1 %v3481_v19  ;;  %1839 = vmatprep.subr.bf16.mxu0 %v3486_v20  ;;  %v3576_v19 = vld [vmem:[%s4956_s1 + $0x58c] ss:$16 sps:$4 sm:$0xff]  }
  0xb1   :  { %1880 = vmatprep.subr.bf16.mxu1 %v3489_v21  ;;  %v3579_v20 = vld [vmem:[%s4956_s1 + $0x78c] ss:$16 sps:$4 sm:$0xff]   ;;  %v3574_v21 = vld [vmem:[%s4956_s1 + $0x588] ss:$16 sps:$4 sm:$0xff]  }
  0xb3   :  { %1840 = vmatpush2.bf16.msra.mxu0 %v3484_v24  ;;  %v3577_v24 = vld [vmem:[%s4956_s1 + $0x788] ss:$16 sps:$4 sm:$0xff]  }
  0xb4   :  { %1881 = vmatpush2.bf16.msra.mxu1 %v3487_v25  ;;  %1841 = vmatprep.subr.bf16.mxu0 %v3492_v26  ;;  %v3582_v25 = vld [vmem:[%s4956_s1 + $0x56c] ss:$16 sps:$4 sm:$0xff]  }
  0xb5   :  { %1882 = vmatprep.subr.bf16.mxu1 %v3495_v27  ;;  %v3585_v26 = vld [vmem:[%s4956_s1 + $0x76c] ss:$16 sps:$4 sm:$0xff]   ;;  %v3580_v27 = vld [vmem:[%s4956_s1 + $0x568] ss:$16 sps:$4 sm:$0xff]  }
  0xb7   :  { %1842 = vmatpush2.bf16.msra.mxu0 %v3490_v30  ;;  %v3583_v30 = vld [vmem:[%s4956_s1 + $0x768] ss:$16 sps:$4 sm:$0xff]  }
  0xb8   :  { %1883 = vmatpush2.bf16.msra.mxu1 %v3493_v31  ;;  %1843 = vmatprep.subr.bf16.mxu0 %v3498_v32  ;;  %v3588_v31 = vld [vmem:[%s4956_s1 + $0x54c] ss:$16 sps:$4 sm:$0xff]  }
  0xb9   :  { %1884 = vmatprep.subr.bf16.mxu1 %v3501_v33  ;;  %v3591_v32 = vld [vmem:[%s4956_s1 + $0x74c] ss:$16 sps:$4 sm:$0xff]   ;;  %v3586_v33 = vld [vmem:[%s4956_s1 + $0x548] ss:$16 sps:$4 sm:$0xff]  }
  0xbb   :  { %1844 = vmatpush2.bf16.msra.mxu0 %v3496_v34  ;;  %v3589_v34 = vld [vmem:[%s4956_s1 + $0x748] ss:$16 sps:$4 sm:$0xff]  }
  0xbc   :  { %1885 = vmatpush2.bf16.msra.mxu1 %v3499_v37  ;;  %1845 = vmatprep.subr.bf16.mxu0 %v3504_v38  ;;  %v3594_v37 = vld [vmem:[%s4956_s1 + $0x52c] ss:$16 sps:$4 sm:$0xff]  }
  0xbd   :  { %1886 = vmatprep.subr.bf16.mxu1 %v3507_v14  ;;  %v3597_v38 = vld [vmem:[%s4956_s1 + $0x72c] ss:$16 sps:$4 sm:$0xff]   ;;  %v3592_v14 = vld [vmem:[%s4956_s1 + $0x528] ss:$16 sps:$4 sm:$0xff]  }
  0xbf   :  { %1846 = vmatpush2.bf16.msra.mxu0 %v3502_v15  ;;  %v3595_v15 = vld [vmem:[%s4956_s1 + $0x728] ss:$16 sps:$4 sm:$0xff]  }
  0xc0   :  { %1887 = vmatpush2.bf16.msra.mxu1 %v3505_v39  ;;  %1897 = vmatprep.subr.bf16.mxu0 %v3510_v40  ;;  %v3600_v39 = vld [vmem:[%s4956_s1 + $0x50c] ss:$16 sps:$4 sm:$0xff]  }
  0xc1   :  { %1938 = vmatprep.subr.bf16.mxu1 %v3513_v41  ;;  %v3603_v40 = vld [vmem:[%s4956_s1 + $0x70c] ss:$16 sps:$4 sm:$0xff]   ;;  %v3598_v41 = vld [vmem:[%s4956_s1 + $0x508] ss:$16 sps:$4 sm:$0xff]  }
  0xc2   :  { %1848 = vmatmul.mubr.bf16.vlgmr.msra.gmra.mxu0 %v4010_v22  ;;  %v3525_v22 = vld [vmem:[%s4956_s1 + $0x6ac] ss:$16 sps:$4 sm:$0xff]  }
  0xc3   :  { %1889 = vmatmul.mubr.bf16.vlgmr.msra.gmra.mxu1 %v4012_v23  ;;  %1898 = vmatpush1.bf16.msra.mxu0 %v3508_v42  ;;  %v3520_v23 = vld [vmem:[%s4956_s1 + $0x4a8] ss:$16 sps:$4 sm:$0xff]  }
  0xc4   :  { %1939 = vmatpush1.bf16.msra.mxu1 %v3511_v44  ;;  %1899 = vmatprep.subr.bf16.mxu0 %v3516_v45  ;;  %v3601_v42 = vld [vmem:[%s4956_s1 + $0x708] ss:$16 sps:$4 sm:$0xff]   ;;  %v3606_v44 = vld [vmem:[%s4958_s5 + $0x74] ss:$8 sps:$4 sm:$0xff]  }
  0xc5   :  { %1940 = vmatprep.subr.bf16.mxu1 %v3519_v46  ;;  %1929 = vmatprep.mubr.bf16.mxu0 %v4026_v28  ;;  %v3529_v28 = vld [vmem:[%s4956_s1 + $0x688] ss:$16 sps:$4 sm:$0xff]   ;;  %v3609_v46 = vld [vmem:[%s4958_s5 + $0x64] ss:$8 sps:$4 sm:$0xff]  }
  0xc6   :  { %1970 = vmatprep.mubr.bf16.mxu1 %v4028_v29  ;;  %v3534_v29 = vld [vmem:[%s4956_s1 + $0x46c] ss:$16 sps:$4 sm:$0xff]   ;;  %v3604_v45 = vld [vmem:[%s4958_s5 + $0x70] ss:$8 sps:$4 sm:$0xff]  }
  0xc7   :  { %1900 = vmatpush1.bf16.msra.mxu0 %v3514_v61 }
  0xc8   :  { %1941 = vmatpush1.bf16.msra.mxu1 %v3517_v3  ;;  %1901 = vmatprep.subr.bf16.mxu0 %v3522_v47  ;;  %v3607_v47 = vld [vmem:[%s4958_s5 + $0x60] ss:$8 sps:$4 sm:$0xff]  }
  0xc9   :  { %1942 = vmatprep.subr.bf16.mxu1 %v3525_v22 }
  0xcb   :  { %1902 = vmatpush1.bf16.msra.mxu0 %v3520_v23 }
  0xcc   :  { %1943 = vmatpush1.bf16.msra.mxu1 %v3523_v48  ;;  %1903 = vmatprep.subr.bf16.mxu0 %v3528_v49  ;;  %v3612_v48 = vld [vmem:[%s4958_s5 + $0x54] ss:$8 sps:$4 sm:$0xff]  }
  0xcd   :  { %1944 = vmatprep.subr.bf16.mxu1 %v3531_v50 }
  0xcf   :  { %1904 = vmatpush1.bf16.msra.mxu0 %v3526_v51 }
  0xd0   :  { %1945 = vmatpush1.bf16.msra.mxu1 %v3529_v28  ;;  %1905 = vmatprep.subr.bf16.mxu0 %v3534_v29  ;;  %v3615_v28 = vld [vmem:[%s4958_s5 + $0x44] ss:$8 sps:$4 sm:$0xff]   ;;  %v3613_v29 = vld [vmem:[%s4958_s5 + $0x40] ss:$8 sps:$4 sm:$0xff]  }
  0xd1   :  { %1946 = vmatprep.subr.bf16.mxu1 %v3537_v52  ;;  %v3618_v52 = vld [vmem:[%s4958_s5 + $0x34] ss:$8 sps:$4 sm:$0xff]  }
  0xd3   :  { %1906 = vmatpush1.bf16.msra.mxu0 %v3532_v53  ;;  %v3616_v53 = vld [vmem:[%s4958_s5 + $0x30] ss:$8 sps:$4 sm:$0xff]  }
  0xd4   :  { %1947 = vmatpush1.bf16.msra.mxu1 %v3535_v54  ;;  %1907 = vmatprep.subr.bf16.mxu0 %v3540_v55  ;;  %v3621_v54 = vld [vmem:[%s4958_s5 + $0x24] ss:$8 sps:$4 sm:$0xff]   ;;  %v3619_v55 = vld [vmem:[%s4958_s5 + $0x20] ss:$8 sps:$4 sm:$0xff]  }
  0xd5   :  { %1948 = vmatprep.subr.bf16.mxu1 %v3543_v56  ;;  %v3624_v56 = vld [vmem:[%s4958_s5 + $0x14] ss:$8 sps:$4 sm:$0xff]  }
  0xd7   :  { %1908 = vmatpush1.bf16.msra.mxu0 %v3538_v57  ;;  %v3622_v57 = vld [vmem:[%s4958_s5 + $0x10] ss:$8 sps:$4 sm:$0xff]  }
  0xd8   :  { %1949 = vmatpush1.bf16.msra.mxu1 %v3541_v58  ;;  %1909 = vmatprep.subr.bf16.mxu0 %v3546_v59  ;;  %v3627_v58 = vld [vmem:[%s4958_s5 + $0x4] ss:$8 sps:$4 sm:$0xff]   ;;  %v3625_v59 = vld [vmem:[%s4958_s5] ss:$8 sps:$4 sm:$0xff]  }
  0xd9   :  { %1950 = vmatprep.subr.bf16.mxu1 %v3549_v60  ;;  %v3630_v60 = vld [vmem:[%s4958_s5 + $0xf4] ss:$8 sps:$4 sm:$0xff]  }
  0xdb   :  { %1910 = vmatpush1.bf16.msra.mxu0 %v3544_v62  ;;  %v3628_v62 = vld [vmem:[%s4958_s5 + $0xf0] ss:$8 sps:$4 sm:$0xff]  }
  0xdc   :  { %1951 = vmatpush1.bf16.msra.mxu1 %v3547_v63  ;;  %1911 = vmatprep.subr.bf16.mxu0 %v3552_v0  ;;  %v3633_v63 = vld [vmem:[%s4958_s5 + $0xe4] ss:$8 sps:$4 sm:$0xff]   ;;  %v3631_v0 = vld [vmem:[%s4958_s5 + $0xe0] ss:$8 sps:$4 sm:$0xff]  }
  0xdd   :  { %1952 = vmatprep.subr.bf16.mxu1 %v3555_v1  ;;  %v3636_v1 = vld [vmem:[%s4958_s5 + $0xd4] ss:$8 sps:$4 sm:$0xff]  }
  0xdf   :  { %1912 = vmatpush1.bf16.msra.mxu0 %v3550_v2  ;;  %v3634_v2 = vld [vmem:[%s4958_s5 + $0xd0] ss:$8 sps:$4 sm:$0xff]  }
  0xe0   :  { %1953 = vmatpush1.bf16.msra.mxu1 %v3553_v4  ;;  %1913 = vmatprep.subr.bf16.mxu0 %v3558_v5  ;;  %v3639_v4 = vld [vmem:[%s4958_s5 + $0xc4] ss:$8 sps:$4 sm:$0xff]   ;;  %v3637_v5 = vld [vmem:[%s4958_s5 + $0xc0] ss:$8 sps:$4 sm:$0xff]  }
  0xe1   :  { %1954 = vmatprep.subr.bf16.mxu1 %v3561_v6  ;;  %v3642_v6 = vld [vmem:[%s4958_s5 + $0xb4] ss:$8 sps:$4 sm:$0xff]  }
  0xe3   :  { %1914 = vmatpush2.bf16.msra.mxu0 %v3556_v7  ;;  %v3640_v7 = vld [vmem:[%s4958_s5 + $0xb0] ss:$8 sps:$4 sm:$0xff]  }
  0xe4   :  { %1955 = vmatpush2.bf16.msra.mxu1 %v3559_v8  ;;  %1915 = vmatprep.subr.bf16.mxu0 %v3564_v9  ;;  %v3645_v8 = vld [vmem:[%s4958_s5 + $0xa4] ss:$8 sps:$4 sm:$0xff]   ;;  %v3643_v9 = vld [vmem:[%s4958_s5 + $0xa0] ss:$8 sps:$4 sm:$0xff]  }
  0xe5   :  { %1956 = vmatprep.subr.bf16.mxu1 %v3567_v10  ;;  %v3648_v10 = vld [vmem:[%s4958_s5 + $0x94] ss:$8 sps:$4 sm:$0xff]  }
  0xe7   :  { %1916 = vmatpush2.bf16.msra.mxu0 %v3562_v11  ;;  %v4706_v11 = vsub.s32 0, %v3906_v43 }
  0xe8   :  { %1957 = vmatpush2.bf16.msra.mxu1 %v3565_v12  ;;  %1917 = vmatprep.subr.bf16.mxu0 %v3570_v13  ;;  %v4711_v12 = vld [vmem:[%s4959_s2] sm:$0xf]  ;;  %v4714_v13 = vsub.s32 1, %v3906_v43 }
  0xe9   :  { %1958 = vmatprep.subr.bf16.mxu1 %v3573_v16  ;;  %v3646_v16 = vld [vmem:[%s4958_s5 + $0x90] ss:$8 sps:$4 sm:$0xff]  }
  0xeb   :  { %1918 = vmatpush2.bf16.msra.mxu0 %v3568_v17  ;;  %v3651_v17 = vld [vmem:[%s4958_s5 + $0x84] ss:$8 sps:$4 sm:$0xff]  }
  0xec   :  { %1959 = vmatpush2.bf16.msra.mxu1 %v3571_v18  ;;  %1919 = vmatprep.subr.bf16.mxu0 %v3576_v19  ;;  %v354_v18 = vrot.slane %v4711_v12, %v4706_v11  ;;  %v358_v19 = vrot.slane %v4711_v12, %v4714_v13 }
  0xed   :  { %1960 = vmatprep.subr.bf16.mxu1 %v3579_v20  ;;  %v3649_v20 = vld [vmem:[%s4958_s5 + $0x80] ss:$8 sps:$4 sm:$0xff]  }
  0xef   :  { %1920 = vmatpush2.bf16.msra.mxu0 %v3574_v21 }
  0xf0   :  { %1961 = vmatpush2.bf16.msra.mxu1 %v3577_v24  ;;  %1921 = vmatprep.subr.bf16.mxu0 %v3582_v25 }
  0xf1   :  { %1962 = vmatprep.subr.bf16.mxu1 %v3585_v26 }
  0xf3   :  { %1922 = vmatpush2.bf16.msra.mxu0 %v3580_v27 }
  0xf4   :  { %1963 = vmatpush2.bf16.msra.mxu1 %v3583_v30  ;;  %1923 = vmatprep.subr.bf16.mxu0 %v3588_v31 }
  0xf5   :  { %1964 = vmatprep.subr.bf16.mxu1 %v3591_v32 }
  0xf7   :  { %1924 = vmatpush2.bf16.msra.mxu0 %v3586_v33 }
  0xf8   :  { %1965 = vmatpush2.bf16.msra.mxu1 %v3589_v34  ;;  %1925 = vmatprep.subr.bf16.mxu0 %v3594_v37  ;;  %v3654_v34 = vld [vmem:[%s4958_s5 + $0x174] ss:$8 sps:$4 sm:$0xff]  }
  0xf9   :  { %1966 = vmatprep.subr.bf16.mxu1 %v3597_v38 }
  0xfb   :  { %1926 = vmatpush2.bf16.msra.mxu0 %v3592_v14  ;;  %v3652_v14 = vld [vmem:[%s4958_s5 + $0x170] ss:$8 sps:$4 sm:$0xff]  }
  0xfc   :  { %1967 = vmatpush2.bf16.msra.mxu1 %v3595_v15  ;;  %1927 = vmatprep.subr.bf16.mxu0 %v3600_v39 }
  0xfd   :  { %1968 = vmatprep.subr.bf16.mxu1 %v3603_v40 }
  0xff   :  { %1928 = vmatpush2.bf16.msra.mxu0 %v3598_v41 }
 0x100   :  { %1969 = vmatpush2.bf16.msra.mxu1 %v3601_v42  ;;  %2521 = vmatprep.subr.bf16.mxu0 %v3606_v44 }
 0x101   :  { %2562 = vmatprep.subr.bf16.mxu1 %v3654_v34  ;;  %v3681_v34 = vld [vmem:[%s4958_s5 + $0x1e4] ss:$8 sps:$4 sm:$0xff]  }
 0x102   :  { %v4617_v61 = vpop.f32.mrf.mxu0  ;;  %1930 = vmatmul.mubr.bf16.vlgmr.msra.gmra.mxu0 %v4216_v35  ;;  %v3610_v35 = vld [vmem:[%s4958_s5 + $0x50] ss:$8 sps:$4 sm:$0xff]  }
 0x103   :  { %v4619_v3 = vpop.f32.mrf.mxu1  ;;  %1971 = vmatmul.mubr.bf16.vlgmr.msra.gmra.mxu1 %v4220_v36  ;;  %2522 = vmatpush1.bf16.msra.mxu0 %v3604_v45  ;;  %v1686_v21 = vadd.f32 %v4617_v61, %v354_v18  ;;  %v3675_v18 = vld [vmem:[%s4958_s5 + $0x104] ss:$8 sps:$4 sm:$0xff]  }
 0x104   :  { %v4626_v22 = vpop.f32.mrf.mxu0  ;;  %2523 = vmatprep.subr.bf16.mxu0 %v3609_v46  ;;  %2563 = vmatpush1.bf16.msra.mxu1 %v3652_v14  ;;  %v3657_v46 = vld [vmem:[%s4958_s5 + $0x164] ss:$8 sps:$4 sm:$0xff]   ;;  %v3679_v14 = vld [vmem:[%s4958_s5 + $0x1e0] ss:$8 sps:$4 sm:$0xff]  }
 0x105   :  { %v4628_v23 = vpop.f32.mrf.mxu1  ;;  %v1688_v24 = vadd.f32 %v4626_v22, %v358_v19  ;;  %v1727_v25 = vadd.f32 %v4619_v3, %v1686_v21  ;;  %v3655_v3 = vld [vmem:[%s4958_s5 + $0x160] ss:$8 sps:$4 sm:$0xff]   ;;  %2564 = vmatprep.subr.bf16.mxu1 %v3657_v46  ;;  %v3688_v46 = vld [vmem:[%s4958_s5 + $0x1b0] ss:$8 sps:$4 sm:$0xff]  }
 0x106   :  { %v1689_v49 = vpop.f32.mrf.mxu0  ;;  %v3673_v21 = vld [vmem:[%s4958_s5 + $0x100] ss:$8 sps:$4 sm:$0xff]  }
 0x107   :  { %v1730_v50 = vpop.f32.mrf.mxu1  ;;  %2524 = vmatpush1.bf16.msra.mxu0 %v3607_v47  ;;  %v1729_v30 = vadd.f32 %v4628_v23, %v1688_v24  ;;  %v3660_v49 = vld [vmem:[%s4958_s5 + $0x154] ss:$8 sps:$4 sm:$0xff]  }
 0x108   :  { %v1690_v36 = vpop.f32.mrf.mxu0  ;;  %2525 = vmatprep.subr.bf16.mxu0 %v3612_v48  ;;  %2565 = vmatpush1.bf16.msra.mxu1 %v3655_v3  ;;  %v3658_v50 = vld [vmem:[%s4958_s5 + $0x150] ss:$8 sps:$4 sm:$0xff]  }
 0x109   :  { %v1731_v51 = vpop.f32.mrf.mxu1  ;;  %2566 = vmatprep.subr.bf16.mxu1 %v3660_v49 }
 0x10b   :  { %2526 = vmatpush1.bf16.msra.mxu0 %v3610_v35 }
 0x10c   :  { %2527 = vmatprep.subr.bf16.mxu0 %v3615_v28  ;;  %2567 = vmatpush1.bf16.msra.mxu1 %v3658_v50  ;;  %v3691_v50 = vld [vmem:[%s4958_s5 + $0x1a0] ss:$8 sps:$4 sm:$0xff]  }
 0x10f   :  { %2528 = vmatpush1.bf16.msra.mxu0 %v3613_v29  ;;  %v3663_v29 = vld [vmem:[%s4958_s5 + $0x144] ss:$8 sps:$4 sm:$0xff]  }
 0x110   :  { %2529 = vmatprep.subr.bf16.mxu0 %v3618_v52  ;;  %v3661_v52 = vld [vmem:[%s4958_s5 + $0x140] ss:$8 sps:$4 sm:$0xff]   ;;  %2568 = vmatprep.subr.bf16.mxu1 %v3663_v29  ;;  %v3696_v29 = vld [vmem:[%s4958_s5 + $0x194] ss:$8 sps:$4 sm:$0xff]  }
 0x111   :  { %2569 = vmatpush1.bf16.msra.mxu1 %v3661_v52 }
 0x113   :  { %2530 = vmatpush1.bf16.msra.mxu0 %v3616_v53 }
 0x114   :  { %2531 = vmatprep.subr.bf16.mxu0 %v3621_v54 }
 0x117   :  { %2532 = vmatpush1.bf16.msra.mxu0 %v3619_v55 }
 0x118   :  { %2533 = vmatprep.subr.bf16.mxu0 %v3624_v56 }
 0x11b   :  { %2534 = vmatpush1.bf16.msra.mxu0 %v3622_v57  ;;  %v3666_v57 = vld [vmem:[%s4958_s5 + $0x134] ss:$8 sps:$4 sm:$0xff]  }
 0x11c   :  { %2535 = vmatprep.subr.bf16.mxu0 %v3627_v58  ;;  %v3664_v58 = vld [vmem:[%s4958_s5 + $0x130] ss:$8 sps:$4 sm:$0xff]   ;;  %2570 = vmatprep.subr.bf16.mxu1 %v3666_v57  ;;  %v3697_v57 = vld [vmem:[%s4958_s5 + $0x180] ss:$8 sps:$4 sm:$0xff]  }
 0x11d   :  { %2571 = vmatpush1.bf16.msra.mxu1 %v3664_v58 }
 0x11f   :  { %2536 = vmatpush1.bf16.msra.mxu0 %v3625_v59 }
 0x120   :  { %2537 = vmatprep.subr.bf16.mxu0 %v3630_v60 }
 0x123   :  { %2538 = vmatpush2.bf16.msra.mxu0 %v3628_v62 }
 0x124   :  { %2539 = vmatprep.subr.bf16.mxu0 %v3633_v63 }
 0x127   :  { %2540 = vmatpush2.bf16.msra.mxu0 %v3631_v0  ;;  %v3669_v0 = vld [vmem:[%s4958_s5 + $0x124] ss:$8 sps:$4 sm:$0xff]  }
 0x128   :  { %2541 = vmatprep.subr.bf16.mxu0 %v3636_v1  ;;  %v3667_v1 = vld [vmem:[%s4958_s5 + $0x120] ss:$8 sps:$4 sm:$0xff]   ;;  %2572 = vmatprep.subr.bf16.mxu1 %v3669_v0 }
 0x129   :  { %2573 = vmatpush1.bf16.msra.mxu1 %v3667_v1 }
 0x12b   :  { %2542 = vmatpush2.bf16.msra.mxu0 %v3634_v2 }
 0x12c   :  { %2543 = vmatprep.subr.bf16.mxu0 %v3639_v4 }
 0x12f   :  { %2544 = vmatpush2.bf16.msra.mxu0 %v3637_v5 }
 0x130   :  { %2545 = vmatprep.subr.bf16.mxu0 %v3642_v6 }
 0x133   :  { %2546 = vmatpush2.bf16.msra.mxu0 %v3640_v7  ;;  %v3672_v7 = vld [vmem:[%s4958_s5 + $0x114] ss:$8 sps:$4 sm:$0xff]  }
 0x134   :  { %2547 = vmatprep.subr.bf16.mxu0 %v3645_v8  ;;  %2574 = vmatprep.subr.bf16.mxu1 %v3672_v7 }
 0x137   :  { %2548 = vmatpush2.bf16.msra.mxu0 %v3643_v9 }
 0x138   :  { %2549 = vmatprep.subr.bf16.mxu0 %v3648_v10  ;;  %v3670_v10 = vld [vmem:[%s4958_s5 + $0x110] ss:$8 sps:$4 sm:$0xff]  }
 0x139   :  { %2575 = vmatpush1.bf16.msra.mxu1 %v3670_v10 }
 0x13a   :  { %2576 = vmatprep.subr.bf16.mxu1 %v3675_v18 }
 0x13b   :  { %2550 = vmatpush2.bf16.msra.mxu0 %v3646_v16 }
 0x13c   :  { %2551 = vmatprep.subr.bf16.mxu0 %v3651_v17 }
 0x13d   :  { %2577 = vmatpush1.bf16.msra.mxu1 %v3673_v21 }
 0x13f   :  { %2552 = vmatpush2.bf16.msra.mxu0 %v3649_v20 }
 0x142   :  { %v1767_v26 = vpop.f32.mrf.mxu0 }
 0x143   :  { %v1808_v27 = vpop.f32.mrf.mxu1  ;;  %v1768_v31 = vadd.f32 %v1767_v26, %v1727_v25  ;;  %v3678_v26 = vld [vmem:[%s4958_s5 + $0x1f4] ss:$8 sps:$4 sm:$0xff]  }
 0x144   :  { %v1769_v32 = vpop.f32.mrf.mxu0  ;;  %2578 = vmatprep.subr.bf16.mxu1 %v3678_v26 }
 0x145   :  { %v1810_v33 = vpop.f32.mrf.mxu1  ;;  %v1809_v37 = vadd.f32 %v1808_v27, %v1768_v31  ;;  %v1770_v38 = vadd.f32 %v1769_v32, %v1729_v30  ;;  %v3676_v31 = vld [vmem:[%s4958_s5 + $0x1f0] ss:$8 sps:$4 sm:$0xff]  }
 0x146   :  { %v1771_v15 = vpop.f32.mrf.mxu0  ;;  %2579 = vmatpush2.bf16.msra.mxu1 %v3676_v31 }
 0x147   :  { %v1812_v39 = vpop.f32.mrf.mxu1  ;;  %v1980_v40 = vsel %vm1979_vm0, %v1809_v37, 0.0  ;;  %v1811_v41 = vadd.f32 %v1810_v33, %v1770_v38  ;;  %2580 = vmatprep.subr.bf16.mxu1 %v3681_v34 }
 0x148   :  { %v1981_v42 = vrot.slane %v1980_v40, 4  ;;  %v1772_v44 = vpop.f32.mrf.mxu0  ;;  %v3684_v39 = vld [vmem:[%s4958_s5 + $0x1d4] ss:$8 sps:$4 sm:$0xff]  }
 0x149   :  { %v1813_v45 = vpop.f32.mrf.mxu1  ;;  %v1987_v61 = vsel %vm1979_vm0, %v1811_v41, 0.0  ;;  %v4820_v44 = vld [vmem:[%s4960_s3] sm:$0xf] }
 0x14a   :  { %v1982_v47 = vadd.f32 %v1981_v42, %v1980_v40  ;;  %v1988_v22 = vrot.slane %v1987_v61, 4  ;;  %2581 = vmatpush2.bf16.msra.mxu1 %v3679_v14  ;;  %v3682_v40 = vld [vmem:[%s4958_s5 + $0x1d0] ss:$8 sps:$4 sm:$0xff]   ;;  %v3685_v42 = vld [vmem:[%s4958_s5 + $0x1c0] ss:$8 sps:$4 sm:$0xff]   ;;  %v2070_v3 = vrot.slane %v4820_v44, %v4706_v11 }
 0x14b   :  { %2582 = vmatprep.subr.bf16.mxu1 %v3684_v39  ;;  %v3690_v45 = vld [vmem:[%s4958_s5 + $0x1b4] ss:$8 sps:$4 sm:$0xff]  }
 0x14c   :  { %v1983_v23 = vrot.slane %v1982_v47, 2  ;;  %v1989_v48 = vadd.f32 %v1988_v22, %v1987_v61  ;;  %v4831_v61 = vld [vmem:[%s4961_s4] sm:$0xf]  ;;  %v3693_v22 = vld [vmem:[%s4958_s5 + $0x1a4] ss:$8 sps:$4 sm:$0xff]  }
 0x14d   :  { %v2096_v49 = vrot.slane %v4831_v61, %v4706_v11 }
 0x14e   :  { %v1984_v35 = vadd.f32 %v1983_v23, %v1982_v47  ;;  %v1990_v36 = vrot.slane %v1989_v48, 2  ;;  %2583 = vmatpush2.bf16.msra.mxu1 %v3682_v40 }
 0x150   :  { %v1985_v51 = vrot.slane %v1984_v35, 1  ;;  %v1991_v28 = vadd.f32 %v1990_v36, %v1989_v48  ;;  %v2074_v48 = vrot.slane %v4820_v44, %v4714_v13 }
 0x152   :  { %v1986_v53 = vadd.f32 %v1985_v51, %v1984_v35  ;;  %v1992_v54 = vrot.slane %v1991_v28, 1 }
 0x154   :  { %v2009_v55 = vmul.f32 0.5, %v1986_v53  ;;  %v1993_v56 = vadd.f32 %v1992_v54, %v1991_v28  ;;  %v2100_v28 = vrot.slane %v4831_v61, %v4714_v13  ;;  %v3694_v54 = vld [vmem:[%s4958_s5 + $0x190] ss:$8 sps:$4 sm:$0xff]  }
 0x156   :  { %v4765_v59 = vsub.f32 %v1809_v37, %v2009_v55  ;;  %v2010_v60 = vmul.f32 0.5, %v1993_v56  ;;  %v3699_v55 = vld [vmem:[%s4958_s5 + $0x184] ss:$8 sps:$4 sm:$0xff]  }
 0x158   :  { %v2017_v62 = vmul.f32 %v4765_v59, %v4765_v59  ;;  %v4769_v63 = vsub.f32 %v1811_v41, %v2010_v60  ;;  %v3687_v41 = vld [vmem:[%s4958_s5 + $0x1c4] ss:$8 sps:$4 sm:$0xff]  }
 0x159   :  { %2584 = vmatprep.subr.bf16.mxu1 %v3687_v41 }
 0x15a   :  { %v2021_v2 = vsel %vm1979_vm0, %v2017_v62, 0.0  ;;  %v2018_v4 = vmul.f32 %v4769_v63, %v4769_v63  ;;  %2585 = vmatpush2.bf16.msra.mxu1 %v3685_v42 }
 0x15b   :  { %v2022_v5 = vrot.slane %v2021_v2, 4  ;;  %2586 = vmatprep.subr.bf16.mxu1 %v3690_v45 }
 0x15c   :  { %v2028_v6 = vsel %vm1979_vm0, %v2018_v4, 0.0 }
 0x15d   :  { %v2023_v8 = vadd.f32 %v2022_v5, %v2021_v2  ;;  %v2029_v9 = vrot.slane %v2028_v6, 4 }
 0x15e   :  { %2587 = vmatpush2.bf16.msra.mxu1 %v3688_v46 }
 0x15f   :  { %v2024_v16 = vrot.slane %v2023_v8, 2  ;;  %v2030_v17 = vadd.f32 %v2029_v9, %v2028_v6  ;;  %2588 = vmatprep.subr.bf16.mxu1 %v3693_v22  ;;  %v4865_v9 = vsub.s32 3, %v3906_v43 }
 0x161   :  { %v2025_v19 = vadd.f32 %v2024_v16, %v2023_v8  ;;  %v2031_v20 = vrot.slane %v2030_v17, 2  ;;  %v4862_v8 = vsub.s32 2, %v3906_v43  ;;  %v366_v16 = vrot.slane %v4711_v12, %v4865_v9 }
 0x162   :  { %2589 = vmatpush2.bf16.msra.mxu1 %v3691_v50 }
 0x163   :  { %v2026_v24 = vrot.slane %v2025_v19, 1  ;;  %v2032_v25 = vadd.f32 %v2031_v20, %v2030_v17  ;;  %2590 = vmatprep.subr.bf16.mxu1 %v3696_v29  ;;  %v362_v10 = vrot.slane %v4711_v12, %v4862_v8 }
 0x165   :  { %v2027_v27 = vadd.f32 %v2026_v24, %v2025_v19  ;;  %v2033_v30 = vrot.slane %v2032_v25, 1 }
 0x166   :  { %2591 = vmatpush2.bf16.msra.mxu1 %v3694_v54 }
 0x167   :  { %v2049_v32 = vmul.f32 0.5, %v2027_v27  ;;  %v2034_v33 = vadd.f32 %v2033_v30, %v2032_v25  ;;  %2592 = vmatprep.subr.bf16.mxu1 %v3699_v55 }
 0x169   :  { %v2053_v37 = vadd.f32 1e-05, %v2049_v32  ;;  %v2050_v38 = vmul.f32 0.5, %v2034_v33 }
 0x16a   :  { %2593 = vmatpush2.bf16.msra.mxu1 %v3697_v57 }
 0x16b   :  { %3716 = vrsqrt.f32 %v2053_v37  ;;  %v2054_v15 = vadd.f32 1e-05, %v2050_v38 }
 0x16d   :  { %3718 = vrsqrt.f32 %v2054_v15 }
 0x178   :  { %v3717_v47 = vpop.eup %3716 }
 0x179   :  { %v2061_v23 = vmul.f32 %v3717_v47, %v4765_v59 }
 0x17a   :  { %v3719_v35 = vpop.eup %3718 }
 0x17b   :  { %v2087_v36 = vmul.f32 %v2070_v3, %v2061_v23  ;;  %v2062_v51 = vmul.f32 %v3719_v35, %v4769_v63 }
 0x17d   :  { %v2088_v52 = vmul.f32 %v2074_v48, %v2062_v51  ;;  %v2113_v53 = vadd.f32 %v2096_v49, %v2087_v36 }
 0x17f   :  { %v2114_v56 = vadd.f32 %v2100_v28, %v2088_v52  ;;  %v2117_v58 = vmax.f32 %v2113_v53, 0.0 }
 0x181   :  { %v2118_v59 = vmax.f32 %v2114_v56, 0.0  ;;  %v2121_v2 = vpack.c.bf16 %v2117_v58, %v2117_v58 }
 0x182   :  { %v1849_v60 = vpop.f32.mrf.mxu0 }
 0x183   :  { %v1890_v62 = vpop.f32.mrf.mxu1  ;;  %v2122_v63 = vpack.c.bf16 %v2118_v59, %v2118_v59  ;;  %v1850_v17 = vadd.f32 %v1849_v60, %v362_v10 }
 0x184   :  { %v1851_v0 = vpop.f32.mrf.mxu0 }
 0x185   :  { %v1892_v1 = vpop.f32.mrf.mxu1  ;;  %2553 = vmatprep.mubr.bf16.mxu0 %v2122_v63  ;;  %v1852_v18 = vadd.f32 %v1851_v0, %v366_v16  ;;  %v1891_v19 = vadd.f32 %v1890_v62, %v1850_v17  ;;  %v2082_v16 = vrot.slane %v4820_v44, %v4865_v9  ;;  %v2104_v17 = vrot.slane %v4831_v61, %v4862_v8 }
 0x186   :  { %v1853_v4 = vpop.f32.mrf.mxu0  ;;  %2554 = vmatmul.mubr.bf16.vlgmr.msra.gmra.mxu0 %v2121_v2 }
 0x187   :  { %v1894_v5 = vpop.f32.mrf.mxu1  ;;  %v1893_v24 = vadd.f32 %v1892_v1, %v1852_v18 }
 0x188   :  { %v1854_v6 = vpop.f32.mrf.mxu0 }
 0x189   :  { %v1895_v7 = vpop.f32.mrf.mxu1  ;;  %v2078_v6 = vrot.slane %v4820_v44, %v4862_v8  ;;  %v3700_v8 = vld [vmem:[%s4962_s9 + $0x78] sm:$0xff]  }
 0x18a   :  { %3195 = vmatprep.subr.bf16.mxu0 %v3700_v8 }
 0x1c2   :  { %v1931_v20 = vpop.f32.mrf.mxu0 }
 0x1c3   :  { %v1972_v21 = vpop.f32.mrf.mxu1  ;;  %v1932_v25 = vadd.f32 %v1931_v20, %v1891_v19 }
 0x1c4   :  { %v1933_v26 = vpop.f32.mrf.mxu0 }
 0x1c5   :  { %v1974_v27 = vpop.f32.mrf.mxu1  ;;  %v1973_v30 = vadd.f32 %v1972_v21, %v1932_v25  ;;  %v1934_v31 = vadd.f32 %v1933_v26, %v1893_v24  ;;  %v2108_v21 = vrot.slane %v4831_v61, %v4865_v9  ;;  %v3701_v61 = vld [vmem:[%s4962_s9 + $0x38] sm:$0xff]   ;;  %v3702_v9 = vld [vmem:[%s4962_s9 + $0x70] sm:$0xff]  }
 0x1c6   :  { %v1935_v32 = vpop.f32.mrf.mxu0  ;;  %3196 = vmatpush3.bf16.msra.mxu0 %v3701_v61 }
 0x1c7   :  { %v1976_v43 = vpop.f32.mrf.mxu1  ;;  %v1994_v33 = vsel %vm1979_vm0, %v1973_v30, 0.0  ;;  %v1975_v34 = vadd.f32 %v1974_v27, %v1934_v31  ;;  %3197 = vmatprep.subr.bf16.mxu0 %v3702_v9 }
 0x1c8   :  { %v1995_v37 = vrot.slane %v1994_v33, 4  ;;  %v1936_v38 = vpop.f32.mrf.mxu0 }
 0x1c9   :  { %v1977_v14 = vpop.f32.mrf.mxu1  ;;  %v2001_v12 = vsel %vm1979_vm0, %v1975_v34, 0.0  ;;  %v3704_v38 = vld [vmem:[%s4962_s9 + $0x68] sm:$0xff]  }
 0x1ca   :  { %v1996_v15 = vadd.f32 %v1995_v37, %v1994_v33  ;;  %v2002_v39 = vrot.slane %v2001_v12, 4  ;;  %v3703_v37 = vld [vmem:[%s4962_s9 + $0x30] sm:$0xff]   ;;  %v3705_v14 = vld [vmem:[%s4962_s9 + $0x28] sm:$0xff]  }
 0x1cb   :  { %3198 = vmatpush3.bf16.msra.mxu0 %v3703_v37  ;;  %v2645_v37 = vld [vmem:[%s4964_s7] sm:$0x3] }
 0x1cc   :  { %v1997_v40 = vrot.slane %v1996_v15, 2  ;;  %v2003_v41 = vadd.f32 %v2002_v39, %v2001_v12  ;;  %3199 = vmatprep.subr.bf16.mxu0 %v3704_v38  ;;  %v3706_v12 = vld [vmem:[%s4962_s9 + $0x60] sm:$0xff]   ;;  %v3708_v39 = vld [vmem:[%s4962_s9 + $0x58] sm:$0xff]  }
 0x1cd   :  { %v2659_v38 = vld [vmem:[%s4965_s8] sm:$0x3] }
 0x1ce   :  { %v1998_v42 = vadd.f32 %v1997_v40, %v1996_v15  ;;  %v2004_v45 = vrot.slane %v2003_v41, 2  ;;  %v3707_v15 = vld [vmem:[%s4962_s9 + $0x20] sm:$0xff]   ;;  %v3709_v40 = vld [vmem:[%s4962_s9 + $0x18] sm:$0xff]  }
 0x1cf   :  { %3200 = vmatpush3.bf16.msra.mxu0 %v3705_v14  ;;  %v2650_v14 = vrot.slane %v2645_v37, %v4706_v11 }
 0x1d0   :  { %v1999_v46 = vrot.slane %v1998_v42, 1  ;;  %v2005_v3 = vadd.f32 %v2004_v45, %v2003_v41  ;;  %3201 = vmatprep.subr.bf16.mxu0 %v3706_v12  ;;  %v3710_v41 = vld [vmem:[%s4962_s9 + $0x50] sm:$0xff]   ;;  %v3712_v45 = vld [vmem:[%s4962_s9 + $0x48] sm:$0xff]  }
 0x1d2   :  { %v2000_v47 = vadd.f32 %v1999_v46, %v1998_v42  ;;  %v2006_v22 = vrot.slane %v2005_v3, 1  ;;  %v3711_v42 = vld [vmem:[%s4962_s9 + $0x10] sm:$0xff]   ;;  %v3713_v46 = vld [vmem:[%s4962_s9 + $0x8] sm:$0xff]  }
 0x1d3   :  { %3202 = vmatpush3.bf16.msra.mxu0 %v3707_v15 }
 0x1d4   :  { %v2011_v23 = vmul.f32 0.5, %v2000_v47  ;;  %v2007_v48 = vadd.f32 %v2006_v22, %v2005_v3  ;;  %3203 = vmatprep.subr.bf16.mxu0 %v3708_v39  ;;  %v3714_v3 = vld [vmem:[%s4962_s9 + $0x40] sm:$0xff]   ;;  %v2654_v39 = vrot.slane %v2645_v37, %v4714_v13 }
 0x1d5   :  { %v3715_v47 = vld [vmem:[%s4962_s9] sm:$0xff]  }
 0x1d6   :  { %v2015_v49 = vsub.f32 %v1973_v30, %v2011_v23  ;;  %v2012_v50 = vmul.f32 0.5, %v2007_v48  ;;  %v2189_v22 = vld [vmem:[%s4963_s6] sm:$0x3] }
 0x1d7   :  { %3204 = vmatpush3.bf16.msra.mxu0 %v3709_v40  ;;  %v2194_v23 = vrot.slane %v2189_v22, %v4706_v11  ;;  %v2198_v48 = vrot.slane %v2189_v22, %v4714_v13  ;;  %v2664_v40 = vrot.slane %v2659_v38, %v4706_v11 }
 0x1d8   :  { %v2019_v35 = vmul.f32 %v2015_v49, %v2015_v49  ;;  %v2016_v36 = vsub.f32 %v1975_v34, %v2012_v50  ;;  %3205 = vmatprep.subr.bf16.mxu0 %v3710_v41 }
 0x1da   :  { %v2035_v51 = vsel %vm1979_vm0, %v2019_v35, 0.0  ;;  %v2020_v28 = vmul.f32 %v2016_v36, %v2016_v36 }
 0x1db   :  { %v2036_v29 = vrot.slane %v2035_v51, 4  ;;  %3206 = vmatpush3.bf16.msra.mxu0 %v3711_v42 }
 0x1dc   :  { %v2042_v52 = vsel %vm1979_vm0, %v2020_v28, 0.0  ;;  %3207 = vmatprep.subr.bf16.mxu0 %v3712_v45 }
 0x1dd   :  { %v2037_v53 = vadd.f32 %v2036_v29, %v2035_v51  ;;  %v2043_v54 = vrot.slane %v2042_v52, 4 }
 0x1df   :  { %v2038_v55 = vrot.slane %v2037_v53, 2  ;;  %v2044_v56 = vadd.f32 %v2043_v54, %v2042_v52  ;;  %3208 = vmatpush3.bf16.msra.mxu0 %v3713_v46  ;;  %v2668_v46 = vrot.slane %v2659_v38, %v4714_v13 }
 0x1e0   :  { %3209 = vmatprep.subr.bf16.mxu0 %v3714_v3 }
 0x1e1   :  { %v2039_v57 = vadd.f32 %v2038_v55, %v2037_v53  ;;  %v2045_v58 = vrot.slane %v2044_v56, 2 }
 0x1e3   :  { %v2040_v59 = vrot.slane %v2039_v57, 1  ;;  %v2046_v60 = vadd.f32 %v2045_v58, %v2044_v56  ;;  %3210 = vmatpush3.bf16.msra.mxu0 %v3715_v47 }
 0x1e5   :  { %v2041_v62 = vadd.f32 %v2040_v59, %v2039_v57  ;;  %v2047_v63 = vrot.slane %v2046_v60, 1 }
 0x1e7   :  { %v2051_v0 = vmul.f32 0.5, %v2041_v62  ;;  %v2048_v1 = vadd.f32 %v2047_v63, %v2046_v60 }
 0x1e9   :  { %v2055_v2 = vadd.f32 1e-05, %v2051_v0  ;;  %v2052_v4 = vmul.f32 0.5, %v2048_v1 }
 0x1eb   :  { %3720 = vrsqrt.f32 %v2055_v2  ;;  %v2056_v5 = vadd.f32 1e-05, %v2052_v4 }
 0x1ed   :  { %3722 = vrsqrt.f32 %v2056_v5 }
 0x1f8   :  { %v3721_v7 = vpop.eup %3720 }
 0x1f9   :  { %v2063_v10 = vmul.f32 %v3721_v7, %v2015_v49 }
 0x1fa   :  { %v3723_v18 = vpop.eup %3722 }
 0x1fb   :  { %v2089_v19 = vmul.f32 %v2078_v6, %v2063_v10  ;;  %v2064_v20 = vmul.f32 %v3723_v18, %v2016_v36 }
 0x1fd   :  { %v2090_v24 = vmul.f32 %v2082_v16, %v2064_v20  ;;  %v2115_v25 = vadd.f32 %v2104_v17, %v2089_v19 }
 0x1ff   :  { %v2116_v26 = vadd.f32 %v2108_v21, %v2090_v24  ;;  %v2119_v27 = vmax.f32 %v2115_v25, 0.0 }
 0x201   :  { %v2120_v30 = vmax.f32 %v2116_v26, 0.0  ;;  %v2123_v32 = vpack.c.bf16 %v2119_v27, %v2119_v27 }
 0x203   :  { %v2124_v31 = vpack.c.bf16 %v2120_v30, %v2120_v30 }
 0x205   :  { %2594 = vmatprep.mubr.bf16.mxu1 %v2124_v31 }
 0x206   :  { %2595 = vmatmul.mubr.bf16.vlgmr.msra.gmra.mxu1 %v2123_v32 }
 0x246   :  { %v2555_v43 = vpop.f32.mrf.mxu0 }
 0x247   :  { %v2556_v49 = vadd.f32 %v2555_v43, %v2194_v23 }
 0x248   :  { %v2557_v44 = vpop.f32.mrf.mxu0 }
 0x249   :  { %v2558_v35 = vadd.f32 %v2557_v44, %v2198_v48 }
 0x24a   :  { %v2559_v33 = vpop.f32.mrf.mxu0 }
 0x24c   :  { %v2560_v34 = vpop.f32.mrf.mxu0 }
 0x2c6   :  { %v2596_v50 = vpop.f32.mrf.mxu1 }
 0x2c7   :  { %v2597_v36 = vadd.f32 %v2596_v50, %v2556_v49 }
 0x2c8   :  { %v2598_v51 = vpop.f32.mrf.mxu1 }
 0x2c9   :  { %v2603_v28 = vsel %vm1979_vm0, %v2597_v36, 0.0  ;;  %v2599_v29 = vadd.f32 %v2598_v51, %v2558_v35 }
 0x2ca   :  { %v2604_v52 = vrot.slane %v2603_v28, 4  ;;  %v2600_v53 = vpop.f32.mrf.mxu1 }
 0x2cb   :  { %v2610_v54 = vsel %vm1979_vm0, %v2599_v29, 0.0 }
 0x2cc   :  { %v2605_v55 = vadd.f32 %v2604_v52, %v2603_v28  ;;  %v2611_v56 = vrot.slane %v2610_v54, 4  ;;  %v2601_v57 = vpop.f32.mrf.mxu1 }
 0x2ce   :  { %v2606_v58 = vrot.slane %v2605_v55, 2  ;;  %v2612_v59 = vadd.f32 %v2611_v56, %v2610_v54 }
 0x2d0   :  { %v2607_v60 = vadd.f32 %v2606_v58, %v2605_v55  ;;  %v2613_v62 = vrot.slane %v2612_v59, 2 }
 0x2d2   :  { %v2608_v63 = vrot.slane %v2607_v60, 1  ;;  %v2614_v0 = vadd.f32 %v2613_v62, %v2612_v59 }
 0x2d4   :  { %v2609_v1 = vadd.f32 %v2608_v63, %v2607_v60  ;;  %v2615_v2 = vrot.slane %v2614_v0, 1 }
 0x2d6   :  { %v2617_v4 = vmul.f32 0.5, %v2609_v1  ;;  %v2616_v5 = vadd.f32 %v2615_v2, %v2614_v0 }
 0x2d8   :  { %v2619_v6 = vsub.f32 %v2597_v36, %v2617_v4  ;;  %v2618_v7 = vmul.f32 0.5, %v2616_v5  ;;  %v3178_v36 = vld [vmem:[%s4966_s10] ss:$0 sm:$0xff] }
 0x2da   :  { %v2621_v10 = vmul.f32 %v2619_v6, %v2619_v6  ;;  %v2620_v16 = vsub.f32 %v2599_v29, %v2618_v7 }
 0x2dc   :  { %v2623_v17 = vsel %vm1979_vm0, %v2621_v10, 0.0  ;;  %v2622_v18 = vmul.f32 %v2620_v16, %v2620_v16 }
 0x2dd   :  { %v2624_v19 = vrot.slane %v2623_v17, 4 }
 0x2de   :  { %v2630_v20 = vsel %vm1979_vm0, %v2622_v18, 0.0 }
 0x2df   :  { %v2625_v21 = vadd.f32 %v2624_v19, %v2623_v17  ;;  %v2631_v24 = vrot.slane %v2630_v20, 4 }
 0x2e1   :  { %v2626_v25 = vrot.slane %v2625_v21, 2  ;;  %v2632_v26 = vadd.f32 %v2631_v24, %v2630_v20 }
 0x2e3   :  { %v2627_v27 = vadd.f32 %v2626_v25, %v2625_v21  ;;  %v2633_v30 = vrot.slane %v2632_v26, 2 }
 0x2e5   :  { %v2628_v31 = vrot.slane %v2627_v27, 1  ;;  %v2634_v32 = vadd.f32 %v2633_v30, %v2632_v26 }
 0x2e7   :  { %v2629_v43 = vadd.f32 %v2628_v31, %v2627_v27  ;;  %v2635_v44 = vrot.slane %v2634_v32, 1 }
 0x2e9   :  { %v2637_v33 = vmul.f32 0.5, %v2629_v43  ;;  %v2636_v34 = vadd.f32 %v2635_v44, %v2634_v32 }
 0x2eb   :  { %v2639_v8 = vadd.f32 1e-05, %v2637_v33  ;;  %v2638_v61 = vmul.f32 0.5, %v2636_v34 }
 0x2ed   :  { %3724 = vrsqrt.f32 %v2639_v8  ;;  %v2640_v9 = vadd.f32 1e-05, %v2638_v61 }
 0x2ef   :  { %3726 = vrsqrt.f32 %v2640_v9 }
 0x2fa   :  { %v3725_v12 = vpop.eup %3724 }
 0x2fb   :  { %v2643_v15 = vmul.f32 %v3725_v12, %v2619_v6 }
 0x2fc   :  { %v3727_v41 = vpop.eup %3726 }
 0x2fd   :  { %v2657_v42 = vmul.f32 %v2650_v14, %v2643_v15  ;;  %v2644_v45 = vmul.f32 %v3727_v41, %v2620_v16 }
 0x2ff   :  { %v2658_v3 = vmul.f32 %v2654_v39, %v2644_v45  ;;  %v2671_v47 = vadd.f32 %v2664_v40, %v2657_v42 }
 0x301   :  { %v2672_v22 = vadd.f32 %v2668_v46, %v2658_v3  ;;  %v2673_v23 = vmax.f32 %v2671_v47, 0.0 }
 0x303   :  { %v2674_v48 = vmax.f32 %v2672_v22, 0.0  ;;  %v2675_v50 = vpack.c.bf16 %v2673_v23, %v2673_v23 }
 0x305   :  { %v2676_v49 = vpack.c.bf16 %v2674_v48, %v2674_v48 }
 0x307   :  { %2844 = vmatprep.mubr.bf16.mxu0 %v2676_v49 }
 0x308   :  { %2845 = vmatmul.mubr.bf16.vlgmr.msra.gmra.mxu0 %v2675_v50 }
 0x3c8   :  { %v3211_v35 = vpop.f32.mrf.mxu0 }
 0x3ca   :  { %v3212_v11 = vpop.f32.mrf.mxu0 }
 0x3cb   :  { %v3213_v51 = vadd.f32 %v3212_v11, %v3211_v35 }
 0x3cc   :  { %v3214_v28 = vpop.f32.mrf.mxu0 }
 0x3cd   :  { %v2847_v29 = vadd.f32 %v3213_v51, %v3178_v36 }
 0x3ce   :  { %v3215_v13 = vpop.f32.mrf.mxu0 }
 0x3cf   :  { %2853 = vst.msk [vmem:[%s4967_s11] sm:$0x3] %vm2852_vm1, %v2847_v29 }

// kernel: pointnet_encoder.23
= control target key start
LH: loop header
LB: loop body
LE: loop exit
PB: predicated region body
PF: predicated region fallthrough
CT: control target
= control target key end

     0   :  { %s806_s27 = smov 0   ;;  %s808_s28 = smov 0   ;;  %s885_s0 = inlined_call_operand.vmem [shape: bf16[32,64], index: 0, kind: input, shape index: {}]   ;;  %s886_s1 = inlined_call_operand.vmem [shape: bf16[64,128], index: 1, kind: input, shape index: {}]   ;;  %s887_s2 = inlined_call_operand.vmem [shape: f32[1,128], index: 2, kind: input, shape index: {}]   ;;  %s888_s3 = inlined_call_operand.vmem [shape: f32[1,128], index: 3, kind: input, shape index: {}]   ;;  %s889_s4 = inlined_call_operand.vmem [shape: f32[1,128], index: 4, kind: input, shape index: {}]   ;;  %s890_s5 = inlined_call_operand.vmem [shape: bf16[64,128], index: 5, kind: input, shape index: {}]   ;;  %s891_s6 = inlined_call_operand.vmem [shape: f32[1,128], index: 6, kind: input, shape index: {}]   ;;  %s892_s7 = inlined_call_operand.vmem [shape: f32[2,128], index: 7, kind: input, shape index: {}]   ;;  %s893_s8 = inlined_call_operand.vmem [shape: bf16[32,128], index: 8, kind: output, shape index: {}]  }
   0x1   :  { %s810_s29 = smov 0  }
   0x2 LB: > { %s30_s30 = sadd.s32 1, %s753_s28  ;;  %p633_p0 = scmp.ge.s32.totalorder %s757_s29, 1  ;;  %s757_s29 = sphi %s810_s29, %s18_s29   ;;  %s753_s28 = sphi %s808_s28, %s895_s28   ;;  %s749_s27 = sphi %s806_s27, %s894_s27  }
   0x3   : > { %p32_p1 = scmp.ge.s32.totalorder %s30_s30, 2  ;;  %p281_p2 = scmp.lt.s32.totalorder %s757_s29, 3 }
   0x5   : > { %s897_s30 = smov (%p32_p1, %s30_s30), 0  ;;  %p282_p3 = pnand %p633_p0, %p281_p2 }
   0x6   : > { %s634_s15 = sshll.u32 (!%p282_p3), %s749_s27, 1 }
   0x7   : > { %285 = sbr.rel (%p282_p3) target bundleno = 245 (0xf5), region = 52  ;;  %p319_p4 = scmp.lt.s32.totalorder (!%p282_p3), %s634_s15, 3 }
   0xc   : > { %v724_v0 = vld [vmem:[%s886_s1 + $0x18] sm:$0xff]   ;;  %v759_v1 = vmov 0.0   ;;  %v725_v2 = vld [vmem:[%s886_s1 + $0x10] sm:$0xff]   ;;  %vm760_vm0 = vmmov 0   ;;  %s899_s15 = smov (!%p319_p4, %s634_s15), 3  ;;  %v727_v5 = vld [vmem:[%s886_s1 + $0x8] sm:$0xff]   ;;  %v433_v17 = vlaneseq }
   0xd   : > { %674 = vmatprep.subr.bf16.mxu0 %v759_v1  ;;  %686 = vmatprep.subr.bf16.mxu1 %v759_v1  ;;  %v726_v3 = vld [vmem:[%s890_s5 + $0x18] sm:$0xff]   ;;  %v728_v4 = vld [vmem:[%s890_s5 + $0x10] sm:$0xff]   ;;  %s635_s20 = sshll.u32 %s899_s15, 2  ;;  %v730_v6 = vld [vmem:[%s890_s5 + $0x8] sm:$0xff]   ;;  %vm380_vm1 = vcmask 523264  }
   0xe   : > { %675 = vmatpush3.bf16.msra.mxu0 %v724_v0  ;;  %682 = vmatprep.mubr.msk.bf16.mxu0 %vm760_vm0, %v759_v1  ;;  %s322_s25 = scalar_lea.vmem %s885_s0, %s635_s20  ;;  %v729_v7 = vld [vmem:[%s886_s1] sm:$0xff]   ;;  %v434_v18 = vshrl.u32 %v433_v17, 7 }
   0xf   : > { %676 = vmatprep.subr.bf16.mxu0 %v759_v1  ;;  %694 = vmatprep.mubr.msk.bf16.mxu1 %vm760_vm0, %v759_v1  ;;  %v732_v8 = vld [vmem:[%s890_s5] sm:$0xff]  }
  0x10   : > { %687 = vmatpush3.bf16.msra.mxu1 %v726_v3  ;;  %v731_v9 = vld [vmem:[%s322_s25] sm:$0xff]   ;;  %v435_v19 = vsub.s32 0, %v434_v18  ;;  %v443_v20 = vsub.s32 1, %v434_v18  ;;  %s330_s25 = scalar_lea.vmem %s893_s8, %s635_s20 }
  0x11   : > { %688 = vmatprep.subr.bf16.mxu1 %v759_v1  ;;  %v425_v10 = vld [vmem:[%s892_s7] sm:$0x3] }
  0x12   : > { %677 = vmatpush3.bf16.msra.mxu0 %v725_v2  ;;  %v426_v11 = vmul.f32 0.03125, %v425_v10  ;;  %v638_v22 = vld [vmem:[%s887_s2] ss:$0 sm:$0xff] }
  0x13   : > { %678 = vmatprep.subr.bf16.mxu0 %v759_v1  ;;  %v645_v31 = vld [vmem:[%s888_s3] ss:$0 sm:$0xff] }
  0x14   : > { %689 = vmatpush3.bf16.msra.mxu1 %v728_v4  ;;  %v427_v12 = vmul.f32 %v426_v11, %v426_v11  ;;  %v436_v23 = vrot.slane %v426_v11, %v435_v19  ;;  %v646_v36 = vld [vmem:[%s889_s4] ss:$0 sm:$0xff] }
  0x15   : > { %690 = vmatprep.subr.bf16.mxu1 %v759_v1  ;;  %v652_v48 = vld [vmem:[%s891_s6] ss:$0 sm:$0xff] }
  0x16   : > { %679 = vmatpush3.bf16.msra.mxu0 %v727_v5  ;;  %v429_v13 = vrot.slane %v427_v12, 7 }
  0x17   : > { %680 = vmatprep.subr.bf16.mxu0 %v759_v1 }
  0x18   : > { %691 = vmatpush3.bf16.msra.mxu1 %v730_v6  ;;  %v431_v14 = vsub.f32 %v426_v11, %v429_v13 }
  0x19   : > { %692 = vmatprep.subr.bf16.mxu1 %v759_v1 }
  0x1a   : > { %681 = vmatpush3.bf16.msra.mxu0 %v729_v7  ;;  %v432_v15 = vmax.f32 %v431_v14, 0.0 }
  0x1c   : > { %693 = vmatpush3.bf16.msra.mxu1 %v732_v8  ;;  %v439_v16 = vadd.f32 1e-05, %v432_v15 }
  0x1d   : > { %683 = vmatmul.mubr.msk.bf16.vlgmr.msra.gmra.mxu0 %vm380_vm1, %v731_v9 }
  0x1e   : > { %733 = vrsqrt.f32 %v439_v16 }
  0x1f   : > { %695 = vmatmul.mubr.msk.bf16.vlgmr.msra.gmra.mxu1 %vm380_vm1, %v731_v9 }
  0x2b   : > { %v734_v21 = vpop.eup %733 }
  0x2c   : > { %v444_v26 = vrot.slane %v734_v21, %v443_v20 }
  0xdd   : > { %v418_v24 = vpop.f32.mrf.mxu0 }
  0xde   : > { %v419_v25 = vadd.f32 %v638_v22, %v418_v24 }
  0xdf   : > { %v684_v27 = vpop.f32.mrf.mxu0  ;;  %v533_v28 = vpop.f32.mrf.mxu1 }
  0xe0   : > { %v437_v29 = vsub.f32 %v419_v25, %v436_v23 }
  0xe1   : > { %v421_v30 = vpop.f32.mrf.mxu0  ;;  %v696_v32 = vpop.f32.mrf.mxu1 }
  0xe2   : > { %v445_v33 = vmul.f32 %v444_v26, %v437_v29  ;;  %v422_v34 = vadd.f32 %v638_v22, %v421_v30 }
  0xe3   : > { %v685_v35 = vpop.f32.mrf.mxu0  ;;  %v536_v37 = vpop.f32.mrf.mxu1 }
  0xe4   : > { %v438_v38 = vsub.f32 %v422_v34, %v436_v23  ;;  %v454_v39 = vmul.f32 %v645_v31, %v445_v33 }
  0xe5   : > { %v697_v40 = vpop.f32.mrf.mxu1 }
  0xe6   : > { %v446_v41 = vmul.f32 %v444_v26, %v438_v38  ;;  %v463_v42 = vadd.f32 %v646_v36, %v454_v39 }
  0xe8   : > { %v465_v43 = vmax.f32 %v463_v42, 0.0  ;;  %v455_v44 = vmul.f32 %v645_v31, %v446_v41 }
  0xea   : > { %v464_v45 = vadd.f32 %v646_v36, %v455_v44  ;;  %v540_v46 = vadd.f32 %v533_v28, %v465_v43 }
  0xec   : > { %v466_v47 = vmax.f32 %v464_v45, 0.0  ;;  %v549_v50 = vadd.f32 %v652_v48, %v540_v46 }
  0xee   : > { %v541_v49 = vadd.f32 %v536_v37, %v466_v47 }
  0xf0   : > { %v550_v51 = vadd.f32 %v652_v48, %v541_v49 }
  0xf2   : > { %v662_v52 = vpack.c.bf16 %v550_v51, %v549_v50 }
  0xf4   : > { %663 = vst [vmem:[%s330_s25] sm:$0xff] %v662_v52  }
  0xf5 PF: > { %s18_s29 = sadd.s32 1, %s757_s29   ;;  %s894_s27 = smov %s753_s28 }
  0xf6   : > { %p15_p5 = scmp.ge.s32.totalorder %s18_s29, 4   ;;  %s895_s28 = smov %s897_s30 }
  0xf8   :  { %17 = sbr.rel (!%p15_p5) target bundleno = 2 (0x2), region = 82 }

// kernel: pointnet_encoder.24
= control target key start
LH: loop header
LB: loop body
LE: loop exit
PB: predicated region body
PF: predicated region fallthrough
CT: control target
= control target key end

     0   :  { %s1165_s12 = smov 0   ;;  %s1167_s13 = smov 0   ;;  %s1542_s0 = inlined_call_operand.vmem [shape: bf16[32,128], index: 0, kind: input, shape index: {}]   ;;  %s1543_s1 = inlined_call_operand.vmem [shape: bf16[128,1024], index: 1, kind: input, shape index: {}]   ;;  %s1544_s2 = inlined_call_operand.vmem [shape: f32[1,1024], index: 2, kind: input, shape index: {}]   ;;  %s1545_s3 = inlined_call_operand.vmem [shape: f32[2,1024], index: 3, kind: output, shape index: {}]  }
   0x1   :  { %s1169_s14 = smov 0  }
   0x2 LB: > { %s25_s15 = sadd.s32 1, %s1136_s13  ;;  %p1018_p0 = scmp.ge.s32.totalorder %s1140_s14, 1  ;;  %s1140_s14 = sphi %s1169_s14, %s13_s14   ;;  %s1136_s13 = sphi %s1167_s13, %s1547_s13   ;;  %s1132_s12 = sphi %s1165_s12, %s1546_s12  }
   0x3   : > { %p27_p1 = scmp.ge.s32.totalorder %s25_s15, 2  ;;  %p149_p2 = scmp.lt.s32.totalorder %s1140_s14, 3 }
   0x5   : > { %s1549_s15 = smov (%p27_p1, %s25_s15), 0  ;;  %p150_p3 = pnand %p1018_p0, %p149_p2 }
   0x6   : > { %s1019_s22 = sshll.u32 (!%p150_p3), %s1132_s12, 1  ;;  %p784_p5 = scmp.eq.s32.totalorder (!%p150_p3), %s1132_s12, 0 }
   0x7   : > { %153 = sbr.rel (%p150_p3) target bundleno = 328 (0x148), region = 32  ;;  %p171_p4 = scmp.lt.s32.totalorder (!%p150_p3), %s1019_s22, 3 }
   0xc   : > { %v236_v0 = vld [vmem:[%s1543_s1 + $0x1c0] sm:$0xff]  ;;  %v237_v2 = vld [vmem:[%s1543_s1 + $0x1c8] sm:$0xff]  ;;  %v1142_v8 = vmov 0   ;;  %s1551_s22 = smov (!%p171_p4, %s1019_s22), 3  ;;  %v238_v63 = vld [vmem:[%s1543_s1 + $0x1d0] sm:$0xff] }
   0xd   : > { %v240_v1 = vld [vmem:[%s1543_s1 + $0x1e0] sm:$0xff]  ;;  %v241_v4 = vld [vmem:[%s1543_s1 + $0x1e8] sm:$0xff]  ;;  %644 = vmatprep.mubr.bf16.mxu0 %v1142_v8  ;;  %687 = vmatprep.mubr.bf16.mxu1 %v1142_v8  ;;  %s1020_s23 = sshll.u32 %s1551_s22, 2 }
   0xe   : > { %v1079_v3 = vcombine.high %v236_v0, %v240_v1  ;;  %v1078_v5 = vcombine.low %v236_v0, %v240_v1  ;;  %v228_v6 = vld [vmem:[%s1543_s1 + $0x180] sm:$0xff]  ;;  %v1081_v9 = vcombine.high %v237_v2, %v241_v4  ;;  %v1080_v10 = vcombine.low %v237_v2, %v241_v4  ;;  %v229_v12 = vld [vmem:[%s1543_s1 + $0x188] sm:$0xff]  ;;  %s1239_s30 = scalar_lea.vmem %s1542_s0, %s1020_s23  ;;  %v242_v0 = vld [vmem:[%s1543_s1 + $0x1f0] sm:$0xff] }
   0xf   : > { %v232_v7 = vld [vmem:[%s1543_s1 + $0x1a0] sm:$0xff]  ;;  %v233_v13 = vld [vmem:[%s1543_s1 + $0x1a8] sm:$0xff]  ;;  %v239_v1 = vld [vmem:[%s1543_s1 + $0x1d8] sm:$0xff] }
  0x10   : > { %v1071_v11 = vcombine.high %v228_v6, %v232_v7  ;;  %v220_v14 = vld [vmem:[%s1543_s1 + $0x140] sm:$0xff]  ;;  %612 = vmatprep.subr.bf16.mxu0 %v1079_v3  ;;  %v1073_v15 = vcombine.high %v229_v12, %v233_v13  ;;  %v221_v17 = vld [vmem:[%s1543_s1 + $0x148] sm:$0xff]  ;;  %655 = vmatprep.subr.bf16.mxu1 %v1081_v9  ;;  %v1070_v19 = vcombine.low %v228_v6, %v232_v7  ;;  %v243_v2 = vld [vmem:[%s1543_s1 + $0x1f8] sm:$0xff] }
  0x11   : > { %v224_v16 = vld [vmem:[%s1543_s1 + $0x160] sm:$0xff]  ;;  %v225_v18 = vld [vmem:[%s1543_s1 + $0x168] sm:$0xff]  ;;  %613 = vmatpush1.bf16.msra.mxu0 %v1078_v5  ;;  %656 = vmatpush1.bf16.msra.mxu1 %v1080_v10  ;;  %v1072_v20 = vcombine.low %v229_v12, %v233_v13  ;;  %v1083_v5 = vcombine.high %v238_v63, %v242_v0  ;;  %v1085_v6 = vcombine.high %v239_v1, %v243_v2  ;;  %v230_v7 = vld [vmem:[%s1543_s1 + $0x190] sm:$0xff] }
  0x12   : > { %614 = vmatprep.subr.bf16.mxu0 %v1071_v11  ;;  %v1063_v21 = vcombine.high %v220_v14, %v224_v16  ;;  %657 = vmatprep.subr.bf16.mxu1 %v1073_v15  ;;  %v1065_v22 = vcombine.high %v221_v17, %v225_v18  ;;  %v212_v23 = vld [vmem:[%s1543_s1 + $0x100] sm:$0xff]  ;;  %v213_v25 = vld [vmem:[%s1543_s1 + $0x108] sm:$0xff]  ;;  %v1062_v27 = vcombine.low %v220_v14, %v224_v16  ;;  %v234_v9 = vld [vmem:[%s1543_s1 + $0x1b0] sm:$0xff] }
  0x13   : > { %v216_v24 = vld [vmem:[%s1543_s1 + $0x120] sm:$0xff]  ;;  %v217_v26 = vld [vmem:[%s1543_s1 + $0x128] sm:$0xff]  ;;  %v1064_v28 = vcombine.low %v221_v17, %v225_v18  ;;  %v231_v11 = vld [vmem:[%s1543_s1 + $0x198] sm:$0xff]  ;;  %v1082_v13 = vcombine.low %v238_v63, %v242_v0  ;;  %v1084_v14 = vcombine.low %v239_v1, %v243_v2  ;;  %v1075_v15 = vcombine.high %v230_v7, %v234_v9 }
  0x14   : > { %v1055_v29 = vcombine.high %v212_v23, %v216_v24  ;;  %v1057_v30 = vcombine.high %v213_v25, %v217_v26  ;;  %v204_v31 = vld [vmem:[%s1543_s1 + $0xc0] sm:$0xff]  ;;  %v205_v33 = vld [vmem:[%s1543_s1 + $0xc8] sm:$0xff]  ;;  %v1054_v35 = vcombine.low %v212_v23, %v216_v24  ;;  %v1056_v36 = vcombine.low %v213_v25, %v217_v26  ;;  %v235_v12 = vld [vmem:[%s1543_s1 + $0x1b8] sm:$0xff] }
  0x15   : > { %615 = vmatpush1.bf16.msra.mxu0 %v1070_v19  ;;  %658 = vmatpush1.bf16.msra.mxu1 %v1072_v20  ;;  %v208_v32 = vld [vmem:[%s1543_s1 + $0xe0] sm:$0xff]  ;;  %v209_v34 = vld [vmem:[%s1543_s1 + $0xe8] sm:$0xff]  ;;  %v1077_v16 = vcombine.high %v231_v11, %v235_v12  ;;  %v222_v17 = vld [vmem:[%s1543_s1 + $0x150] sm:$0xff]  ;;  %v246_v2 = vlaneseq }
  0x16   : > { %616 = vmatprep.subr.bf16.mxu0 %v1063_v21  ;;  %659 = vmatprep.subr.bf16.mxu1 %v1065_v22  ;;  %v1047_v37 = vcombine.high %v204_v31, %v208_v32  ;;  %v1049_v38 = vcombine.high %v205_v33, %v209_v34  ;;  %v196_v39 = vld [vmem:[%s1543_s1 + $0x80] sm:$0xff]  ;;  %v197_v41 = vld [vmem:[%s1543_s1 + $0x88] sm:$0xff]  ;;  %v1046_v43 = vcombine.low %v204_v31, %v208_v32  ;;  %v226_v18 = vld [vmem:[%s1543_s1 + $0x170] sm:$0xff] }
  0x17   : > { %v200_v40 = vld [vmem:[%s1543_s1 + $0xa0] sm:$0xff]  ;;  %v201_v42 = vld [vmem:[%s1543_s1 + $0xa8] sm:$0xff]  ;;  %v1048_v44 = vcombine.low %v205_v33, %v209_v34  ;;  %v223_v19 = vld [vmem:[%s1543_s1 + $0x158] sm:$0xff]  ;;  %v1074_v21 = vcombine.low %v230_v7, %v234_v9  ;;  %v1076_v22 = vcombine.low %v231_v11, %v235_v12  ;;  %v1067_v23 = vcombine.high %v222_v17, %v226_v18 }
  0x18   : > { %v1039_v45 = vcombine.high %v196_v39, %v200_v40  ;;  %v1041_v46 = vcombine.high %v197_v41, %v201_v42  ;;  %v188_v47 = vld [vmem:[%s1543_s1 + $0x40] sm:$0xff]  ;;  %v189_v49 = vld [vmem:[%s1543_s1 + $0x48] sm:$0xff]  ;;  %v1038_v51 = vcombine.low %v196_v39, %v200_v40  ;;  %v1040_v52 = vcombine.low %v197_v41, %v201_v42  ;;  %v227_v20 = vld [vmem:[%s1543_s1 + $0x178] sm:$0xff] }
  0x19   : > { %617 = vmatpush1.bf16.msra.mxu0 %v1062_v27  ;;  %660 = vmatpush1.bf16.msra.mxu1 %v1064_v28  ;;  %v192_v48 = vld [vmem:[%s1543_s1 + $0x60] sm:$0xff]  ;;  %v193_v50 = vld [vmem:[%s1543_s1 + $0x68] sm:$0xff]  ;;  %v1069_v24 = vcombine.high %v223_v19, %v227_v20  ;;  %v214_v25 = vld [vmem:[%s1543_s1 + $0x110] sm:$0xff] }
  0x1a   : > { %618 = vmatprep.subr.bf16.mxu0 %v1055_v29  ;;  %661 = vmatprep.subr.bf16.mxu1 %v1057_v30  ;;  %v1031_v53 = vcombine.high %v188_v47, %v192_v48  ;;  %v1033_v54 = vcombine.high %v189_v49, %v193_v50  ;;  %v180_v55 = vld [vmem:[%s1543_s1] sm:$0xff]  ;;  %v181_v57 = vld [vmem:[%s1543_s1 + $0x8] sm:$0xff]  ;;  %v1030_v59 = vcombine.low %v188_v47, %v192_v48  ;;  %v218_v26 = vld [vmem:[%s1543_s1 + $0x130] sm:$0xff] }
  0x1b   : > { %v184_v56 = vld [vmem:[%s1543_s1 + $0x20] sm:$0xff]  ;;  %v185_v58 = vld [vmem:[%s1543_s1 + $0x28] sm:$0xff]  ;;  %v1032_v60 = vcombine.low %v189_v49, %v193_v50  ;;  %v215_v27 = vld [vmem:[%s1543_s1 + $0x118] sm:$0xff]  ;;  %v1066_v29 = vcombine.low %v222_v17, %v226_v18  ;;  %v1068_v30 = vcombine.low %v223_v19, %v227_v20  ;;  %v1059_v31 = vcombine.high %v214_v25, %v218_v26 }
  0x1c   : > { %v1023_v61 = vcombine.high %v180_v55, %v184_v56  ;;  %v1025_v62 = vcombine.high %v181_v57, %v185_v58  ;;  %v1022_v3 = vcombine.low %v180_v55, %v184_v56  ;;  %v1024_v4 = vcombine.low %v181_v57, %v185_v58  ;;  %v1308_v10 = vld [vmem:[%s1239_s30] sm:$0xff]   ;;  %v219_v28 = vld [vmem:[%s1543_s1 + $0x138] sm:$0xff]  ;;  %v206_v33 = vld [vmem:[%s1543_s1 + $0xd0] sm:$0xff] }
  0x1d   : > { %619 = vmatpush1.bf16.msra.mxu0 %v1054_v35  ;;  %662 = vmatpush1.bf16.msra.mxu1 %v1056_v36  ;;  %v1061_v32 = vcombine.high %v215_v27, %v219_v28  ;;  %v210_v34 = vld [vmem:[%s1543_s1 + $0xf0] sm:$0xff]  ;;  %v211_v35 = vld [vmem:[%s1543_s1 + $0xf8] sm:$0xff]  ;;  %v1058_v36 = vcombine.low %v214_v25, %v218_v26 }
  0x1e   : > { %620 = vmatprep.subr.bf16.mxu0 %v1047_v37  ;;  %663 = vmatprep.subr.bf16.mxu1 %v1049_v38  ;;  %v1060_v37 = vcombine.low %v215_v27, %v219_v28  ;;  %v1051_v38 = vcombine.high %v206_v33, %v210_v34  ;;  %v198_v40 = vld [vmem:[%s1543_s1 + $0x90] sm:$0xff]  ;;  %v199_v42 = vld [vmem:[%s1543_s1 + $0x98] sm:$0xff] }
  0x1f   : > { %v202_v41 = vld [vmem:[%s1543_s1 + $0xb0] sm:$0xff]  ;;  %v191_v50 = vld [vmem:[%s1543_s1 + $0x58] sm:$0xff] }
  0x20   : > { %v190_v48 = vld [vmem:[%s1543_s1 + $0x50] sm:$0xff]  ;;  %v183_v58 = vld [vmem:[%s1543_s1 + $0x18] sm:$0xff] }
  0x21   : > { %621 = vmatpush1.bf16.msra.mxu0 %v1046_v43  ;;  %664 = vmatpush1.bf16.msra.mxu1 %v1048_v44  ;;  %v203_v43 = vld [vmem:[%s1543_s1 + $0xb8] sm:$0xff]  ;;  %v1050_v44 = vcombine.low %v206_v33, %v210_v34  ;;  %v194_v49 = vld [vmem:[%s1543_s1 + $0x70] sm:$0xff] }
  0x22   : > { %622 = vmatprep.subr.bf16.mxu0 %v1039_v45  ;;  %665 = vmatprep.subr.bf16.mxu1 %v1041_v46  ;;  %v1043_v46 = vcombine.high %v198_v40, %v202_v41  ;;  %v1045_v47 = vcombine.high %v199_v42, %v203_v43  ;;  %v182_v56 = vld [vmem:[%s1543_s1 + $0x10] sm:$0xff] }
  0x23   : > { %v186_v57 = vld [vmem:[%s1543_s1 + $0x30] sm:$0xff] }
  0x24   : > { %v1026_v0 = vcombine.low %v182_v56, %v186_v57 }
  0x25   : > { %623 = vmatpush1.bf16.msra.mxu0 %v1038_v51  ;;  %666 = vmatpush1.bf16.msra.mxu1 %v1040_v52  ;;  %v195_v51 = vld [vmem:[%s1543_s1 + $0x78] sm:$0xff]  ;;  %v1042_v52 = vcombine.low %v198_v40, %v202_v41 }
  0x26   : > { %624 = vmatprep.subr.bf16.mxu0 %v1031_v53  ;;  %667 = vmatprep.subr.bf16.mxu1 %v1033_v54  ;;  %v1044_v53 = vcombine.low %v199_v42, %v203_v43  ;;  %v1035_v54 = vcombine.high %v190_v48, %v194_v49  ;;  %v1037_v55 = vcombine.high %v191_v50, %v195_v51 }
  0x29   : > { %625 = vmatpush1.bf16.msra.mxu0 %v1030_v59  ;;  %668 = vmatpush1.bf16.msra.mxu1 %v1032_v60  ;;  %v187_v59 = vld [vmem:[%s1543_s1 + $0x38] sm:$0xff]  ;;  %v1034_v60 = vcombine.low %v190_v48, %v194_v49 }
  0x2a   : > { %626 = vmatprep.subr.bf16.mxu0 %v1023_v61  ;;  %669 = vmatprep.subr.bf16.mxu1 %v1025_v62  ;;  %v1036_v61 = vcombine.low %v191_v50, %v195_v51  ;;  %v1027_v62 = vcombine.high %v182_v56, %v186_v57  ;;  %v1029_v63 = vcombine.high %v183_v58, %v187_v59 }
  0x2b   : > { %v1028_v1 = vcombine.low %v183_v58, %v187_v59 }
  0x2d   : > { %627 = vmatpush1.bf16.msra.mxu0 %v1022_v3  ;;  %670 = vmatpush1.bf16.msra.mxu1 %v1024_v4  ;;  %v1395_v3 = vshrl.u32 %v246_v2, 7 }
  0x2e   : > { %698 = vmatprep.subr.bf16.mxu0 %v1083_v5  ;;  %741 = vmatprep.subr.bf16.mxu1 %v1085_v6  ;;  %v244_v5 = vld [vmem:[%s1544_s2] sm:$0xff] }
  0x2f   : > { %v248_v4 = vsub.s32 0, %v1395_v3  ;;  %v256_v6 = vsub.s32 2, %v1395_v3  ;;  %v252_v7 = vsub.s32 1, %v1395_v3  ;;  %v260_v9 = vsub.s32 3, %v1395_v3 }
  0x30   : > { %645 = vmatmul.mubr.bf16.vlgmr.msra.gmra.mxu0 %v1308_v10  ;;  %688 = vmatmul.mubr.bf16.vlgmr.msra.gmra.mxu1 %v1308_v10  ;;  %v276_v33 = vsub.s32 7, %v1395_v3 }
  0x31   : > { %699 = vmatpush1.bf16.msra.mxu0 %v1082_v13  ;;  %742 = vmatpush1.bf16.msra.mxu1 %v1084_v14  ;;  %v249_v11 = vrot.slane %v244_v5, %v248_v4  ;;  %v257_v12 = vrot.slane %v244_v5, %v256_v6  ;;  %v253_v13 = vrot.slane %v244_v5, %v252_v7 }
  0x32   : > { %700 = vmatprep.subr.bf16.mxu0 %v1075_v15  ;;  %743 = vmatprep.subr.bf16.mxu1 %v1077_v16  ;;  %v261_v14 = vrot.slane %v244_v5, %v260_v9 }
  0x33   : > { %730 = vmatprep.mubr.bf16.mxu0 %v1142_v8  ;;  %773 = vmatprep.mubr.bf16.mxu1 %v1142_v8  ;;  %v207_v8 = vld [vmem:[%s1543_s1 + $0xd8] sm:$0xff] }
  0x34   : > { %v1053_v39 = vcombine.high %v207_v8, %v211_v35  ;;  %v1052_v45 = vcombine.low %v207_v8, %v211_v35 }
  0x35   : > { %701 = vmatpush1.bf16.msra.mxu0 %v1074_v21  ;;  %744 = vmatpush1.bf16.msra.mxu1 %v1076_v22 }
  0x36   : > { %702 = vmatprep.subr.bf16.mxu0 %v1067_v23  ;;  %745 = vmatprep.subr.bf16.mxu1 %v1069_v24 }
  0x39   : > { %703 = vmatpush1.bf16.msra.mxu0 %v1066_v29  ;;  %746 = vmatpush1.bf16.msra.mxu1 %v1068_v30  ;;  %v264_v30 = vsub.s32 4, %v1395_v3 }
  0x3a   : > { %704 = vmatprep.subr.bf16.mxu0 %v1059_v31  ;;  %747 = vmatprep.subr.bf16.mxu1 %v1061_v32  ;;  %v272_v31 = vsub.s32 6, %v1395_v3  ;;  %v268_v32 = vsub.s32 5, %v1395_v3 }
  0x3b   : > { %v265_v34 = vrot.slane %v244_v5, %v264_v30 }
  0x3c   : > { %v273_v8 = vrot.slane %v244_v5, %v272_v31  ;;  %v269_v35 = vrot.slane %v244_v5, %v268_v32 }
  0x3d   : > { %705 = vmatpush1.bf16.msra.mxu0 %v1058_v36  ;;  %748 = vmatpush1.bf16.msra.mxu1 %v1060_v37  ;;  %v277_v37 = vrot.slane %v244_v5, %v276_v33 }
  0x3e   : > { %706 = vmatprep.subr.bf16.mxu0 %v1051_v38  ;;  %749 = vmatprep.subr.bf16.mxu1 %v1053_v39 }
  0x41   : > { %707 = vmatpush1.bf16.msra.mxu0 %v1050_v44  ;;  %750 = vmatpush1.bf16.msra.mxu1 %v1052_v45 }
  0x42   : > { %708 = vmatprep.subr.bf16.mxu0 %v1043_v46  ;;  %751 = vmatprep.subr.bf16.mxu1 %v1045_v47 }
  0x45   : > { %709 = vmatpush1.bf16.msra.mxu0 %v1042_v52  ;;  %752 = vmatpush1.bf16.msra.mxu1 %v1044_v53  ;;  %v1143_v53 = vmov (%p784_p5), 0.0  }
  0x46   : > { %710 = vmatprep.subr.bf16.mxu0 %v1035_v54  ;;  %753 = vmatprep.subr.bf16.mxu1 %v1037_v55  ;;  %790 = vst [vmem:[%s1545_s3] sm:$0xff] (%p784_p5), %v1143_v53  ;;  %791 = vst [vmem:[%s1545_s3 + $0x8] sm:$0xff] (%p784_p5), %v1143_v53 }
  0x49   : > { %711 = vmatpush1.bf16.msra.mxu0 %v1034_v60  ;;  %754 = vmatpush1.bf16.msra.mxu1 %v1036_v61 }
  0x4a   : > { %712 = vmatprep.subr.bf16.mxu0 %v1027_v62  ;;  %755 = vmatprep.subr.bf16.mxu1 %v1029_v63 }
  0x4d   : > { %713 = vmatpush1.bf16.msra.mxu0 %v1026_v0  ;;  %756 = vmatpush1.bf16.msra.mxu1 %v1028_v1 }
  0x50   : > { %731 = vmatmul.mubr.bf16.vlgmr.msra.gmra.mxu0 %v1308_v10  ;;  %774 = vmatmul.mubr.bf16.vlgmr.msra.gmra.mxu1 %v1308_v10 }
  0xf0   : > { %v646_v10 = vpop.f32.mrf.mxu0  ;;  %v689_v16 = vpop.f32.mrf.mxu1 }
  0xf1   : > { %v1404_v15 = vadd.f32 %v646_v10, %v249_v11  ;;  %v1406_v17 = vadd.f32 %v689_v16, %v257_v12 }
  0xf2   : > { %v648_v18 = vpop.f32.mrf.mxu0  ;;  %v691_v20 = vpop.f32.mrf.mxu1 }
  0xf3   : > { %v1408_v19 = vadd.f32 %v648_v18, %v253_v13  ;;  %v1410_v21 = vadd.f32 %v691_v20, %v261_v14 }
  0xf4   : > { %v650_v22 = vpop.f32.mrf.mxu0  ;;  %v693_v24 = vpop.f32.mrf.mxu1 }
  0xf5   : > { %v1412_v23 = vadd.f32 %v650_v22, %v249_v11  ;;  %v1414_v25 = vadd.f32 %v693_v24, %v257_v12 }
  0xf6   : > { %v652_v26 = vpop.f32.mrf.mxu0  ;;  %v695_v28 = vpop.f32.mrf.mxu1 }
  0xf7   : > { %v1416_v27 = vadd.f32 %v652_v26, %v253_v13  ;;  %v1418_v29 = vadd.f32 %v695_v28, %v261_v14 }
 0x110   : > { %v732_v36 = vpop.f32.mrf.mxu0  ;;  %v775_v39 = vpop.f32.mrf.mxu1 }
 0x111   : > { %v1424_v38 = vadd.f32 %v732_v36, %v265_v34  ;;  %v1426_v40 = vadd.f32 %v775_v39, %v273_v8 }
 0x112   : > { %v734_v41 = vpop.f32.mrf.mxu0  ;;  %v777_v43 = vpop.f32.mrf.mxu1 }
 0x113   : > { %v1428_v42 = vadd.f32 %v734_v41, %v269_v35  ;;  %v1430_v44 = vadd.f32 %v777_v43, %v277_v37  ;;  %789 = sbr.rel (!%p784_p5) target bundleno = 280 (0x118), region = 36 }
 0x114   : > { %v736_v45 = vpop.f32.mrf.mxu0  ;;  %v779_v47 = vpop.f32.mrf.mxu1 }
 0x115   : > { %v1432_v46 = vadd.f32 %v736_v45, %v265_v34  ;;  %v1434_v48 = vadd.f32 %v779_v47, %v273_v8 }
 0x116   : > { %v738_v49 = vpop.f32.mrf.mxu0  ;;  %v781_v51 = vpop.f32.mrf.mxu1 }
 0x117   : > { %v1436_v50 = vadd.f32 %v738_v49, %v269_v35  ;;  %v1438_v52 = vadd.f32 %v781_v51, %v277_v37 }
 0x118 PF: > { %v792_v54 = vadd.f32 %v1412_v23, %v1404_v15  ;;  %v799_v55 = vadd.f32 %v1416_v27, %v1408_v19  ;;  %v806_v56 = vadd.f32 %v1414_v25, %v1406_v17  ;;  %v813_v57 = vadd.f32 %v1418_v29, %v1410_v21 }
 0x119   : > { %v820_v58 = vadd.f32 %v1432_v46, %v1424_v38  ;;  %v827_v59 = vadd.f32 %v1436_v50, %v1428_v42  ;;  %v834_v60 = vadd.f32 %v1434_v48, %v1426_v40  ;;  %v841_v61 = vadd.f32 %v1438_v52, %v1430_v44 }
 0x11a   : > { %v793_v62 = vrot.slane %v792_v54, 4  ;;  %v800_v63 = vrot.slane %v799_v55, 4  ;;  %v807_v0 = vrot.slane %v806_v56, 4  ;;  %v814_v1 = vrot.slane %v813_v57, 4 }
 0x11b   : > { %v821_v2 = vrot.slane %v820_v58, 4  ;;  %v828_v4 = vrot.slane %v827_v59, 4  ;;  %v835_v5 = vrot.slane %v834_v60, 4  ;;  %v842_v6 = vrot.slane %v841_v61, 4 }
 0x11c   : > { %v794_v7 = vadd.f32 %v793_v62, %v792_v54  ;;  %v801_v9 = vadd.f32 %v800_v63, %v799_v55  ;;  %v808_v11 = vadd.f32 %v807_v0, %v806_v56  ;;  %v815_v12 = vadd.f32 %v814_v1, %v813_v57 }
 0x11d   : > { %v822_v13 = vadd.f32 %v821_v2, %v820_v58  ;;  %v829_v10 = vadd.f32 %v828_v4, %v827_v59  ;;  %v836_v14 = vadd.f32 %v835_v5, %v834_v60  ;;  %v843_v16 = vadd.f32 %v842_v6, %v841_v61 }
 0x11e   : > { %v795_v18 = vrot.slane %v794_v7, 2  ;;  %v802_v20 = vrot.slane %v801_v9, 2  ;;  %v809_v22 = vrot.slane %v808_v11, 2  ;;  %v816_v24 = vrot.slane %v815_v12, 2 }
 0x11f   : > { %v823_v26 = vrot.slane %v822_v13, 2  ;;  %v830_v28 = vrot.slane %v829_v10, 2  ;;  %v837_v30 = vrot.slane %v836_v14, 2  ;;  %v844_v31 = vrot.slane %v843_v16, 2 }
 0x120   : > { %v796_v32 = vadd.f32 %v795_v18, %v794_v7  ;;  %v803_v33 = vadd.f32 %v802_v20, %v801_v9  ;;  %v810_v34 = vadd.f32 %v809_v22, %v808_v11  ;;  %v817_v8 = vadd.f32 %v816_v24, %v815_v12 }
 0x121   : > { %v824_v35 = vadd.f32 %v823_v26, %v822_v13  ;;  %v831_v36 = vadd.f32 %v830_v28, %v829_v10  ;;  %v838_v37 = vadd.f32 %v837_v30, %v836_v14  ;;  %v845_v39 = vadd.f32 %v844_v31, %v843_v16 }
 0x122   : > { %v797_v41 = vrot.slane %v796_v32, 1  ;;  %v804_v43 = vrot.slane %v803_v33, 1  ;;  %v811_v45 = vrot.slane %v810_v34, 1  ;;  %v818_v47 = vrot.slane %v817_v8, 1 }
 0x123   : > { %v825_v49 = vrot.slane %v824_v35, 1  ;;  %v832_v51 = vrot.slane %v831_v36, 1  ;;  %v839_v53 = vrot.slane %v838_v37, 1  ;;  %v846_v54 = vrot.slane %v845_v39, 1 }
 0x124   : > { %v1464_v55 = vadd.f32 %v797_v41, %v796_v32  ;;  %v1466_v56 = vadd.f32 %v804_v43, %v803_v33  ;;  %v1468_v57 = vadd.f32 %v811_v45, %v810_v34  ;;  %v1470_v58 = vadd.f32 %v818_v47, %v817_v8 }
 0x125   : > { %v1472_v59 = vadd.f32 %v825_v49, %v824_v35  ;;  %v1474_v60 = vadd.f32 %v832_v51, %v831_v36  ;;  %v1476_v61 = vadd.f32 %v839_v53, %v838_v37  ;;  %v1478_v62 = vadd.f32 %v846_v54, %v845_v39 }
 0x126   : > { %v848_v63 = vmul.f32 %v1404_v15, %v1404_v15  ;;  %v849_v0 = vmul.f32 %v1408_v19, %v1408_v19  ;;  %v850_v1 = vmul.f32 %v1406_v17, %v1406_v17  ;;  %v851_v2 = vmul.f32 %v1410_v21, %v1410_v21 }
 0x127   : > { %v852_v4 = vmul.f32 %v1424_v38, %v1424_v38  ;;  %v853_v5 = vmul.f32 %v1428_v42, %v1428_v42  ;;  %v854_v6 = vmul.f32 %v1426_v40, %v1426_v40  ;;  %v855_v15 = vmul.f32 %v1430_v44, %v1430_v44 }
 0x128   : > { %v856_v19 = vmul.f32 %v1412_v23, %v1412_v23  ;;  %v857_v17 = vmul.f32 %v1416_v27, %v1416_v27  ;;  %v858_v21 = vmul.f32 %v1414_v25, %v1414_v25  ;;  %v859_v38 = vmul.f32 %v1418_v29, %v1418_v29 }
 0x129   : > { %v860_v42 = vmul.f32 %v1432_v46, %v1432_v46  ;;  %v861_v40 = vmul.f32 %v1436_v50, %v1436_v50  ;;  %v862_v44 = vmul.f32 %v1434_v48, %v1434_v48  ;;  %v863_v23 = vmul.f32 %v1438_v52, %v1438_v52 }
 0x12a   : > { %v864_v7 = vadd.f32 %v856_v19, %v848_v63  ;;  %v871_v27 = vadd.f32 %v857_v17, %v849_v0  ;;  %v878_v9 = vadd.f32 %v858_v21, %v850_v1  ;;  %v885_v11 = vadd.f32 %v859_v38, %v851_v2 }
 0x12b   : > { %v892_v25 = vadd.f32 %v860_v42, %v852_v4  ;;  %v899_v12 = vadd.f32 %v861_v40, %v853_v5  ;;  %v906_v13 = vadd.f32 %v862_v44, %v854_v6  ;;  %v913_v29 = vadd.f32 %v863_v23, %v855_v15 }
 0x12c   : > { %v865_v10 = vrot.slane %v864_v7, 4  ;;  %v872_v14 = vrot.slane %v871_v27, 4  ;;  %v879_v46 = vrot.slane %v878_v9, 4  ;;  %v886_v16 = vrot.slane %v885_v11, 4 }
 0x12d   : > { %v893_v18 = vrot.slane %v892_v25, 4  ;;  %v900_v50 = vrot.slane %v899_v12, 4  ;;  %v907_v20 = vrot.slane %v906_v13, 4  ;;  %v914_v22 = vrot.slane %v913_v29, 4 }
 0x12e   : > { %v866_v48 = vadd.f32 %v865_v10, %v864_v7  ;;  %v873_v24 = vadd.f32 %v872_v14, %v871_v27  ;;  %v880_v26 = vadd.f32 %v879_v46, %v878_v9  ;;  %v887_v52 = vadd.f32 %v886_v16, %v885_v11 }
 0x12f   : > { %v894_v28 = vadd.f32 %v893_v18, %v892_v25  ;;  %v901_v30 = vadd.f32 %v900_v50, %v899_v12  ;;  %v908_v31 = vadd.f32 %v907_v20, %v906_v13  ;;  %v915_v32 = vadd.f32 %v914_v22, %v913_v29 }
 0x130   : > { %v867_v33 = vrot.slane %v866_v48, 2  ;;  %v874_v34 = vrot.slane %v873_v24, 2  ;;  %v881_v8 = vrot.slane %v880_v26, 2  ;;  %v888_v35 = vrot.slane %v887_v52, 2 }
 0x131   : > { %v895_v36 = vrot.slane %v894_v28, 2  ;;  %v902_v37 = vrot.slane %v901_v30, 2  ;;  %v909_v39 = vrot.slane %v908_v31, 2  ;;  %v916_v41 = vrot.slane %v915_v32, 2 }
 0x132   : > { %v868_v43 = vadd.f32 %v867_v33, %v866_v48  ;;  %v875_v45 = vadd.f32 %v874_v34, %v873_v24  ;;  %v882_v47 = vadd.f32 %v881_v8, %v880_v26  ;;  %v889_v49 = vadd.f32 %v888_v35, %v887_v52 }
 0x133   : > { %v896_v51 = vadd.f32 %v895_v36, %v894_v28  ;;  %v903_v53 = vadd.f32 %v902_v37, %v901_v30  ;;  %v910_v54 = vadd.f32 %v909_v39, %v908_v31  ;;  %v917_v63 = vadd.f32 %v916_v41, %v915_v32 }
 0x134   : > { %v869_v0 = vrot.slane %v868_v43, 1  ;;  %v876_v1 = vrot.slane %v875_v45, 1  ;;  %v883_v2 = vrot.slane %v882_v47, 1  ;;  %v890_v4 = vrot.slane %v889_v49, 1 }
 0x135   : > { %v897_v5 = vrot.slane %v896_v51, 1  ;;  %v904_v6 = vrot.slane %v903_v53, 1  ;;  %v911_v15 = vrot.slane %v910_v54, 1  ;;  %v918_v19 = vrot.slane %v917_v63, 1 }
 0x136   : > { %v870_v17 = vadd.f32 %v869_v0, %v868_v43  ;;  %v877_v21 = vadd.f32 %v876_v1, %v875_v45  ;;  %v884_v38 = vadd.f32 %v883_v2, %v882_v47  ;;  %v891_v42 = vadd.f32 %v890_v4, %v889_v49 }
 0x137   : > { %v898_v40 = vadd.f32 %v897_v5, %v896_v51  ;;  %v905_v44 = vadd.f32 %v904_v6, %v903_v53  ;;  %v912_v23 = vadd.f32 %v911_v15, %v910_v54  ;;  %v919_v7 = vadd.f32 %v918_v19, %v917_v63 }
 0x138   : > { %vm922_vm0 = vcmask 1040384   ;;  %v1144_v14 = vmov 1983009808  }
 0x139   : > { %v923_v27 = vsel %vm922_vm0, %v1464_v55, %v870_v17  ;;  %v924_v9 = vsel %vm922_vm0, %v1466_v56, %v877_v21  ;;  %v925_v11 = vsel %vm922_vm0, %v1468_v57, %v884_v38  ;;  %v926_v25 = vsel %vm922_vm0, %v1470_v58, %v891_v42 }
 0x13a   : > { %v927_v12 = vsel %vm922_vm0, %v1472_v59, %v898_v40  ;;  %v928_v13 = vsel %vm922_vm0, %v1474_v60, %v905_v44  ;;  %v929_v29 = vsel %vm922_vm0, %v1476_v61, %v912_v23  ;;  %v930_v10 = vsel %vm922_vm0, %v1478_v62, %v919_v7  ;;  %v920_v59 = vld [vmem:[%s1545_s3] sm:$0xff]  ;;  %v921_v60 = vld [vmem:[%s1545_s3 + $0x8] sm:$0xff] }
 0x13b   : > { %v942_v46 = vunpack.c.l.s4 %v1144_v14  ;;  %v939_v16 = vcombine.low %v923_v27, %v924_v9  ;;  %v940_v18 = vcombine.low %v925_v11, %v926_v25  ;;  %v956_v55 = vcombine.low %v927_v12, %v928_v13 }
 0x13c   : > { %v957_v20 = vcombine.low %v929_v29, %v930_v10 }
 0x13d   : > { %v943_v50 = vunpack.c.0.s8 %v942_v46 }
 0x13f   : > { %v946_v56 = vsub.s32 %v943_v50, %v1395_v3 }
 0x141   : > { %v947_v57 = vrot.slane %v939_v16, %v946_v56  ;;  %v954_v22 = vrot.slane %v940_v18, %v946_v56  ;;  %v964_v58 = vrot.slane %v956_v55, %v946_v56  ;;  %v971_v48 = vrot.slane %v957_v20, %v946_v56 }
 0x143   : > { %v955_v61 = vcombine.low %v947_v57, %v954_v22  ;;  %v972_v62 = vcombine.low %v964_v58, %v971_v48 }
 0x145   : > { %v975_v24 = vadd.f32 %v955_v61, %v920_v59  ;;  %v976_v26 = vadd.f32 %v972_v62, %v921_v60 }
 0x147   : > { %977 = vst [vmem:[%s1545_s3] sm:$0xff] %v975_v24  ;;  %978 = vst [vmem:[%s1545_s3 + $0x8] sm:$0xff] %v976_v26 }
 0x148 PF: > { %s13_s14 = sadd.s32 1, %s1140_s14   ;;  %s1546_s12 = smov %s1136_s13 }
 0x149   : > { %p10_p6 = scmp.ge.s32.totalorder %s13_s14, 4   ;;  %s1547_s13 = smov %s1549_s15 }
 0x14b   :  { %12 = sbr.rel (!%p10_p6) target bundleno = 2 (0x2), region = 62 }

// kernel: pointnet_encoder.25
= control target key start
LH: loop header
LB: loop body
LE: loop exit
PB: predicated region body
PF: predicated region fallthrough
CT: control target
= control target key end

     0   :  { %s2380_s27 = smov 0   ;;  %s2382_s28 = smov 0   ;;  %s3092_s0 = inlined_call_operand.vmem [shape: bf16[32,128], index: 0, kind: input, shape index: {}]   ;;  %s3093_s1 = inlined_call_operand.vmem [shape: bf16[128,1024], index: 1, kind: input, shape index: {}]   ;;  %s3094_s2 = inlined_call_operand.vmem [shape: f32[1,1024], index: 2, kind: input, shape index: {}]   ;;  %s3095_s3 = inlined_call_operand.vmem [shape: f32[1,1024], index: 3, kind: input, shape index: {}]   ;;  %s3096_s4 = inlined_call_operand.vmem [shape: f32[1,1024], index: 4, kind: input, shape index: {}]   ;;  %s3097_s5 = inlined_call_operand.vmem [shape: bf16[128,1024], index: 5, kind: input, shape index: {}]   ;;  %s3098_s6 = inlined_call_operand.vmem [shape: f32[1,1024], index: 6, kind: input, shape index: {}]   ;;  %s3099_s7 = inlined_call_operand.vmem [shape: f32[2,1024], index: 7, kind: input, shape index: {}]   ;;  %s3100_s8 = inlined_call_operand.vmem [shape: f32[2,1,1024], index: 8, kind: output, shape index: {}]  }
   0x1   :  { %s2384_s29 = smov 0  }
   0x2 LB: > { %s30_s30 = sadd.s32 1, %s2327_s28  ;;  %p2143_p0 = scmp.ge.s32.totalorder %s2331_s29, 1  ;;  %s2331_s29 = sphi %s2384_s29, %s18_s29   ;;  %s2327_s28 = sphi %s2382_s28, %s3102_s28   ;;  %s2323_s27 = sphi %s2380_s27, %s3101_s27  }
   0x3   : > { %p32_p1 = scmp.ge.s32.totalorder %s30_s30, 2  ;;  %p279_p2 = scmp.lt.s32.totalorder %s2331_s29, 3 }
   0x5   : > { %s3104_s30 = smov (%p32_p1, %s30_s30), 0  ;;  %p280_p3 = pnand %p2143_p0, %p279_p2 }
   0x6   : > { %s2144_s15 = sshll.u32 (!%p280_p3), %s2323_s27, 1  ;;  %p321_p5 = scmp.lt.s32.totalorder (!%p280_p3), %s2323_s27, 1 }
   0x7   : > { %283 = sbr.rel (%p280_p3) target bundleno = 372 (0x174), region = 52  ;;  %p315_p4 = scmp.lt.s32.totalorder (!%p280_p3), %s2144_s15, 3 }
   0xc   : > { %v384_v0 = vld [vmem:[%s3093_s1 + $0x1c0] sm:$0xff]  ;;  %v385_v2 = vld [vmem:[%s3093_s1 + $0x1c8] sm:$0xff]  ;;  %v2333_v8 = vmov 0   ;;  %s3106_s15 = smov (!%p315_p4, %s2144_s15), 3  ;;  %v386_v63 = vld [vmem:[%s3093_s1 + $0x1d0] sm:$0xff]  ;;  %s3108_s27 = smov (!%p321_p5, %s2323_s27), 1 }
   0xd   : > { %v388_v1 = vld [vmem:[%s3093_s1 + $0x1e0] sm:$0xff]  ;;  %v389_v4 = vld [vmem:[%s3093_s1 + $0x1e8] sm:$0xff]  ;;  %792 = vmatprep.mubr.bf16.mxu0 %v2333_v8  ;;  %835 = vmatprep.mubr.bf16.mxu1 %v2333_v8  ;;  %s2145_s21 = sshll.u32 %s3106_s15, 2  ;;  %s2146_s14 = sshll.u32 %s3108_s27, 3 }
   0xe   : > { %v2205_v3 = vcombine.high %v384_v0, %v388_v1  ;;  %v2204_v5 = vcombine.low %v384_v0, %v388_v1  ;;  %v376_v6 = vld [vmem:[%s3093_s1 + $0x180] sm:$0xff]  ;;  %v2207_v9 = vcombine.high %v385_v2, %v389_v4  ;;  %v2206_v10 = vcombine.low %v385_v2, %v389_v4  ;;  %v377_v12 = vld [vmem:[%s3093_s1 + $0x188] sm:$0xff]  ;;  %s2454_s10 = scalar_lea.vmem %s3092_s0, %s2145_s21  ;;  %v390_v0 = vld [vmem:[%s3093_s1 + $0x1f0] sm:$0xff]  ;;  %s324_s18 = scalar_lea.vmem %s3100_s8, %s2146_s14 }
   0xf   : > { %v380_v7 = vld [vmem:[%s3093_s1 + $0x1a0] sm:$0xff]  ;;  %v381_v13 = vld [vmem:[%s3093_s1 + $0x1a8] sm:$0xff]  ;;  %v387_v1 = vld [vmem:[%s3093_s1 + $0x1d8] sm:$0xff] }
  0x10   : > { %v2197_v11 = vcombine.high %v376_v6, %v380_v7  ;;  %v368_v14 = vld [vmem:[%s3093_s1 + $0x140] sm:$0xff]  ;;  %760 = vmatprep.subr.bf16.mxu0 %v2205_v3  ;;  %v2199_v15 = vcombine.high %v377_v12, %v381_v13  ;;  %v369_v17 = vld [vmem:[%s3093_s1 + $0x148] sm:$0xff]  ;;  %803 = vmatprep.subr.bf16.mxu1 %v2207_v9  ;;  %v2196_v19 = vcombine.low %v376_v6, %v380_v7  ;;  %v391_v2 = vld [vmem:[%s3093_s1 + $0x1f8] sm:$0xff] }
  0x11   : > { %v372_v16 = vld [vmem:[%s3093_s1 + $0x160] sm:$0xff]  ;;  %v373_v18 = vld [vmem:[%s3093_s1 + $0x168] sm:$0xff]  ;;  %761 = vmatpush1.bf16.msra.mxu0 %v2204_v5  ;;  %804 = vmatpush1.bf16.msra.mxu1 %v2206_v10  ;;  %v2198_v20 = vcombine.low %v377_v12, %v381_v13  ;;  %v2209_v5 = vcombine.high %v386_v63, %v390_v0  ;;  %v2211_v6 = vcombine.high %v387_v1, %v391_v2  ;;  %v378_v7 = vld [vmem:[%s3093_s1 + $0x190] sm:$0xff] }
  0x12   : > { %762 = vmatprep.subr.bf16.mxu0 %v2197_v11  ;;  %v2189_v21 = vcombine.high %v368_v14, %v372_v16  ;;  %805 = vmatprep.subr.bf16.mxu1 %v2199_v15  ;;  %v2191_v22 = vcombine.high %v369_v17, %v373_v18  ;;  %v360_v23 = vld [vmem:[%s3093_s1 + $0x100] sm:$0xff]  ;;  %v361_v25 = vld [vmem:[%s3093_s1 + $0x108] sm:$0xff]  ;;  %v2188_v27 = vcombine.low %v368_v14, %v372_v16  ;;  %v382_v9 = vld [vmem:[%s3093_s1 + $0x1b0] sm:$0xff] }
  0x13   : > { %v364_v24 = vld [vmem:[%s3093_s1 + $0x120] sm:$0xff]  ;;  %v365_v26 = vld [vmem:[%s3093_s1 + $0x128] sm:$0xff]  ;;  %v2190_v28 = vcombine.low %v369_v17, %v373_v18  ;;  %v379_v11 = vld [vmem:[%s3093_s1 + $0x198] sm:$0xff]  ;;  %v2208_v13 = vcombine.low %v386_v63, %v390_v0  ;;  %v2210_v14 = vcombine.low %v387_v1, %v391_v2  ;;  %v2201_v15 = vcombine.high %v378_v7, %v382_v9 }
  0x14   : > { %v2181_v29 = vcombine.high %v360_v23, %v364_v24  ;;  %v2183_v30 = vcombine.high %v361_v25, %v365_v26  ;;  %v352_v31 = vld [vmem:[%s3093_s1 + $0xc0] sm:$0xff]  ;;  %v353_v33 = vld [vmem:[%s3093_s1 + $0xc8] sm:$0xff]  ;;  %v2180_v35 = vcombine.low %v360_v23, %v364_v24  ;;  %v2182_v36 = vcombine.low %v361_v25, %v365_v26  ;;  %v383_v12 = vld [vmem:[%s3093_s1 + $0x1b8] sm:$0xff] }
  0x15   : > { %763 = vmatpush1.bf16.msra.mxu0 %v2196_v19  ;;  %806 = vmatpush1.bf16.msra.mxu1 %v2198_v20  ;;  %v356_v32 = vld [vmem:[%s3093_s1 + $0xe0] sm:$0xff]  ;;  %v357_v34 = vld [vmem:[%s3093_s1 + $0xe8] sm:$0xff]  ;;  %v2203_v16 = vcombine.high %v379_v11, %v383_v12  ;;  %v370_v17 = vld [vmem:[%s3093_s1 + $0x150] sm:$0xff] }
  0x16   : > { %764 = vmatprep.subr.bf16.mxu0 %v2189_v21  ;;  %807 = vmatprep.subr.bf16.mxu1 %v2191_v22  ;;  %v2173_v37 = vcombine.high %v352_v31, %v356_v32  ;;  %v2175_v38 = vcombine.high %v353_v33, %v357_v34  ;;  %v344_v39 = vld [vmem:[%s3093_s1 + $0x80] sm:$0xff]  ;;  %v345_v41 = vld [vmem:[%s3093_s1 + $0x88] sm:$0xff]  ;;  %v2172_v43 = vcombine.low %v352_v31, %v356_v32  ;;  %v374_v18 = vld [vmem:[%s3093_s1 + $0x170] sm:$0xff] }
  0x17   : > { %v348_v40 = vld [vmem:[%s3093_s1 + $0xa0] sm:$0xff]  ;;  %v349_v42 = vld [vmem:[%s3093_s1 + $0xa8] sm:$0xff]  ;;  %v2174_v44 = vcombine.low %v353_v33, %v357_v34  ;;  %v371_v19 = vld [vmem:[%s3093_s1 + $0x158] sm:$0xff]  ;;  %v2200_v21 = vcombine.low %v378_v7, %v382_v9  ;;  %v2202_v22 = vcombine.low %v379_v11, %v383_v12  ;;  %v2193_v23 = vcombine.high %v370_v17, %v374_v18 }
  0x18   : > { %v2165_v45 = vcombine.high %v344_v39, %v348_v40  ;;  %v2167_v46 = vcombine.high %v345_v41, %v349_v42  ;;  %v336_v47 = vld [vmem:[%s3093_s1 + $0x40] sm:$0xff]  ;;  %v337_v49 = vld [vmem:[%s3093_s1 + $0x48] sm:$0xff]  ;;  %v2164_v51 = vcombine.low %v344_v39, %v348_v40  ;;  %v2166_v52 = vcombine.low %v345_v41, %v349_v42  ;;  %v375_v20 = vld [vmem:[%s3093_s1 + $0x178] sm:$0xff] }
  0x19   : > { %765 = vmatpush1.bf16.msra.mxu0 %v2188_v27  ;;  %808 = vmatpush1.bf16.msra.mxu1 %v2190_v28  ;;  %v340_v48 = vld [vmem:[%s3093_s1 + $0x60] sm:$0xff]  ;;  %v341_v50 = vld [vmem:[%s3093_s1 + $0x68] sm:$0xff]  ;;  %v2195_v24 = vcombine.high %v371_v19, %v375_v20  ;;  %v362_v25 = vld [vmem:[%s3093_s1 + $0x110] sm:$0xff] }
  0x1a   : > { %766 = vmatprep.subr.bf16.mxu0 %v2181_v29  ;;  %809 = vmatprep.subr.bf16.mxu1 %v2183_v30  ;;  %v2157_v53 = vcombine.high %v336_v47, %v340_v48  ;;  %v2159_v54 = vcombine.high %v337_v49, %v341_v50  ;;  %v328_v55 = vld [vmem:[%s3093_s1] sm:$0xff]  ;;  %v329_v57 = vld [vmem:[%s3093_s1 + $0x8] sm:$0xff]  ;;  %v2156_v59 = vcombine.low %v336_v47, %v340_v48  ;;  %v366_v26 = vld [vmem:[%s3093_s1 + $0x130] sm:$0xff] }
  0x1b   : > { %v332_v56 = vld [vmem:[%s3093_s1 + $0x20] sm:$0xff]  ;;  %v333_v58 = vld [vmem:[%s3093_s1 + $0x28] sm:$0xff]  ;;  %v2158_v60 = vcombine.low %v337_v49, %v341_v50  ;;  %v363_v27 = vld [vmem:[%s3093_s1 + $0x118] sm:$0xff]  ;;  %v2192_v29 = vcombine.low %v370_v17, %v374_v18  ;;  %v2194_v30 = vcombine.low %v371_v19, %v375_v20  ;;  %v2185_v31 = vcombine.high %v362_v25, %v366_v26 }
  0x1c   : > { %v2149_v61 = vcombine.high %v328_v55, %v332_v56  ;;  %v2151_v62 = vcombine.high %v329_v57, %v333_v58  ;;  %v2148_v3 = vcombine.low %v328_v55, %v332_v56  ;;  %v2150_v4 = vcombine.low %v329_v57, %v333_v58  ;;  %v2523_v10 = vld [vmem:[%s2454_s10] sm:$0xff]   ;;  %v367_v28 = vld [vmem:[%s3093_s1 + $0x138] sm:$0xff]  ;;  %v354_v33 = vld [vmem:[%s3093_s1 + $0xd0] sm:$0xff] }
  0x1d   : > { %767 = vmatpush1.bf16.msra.mxu0 %v2180_v35  ;;  %810 = vmatpush1.bf16.msra.mxu1 %v2182_v36  ;;  %v2187_v32 = vcombine.high %v363_v27, %v367_v28  ;;  %v358_v34 = vld [vmem:[%s3093_s1 + $0xf0] sm:$0xff]  ;;  %v355_v35 = vld [vmem:[%s3093_s1 + $0xd8] sm:$0xff]  ;;  %v1320_v1 = vld [vmem:[%s3097_s5 + $0x1c0] sm:$0xff] }
  0x1e   : > { %768 = vmatprep.subr.bf16.mxu0 %v2173_v37  ;;  %811 = vmatprep.subr.bf16.mxu1 %v2175_v38  ;;  %v359_v36 = vld [vmem:[%s3093_s1 + $0xf8] sm:$0xff]  ;;  %v2184_v37 = vcombine.low %v362_v25, %v366_v26  ;;  %v2186_v38 = vcombine.low %v363_v27, %v367_v28  ;;  %v2177_v39 = vcombine.high %v354_v33, %v358_v34  ;;  %v346_v41 = vld [vmem:[%s3093_s1 + $0x90] sm:$0xff]  ;;  %v1324_v2 = vld [vmem:[%s3097_s5 + $0x1e0] sm:$0xff] }
  0x1f   : > { %v2179_v40 = vcombine.high %v355_v35, %v359_v36  ;;  %v350_v42 = vld [vmem:[%s3093_s1 + $0xb0] sm:$0xff]  ;;  %v2269_v7 = vcombine.high %v1320_v1, %v1324_v2  ;;  %v1312_v11 = vld [vmem:[%s3097_s5 + $0x180] sm:$0xff] }
  0x20   : > { %v2169_v47 = vcombine.high %v346_v41, %v350_v42  ;;  %v338_v49 = vld [vmem:[%s3093_s1 + $0x50] sm:$0xff]  ;;  %v1316_v12 = vld [vmem:[%s3097_s5 + $0x1a0] sm:$0xff] }
  0x21   : > { %769 = vmatpush1.bf16.msra.mxu0 %v2172_v43  ;;  %812 = vmatpush1.bf16.msra.mxu1 %v2174_v44  ;;  %v347_v43 = vld [vmem:[%s3093_s1 + $0x98] sm:$0xff]  ;;  %v342_v50 = vld [vmem:[%s3093_s1 + $0x70] sm:$0xff]  ;;  %v2261_v17 = vcombine.high %v1312_v11, %v1316_v12  ;;  %v1304_v19 = vld [vmem:[%s3097_s5 + $0x140] sm:$0xff] }
  0x22   : > { %770 = vmatprep.subr.bf16.mxu0 %v2165_v45  ;;  %813 = vmatprep.subr.bf16.mxu1 %v2167_v46  ;;  %v351_v44 = vld [vmem:[%s3093_s1 + $0xb8] sm:$0xff]  ;;  %v2176_v45 = vcombine.low %v354_v33, %v358_v34  ;;  %v2178_v46 = vcombine.low %v355_v35, %v359_v36  ;;  %v2161_v55 = vcombine.high %v338_v49, %v342_v50  ;;  %v330_v57 = vld [vmem:[%s3093_s1 + $0x10] sm:$0xff]  ;;  %v1308_v20 = vld [vmem:[%s3097_s5 + $0x160] sm:$0xff] }
  0x23   : > { %v2171_v48 = vcombine.high %v347_v43, %v351_v44  ;;  %v334_v58 = vld [vmem:[%s3093_s1 + $0x30] sm:$0xff]  ;;  %v2253_v25 = vcombine.high %v1304_v19, %v1308_v20  ;;  %v1296_v27 = vld [vmem:[%s3097_s5 + $0x100] sm:$0xff] }
  0x24   : > { %v2153_v63 = vcombine.high %v330_v57, %v334_v58  ;;  %v1300_v28 = vld [vmem:[%s3097_s5 + $0x120] sm:$0xff] }
  0x25   : > { %771 = vmatpush1.bf16.msra.mxu0 %v2164_v51  ;;  %814 = vmatpush1.bf16.msra.mxu1 %v2166_v52  ;;  %v339_v51 = vld [vmem:[%s3093_s1 + $0x58] sm:$0xff]  ;;  %v2245_v33 = vcombine.high %v1296_v27, %v1300_v28  ;;  %v1288_v35 = vld [vmem:[%s3097_s5 + $0xc0] sm:$0xff] }
  0x26   : > { %772 = vmatprep.subr.bf16.mxu0 %v2157_v53  ;;  %815 = vmatprep.subr.bf16.mxu1 %v2159_v54  ;;  %v343_v52 = vld [vmem:[%s3093_s1 + $0x78] sm:$0xff]  ;;  %v2168_v53 = vcombine.low %v346_v41, %v350_v42  ;;  %v2170_v54 = vcombine.low %v347_v43, %v351_v44  ;;  %v1292_v36 = vld [vmem:[%s3097_s5 + $0xe0] sm:$0xff] }
  0x27   : > { %v2163_v56 = vcombine.high %v339_v51, %v343_v52  ;;  %v2237_v41 = vcombine.high %v1288_v35, %v1292_v36  ;;  %v1280_v43 = vld [vmem:[%s3097_s5 + $0x80] sm:$0xff] }
  0x28   : > { %v1284_v44 = vld [vmem:[%s3097_s5 + $0xa0] sm:$0xff] }
  0x29   : > { %773 = vmatpush1.bf16.msra.mxu0 %v2156_v59  ;;  %816 = vmatpush1.bf16.msra.mxu1 %v2158_v60  ;;  %v331_v59 = vld [vmem:[%s3093_s1 + $0x18] sm:$0xff] }
  0x2a   : > { %774 = vmatprep.subr.bf16.mxu0 %v2149_v61  ;;  %817 = vmatprep.subr.bf16.mxu1 %v2151_v62  ;;  %v335_v60 = vld [vmem:[%s3093_s1 + $0x38] sm:$0xff]  ;;  %v2160_v61 = vcombine.low %v338_v49, %v342_v50  ;;  %v2162_v62 = vcombine.low %v339_v51, %v343_v52  ;;  %v2229_v49 = vcombine.high %v1280_v43, %v1284_v44  ;;  %v1272_v51 = vld [vmem:[%s3097_s5 + $0x40] sm:$0xff] }
  0x2b   : > { %v2155_v0 = vcombine.high %v331_v59, %v335_v60  ;;  %v1276_v52 = vld [vmem:[%s3097_s5 + $0x60] sm:$0xff] }
  0x2d   : > { %775 = vmatpush1.bf16.msra.mxu0 %v2148_v3  ;;  %818 = vmatpush1.bf16.msra.mxu1 %v2150_v4  ;;  %v1321_v3 = vld [vmem:[%s3097_s5 + $0x1c8] sm:$0xff] }
  0x2e   : > { %846 = vmatprep.subr.bf16.mxu0 %v2209_v5  ;;  %889 = vmatprep.subr.bf16.mxu1 %v2211_v6  ;;  %v1325_v4 = vld [vmem:[%s3097_s5 + $0x1e8] sm:$0xff]  ;;  %v2152_v5 = vcombine.low %v330_v57, %v334_v58  ;;  %v2154_v6 = vcombine.low %v331_v59, %v335_v60  ;;  %v2221_v57 = vcombine.high %v1272_v51, %v1276_v52  ;;  %v1264_v59 = vld [vmem:[%s3097_s5] sm:$0xff] }
  0x2f   : > { %v2271_v9 = vcombine.high %v1321_v3, %v1325_v4  ;;  %v1268_v60 = vld [vmem:[%s3097_s5 + $0x20] sm:$0xff] }
  0x30   : > { %793 = vmatmul.mubr.bf16.vlgmr.msra.gmra.mxu0 %v2523_v10  ;;  %836 = vmatmul.mubr.bf16.vlgmr.msra.gmra.mxu1 %v2523_v10 }
  0x31   : > { %847 = vmatpush1.bf16.msra.mxu0 %v2208_v13  ;;  %890 = vmatpush1.bf16.msra.mxu1 %v2210_v14  ;;  %v1313_v13 = vld [vmem:[%s3097_s5 + $0x188] sm:$0xff] }
  0x32   : > { %848 = vmatprep.subr.bf16.mxu0 %v2201_v15  ;;  %891 = vmatprep.subr.bf16.mxu1 %v2203_v16  ;;  %v1317_v14 = vld [vmem:[%s3097_s5 + $0x1a8] sm:$0xff]  ;;  %v2268_v15 = vcombine.low %v1320_v1, %v1324_v2  ;;  %v2270_v16 = vcombine.low %v1321_v3, %v1325_v4  ;;  %v2213_v1 = vcombine.high %v1264_v59, %v1268_v60  ;;  %v1322_v3 = vld [vmem:[%s3097_s5 + $0x1d0] sm:$0xff] }
  0x33   : > { %878 = vmatprep.mubr.bf16.mxu0 %v2333_v8  ;;  %921 = vmatprep.mubr.bf16.mxu1 %v2333_v8  ;;  %v2263_v18 = vcombine.high %v1313_v13, %v1317_v14  ;;  %v1326_v4 = vld [vmem:[%s3097_s5 + $0x1f0] sm:$0xff] }
  0x35   : > { %849 = vmatpush1.bf16.msra.mxu0 %v2200_v21  ;;  %892 = vmatpush1.bf16.msra.mxu1 %v2202_v22  ;;  %v1305_v21 = vld [vmem:[%s3097_s5 + $0x148] sm:$0xff] }
  0x36   : > { %850 = vmatprep.subr.bf16.mxu0 %v2193_v23  ;;  %893 = vmatprep.subr.bf16.mxu1 %v2195_v24  ;;  %v1309_v22 = vld [vmem:[%s3097_s5 + $0x168] sm:$0xff]  ;;  %v2260_v23 = vcombine.low %v1312_v11, %v1316_v12  ;;  %v2262_v24 = vcombine.low %v1313_v13, %v1317_v14  ;;  %v2273_v11 = vcombine.high %v1322_v3, %v1326_v4  ;;  %v1314_v13 = vld [vmem:[%s3097_s5 + $0x190] sm:$0xff] }
  0x37   : > { %v2255_v26 = vcombine.high %v1305_v21, %v1309_v22  ;;  %v1318_v14 = vld [vmem:[%s3097_s5 + $0x1b0] sm:$0xff] }
  0x39   : > { %851 = vmatpush1.bf16.msra.mxu0 %v2192_v29  ;;  %894 = vmatpush1.bf16.msra.mxu1 %v2194_v30  ;;  %v1297_v29 = vld [vmem:[%s3097_s5 + $0x108] sm:$0xff] }
  0x3a   : > { %852 = vmatprep.subr.bf16.mxu0 %v2185_v31  ;;  %895 = vmatprep.subr.bf16.mxu1 %v2187_v32  ;;  %v1301_v30 = vld [vmem:[%s3097_s5 + $0x128] sm:$0xff]  ;;  %v2252_v31 = vcombine.low %v1304_v19, %v1308_v20  ;;  %v2254_v32 = vcombine.low %v1305_v21, %v1309_v22  ;;  %v2265_v19 = vcombine.high %v1314_v13, %v1318_v14  ;;  %v1306_v21 = vld [vmem:[%s3097_s5 + $0x150] sm:$0xff] }
  0x3b   : > { %v2247_v34 = vcombine.high %v1297_v29, %v1301_v30  ;;  %v1310_v22 = vld [vmem:[%s3097_s5 + $0x170] sm:$0xff] }
  0x3d   : > { %853 = vmatpush1.bf16.msra.mxu0 %v2184_v37  ;;  %896 = vmatpush1.bf16.msra.mxu1 %v2186_v38  ;;  %v1289_v37 = vld [vmem:[%s3097_s5 + $0xc8] sm:$0xff] }
  0x3e   : > { %854 = vmatprep.subr.bf16.mxu0 %v2177_v39  ;;  %897 = vmatprep.subr.bf16.mxu1 %v2179_v40  ;;  %v1293_v38 = vld [vmem:[%s3097_s5 + $0xe8] sm:$0xff]  ;;  %v2244_v39 = vcombine.low %v1296_v27, %v1300_v28  ;;  %v2246_v40 = vcombine.low %v1297_v29, %v1301_v30  ;;  %v2257_v27 = vcombine.high %v1306_v21, %v1310_v22  ;;  %v1298_v29 = vld [vmem:[%s3097_s5 + $0x110] sm:$0xff] }
  0x3f   : > { %v2239_v42 = vcombine.high %v1289_v37, %v1293_v38  ;;  %v1302_v30 = vld [vmem:[%s3097_s5 + $0x130] sm:$0xff] }
  0x41   : > { %855 = vmatpush1.bf16.msra.mxu0 %v2176_v45  ;;  %898 = vmatpush1.bf16.msra.mxu1 %v2178_v46  ;;  %v1281_v45 = vld [vmem:[%s3097_s5 + $0x88] sm:$0xff] }
  0x42   : > { %856 = vmatprep.subr.bf16.mxu0 %v2169_v47  ;;  %899 = vmatprep.subr.bf16.mxu1 %v2171_v48  ;;  %v1285_v46 = vld [vmem:[%s3097_s5 + $0xa8] sm:$0xff]  ;;  %v2236_v47 = vcombine.low %v1288_v35, %v1292_v36  ;;  %v2238_v48 = vcombine.low %v1289_v37, %v1293_v38  ;;  %v2249_v35 = vcombine.high %v1298_v29, %v1302_v30  ;;  %v1290_v37 = vld [vmem:[%s3097_s5 + $0xd0] sm:$0xff] }
  0x43   : > { %v2231_v50 = vcombine.high %v1281_v45, %v1285_v46  ;;  %v1294_v38 = vld [vmem:[%s3097_s5 + $0xf0] sm:$0xff] }
  0x45   : > { %857 = vmatpush1.bf16.msra.mxu0 %v2168_v53  ;;  %900 = vmatpush1.bf16.msra.mxu1 %v2170_v54  ;;  %v1273_v53 = vld [vmem:[%s3097_s5 + $0x48] sm:$0xff] }
  0x46   : > { %858 = vmatprep.subr.bf16.mxu0 %v2161_v55  ;;  %901 = vmatprep.subr.bf16.mxu1 %v2163_v56  ;;  %v1277_v54 = vld [vmem:[%s3097_s5 + $0x68] sm:$0xff]  ;;  %v2228_v55 = vcombine.low %v1280_v43, %v1284_v44  ;;  %v2230_v56 = vcombine.low %v1281_v45, %v1285_v46  ;;  %v1282_v44 = vld [vmem:[%s3097_s5 + $0x90] sm:$0xff]  ;;  %v1283_v46 = vld [vmem:[%s3097_s5 + $0x98] sm:$0xff] }
  0x47   : > { %v2223_v58 = vcombine.high %v1273_v53, %v1277_v54  ;;  %v1286_v45 = vld [vmem:[%s3097_s5 + $0xb0] sm:$0xff] }
  0x49   : > { %859 = vmatpush1.bf16.msra.mxu0 %v2160_v61  ;;  %902 = vmatpush1.bf16.msra.mxu1 %v2162_v62  ;;  %v1265_v61 = vld [vmem:[%s3097_s5 + $0x8] sm:$0xff] }
  0x4a   : > { %860 = vmatprep.subr.bf16.mxu0 %v2153_v63  ;;  %903 = vmatprep.subr.bf16.mxu1 %v2155_v0  ;;  %v1269_v62 = vld [vmem:[%s3097_s5 + $0x28] sm:$0xff]  ;;  %v2220_v63 = vcombine.low %v1272_v51, %v1276_v52  ;;  %v2222_v0 = vcombine.low %v1273_v53, %v1277_v54  ;;  %v1274_v52 = vld [vmem:[%s3097_s5 + $0x50] sm:$0xff]  ;;  %v1275_v54 = vld [vmem:[%s3097_s5 + $0x58] sm:$0xff] }
  0x4b   : > { %v2215_v2 = vcombine.high %v1265_v61, %v1269_v62  ;;  %v1278_v53 = vld [vmem:[%s3097_s5 + $0x70] sm:$0xff] }
  0x4d   : > { %861 = vmatpush1.bf16.msra.mxu0 %v2152_v5  ;;  %904 = vmatpush1.bf16.msra.mxu1 %v2154_v6  ;;  %v1323_v5 = vld [vmem:[%s3097_s5 + $0x1d8] sm:$0xff] }
  0x4e   : > { %1648 = vmatprep.subr.bf16.mxu0 %v2269_v7  ;;  %1691 = vmatprep.subr.bf16.mxu1 %v2271_v9  ;;  %v1327_v6 = vld [vmem:[%s3097_s5 + $0x1f8] sm:$0xff]  ;;  %v2212_v7 = vcombine.low %v1264_v59, %v1268_v60  ;;  %v2214_v9 = vcombine.low %v1265_v61, %v1269_v62  ;;  %v1266_v60 = vld [vmem:[%s3097_s5 + $0x10] sm:$0xff] }
  0x4f   : > { %v2275_v12 = vcombine.high %v1323_v5, %v1327_v6  ;;  %v1270_v61 = vld [vmem:[%s3097_s5 + $0x30] sm:$0xff]  ;;  %v1267_v62 = vld [vmem:[%s3097_s5 + $0x18] sm:$0xff] }
  0x50   : > { %879 = vmatmul.mubr.bf16.vlgmr.msra.gmra.mxu0 %v2523_v10  ;;  %922 = vmatmul.mubr.bf16.vlgmr.msra.gmra.mxu1 %v2523_v10 }
  0x51   : > { %1649 = vmatpush1.bf16.msra.mxu0 %v2268_v15  ;;  %1692 = vmatpush1.bf16.msra.mxu1 %v2270_v16  ;;  %v1315_v15 = vld [vmem:[%s3097_s5 + $0x198] sm:$0xff] }
  0x52   : > { %1650 = vmatprep.subr.bf16.mxu0 %v2261_v17  ;;  %1693 = vmatprep.subr.bf16.mxu1 %v2263_v18  ;;  %v1319_v16 = vld [vmem:[%s3097_s5 + $0x1b8] sm:$0xff]  ;;  %v2272_v17 = vcombine.low %v1322_v3, %v1326_v4  ;;  %v2274_v18 = vcombine.low %v1323_v5, %v1327_v6  ;;  %v2216_v4 = vcombine.low %v1266_v60, %v1270_v61  ;;  %v932_v6 = vld [vmem:[%s3099_s7] sm:$0xff] }
  0x53   : > { %1680 = vmatprep.mubr.bf16.mxu0 %v2333_v8  ;;  %1723 = vmatprep.mubr.bf16.mxu1 %v2333_v8  ;;  %v2267_v20 = vcombine.high %v1315_v15, %v1319_v16 }
  0x55   : > { %1651 = vmatpush1.bf16.msra.mxu0 %v2260_v23  ;;  %1694 = vmatpush1.bf16.msra.mxu1 %v2262_v24  ;;  %v1307_v23 = vld [vmem:[%s3097_s5 + $0x158] sm:$0xff] }
  0x56   : > { %1652 = vmatprep.subr.bf16.mxu0 %v2253_v25  ;;  %1695 = vmatprep.subr.bf16.mxu1 %v2255_v26  ;;  %v1311_v24 = vld [vmem:[%s3097_s5 + $0x178] sm:$0xff]  ;;  %v2264_v25 = vcombine.low %v1314_v13, %v1318_v14  ;;  %v2266_v26 = vcombine.low %v1315_v15, %v1319_v16  ;;  %v933_v13 = vld [vmem:[%s3099_s7 + $0x8] sm:$0xff] }
  0x57   : > { %v2259_v28 = vcombine.high %v1307_v23, %v1311_v24  ;;  %v2820_v14 = vmul.f32 0.03125, %v933_v13 }
  0x59   : > { %1653 = vmatpush1.bf16.msra.mxu0 %v2252_v31  ;;  %1696 = vmatpush1.bf16.msra.mxu1 %v2254_v32  ;;  %v1299_v31 = vld [vmem:[%s3097_s5 + $0x118] sm:$0xff] }
  0x5a   : > { %1654 = vmatprep.subr.bf16.mxu0 %v2245_v33  ;;  %1697 = vmatprep.subr.bf16.mxu1 %v2247_v34  ;;  %v1303_v32 = vld [vmem:[%s3097_s5 + $0x138] sm:$0xff]  ;;  %v2256_v33 = vcombine.low %v1306_v21, %v1310_v22  ;;  %v2258_v34 = vcombine.low %v1307_v23, %v1311_v24  ;;  %v394_v21 = vlaneseq }
  0x5b   : > { %v2251_v36 = vcombine.high %v1299_v31, %v1303_v32 }
  0x5d   : > { %1655 = vmatpush1.bf16.msra.mxu0 %v2244_v39  ;;  %1698 = vmatpush1.bf16.msra.mxu1 %v2246_v40  ;;  %v1295_v39 = vld [vmem:[%s3097_s5 + $0xf8] sm:$0xff]  ;;  %v2248_v40 = vcombine.low %v1298_v29, %v1302_v30 }
  0x5e   : > { %1656 = vmatprep.subr.bf16.mxu0 %v2237_v41  ;;  %1699 = vmatprep.subr.bf16.mxu1 %v2239_v42  ;;  %v2250_v41 = vcombine.low %v1299_v31, %v1303_v32  ;;  %v2241_v42 = vcombine.high %v1290_v37, %v1294_v38 }
  0x61   : > { %1657 = vmatpush1.bf16.msra.mxu0 %v2236_v47  ;;  %1700 = vmatpush1.bf16.msra.mxu1 %v2238_v48  ;;  %v1287_v47 = vld [vmem:[%s3097_s5 + $0xb8] sm:$0xff]  ;;  %v2240_v48 = vcombine.low %v1290_v37, %v1294_v38  ;;  %v2845_v37 = vld [vmem:[%s3094_s2] sm:$0xff] }
  0x62   : > { %1658 = vmatprep.subr.bf16.mxu0 %v2229_v49  ;;  %1701 = vmatprep.subr.bf16.mxu1 %v2231_v50  ;;  %v2233_v50 = vcombine.high %v1282_v44, %v1286_v45  ;;  %v2235_v51 = vcombine.high %v1283_v46, %v1287_v47 }
  0x65   : > { %1659 = vmatpush1.bf16.msra.mxu0 %v2228_v55  ;;  %1702 = vmatpush1.bf16.msra.mxu1 %v2230_v56  ;;  %v1279_v55 = vld [vmem:[%s3097_s5 + $0x78] sm:$0xff]  ;;  %v2232_v56 = vcombine.low %v1282_v44, %v1286_v45 }
  0x66   : > { %1660 = vmatprep.subr.bf16.mxu0 %v2221_v57  ;;  %1703 = vmatprep.subr.bf16.mxu1 %v2223_v58  ;;  %v2234_v57 = vcombine.low %v1283_v46, %v1287_v47  ;;  %v2225_v58 = vcombine.high %v1274_v52, %v1278_v53  ;;  %v2227_v59 = vcombine.high %v1275_v54, %v1279_v55 }
  0x69   : > { %1661 = vmatpush1.bf16.msra.mxu0 %v2220_v63  ;;  %1704 = vmatpush1.bf16.msra.mxu1 %v2222_v0  ;;  %v1271_v63 = vld [vmem:[%s3097_s5 + $0x38] sm:$0xff]  ;;  %v2224_v0 = vcombine.low %v1274_v52, %v1278_v53 }
  0x6a   : > { %1662 = vmatprep.subr.bf16.mxu0 %v2213_v1  ;;  %1705 = vmatprep.subr.bf16.mxu1 %v2215_v2  ;;  %v2226_v1 = vcombine.low %v1275_v54, %v1279_v55  ;;  %v2217_v2 = vcombine.high %v1266_v60, %v1270_v61  ;;  %v2219_v3 = vcombine.high %v1267_v62, %v1271_v63  ;;  %v2891_v60 = vld [vmem:[%s3095_s3] sm:$0xff] }
  0x6b   : > { %v2218_v5 = vcombine.low %v1267_v62, %v1271_v63 }
  0x6d   : > { %1663 = vmatpush1.bf16.msra.mxu0 %v2212_v7  ;;  %1706 = vmatpush1.bf16.msra.mxu1 %v2214_v9  ;;  %v2812_v7 = vmul.f32 0.03125, %v932_v6  ;;  %v2900_v6 = vld [vmem:[%s3096_s4] sm:$0xff] }
  0x6e   : > { %1734 = vmatprep.subr.bf16.mxu0 %v2273_v11  ;;  %1777 = vmatprep.subr.bf16.mxu1 %v2275_v12 }
  0x6f   : > { %v936_v9 = vmul.f32 %v2812_v7, %v2812_v7 }
  0x70   : > { %1681 = vmatmul.mubr.bf16.vlgmr.msra.gmra.mxu0 %v2523_v10  ;;  %1724 = vmatmul.mubr.bf16.vlgmr.msra.gmra.mxu1 %v2523_v10 }
  0x71   : > { %1735 = vmatpush1.bf16.msra.mxu0 %v2272_v17  ;;  %1778 = vmatpush1.bf16.msra.mxu1 %v2274_v18  ;;  %v940_v11 = vrot.slane %v936_v9, 7 }
  0x72   : > { %1736 = vmatprep.subr.bf16.mxu0 %v2265_v19  ;;  %1779 = vmatprep.subr.bf16.mxu1 %v2267_v20 }
  0x73   : > { %1766 = vmatprep.mubr.bf16.mxu0 %v2333_v8  ;;  %1809 = vmatprep.mubr.bf16.mxu1 %v2333_v8  ;;  %v1291_v8 = vld [vmem:[%s3097_s5 + $0xd8] sm:$0xff]  ;;  %v944_v12 = vsub.f32 %v2812_v7, %v940_v11 }
  0x74   : > { %v2243_v43 = vcombine.high %v1291_v8, %v1295_v39  ;;  %v2242_v49 = vcombine.low %v1291_v8, %v1295_v39 }
  0x75   : > { %1737 = vmatpush1.bf16.msra.mxu0 %v2264_v25  ;;  %1780 = vmatpush1.bf16.msra.mxu1 %v2266_v26  ;;  %v946_v15 = vmax.f32 %v944_v12, 0.0  ;;  %v2825_v25 = vshrl.u32 %v394_v21, 7 }
  0x76   : > { %1738 = vmatprep.subr.bf16.mxu0 %v2257_v27  ;;  %1781 = vmatprep.subr.bf16.mxu1 %v2259_v28 }
  0x77   : > { %v1038_v16 = vadd.f32 1e-05, %v946_v15  ;;  %v2828_v29 = vsub.s32 0, %v2825_v25  ;;  %v2831_v30 = vsub.s32 1, %v2825_v25  ;;  %v2834_v31 = vsub.s32 2, %v2825_v25 }
  0x78   : > { %v2837_v32 = vsub.s32 4, %v2825_v25  ;;  %v2848_v38 = vsub.s32 3, %v2825_v25  ;;  %v2851_v8 = vsub.s32 6, %v2825_v25 }
  0x79   : > { %1739 = vmatpush1.bf16.msra.mxu0 %v2256_v33  ;;  %1782 = vmatpush1.bf16.msra.mxu1 %v2258_v34  ;;  %2305 = vrsqrt.f32 %v1038_v16  ;;  %v957_v45 = vrot.slane %v2812_v7, %v2834_v31  ;;  %v397_v46 = vrot.slane %v2845_v37, %v2828_v29  ;;  %v405_v47 = vrot.slane %v2845_v37, %v2834_v31 }
  0x7a   : > { %1740 = vmatprep.subr.bf16.mxu0 %v2249_v35  ;;  %1783 = vmatprep.subr.bf16.mxu1 %v2251_v36  ;;  %v2840_v35 = vsub.s32 5, %v2825_v25  ;;  %v961_v44 = vrot.slane %v2812_v7, %v2837_v32  ;;  %v1137_v13 = vrot.slane %v2891_v60, %v2828_v29  ;;  %v1141_v16 = vrot.slane %v2891_v60, %v2831_v30 }
  0x7b   : > { %v2916_v21 = vrot.slane %v2900_v6, %v2828_v29 }
  0x7d   : > { %1741 = vmatpush1.bf16.msra.mxu0 %v2248_v40  ;;  %1784 = vmatpush1.bf16.msra.mxu1 %v2250_v41  ;;  %v2856_v40 = vsub.s32 7, %v2825_v25 }
  0x7e   : > { %1742 = vmatprep.subr.bf16.mxu0 %v2241_v42  ;;  %1785 = vmatprep.subr.bf16.mxu1 %v2243_v43  ;;  %v953_v42 = vrot.slane %v2812_v7, %v2828_v29 }
  0x81   : > { %1743 = vmatpush1.bf16.msra.mxu0 %v2240_v48  ;;  %1786 = vmatpush1.bf16.msra.mxu1 %v2242_v49  ;;  %v401_v49 = vrot.slane %v2845_v37, %v2831_v30 }
  0x82   : > { %1744 = vmatprep.subr.bf16.mxu0 %v2233_v50  ;;  %1787 = vmatprep.subr.bf16.mxu1 %v2235_v51  ;;  %v409_v50 = vrot.slane %v2845_v37, %v2848_v38  ;;  %v965_v51 = vrot.slane %v2812_v7, %v2851_v8 }
  0x85   : > { %1745 = vmatpush1.bf16.msra.mxu0 %v2232_v56  ;;  %1788 = vmatpush1.bf16.msra.mxu1 %v2234_v57  ;;  %v993_v56 = vrot.slane %v953_v42, %v2828_v29  ;;  %v1207_v42 = vrot.slane %v2900_v6, %v2848_v38 }
  0x86   : > { %1746 = vmatprep.subr.bf16.mxu0 %v2225_v58  ;;  %1789 = vmatprep.subr.bf16.mxu1 %v2227_v59  ;;  %v2306_v34 = vpop.eup %2305  ;;  %v1001_v58 = vrot.slane %v961_v44, %v2828_v29  ;;  %v997_v59 = vrot.slane %v957_v45, %v2828_v29  ;;  %v969_v45 = vrot.slane %v2820_v14, %v2828_v29 }
  0x87   : > { %v1047_v43 = vrot.slane %v2306_v34, %v2831_v30  ;;  %v1055_v48 = vrot.slane %v2306_v34, %v2840_v35  ;;  %v1051_v53 = vrot.slane %v2306_v34, %v2848_v38  ;;  %v1059_v54 = vrot.slane %v2306_v34, %v2856_v40 }
  0x89   : > { %1747 = vmatpush1.bf16.msra.mxu0 %v2224_v0  ;;  %1790 = vmatpush1.bf16.msra.mxu1 %v2226_v1  ;;  %v1087_v57 = vrot.slane %v1047_v43, %v2831_v30  ;;  %v1095_v63 = vrot.slane %v1055_v48, %v2831_v30  ;;  %v1091_v7 = vrot.slane %v1051_v53, %v2831_v30 }
  0x8a   : > { %1748 = vmatprep.subr.bf16.mxu0 %v2217_v2  ;;  %1791 = vmatprep.subr.bf16.mxu1 %v2219_v3  ;;  %v1005_v3 = vrot.slane %v965_v51, %v2828_v29  ;;  %v1099_v9 = vrot.slane %v1059_v54, %v2831_v30  ;;  %v2946_v53 = vrot.slane %v2845_v37, %v2840_v35 }
  0x8d   : > { %1749 = vmatpush1.bf16.msra.mxu0 %v2216_v4  ;;  %1792 = vmatpush1.bf16.msra.mxu1 %v2218_v5 }
  0x90   : > { %1767 = vmatmul.mubr.bf16.vlgmr.msra.gmra.mxu0 %v2523_v10  ;;  %1810 = vmatmul.mubr.bf16.vlgmr.msra.gmra.mxu1 %v2523_v10  ;;  %v937_v10 = vmul.f32 %v2820_v14, %v2820_v14 }
  0x92   : > { %v941_v17 = vrot.slane %v937_v10, 7  ;;  %v1145_v10 = vrot.slane %v2891_v60, %v2834_v31 }
  0x94   : > { %v945_v20 = vsub.f32 %v2820_v14, %v941_v17  ;;  %v1149_v17 = vrot.slane %v2891_v60, %v2848_v38 }
  0x96   : > { %v947_v24 = vmax.f32 %v945_v20, 0.0 }
  0x98   : > { %v1039_v28 = vadd.f32 1e-05, %v947_v24 }
  0x9a   : > { %2307 = vrsqrt.f32 %v1039_v28 }
  0xa7   : > { %v2308_v43 = vpop.eup %2307 }
  0xf0   : > { %v794_v18 = vpop.f32.mrf.mxu0  ;;  %v837_v19 = vpop.f32.mrf.mxu1 }
  0xf1   : > { %v795_v61 = vadd.f32 %v794_v18, %v397_v46  ;;  %v838_v62 = vadd.f32 %v837_v19, %v405_v47 }
  0xf2   : > { %v796_v22 = vpop.f32.mrf.mxu0  ;;  %v839_v23 = vpop.f32.mrf.mxu1 }
  0xf3   : > { %v797_v1 = vadd.f32 %v796_v22, %v401_v49  ;;  %v840_v2 = vadd.f32 %v839_v23, %v409_v50  ;;  %v1022_v18 = vsub.f32 %v795_v61, %v993_v56  ;;  %v1024_v19 = vsub.f32 %v838_v62, %v1001_v58 }
  0xf4   : > { %v798_v26 = vpop.f32.mrf.mxu0  ;;  %v841_v27 = vpop.f32.mrf.mxu1  ;;  %v973_v61 = vrot.slane %v2820_v14, %v2834_v31 }
  0xf5   : > { %v799_v11 = vadd.f32 %v798_v26, %v397_v46  ;;  %v842_v15 = vadd.f32 %v841_v27, %v405_v47  ;;  %v1023_v22 = vsub.f32 %v797_v1, %v997_v59  ;;  %v1025_v23 = vsub.f32 %v840_v2, %v1005_v3 }
  0xf6   : > { %v800_v33 = vpop.f32.mrf.mxu0  ;;  %v843_v36 = vpop.f32.mrf.mxu1  ;;  %v2922_v27 = vrot.slane %v2900_v6, %v2834_v31  ;;  %v2938_v46 = vrot.slane %v2845_v37, %v2851_v8  ;;  %v977_v47 = vrot.slane %v2820_v14, %v2837_v32  ;;  %v2955_v1 = vrot.slane %v2845_v37, %v2856_v40 }
  0xf7   : > { %v801_v0 = vadd.f32 %v800_v33, %v401_v49  ;;  %v844_v4 = vadd.f32 %v843_v36, %v409_v50  ;;  %v1030_v28 = vsub.f32 %v799_v11, %v993_v56  ;;  %v2926_v33 = vrot.slane %v2845_v37, %v2837_v32 }
  0xf8   : > { %v1199_v36 = vrot.slane %v2900_v6, %v2831_v30  ;;  %v1032_v44 = vsub.f32 %v842_v15, %v1001_v58  ;;  %v1116_v49 = vmul.f32 %v1087_v57, %v1022_v18  ;;  %v1118_v50 = vmul.f32 %v1095_v63, %v1024_v19 }
  0xf9   : > { %v1031_v20 = vsub.f32 %v801_v0, %v997_v59  ;;  %v1033_v24 = vsub.f32 %v844_v4, %v1005_v3  ;;  %v1117_v56 = vmul.f32 %v1091_v7, %v1023_v22  ;;  %v1119_v58 = vmul.f32 %v1099_v9, %v1025_v23 }
  0xfa   : > { %v1124_v62 = vmul.f32 %v1087_v57, %v1030_v28  ;;  %v1063_v0 = vrot.slane %v2308_v43, %v2831_v30  ;;  %v981_v2 = vrot.slane %v2820_v14, %v2851_v8  ;;  %v1126_v3 = vmul.f32 %v1095_v63, %v1032_v44 }
  0xfb   : > { %v1125_v51 = vmul.f32 %v1091_v7, %v1031_v20  ;;  %v1127_v59 = vmul.f32 %v1099_v9, %v1033_v24  ;;  %v1071_v4 = vrot.slane %v2308_v43, %v2840_v35  ;;  %v1067_v7 = vrot.slane %v2308_v43, %v2848_v38 }
  0xfc   : > { %v1075_v9 = vrot.slane %v2308_v43, %v2856_v40  ;;  %v2963_v15 = vrot.slane %v969_v45, %v2828_v29  ;;  %v1174_v57 = vmul.f32 %v1137_v13, %v1116_v49  ;;  %v1176_v18 = vmul.f32 %v1145_v10, %v1118_v50 }
  0xfd   : > { %v1183_v20 = vmul.f32 %v1141_v16, %v1125_v51  ;;  %v2966_v37 = vrot.slane %v977_v47, %v2828_v29  ;;  %v1175_v22 = vmul.f32 %v1141_v16, %v1117_v56  ;;  %v1177_v14 = vmul.f32 %v1149_v17, %v1119_v58 }
  0xfe   : > { %v1185_v63 = vmul.f32 %v1149_v17, %v1127_v59  ;;  %v2969_v23 = vrot.slane %v1063_v0, %v2831_v30  ;;  %v2972_v24 = vrot.slane %v973_v61, %v2828_v29  ;;  %v2975_v28 = vrot.slane %v981_v2, %v2828_v29  ;;  %v2989_v17 = vld [vmem:[%s3098_s6] sm:$0xff] }
  0xff   : > { %v1182_v43 = vmul.f32 %v1137_v13, %v1124_v62  ;;  %v2978_v44 = vrot.slane %v1071_v4, %v2831_v30  ;;  %v2981_v45 = vrot.slane %v1067_v7, %v2831_v30  ;;  %v2984_v16 = vrot.slane %v1075_v9, %v2831_v30 }
 0x100   : > { %v1184_v49 = vmul.f32 %v1145_v10, %v1126_v3  ;;  %v1232_v50 = vadd.f32 %v2916_v21, %v1174_v57  ;;  %v1234_v13 = vadd.f32 %v2922_v27, %v1176_v18  ;;  %v1241_v56 = vadd.f32 %v1199_v36, %v1183_v20 }
 0x101   : > { %v2995_v58 = vrot.slane %v2891_v60, %v2837_v32  ;;  %v1233_v59 = vadd.f32 %v1199_v36, %v1175_v22  ;;  %v1235_v61 = vadd.f32 %v1207_v42, %v1177_v14  ;;  %v1243_v62 = vadd.f32 %v1207_v42, %v1185_v63 }
 0x102   : > { %v2999_v0 = vrot.slane %v2891_v60, %v2851_v8  ;;  %v1841_v10 = vrot.slane %v2989_v17, %v2828_v29  ;;  %v1240_v2 = vadd.f32 %v2916_v21, %v1182_v43  ;;  %v3006_v3 = vrot.slane %v2891_v60, %v2840_v35 }
 0x103   : > { %v3010_v4 = vrot.slane %v2891_v60, %v2856_v40  ;;  %v1849_v36 = vrot.slane %v2989_v17, %v2834_v31  ;;  %v1845_v42 = vrot.slane %v2989_v17, %v2831_v30  ;;  %v1853_v7 = vrot.slane %v2989_v17, %v2848_v38 }
 0x104   : > { %v1242_v29 = vadd.f32 %v2922_v27, %v1184_v49  ;;  %v1248_v57 = vmax.f32 %v1232_v50, 0.0  ;;  %v1250_v18 = vmax.f32 %v1234_v13, 0.0  ;;  %v1257_v20 = vmax.f32 %v1241_v56, 0.0 }
 0x105   : > { %v1249_v31 = vmax.f32 %v1233_v59, 0.0  ;;  %v1251_v14 = vmax.f32 %v1235_v61, 0.0  ;;  %v1259_v63 = vmax.f32 %v1243_v62, 0.0  ;;  %v1256_v27 = vmax.f32 %v1240_v2, 0.0 }
 0x106   : > { %v1258_v50 = vmax.f32 %v1242_v29, 0.0 }
 0x110   : > { %v2853_v39 = vpop.f32.mrf.mxu0  ;;  %v2858_v41 = vpop.f32.mrf.mxu1 }
 0x111   : > { %v881_v9 = vadd.f32 %v2853_v39, %v2926_v33  ;;  %v924_v22 = vadd.f32 %v2858_v41, %v2938_v46 }
 0x112   : > { %v2878_v52 = vpop.f32.mrf.mxu0  ;;  %v2882_v55 = vpop.f32.mrf.mxu1 }
 0x113   : > { %v883_v30 = vadd.f32 %v2878_v52, %v2946_v53  ;;  %v926_v39 = vadd.f32 %v2882_v55, %v2955_v1  ;;  %v1026_v41 = vsub.f32 %v881_v9, %v2963_v15  ;;  %v1028_v61 = vsub.f32 %v924_v22, %v2966_v37 }
 0x114   : > { %v2895_v5 = vpop.f32.mrf.mxu0  ;;  %v2904_v12 = vpop.f32.mrf.mxu1 }
 0x115   : > { %v885_v38 = vadd.f32 %v2895_v5, %v2926_v33  ;;  %v928_v49 = vadd.f32 %v2904_v12, %v2938_v46  ;;  %v1027_v55 = vsub.f32 %v883_v30, %v2972_v24  ;;  %v1029_v29 = vsub.f32 %v926_v39, %v2975_v28 }
 0x116   : > { %v2918_v26 = vpop.f32.mrf.mxu0  ;;  %v2928_v34 = vpop.f32.mrf.mxu1 }
 0x117   : > { %v887_v56 = vadd.f32 %v2918_v26, %v2946_v53  ;;  %v930_v5 = vadd.f32 %v2928_v34, %v2955_v1  ;;  %v1034_v12 = vsub.f32 %v885_v38, %v2963_v15  ;;  %v1036_v26 = vsub.f32 %v928_v49, %v2966_v37 }
 0x118   : > { %v1121_v9 = vmul.f32 %v2981_v45, %v1027_v55 }
 0x119   : > { %v1035_v34 = vsub.f32 %v887_v56, %v2972_v24  ;;  %v1037_v15 = vsub.f32 %v930_v5, %v2975_v28  ;;  %v1211_v28 = vrot.slane %v2900_v6, %v2837_v32 }
 0x130   : > { %v2942_v48 = vpop.f32.mrf.mxu0  ;;  %v2948_v54 = vpop.f32.mrf.mxu1 }
 0x131   : > { %v1820_v46 = vadd.f32 %v2942_v48, %v1248_v57  ;;  %v1822_v53 = vadd.f32 %v2948_v54, %v1250_v18  ;;  %v1128_v57 = vmul.f32 %v2969_v23, %v1034_v12  ;;  %v1123_v54 = vmul.f32 %v2984_v16, %v1029_v29 }
 0x132   : > { %v1684_v11 = vpop.f32.mrf.mxu0  ;;  %v1727_v19 = vpop.f32.mrf.mxu1  ;;  %v1130_v18 = vmul.f32 %v2978_v44, %v1036_v26  ;;  %v1861_v12 = vrot.slane %v2989_v17, %v2840_v35 }
 0x133   : > { %v1821_v59 = vadd.f32 %v1684_v11, %v1249_v31  ;;  %v1823_v33 = vadd.f32 %v1727_v19, %v1251_v14  ;;  %v1878_v37 = vadd.f32 %v1841_v10, %v1820_v46  ;;  %v1181_v38 = vmul.f32 %v3010_v4, %v1123_v54 }
 0x134   : > { %v1686_v47 = vpop.f32.mrf.mxu0  ;;  %v1729_v51 = vpop.f32.mrf.mxu1 }
 0x135   : > { %v1828_v52 = vadd.f32 %v1686_v47, %v1256_v27  ;;  %v1830_v62 = vadd.f32 %v1729_v51, %v1258_v50  ;;  %v1120_v47 = vmul.f32 %v2969_v23, %v1026_v41  ;;  %v1879_v1 = vadd.f32 %v1845_v42, %v1821_v59 }
 0x136   : > { %v1688_v21 = vpop.f32.mrf.mxu0  ;;  %v1731_v60 = vpop.f32.mrf.mxu1  ;;  %v1122_v51 = vmul.f32 %v2978_v44, %v1028_v61  ;;  %v1179_v44 = vmul.f32 %v3006_v3, %v1121_v9  ;;  %v1188_v27 = vmul.f32 %v2999_v0, %v1130_v18 }
 0x137   : > { %v1829_v43 = vadd.f32 %v1688_v21, %v1257_v20  ;;  %v1831_v13 = vadd.f32 %v1731_v60, %v1259_v63  ;;  %v1886_v19 = vadd.f32 %v1841_v10, %v1828_v52  ;;  %v1881_v21 = vadd.f32 %v1853_v7, %v1823_v33 }
 0x138   : > { %v1888_v48 = vadd.f32 %v1849_v36, %v1830_v62  ;;  %v1880_v60 = vadd.f32 %v1849_v36, %v1822_v53  ;;  %v1178_v31 = vmul.f32 %v2995_v58, %v1120_v47  ;;  %v1180_v23 = vmul.f32 %v2999_v0, %v1122_v51 }
 0x139   : > { %v1887_v2 = vadd.f32 %v1845_v42, %v1829_v43  ;;  %v1889_v11 = vadd.f32 %v1853_v7, %v1831_v13  ;;  %v1129_v42 = vmul.f32 %v2981_v45, %v1035_v34  ;;  %v1894_v22 = vmax.f32 %v1878_v37, %v1886_v19 }
 0x13a   : > { %v1131_v7 = vmul.f32 %v2984_v16, %v1037_v15  ;;  %v1908_v14 = vmax.f32 %v1880_v60, %v1888_v48  ;;  %v1219_v10 = vrot.slane %v2900_v6, %v2851_v8  ;;  %v1215_v45 = vrot.slane %v2900_v6, %v2840_v35 }
 0x13b   : > { %v1901_v20 = vmax.f32 %v1879_v1, %v1887_v2  ;;  %v1915_v24 = vmax.f32 %v1881_v21, %v1889_v11  ;;  %v1186_v36 = vmul.f32 %v2995_v58, %v1128_v57  ;;  %v1223_v16 = vrot.slane %v2900_v6, %v2856_v40 }
 0x13c   : > { %v1895_v43 = vrot.slane %v1894_v22, 4  ;;  %v1236_v39 = vadd.f32 %v1211_v28, %v1178_v31  ;;  %v1187_v49 = vmul.f32 %v3006_v3, %v1129_v42  ;;  %v1909_v50 = vrot.slane %v1908_v14, 4 }
 0x13d   : > { %v1902_v63 = vrot.slane %v1901_v20, 4  ;;  %v1916_v30 = vrot.slane %v1915_v24, 4  ;;  %v1238_v13 = vadd.f32 %v1219_v10, %v1180_v23  ;;  %v1189_v41 = vmul.f32 %v3010_v4, %v1131_v7 }
 0x13e   : > { %v1857_v58 = vrot.slane %v2989_v17, %v2837_v32  ;;  %v1237_v59 = vadd.f32 %v1215_v45, %v1179_v44  ;;  %v1244_v52 = vadd.f32 %v1211_v28, %v1186_v36  ;;  %v1865_v6 = vrot.slane %v2989_v17, %v2851_v8 }
 0x13f   : > { %v1903_v56 = vmax.f32 %v1901_v20, %v1902_v63  ;;  %v1917_v61 = vmax.f32 %v1915_v24, %v1916_v30  ;;  %v1239_v0 = vadd.f32 %v1223_v16, %v1181_v38  ;;  %v1246_v33 = vadd.f32 %v1219_v10, %v1188_v27 }
 0x140   : > { %v1896_v62 = vmax.f32 %v1894_v22, %v1895_v43  ;;  %v1252_v55 = vmax.f32 %v1236_v39, 0.0  ;;  %v1245_v4 = vadd.f32 %v1215_v45, %v1187_v49  ;;  %v1910_v46 = vmax.f32 %v1908_v14, %v1909_v50 }
 0x141   : > { %v1254_v2 = vmax.f32 %v1238_v13, 0.0  ;;  %v1869_v32 = vrot.slane %v2989_v17, %v2856_v40  ;;  %v1247_v26 = vadd.f32 %v1223_v16, %v1189_v41  ;;  %v1904_v53 = vrot.slane %v1903_v56, 2 }
 0x142   : > { %v1253_v47 = vmax.f32 %v1237_v59, 0.0  ;;  %v1260_v34 = vmax.f32 %v1244_v52, 0.0  ;;  %v1918_v1 = vrot.slane %v1917_v61, 2  ;;  %v1255_v51 = vmax.f32 %v1239_v0, 0.0 }
 0x143   : > { %v1262_v21 = vmax.f32 %v1246_v33, 0.0  ;;  %v1897_v48 = vrot.slane %v1896_v62, 2  ;;  %v1261_v37 = vmax.f32 %v1245_v4, 0.0  ;;  %v1911_v20 = vrot.slane %v1910_v46, 2 }
 0x144   : > { %v1263_v17 = vmax.f32 %v1247_v26, 0.0  ;;  %v1905_v60 = vmax.f32 %v1903_v56, %v1904_v53  ;;  %v1919_v28 = vmax.f32 %v1917_v61, %v1918_v1  ;;  %v2334_v27 = vmov 1966171168  }
 0x145   : > { %v1898_v10 = vmax.f32 %v1896_v62, %v1897_v48  ;;  %v1912_v36 = vmax.f32 %v1910_v46, %v1911_v20  ;;  %v1967_v43 = vunpack.c.l.s4 %v2334_v27 }
 0x146   : > { %v1906_v50 = vrot.slane %v1905_v60, 1  ;;  %v1920_v13 = vrot.slane %v1919_v28, 1 }
 0x147   : > { %v1899_v52 = vrot.slane %v1898_v10, 1  ;;  %v1913_v61 = vrot.slane %v1912_v36, 1  ;;  %v1968_v0 = vunpack.c.0.s8 %v1967_v43 }
 0x150   : > { %v1768_v5 = vpop.f32.mrf.mxu0  ;;  %v1811_v3 = vpop.f32.mrf.mxu1 }
 0x151   : > { %v1824_v11 = vadd.f32 %v1768_v5, %v1252_v55  ;;  %v1826_v19 = vadd.f32 %v1811_v3, %v1254_v2  ;;  %v1907_v55 = vmax.f32 %v1905_v60, %v1906_v50  ;;  %v1921_v3 = vmax.f32 %v1919_v28, %v1920_v13 }
 0x152   : > { %v1770_v29 = vpop.f32.mrf.mxu0  ;;  %v1813_v8 = vpop.f32.mrf.mxu1 }
 0x153   : > { %v1825_v35 = vadd.f32 %v1770_v29, %v1253_v47  ;;  %v1827_v54 = vadd.f32 %v1813_v8, %v1255_v51  ;;  %v1882_v24 = vadd.f32 %v1857_v58, %v1824_v11  ;;  %v1884_v7 = vadd.f32 %v1865_v6, %v1826_v19 }
 0x154   : > { %v1772_v15 = vpop.f32.mrf.mxu0  ;;  %v1815_v57 = vpop.f32.mrf.mxu1  ;;  %v1900_v29 = vmax.f32 %v1898_v10, %v1899_v52  ;;  %v1971_v11 = vsub.s32 %v1968_v0, %v2825_v25 }
 0x155   : > { %v1832_v9 = vadd.f32 %v1772_v15, %v1260_v34  ;;  %v1834_v18 = vadd.f32 %v1815_v57, %v1262_v21  ;;  %v1883_v63 = vadd.f32 %v1861_v12, %v1825_v35  ;;  %v1885_v30 = vadd.f32 %v1869_v32, %v1827_v54 }
 0x156   : > { %v1774_v40 = vpop.f32.mrf.mxu0  ;;  %v1817_v31 = vpop.f32.mrf.mxu1  ;;  %v1962_v34 = vcombine.low %v1900_v29, %v1907_v55 }
 0x157   : > { %v1890_v42 = vadd.f32 %v1857_v58, %v1832_v9  ;;  %v1833_v22 = vadd.f32 %v1774_v40, %v1261_v37  ;;  %v1892_v14 = vadd.f32 %v1865_v6, %v1834_v18  ;;  %v1835_v23 = vadd.f32 %v1817_v31, %v1263_v17 }
 0x158   : > { %v1972_v9 = vrot.slane %v1962_v34, %v1971_v11 }
 0x159   : > { %v1922_v44 = vmax.f32 %v1882_v24, %v1890_v42  ;;  %v1891_v45 = vadd.f32 %v1861_v12, %v1833_v22  ;;  %v1936_v38 = vmax.f32 %v1884_v7, %v1892_v14  ;;  %v1893_v16 = vadd.f32 %v1869_v32, %v1835_v23 }
 0x15a   : > { %v1914_v32 = vmax.f32 %v1912_v36, %v1913_v61 }
 0x15b   : > { %v1923_v39 = vrot.slane %v1922_v44, 4  ;;  %v1929_v49 = vmax.f32 %v1883_v63, %v1891_v45  ;;  %v1937_v41 = vrot.slane %v1936_v38, 4  ;;  %v1943_v56 = vmax.f32 %v1885_v30, %v1893_v16 }
 0x15c   : > { %v1963_v1 = vcombine.low %v1914_v32, %v1921_v3 }
 0x15d   : > { %v1924_v58 = vmax.f32 %v1922_v44, %v1923_v39  ;;  %v1930_v59 = vrot.slane %v1929_v49, 4  ;;  %v1938_v5 = vmax.f32 %v1936_v38, %v1937_v41  ;;  %v1944_v6 = vrot.slane %v1943_v56, 4 }
 0x15e   : > { %v1979_v57 = vrot.slane %v1963_v1, %v1971_v11 }
 0x15f   : > { %v1925_v33 = vrot.slane %v1924_v58, 2  ;;  %v1931_v62 = vmax.f32 %v1929_v49, %v1930_v59  ;;  %v1939_v12 = vrot.slane %v1938_v5, 2  ;;  %v1945_v4 = vmax.f32 %v1943_v56, %v1944_v6 }
 0x160   : > { %v1994_v40 = vcombine.low %v1972_v9, %v1979_v57 }
 0x161   : > { %v1926_v46 = vmax.f32 %v1924_v58, %v1925_v33  ;;  %v1932_v2 = vrot.slane %v1931_v62, 2  ;;  %v1940_v26 = vmax.f32 %v1938_v5, %v1939_v12  ;;  %v1946_v53 = vrot.slane %v1945_v4, 2 }
 0x162   : > { %v2002_v24 = vrot.slane %v1994_v40, %v1971_v11 }
 0x163   : > { %v1927_v47 = vrot.slane %v1926_v46, 1  ;;  %v1933_v8 = vmax.f32 %v1931_v62, %v1932_v2  ;;  %v1941_v19 = vrot.slane %v1940_v26, 1  ;;  %v1947_v51 = vmax.f32 %v1945_v4, %v1946_v53 }
 0x165   : > { %v1934_v15 = vrot.slane %v1933_v8, 1  ;;  %v1948_v21 = vrot.slane %v1947_v51, 1  ;;  %v1928_v48 = vmax.f32 %v1926_v46, %v1927_v47  ;;  %v1942_v37 = vmax.f32 %v1940_v26, %v1941_v19 }
 0x167   : > { %v1935_v35 = vmax.f32 %v1933_v8, %v1934_v15  ;;  %v1949_v20 = vmax.f32 %v1947_v51, %v1948_v21 }
 0x169   : > { %v1964_v54 = vcombine.low %v1928_v48, %v1935_v35  ;;  %v1965_v18 = vcombine.low %v1942_v37, %v1949_v20 }
 0x16b   : > { %v1986_v25 = vrot.slane %v1964_v54, %v1971_v11  ;;  %v1993_v17 = vrot.slane %v1965_v18, %v1971_v11 }
 0x16d   : > { %v1995_v60 = vcombine.low %v1986_v25, %v1993_v17 }
 0x16f   : > { %v2009_v42 = vrot.slane %v1995_v60, %v1971_v11 }
 0x171   : > { %v2010_v22 = vcombine.low %v2002_v24, %v2009_v42 }
 0x173   : > { %2012 = vst [vmem:[%s324_s18] sm:$0xff] %v2010_v22 }
 0x174 PF: > { %s18_s29 = sadd.s32 1, %s2331_s29   ;;  %s3101_s27 = smov %s2327_s28 }
 0x175   : > { %p15_p6 = scmp.ge.s32.totalorder %s18_s29, 4   ;;  %s3102_s28 = smov %s3104_s30 }
 0x177   :  { %17 = sbr.rel (!%p15_p6) target bundleno = 2 (0x2), region = 90 }

</bundles_post_ra>
